<compile_context>
chip_gen: v5e
topology: v5e:2x2
jax: 0.10.0
libtpu: 0.0.40
codegen_flags: <defaults>
</compile_context>

<pallas_src>
import functools

import numpy as np
import jax
import jax.numpy as jnp
from jax.experimental import pallas as pl
from jax.experimental.pallas import tpu as pltpu

_BN_EPS = 1e-5
_BN_SCALE = np.float32(1.0 / np.sqrt(1.0 + _BN_EPS))   # eval-mode BN with fresh stats
_VMEM_LIMIT = 32 * 1024 * 1024


def _round_up(x, m):
    return ((x + m - 1) // m) * m


def _pad_kn(K, N):
    """Padded (K, N) for MXU layout.  K tiles of 512, N tiles of 256."""
    Kp = _round_up(max(K, 128), 128)
    if Kp > 512:
        Kp = _round_up(Kp, 512)
    Np = _round_up(max(N, 128), 128)
    if Np > 256:
        Np = _round_up(Np, 256)
    return Kp, Np


# ----------------------------------------------------------------------------
# Architecture table: name -> (cout, k, stride, pad, dilation, bn, act)
# (inc0/inc1a/inc2a are fused into "inc_head"; att0/att1 live in the fused
#  attention kernel; fc layers live in the fused FC-head kernel.)
# ----------------------------------------------------------------------------
_CONV_CFG = {
    "stem":     (32,  3, 2, 1, 1, True, "relu"),
    "pyr0":     (16,  3, 1, 1, 1, True, "relu"),
    "pyr1":     (16,  5, 1, 2, 1, True, "relu"),
    "pyr2":     (16,  7, 1, 3, 1, True, "relu"),
    "pyr3":     (16,  1, 1, 0, 1, True, "relu"),
    "down1":    (128, 3, 2, 1, 1, True, "relu"),
    "inc_head": (112, 1, 1, 0, 1, True, "relu"),   # inc0(32)|inc1a(48)|inc2a(32)
    "inc1b":    (64,  3, 1, 1, 1, True, "relu"),
    "inc2b":    (48,  5, 1, 2, 1, True, "relu"),
    "inc3":     (32,  1, 1, 0, 1, True, "relu"),
    "down2":    (256, 3, 2, 1, 1, True, "relu"),
    "down3a":   (384, 3, 2, 1, 1, True, "relu"),
    "down3b":   (384, 3, 1, 2, 2, True, "relu"),
    "fp":       (512, 3, 2, 1, 1, True, "relu"),
}


# ----------------------------------------------------------------------------
# Tiled bf16 matmul + bias + activation kernel (M,N parallel; K reduction)
# ----------------------------------------------------------------------------
def _mm_kernel(x_ref, w_ref, b_ref, o_ref, acc_ref, *, act, nk):
    @pl.when(pl.program_id(2) == 0)
    def _init():
        acc_ref[...] = jnp.zeros_like(acc_ref)

    acc_ref[...] += jnp.dot(x_ref[...], w_ref[...],
                            preferred_element_type=jnp.float32)

    @pl.when(pl.program_id(2) == nk - 1)
    def _finalize():
        acc = acc_ref[...] + b_ref[...]          # (1, tn) broadcasts over rows
        if act == "relu":
            acc = jnp.maximum(acc, 0.0)
        elif act == "sigmoid":
            acc = pl.reciprocal(1.0 + jnp.exp(-acc), approx=True)
        o_ref[...] = acc.astype(o_ref.dtype)


def matmul_bias_act(x, w_pad, b_pad, n_out, act="relu", out_dtype=jnp.bfloat16):
    """out[:M,:n_out] = act(x @ w + b).  `w_pad`/`b_pad` are pre-padded bf16/f32
    weights produced by prepare_params; only the activation is padded here."""
    M, K = x.shape
    Kp, Np = w_pad.shape

    Mp0 = _round_up(max(M, 16), 16)
    tm = Mp0 if Mp0 <= 256 else 256
    Mp = _round_up(Mp0, tm)
    tk = Kp if Kp <= 512 else 512
    tn = Np if Np <= 256 else 256
    nk = Kp // tk

    xp = jnp.pad(x.astype(jnp.bfloat16), ((0, Mp - M), (0, Kp - K)))

    out = pl.pallas_call(
        functools.partial(_mm_kernel, act=act, nk=nk),
        out_shape=jax.ShapeDtypeStruct((Mp, Np), out_dtype),
        grid_spec=pltpu.PrefetchScalarGridSpec(
            num_scalar_prefetch=0,
            grid=(Mp // tm, Np // tn, nk),
            in_specs=[
                pl.BlockSpec((tm, tk), lambda i, j, k: (i, k)),
                pl.BlockSpec((tk, tn), lambda i, j, k: (k, j)),
                pl.BlockSpec((1, tn), lambda i, j, k: (0, j)),
            ],
            out_specs=pl.BlockSpec((tm, tn), lambda i, j, k: (i, j)),
            scratch_shapes=[pltpu.VMEM((tm, tn), jnp.float32)],
        ),
        compiler_params=pltpu.CompilerParams(
            dimension_semantics=("parallel", "parallel", "arbitrary"),
            vmem_limit_bytes=_VMEM_LIMIT),
    )(xp, w_pad, b_pad)
    return out[:M, :n_out]


# ----------------------------------------------------------------------------
# Fused attention kernel: att = sigmoid(relu(x@W0+b0)@W1+b1[:,0]); out = x*att
# ----------------------------------------------------------------------------
def _attention_kernel(x_ref, w0_ref, b0_ref, w1_ref, b1_ref, o_ref):
    x = x_ref[...]
    h = jnp.dot(x, w0_ref[...], preferred_element_type=jnp.float32) + b0_ref[...]
    h = jnp.maximum(h, 0.0).astype(jnp.bfloat16)
    s = jnp.dot(h, w1_ref[...], preferred_element_type=jnp.float32) + b1_ref[...]
    att = pl.reciprocal(1.0 + jnp.exp(-s[:, 0:1]), approx=True)   # (M, 1) gate
    o_ref[...] = (x.astype(jnp.float32) * att).astype(o_ref.dtype)


def attention_apply(x_nhwc, w0, b0, w1, b1):
    N, H, W, C = x_nhwc.shape
    M = N * H * W
    Mp = _round_up(max(M, 16), 16)
    Cp = w0.shape[0]
    xf = jnp.pad(x_nhwc.reshape(M, C).astype(jnp.bfloat16),
                 ((0, Mp - M), (0, Cp - C)))

    def fs(shape):
        return pl.BlockSpec(shape, lambda i: (0, 0))

    out = pl.pallas_call(
        _attention_kernel,
        out_shape=jax.ShapeDtypeStruct((Mp, Cp), jnp.bfloat16),
        grid=(1,),
        in_specs=[fs(xf.shape), fs(w0.shape), fs(b0.shape),
                  fs(w1.shape), fs(b1.shape)],
        out_specs=fs((Mp, Cp)),
        compiler_params=pltpu.CompilerParams(
            dimension_semantics=("arbitrary",),
            vmem_limit_bytes=_VMEM_LIMIT),
    )(xf, w0, b0, w1, b1)
    return out[:M, :C].reshape(N, H, W, C)


# ----------------------------------------------------------------------------
# Fused FC head kernel: fc1+BN+ReLU -> fc2+BN+ReLU -> fc3   (dropout = identity)
# ----------------------------------------------------------------------------
def _fc_head_kernel(f_ref, w1_ref, b1_ref, w2_ref, b2_ref, w3_ref, b3_ref, o_ref):
    h = jnp.dot(f_ref[...], w1_ref[...], preferred_element_type=jnp.float32) + b1_ref[...]
    h = jnp.maximum(h, 0.0).astype(jnp.bfloat16)
    h = jnp.dot(h, w2_ref[...], preferred_element_type=jnp.float32) + b2_ref[...]
    h = jnp.maximum(h, 0.0).astype(jnp.bfloat16)
    o_ref[...] = jnp.dot(h, w3_ref[...], preferred_element_type=jnp.float32) + b3_ref[...]


def fc_head(feat, w1, b1, w2, b2, w3, b3, num_classes):
    B, F = feat.shape
    Mp = _round_up(max(B, 16), 16)
    fpad = jnp.pad(feat.astype(jnp.bfloat16), ((0, Mp - B), (0, 0)))
    N3p = w3.shape[1]

    def fs(shape):
        return pl.BlockSpec(shape, lambda i: (0, 0))

    out = pl.pallas_call(
        _fc_head_kernel,
        out_shape=jax.ShapeDtypeStruct((Mp, N3p), jnp.float32),
        grid=(1,),
        in_specs=[fs(fpad.shape), fs(w1.shape), fs(b1.shape),
                  fs(w2.shape), fs(b2.shape), fs(w3.shape), fs(b3.shape)],
        out_specs=fs((Mp, N3p)),
        compiler_params=pltpu.CompilerParams(
            dimension_semantics=("arbitrary",),
            vmem_limit_bytes=_VMEM_LIMIT),
    )(fpad, w1, b1, w2, b2, w3, b3)
    return out[:B, :num_classes]


# ----------------------------------------------------------------------------
# Plain-JAX glue: im2col (k>1 only), max-pool
# ----------------------------------------------------------------------------
def _im2col(x, kh, kw, stride, padding, dilation=1):
    """x: (N,H,W,C) -> patches (N*OH*OW, kh*kw*C), column order (kh, kw, C)."""
    N, H, W, C = x.shape
    xp = jnp.pad(x, ((0, 0), (padding, padding), (padding, padding), (0, 0)))
    eff_kh = dilation * (kh - 1) + 1
    eff_kw = dilation * (kw - 1) + 1
    OH = (H + 2 * padding - eff_kh) // stride + 1
    OW = (W + 2 * padding - eff_kw) // stride + 1
    chunks = []
    for i in range(kh):
        for j in range(kw):
            sl = xp[:,
                    i * dilation: i * dilation + (OH - 1) * stride + 1: stride,
                    j * dilation: j * dilation + (OW - 1) * stride + 1: stride,
                    :]
            chunks.append(sl)
    patches = jnp.concatenate(chunks, axis=-1)          # (N, OH, OW, kh*kw*C)
    return patches.reshape(N * OH * OW, kh * kw * C), OH, OW


def _maxpool3x3_s1_p1(x):
    N, H, W, C = x.shape
    xp = jnp.pad(x, ((0, 0), (1, 1), (1, 1), (0, 0)), constant_values=-jnp.inf)
    out = jnp.full_like(x, -jnp.inf)
    for i in range(3):
        for j in range(3):
            out = jnp.maximum(out, xp[:, i:i + H, j:j + W, :])
    return out


# ----------------------------------------------------------------------------
# Conv block = (reshape | im2col) + Pallas tiled matmul (BN folded, act fused)
# ----------------------------------------------------------------------------
def conv_block(p, name, x):
    cout, k, stride, pad, dil, _bn, act = _CONV_CFG[name]
    w = p[name + "_w"]
    b = p[name + "_b"]
    nb = x.shape[0]
    if k == 1 and stride == 1 and pad == 0:
        _, H, W, C = x.shape
        patches = x.reshape(nb * H * W, C)               # no im2col for 1x1
        oh, ow = H, W
    else:
        patches, oh, ow = _im2col(x, k, k, stride, pad, dil)
    out = matmul_bias_act(patches, w, b, n_out=cout, act=act)
    return out.reshape(nb, oh, ow, cout)


# ----------------------------------------------------------------------------
# Parameter init (PyTorch-like raw layout) and one-time MXU-layout preparation
# ----------------------------------------------------------------------------
def _kaiming_conv(key, cout, cin, k):
    fan_out = cout * k * k
    return jax.random.normal(key, (cout, cin, k, k), jnp.float32) * np.sqrt(2.0 / fan_out)


def _kaiming_linear(key, out_f, in_f):
    return jax.random.normal(key, (out_f, in_f), jnp.float32) * np.sqrt(2.0 / out_f)


def init_params(key, num_classes=10):
    keys = iter(jax.random.split(key, 64))
    p = {}

    def conv_p(name, cout, cin, k, bias=True):
        p[name + "_w"] = _kaiming_conv(next(keys), cout, cin, k)
        if bias:
            p[name + "_b"] = jnp.zeros((cout,), jnp.float32)

    conv_p("stem", 32, 3, 3, bias=False)
    conv_p("pyr0", 16, 32, 3)
    conv_p("pyr1", 16, 32, 5)
    conv_p("pyr2", 16, 32, 7)
    conv_p("pyr3", 16, 32, 1)
    conv_p("down1", 128, 64, 3)
    conv_p("inc0", 32, 128, 1)
    conv_p("inc1a", 48, 128, 1)
    conv_p("inc1b", 64, 48, 3)
    conv_p("inc2a", 32, 128, 1)
    conv_p("inc2b", 48, 32, 5)
    conv_p("inc3", 32, 128, 1)
    conv_p("down2", 256, 176, 3)
    conv_p("att0", 64, 256, 1)
    conv_p("att1", 1, 64, 1)
    conv_p("down3a", 384, 256, 3)
    conv_p("down3b", 384, 384, 3)
    conv_p("fp", 512, 384, 3)

    p["fc1_w"] = _kaiming_linear(next(keys), 512, 1024)
    p["fc1_b"] = jnp.zeros((512,), jnp.float32)
    p["fc2_w"] = _kaiming_linear(next(keys), 256, 512)
    p["fc2_b"] = jnp.zeros((256,), jnp.float32)
    p["fc3_w"] = _kaiming_linear(next(keys), num_classes, 256)
    p["fc3_b"] = jnp.zeros((num_classes,), jnp.float32)
    return p


def prepare_params(raw, num_classes=10):
    """One-time: fold BN, transpose to (kh*kw*cin, cout), pad to MXU layout, bf16."""
    p = {}

    def conv_prep(name, w, b, bn):
        if bn:
            w = w * _BN_SCALE
            b = b * _BN_SCALE
        cout, cin, kh, kw = w.shape
        w2 = jnp.transpose(w, (2, 3, 1, 0)).reshape(kh * kw * cin, cout)
        K, N = w2.shape
        Kp, Np = _pad_kn(K, N)
        p[name + "_w"] = jnp.pad(w2, ((0, Kp - K), (0, Np - N))).astype(jnp.bfloat16)
        p[name + "_b"] = jnp.pad(b.astype(jnp.float32), (0, Np - N)).reshape(1, Np)

    for name, cfg in _CONV_CFG.items():
        if name == "inc_head":   # fuse the three sibling 1x1 inception heads
            w = jnp.concatenate([raw["inc0_w"], raw["inc1a_w"], raw["inc2a_w"]], axis=0)
            b = jnp.concatenate([raw["inc0_b"], raw["inc1a_b"], raw["inc2a_b"]], axis=0)
        else:
            w = raw[name + "_w"]
            b = raw.get(name + "_b", jnp.zeros((w.shape[0],), jnp.float32))
        conv_prep(name, w, b, bn=cfg[5])

    # attention (no BN)
    conv_prep("att0", raw["att0_w"], raw["att0_b"], bn=False)
    conv_prep("att1", raw["att1_w"], raw["att1_b"], bn=False)

    # FC head (BN1d folded into fc1/fc2)
    def fc_prep(name, w, b, bn, n_pad):
        if bn:
            w = w * _BN_SCALE
            b = b * _BN_SCALE
        w2 = w.T                                   # (in, out)
        K, N = w2.shape
        p[name + "_w"] = jnp.pad(w2, ((0, 0), (0, n_pad - N))).astype(jnp.bfloat16)
        p[name + "_b"] = jnp.pad(b.astype(jnp.float32), (0, n_pad - N)).reshape(1, n_pad)

    fc_prep("fc1", raw["fc1_w"], raw["fc1_b"], True, 512)
    fc_prep("fc2", raw["fc2_w"], raw["fc2_b"], True, 256)
    fc_prep("fc3", raw["fc3_w"], raw["fc3_b"], False, _round_up(max(num_classes, 128), 128))
    return p


# ----------------------------------------------------------------------------
# Forward pass (inference semantics)
# ----------------------------------------------------------------------------
def custom_cnn_pro_forward(params, x_nchw, num_classes=10):
    p = params
    x = jnp.transpose(x_nchw, (0, 2, 3, 1)).astype(jnp.bfloat16)   # NCHW -> NHWC

    # stem
    x = conv_block(p, "stem", x)

    # pyramid features (k = 3,5,7,1), concat on channels
    pyr = [conv_block(p, f"pyr{i}", x) for i in range(4)]
    x = jnp.concatenate(pyr, axis=-1)                              # 64 ch

    x = conv_block(p, "down1", x)                                  # 128 ch

    # inception block (inc0|inc1a|inc2a fused into one 1x1 matmul)
    heads = conv_block(p, "inc_head", x)                           # 112 ch
    b0 = heads[..., :32]
    b1 = conv_block(p, "inc1b", heads[..., 32:80])
    b2 = conv_block(p, "inc2b", heads[..., 80:112])
    b3 = conv_block(p, "inc3", _maxpool3x3_s1_p1(x))
    x = jnp.concatenate([b0, b1, b2, b3], axis=-1)                 # 176 ch

    x = conv_block(p, "down2", x)                                  # 256 ch

    # fused attention: 1x1 conv + ReLU + 1x1 conv + sigmoid + multiply
    x = attention_apply(x, p["att0_w"], p["att0_b"], p["att1_w"], p["att1_b"])

    # down3: strided conv + dilated conv, then feature pyramid head
    x = conv_block(p, "down3a", x)
    x = conv_block(p, "down3b", x)
    x = conv_block(p, "fp", x)                                     # 512 ch

    # global avg + max pooling (tiny trailing spatial; plain-JAX glue)
    xf = x.astype(jnp.float32)
    avg_x = jnp.mean(xf, axis=(1, 2))
    max_x = jnp.max(xf, axis=(1, 2))
    feat = jnp.concatenate([avg_x, max_x], axis=-1)                # (N, 1024)

    # fused FC head (BN1d folded, dropout = identity)
    return fc_head(feat, p["fc1_w"], p["fc1_b"], p["fc2_w"], p["fc2_b"],
                   p["fc3_w"], p["fc3_b"], num_classes)


if __name__ == "__main__":
    key = jax.random.PRNGKey(0)
    pkey, xkey = jax.random.split(key)

    num_classes = 10
    raw_params = init_params(pkey, num_classes=num_classes)
    params = prepare_params(raw_params, num_classes=num_classes)   # one-time MXU layout
    x = jax.random.normal(xkey, (2, 3, 16, 16), jnp.float32)       # NCHW like PyTorch

    fwd = jax.jit(functools.partial(custom_cnn_pro_forward, num_classes=num_classes))
    logits = fwd(params, x)
    jax.block_until_ready(logits)
    assert logits.shape == (2, num_classes), logits.shape
    assert bool(jnp.all(jnp.isfinite(logits)))
    print("KERNEL_OK")
</pallas_src>

<mosaic_0001>
module attributes {stable_mosaic.version = 11 : i64} {
  func.func @_mm_kernel(%arg0: i32, %arg1: i32, %arg2: i32, %arg3: memref<128x128xbf16, #tpu.memory_space<vmem>>, %arg4: memref<128x128xbf16, #tpu.memory_space<vmem>>, %arg5: memref<1x128xf32, #tpu.memory_space<vmem>>, %arg6: memref<128x128xbf16, #tpu.memory_space<vmem>>, %arg7: memref<128x128xf32, #tpu.memory_space<vmem>>) attributes {dimension_semantics = [#tpu.dimension_semantics<parallel>, #tpu.dimension_semantics<parallel>, #tpu.dimension_semantics<arbitrary>], iteration_bounds = array<i64: 1, 1, 1>, scalar_prefetch = 0 : i64, scratch_operands = 1 : i64, tpu.core_type = #tpu.core_type<tc>, window_params = [{transform_indices = @transform_0, window_bounds = array<i64: 128, 128>}, {transform_indices = @transform_1, window_bounds = array<i64: 128, 128>}, {transform_indices = @transform_2, window_bounds = array<i64: 1, 128>}, {transform_indices = @transform_3, window_bounds = array<i64: 128, 128>}]} {
    %c0_i32 = arith.constant 0 : i32
    %0 = arith.cmpi eq, %arg2, %c0_i32 : i32
    %1 = arith.extui %0 : i1 to i32
    %c0_i32_0 = arith.constant 0 : i32
    %2 = arith.cmpi ne, %1, %c0_i32_0 : i32
    scf.if %2 {
      %cst_10 = arith.constant 0.000000e+00 : f32
      %12 = vector.broadcast %cst_10 : f32 to vector<128x128xf32>
      %c0_11 = arith.constant 0 : index
      %c0_12 = arith.constant 0 : index
      %13 = vector.load %arg7[%c0_11, %c0_12] : memref<128x128xf32, #tpu.memory_space<vmem>>, vector<128x128xf32>
      tpu.vector_store %arg7[%c0_11, %c0_12], %12 {strides = array<i32>} : memref<128x128xf32, #tpu.memory_space<vmem>>, vector<128x128xf32>,
    } else {
    }
    %c0 = arith.constant 0 : index
    %c0_1 = arith.constant 0 : index
    %3 = vector.load %arg7[%c0, %c0_1] : memref<128x128xf32, #tpu.memory_space<vmem>>, vector<128x128xf32>
    %c0_2 = arith.constant 0 : index
    %c0_3 = arith.constant 0 : index
    %4 = vector.load %arg3[%c0_2, %c0_3] : memref<128x128xbf16, #tpu.memory_space<vmem>>, vector<128x128xbf16>
    %c0_4 = arith.constant 0 : index
    %c0_5 = arith.constant 0 : index
    %5 = vector.load %arg4[%c0_4, %c0_5] : memref<128x128xbf16, #tpu.memory_space<vmem>>, vector<128x128xbf16>
    %cst = arith.constant dense<0.000000e+00> : vector<128x128xf32>
    %6 = tpu.matmul %4, %5, %cst {dimension_numbers = #tpu.dot_dimension_numbers<[1], [0], [0], [1], [0, 0, 1, 1], [], []>} : vector<128x128xbf16>, vector<128x128xbf16>, vector<128x128xf32> -> vector<128x128xf32>
    %7 = arith.addf %3, %6 : vector<128x128xf32>
    %c0_6 = arith.constant 0 : index
    %c0_7 = arith.constant 0 : index
    %8 = vector.load %arg7[%c0_6, %c0_7] : memref<128x128xf32, #tpu.memory_space<vmem>>, vector<128x128xf32>
    tpu.vector_store %arg7[%c0_6, %c0_7], %7 {strides = array<i32>} : memref<128x128xf32, #tpu.memory_space<vmem>>, vector<128x128xf32>,
    %c0_i32_8 = arith.constant 0 : i32
    %9 = arith.cmpi eq, %arg2, %c0_i32_8 : i32
    %10 = arith.extui %9 : i1 to i32
    %c0_i32_9 = arith.constant 0 : i32
    %11 = arith.cmpi ne, %10, %c0_i32_9 : i32
    scf.if %11 {
      %c0_10 = arith.constant 0 : index
      %c0_11 = arith.constant 0 : index
      %12 = vector.load %arg7[%c0_10, %c0_11] : memref<128x128xf32, #tpu.memory_space<vmem>>, vector<128x128xf32>
      %c0_12 = arith.constant 0 : index
      %c0_13 = arith.constant 0 : index
      %13 = vector.load %arg5[%c0_12, %c0_13] : memref<1x128xf32, #tpu.memory_space<vmem>>, vector<1x128xf32>
      %14 = vector.broadcast %13 : vector<1x128xf32> to vector<128x128xf32>
      %15 = arith.addf %12, %14 : vector<128x128xf32>
      %cst_14 = arith.constant 0.000000e+00 : f32
      %16 = vector.broadcast %cst_14 : f32 to vector<128x128xf32>
      %17 = arith.maximumf %15, %16 : vector<128x128xf32>
      %18 = arith.truncf %17 : vector<128x128xf32> to vector<128x128xbf16>
      %c0_15 = arith.constant 0 : index
      %c0_16 = arith.constant 0 : index
      %19 = vector.load %arg6[%c0_15, %c0_16] : memref<128x128xbf16, #tpu.memory_space<vmem>>, vector<128x128xbf16>
      tpu.vector_store %arg6[%c0_15, %c0_16], %18 {strides = array<i32>} : memref<128x128xbf16, #tpu.memory_space<vmem>>, vector<128x128xbf16>,
    } else {
    }
    return
  }
  func.func @transform_0(%arg0: i32, %arg1: i32, %arg2: i32) -> (i32, i32) {
    %c0_i32 = arith.constant 0 : i32
    return %arg0, %arg2 : i32, i32
  }
  func.func @transform_1(%arg0: i32, %arg1: i32, %arg2: i32) -> (i32, i32) {
    %c0_i32 = arith.constant 0 : i32
    return %arg2, %arg1 : i32, i32
  }
  func.func @transform_2(%arg0: i32, %arg1: i32, %arg2: i32) -> (i32, i32) {
    %c0_i32 = arith.constant 0 : i32
    %c0_i32_0 = arith.constant 0 : i32
    return %c0_i32, %arg1 : i32, i32
  }
  func.func @transform_3(%arg0: i32, %arg1: i32, %arg2: i32) -> (i32, i32) {
    %c0_i32 = arith.constant 0 : i32
    return %arg0, %arg1 : i32, i32
  }
}

module attributes {stable_mosaic.version = 11 : i64} {
  func.func @_mm_kernel(%arg0: i32, %arg1: i32, %arg2: i32, %arg3: memref<128x384xbf16, #tpu.memory_space<vmem>>, %arg4: memref<384x128xbf16, #tpu.memory_space<vmem>>, %arg5: memref<1x128xf32, #tpu.memory_space<vmem>>, %arg6: memref<128x128xbf16, #tpu.memory_space<vmem>>, %arg7: memref<128x128xf32, #tpu.memory_space<vmem>>) attributes {dimension_semantics = [#tpu.dimension_semantics<parallel>, #tpu.dimension_semantics<parallel>, #tpu.dimension_semantics<arbitrary>], iteration_bounds = array<i64: 1, 1, 1>, scalar_prefetch = 0 : i64, scratch_operands = 1 : i64, tpu.core_type = #tpu.core_type<tc>, window_params = [{transform_indices = @transform_0, window_bounds = array<i64: 128, 384>}, {transform_indices = @transform_1, window_bounds = array<i64: 384, 128>}, {transform_indices = @transform_2, window_bounds = array<i64: 1, 128>}, {transform_indices = @transform_3, window_bounds = array<i64: 128, 128>}]} {
    %c0_i32 = arith.constant 0 : i32
    %0 = arith.cmpi eq, %arg2, %c0_i32 : i32
    %1 = arith.extui %0 : i1 to i32
    %c0_i32_0 = arith.constant 0 : i32
    %2 = arith.cmpi ne, %1, %c0_i32_0 : i32
    scf.if %2 {
      %cst_10 = arith.constant 0.000000e+00 : f32
      %12 = vector.broadcast %cst_10 : f32 to vector<128x128xf32>
      %c0_11 = arith.constant 0 : index
      %c0_12 = arith.constant 0 : index
      %13 = vector.load %arg7[%c0_11, %c0_12] : memref<128x128xf32, #tpu.memory_space<vmem>>, vector<128x128xf32>
      tpu.vector_store %arg7[%c0_11, %c0_12], %12 {strides = array<i32>} : memref<128x128xf32, #tpu.memory_space<vmem>>, vector<128x128xf32>,
    } else {
    }
    %c0 = arith.constant 0 : index
    %c0_1 = arith.constant 0 : index
    %3 = vector.load %arg7[%c0, %c0_1] : memref<128x128xf32, #tpu.memory_space<vmem>>, vector<128x128xf32>
    %c0_2 = arith.constant 0 : index
    %c0_3 = arith.constant 0 : index
    %4 = vector.load %arg3[%c0_2, %c0_3] : memref<128x384xbf16, #tpu.memory_space<vmem>>, vector<128x384xbf16>
    %c0_4 = arith.constant 0 : index
    %c0_5 = arith.constant 0 : index
    %5 = vector.load %arg4[%c0_4, %c0_5] : memref<384x128xbf16, #tpu.memory_space<vmem>>, vector<384x128xbf16>
    %cst = arith.constant dense<0.000000e+00> : vector<128x128xf32>
    %6 = tpu.matmul %4, %5, %cst {dimension_numbers = #tpu.dot_dimension_numbers<[1], [0], [0], [1], [0, 0, 1, 1], [], []>} : vector<128x384xbf16>, vector<384x128xbf16>, vector<128x128xf32> -> vector<128x128xf32>
    %7 = arith.addf %3, %6 : vector<128x128xf32>
    %c0_6 = arith.constant 0 : index
    %c0_7 = arith.constant 0 : index
    %8 = vector.load %arg7[%c0_6, %c0_7] : memref<128x128xf32, #tpu.memory_space<vmem>>, vector<128x128xf32>
    tpu.vector_store %arg7[%c0_6, %c0_7], %7 {strides = array<i32>} : memref<128x128xf32, #tpu.memory_space<vmem>>, vector<128x128xf32>,
    %c0_i32_8 = arith.constant 0 : i32
    %9 = arith.cmpi eq, %arg2, %c0_i32_8 : i32
    %10 = arith.extui %9 : i1 to i32
    %c0_i32_9 = arith.constant 0 : i32
    %11 = arith.cmpi ne, %10, %c0_i32_9 : i32
    scf.if %11 {
      %c0_10 = arith.constant 0 : index
      %c0_11 = arith.constant 0 : index
      %12 = vector.load %arg7[%c0_10, %c0_11] : memref<128x128xf32, #tpu.memory_space<vmem>>, vector<128x128xf32>
      %c0_12 = arith.constant 0 : index
      %c0_13 = arith.constant 0 : index
      %13 = vector.load %arg5[%c0_12, %c0_13] : memref<1x128xf32, #tpu.memory_space<vmem>>, vector<1x128xf32>
      %14 = vector.broadcast %13 : vector<1x128xf32> to vector<128x128xf32>
      %15 = arith.addf %12, %14 : vector<128x128xf32>
      %cst_14 = arith.constant 0.000000e+00 : f32
      %16 = vector.broadcast %cst_14 : f32 to vector<128x128xf32>
      %17 = arith.maximumf %15, %16 : vector<128x128xf32>
      %18 = arith.truncf %17 : vector<128x128xf32> to vector<128x128xbf16>
      %c0_15 = arith.constant 0 : index
      %c0_16 = arith.constant 0 : index
      %19 = vector.load %arg6[%c0_15, %c0_16] : memref<128x128xbf16, #tpu.memory_space<vmem>>, vector<128x128xbf16>
      tpu.vector_store %arg6[%c0_15, %c0_16], %18 {strides = array<i32>} : memref<128x128xbf16, #tpu.memory_space<vmem>>, vector<128x128xbf16>,
    } else {
    }
    return
  }
  func.func @transform_0(%arg0: i32, %arg1: i32, %arg2: i32) -> (i32, i32) {
    %c0_i32 = arith.constant 0 : i32
    return %arg0, %arg2 : i32, i32
  }
  func.func @transform_1(%arg0: i32, %arg1: i32, %arg2: i32) -> (i32, i32) {
    %c0_i32 = arith.constant 0 : i32
    return %arg2, %arg1 : i32, i32
  }
  func.func @transform_2(%arg0: i32, %arg1: i32, %arg2: i32) -> (i32, i32) {
    %c0_i32 = arith.constant 0 : i32
    %c0_i32_0 = arith.constant 0 : i32
    return %c0_i32, %arg1 : i32, i32
  }
  func.func @transform_3(%arg0: i32, %arg1: i32, %arg2: i32) -> (i32, i32) {
    %c0_i32 = arith.constant 0 : i32
    return %arg0, %arg1 : i32, i32
  }
}

module attributes {stable_mosaic.version = 11 : i64} {
  func.func @_mm_kernel(%arg0: i32, %arg1: i32, %arg2: i32, %arg3: memref<128x512xbf16, #tpu.memory_space<vmem>>, %arg4: memref<512x128xbf16, #tpu.memory_space<vmem>>, %arg5: memref<1x128xf32, #tpu.memory_space<vmem>>, %arg6: memref<128x128xbf16, #tpu.memory_space<vmem>>, %arg7: memref<128x128xf32, #tpu.memory_space<vmem>>) attributes {dimension_semantics = [#tpu.dimension_semantics<parallel>, #tpu.dimension_semantics<parallel>, #tpu.dimension_semantics<arbitrary>], iteration_bounds = array<i64: 1, 1, 2>, scalar_prefetch = 0 : i64, scratch_operands = 1 : i64, tpu.core_type = #tpu.core_type<tc>, window_params = [{transform_indices = @transform_0, window_bounds = array<i64: 128, 512>}, {transform_indices = @transform_1, window_bounds = array<i64: 512, 128>}, {transform_indices = @transform_2, window_bounds = array<i64: 1, 128>}, {transform_indices = @transform_3, window_bounds = array<i64: 128, 128>}]} {
    %c0_i32 = arith.constant 0 : i32
    %0 = arith.cmpi eq, %arg2, %c0_i32 : i32
    %1 = arith.extui %0 : i1 to i32
    %c0_i32_0 = arith.constant 0 : i32
    %2 = arith.cmpi ne, %1, %c0_i32_0 : i32
    scf.if %2 {
      %cst_9 = arith.constant 0.000000e+00 : f32
      %12 = vector.broadcast %cst_9 : f32 to vector<128x128xf32>
      %c0_10 = arith.constant 0 : index
      %c0_11 = arith.constant 0 : index
      %13 = vector.load %arg7[%c0_10, %c0_11] : memref<128x128xf32, #tpu.memory_space<vmem>>, vector<128x128xf32>
      tpu.vector_store %arg7[%c0_10, %c0_11], %12 {strides = array<i32>} : memref<128x128xf32, #tpu.memory_space<vmem>>, vector<128x128xf32>,
    } else {
    }
    %c0 = arith.constant 0 : index
    %c0_1 = arith.constant 0 : index
    %3 = vector.load %arg7[%c0, %c0_1] : memref<128x128xf32, #tpu.memory_space<vmem>>, vector<128x128xf32>
    %c0_2 = arith.constant 0 : index
    %c0_3 = arith.constant 0 : index
    %4 = vector.load %arg3[%c0_2, %c0_3] : memref<128x512xbf16, #tpu.memory_space<vmem>>, vector<128x512xbf16>
    %c0_4 = arith.constant 0 : index
    %c0_5 = arith.constant 0 : index
    %5 = vector.load %arg4[%c0_4, %c0_5] : memref<512x128xbf16, #tpu.memory_space<vmem>>, vector<512x128xbf16>
    %cst = arith.constant dense<0.000000e+00> : vector<128x128xf32>
    %6 = tpu.matmul %4, %5, %cst {dimension_numbers = #tpu.dot_dimension_numbers<[1], [0], [0], [1], [0, 0, 1, 1], [], []>} : vector<128x512xbf16>, vector<512x128xbf16>, vector<128x128xf32> -> vector<128x128xf32>
    %7 = arith.addf %3, %6 : vector<128x128xf32>
    %c0_6 = arith.constant 0 : index
    %c0_7 = arith.constant 0 : index
    %8 = vector.load %arg7[%c0_6, %c0_7] : memref<128x128xf32, #tpu.memory_space<vmem>>, vector<128x128xf32>
    tpu.vector_store %arg7[%c0_6, %c0_7], %7 {strides = array<i32>} : memref<128x128xf32, #tpu.memory_space<vmem>>, vector<128x128xf32>,
    %c1_i32 = arith.constant 1 : i32
    %9 = arith.cmpi eq, %arg2, %c1_i32 : i32
    %10 = arith.extui %9 : i1 to i32
    %c0_i32_8 = arith.constant 0 : i32
    %11 = arith.cmpi ne, %10, %c0_i32_8 : i32
    scf.if %11 {
      %c0_9 = arith.constant 0 : index
      %c0_10 = arith.constant 0 : index
      %12 = vector.load %arg7[%c0_9, %c0_10] : memref<128x128xf32, #tpu.memory_space<vmem>>, vector<128x128xf32>
      %c0_11 = arith.constant 0 : index
      %c0_12 = arith.constant 0 : index
      %13 = vector.load %arg5[%c0_11, %c0_12] : memref<1x128xf32, #tpu.memory_space<vmem>>, vector<1x128xf32>
      %14 = vector.broadcast %13 : vector<1x128xf32> to vector<128x128xf32>
      %15 = arith.addf %12, %14 : vector<128x128xf32>
      %cst_13 = arith.constant 0.000000e+00 : f32
      %16 = vector.broadcast %cst_13 : f32 to vector<128x128xf32>
      %17 = arith.maximumf %15, %16 : vector<128x128xf32>
      %18 = arith.truncf %17 : vector<128x128xf32> to vector<128x128xbf16>
      %c0_14 = arith.constant 0 : index
      %c0_15 = arith.constant 0 : index
      %19 = vector.load %arg6[%c0_14, %c0_15] : memref<128x128xbf16, #tpu.memory_space<vmem>>, vector<128x128xbf16>
      tpu.vector_store %arg6[%c0_14, %c0_15], %18 {strides = array<i32>} : memref<128x128xbf16, #tpu.memory_space<vmem>>, vector<128x128xbf16>,
    } else {
    }
    return
  }
  func.func @transform_0(%arg0: i32, %arg1: i32, %arg2: i32) -> (i32, i32) {
    %c0_i32 = arith.constant 0 : i32
    return %arg0, %arg2 : i32, i32
  }
  func.func @transform_1(%arg0: i32, %arg1: i32, %arg2: i32) -> (i32, i32) {
    %c0_i32 = arith.constant 0 : i32
    return %arg2, %arg1 : i32, i32
  }
  func.func @transform_2(%arg0: i32, %arg1: i32, %arg2: i32) -> (i32, i32) {
    %c0_i32 = arith.constant 0 : i32
    %c0_i32_0 = arith.constant 0 : i32
    return %c0_i32, %arg1 : i32, i32
  }
  func.func @transform_3(%arg0: i32, %arg1: i32, %arg2: i32) -> (i32, i32) {
    %c0_i32 = arith.constant 0 : i32
    return %arg0, %arg1 : i32, i32
  }
}

module attributes {stable_mosaic.version = 11 : i64} {
  func.func @_mm_kernel(%arg0: i32, %arg1: i32, %arg2: i32, %arg3: memref<128x512xbf16, #tpu.memory_space<vmem>>, %arg4: memref<512x128xbf16, #tpu.memory_space<vmem>>, %arg5: memref<1x128xf32, #tpu.memory_space<vmem>>, %arg6: memref<128x128xbf16, #tpu.memory_space<vmem>>, %arg7: memref<128x128xf32, #tpu.memory_space<vmem>>) attributes {dimension_semantics = [#tpu.dimension_semantics<parallel>, #tpu.dimension_semantics<parallel>, #tpu.dimension_semantics<arbitrary>], iteration_bounds = array<i64: 1, 1, 4>, scalar_prefetch = 0 : i64, scratch_operands = 1 : i64, tpu.core_type = #tpu.core_type<tc>, window_params = [{transform_indices = @transform_0, window_bounds = array<i64: 128, 512>}, {transform_indices = @transform_1, window_bounds = array<i64: 512, 128>}, {transform_indices = @transform_2, window_bounds = array<i64: 1, 128>}, {transform_indices = @transform_3, window_bounds = array<i64: 128, 128>}]} {
    %c0_i32 = arith.constant 0 : i32
    %0 = arith.cmpi eq, %arg2, %c0_i32 : i32
    %1 = arith.extui %0 : i1 to i32
    %c0_i32_0 = arith.constant 0 : i32
    %2 = arith.cmpi ne, %1, %c0_i32_0 : i32
    scf.if %2 {
      %cst_9 = arith.constant 0.000000e+00 : f32
      %12 = vector.broadcast %cst_9 : f32 to vector<128x128xf32>
      %c0_10 = arith.constant 0 : index
      %c0_11 = arith.constant 0 : index
      %13 = vector.load %arg7[%c0_10, %c0_11] : memref<128x128xf32, #tpu.memory_space<vmem>>, vector<128x128xf32>
      tpu.vector_store %arg7[%c0_10, %c0_11], %12 {strides = array<i32>} : memref<128x128xf32, #tpu.memory_space<vmem>>, vector<128x128xf32>,
    } else {
    }
    %c0 = arith.constant 0 : index
    %c0_1 = arith.constant 0 : index
    %3 = vector.load %arg7[%c0, %c0_1] : memref<128x128xf32, #tpu.memory_space<vmem>>, vector<128x128xf32>
    %c0_2 = arith.constant 0 : index
    %c0_3 = arith.constant 0 : index
    %4 = vector.load %arg3[%c0_2, %c0_3] : memref<128x512xbf16, #tpu.memory_space<vmem>>, vector<128x512xbf16>
    %c0_4 = arith.constant 0 : index
    %c0_5 = arith.constant 0 : index
    %5 = vector.load %arg4[%c0_4, %c0_5] : memref<512x128xbf16, #tpu.memory_space<vmem>>, vector<512x128xbf16>
    %cst = arith.constant dense<0.000000e+00> : vector<128x128xf32>
    %6 = tpu.matmul %4, %5, %cst {dimension_numbers = #tpu.dot_dimension_numbers<[1], [0], [0], [1], [0, 0, 1, 1], [], []>} : vector<128x512xbf16>, vector<512x128xbf16>, vector<128x128xf32> -> vector<128x128xf32>
    %7 = arith.addf %3, %6 : vector<128x128xf32>
    %c0_6 = arith.constant 0 : index
    %c0_7 = arith.constant 0 : index
    %8 = vector.load %arg7[%c0_6, %c0_7] : memref<128x128xf32, #tpu.memory_space<vmem>>, vector<128x128xf32>
    tpu.vector_store %arg7[%c0_6, %c0_7], %7 {strides = array<i32>} : memref<128x128xf32, #tpu.memory_space<vmem>>, vector<128x128xf32>,
    %c3_i32 = arith.constant 3 : i32
    %9 = arith.cmpi eq, %arg2, %c3_i32 : i32
    %10 = arith.extui %9 : i1 to i32
    %c0_i32_8 = arith.constant 0 : i32
    %11 = arith.cmpi ne, %10, %c0_i32_8 : i32
    scf.if %11 {
      %c0_9 = arith.constant 0 : index
      %c0_10 = arith.constant 0 : index
      %12 = vector.load %arg7[%c0_9, %c0_10] : memref<128x128xf32, #tpu.memory_space<vmem>>, vector<128x128xf32>
      %c0_11 = arith.constant 0 : index
      %c0_12 = arith.constant 0 : index
      %13 = vector.load %arg5[%c0_11, %c0_12] : memref<1x128xf32, #tpu.memory_space<vmem>>, vector<1x128xf32>
      %14 = vector.broadcast %13 : vector<1x128xf32> to vector<128x128xf32>
      %15 = arith.addf %12, %14 : vector<128x128xf32>
      %cst_13 = arith.constant 0.000000e+00 : f32
      %16 = vector.broadcast %cst_13 : f32 to vector<128x128xf32>
      %17 = arith.maximumf %15, %16 : vector<128x128xf32>
      %18 = arith.truncf %17 : vector<128x128xf32> to vector<128x128xbf16>
      %c0_14 = arith.constant 0 : index
      %c0_15 = arith.constant 0 : index
      %19 = vector.load %arg6[%c0_14, %c0_15] : memref<128x128xbf16, #tpu.memory_space<vmem>>, vector<128x128xbf16>
      tpu.vector_store %arg6[%c0_14, %c0_15], %18 {strides = array<i32>} : memref<128x128xbf16, #tpu.memory_space<vmem>>, vector<128x128xbf16>,
    } else {
    }
    return
  }
  func.func @transform_0(%arg0: i32, %arg1: i32, %arg2: i32) -> (i32, i32) {
    %c0_i32 = arith.constant 0 : i32
    return %arg0, %arg2 : i32, i32
  }
  func.func @transform_1(%arg0: i32, %arg1: i32, %arg2: i32) -> (i32, i32) {
    %c0_i32 = arith.constant 0 : i32
    return %arg2, %arg1 : i32, i32
  }
  func.func @transform_2(%arg0: i32, %arg1: i32, %arg2: i32) -> (i32, i32) {
    %c0_i32 = arith.constant 0 : i32
    %c0_i32_0 = arith.constant 0 : i32
    return %c0_i32, %arg1 : i32, i32
  }
  func.func @transform_3(%arg0: i32, %arg1: i32, %arg2: i32) -> (i32, i32) {
    %c0_i32 = arith.constant 0 : i32
    return %arg0, %arg1 : i32, i32
  }
}

module attributes {stable_mosaic.version = 11 : i64} {
  func.func @_mm_kernel(%arg0: i32, %arg1: i32, %arg2: i32, %arg3: memref<128x128xbf16, #tpu.memory_space<vmem>>, %arg4: memref<128x128xbf16, #tpu.memory_space<vmem>>, %arg5: memref<1x128xf32, #tpu.memory_space<vmem>>, %arg6: memref<128x128xbf16, #tpu.memory_space<vmem>>, %arg7: memref<128x128xf32, #tpu.memory_space<vmem>>) attributes {dimension_semantics = [#tpu.dimension_semantics<parallel>, #tpu.dimension_semantics<parallel>, #tpu.dimension_semantics<arbitrary>], iteration_bounds = array<i64: 1, 1, 1>, scalar_prefetch = 0 : i64, scratch_operands = 1 : i64, tpu.core_type = #tpu.core_type<tc>, window_params = [{transform_indices = @transform_0, window_bounds = array<i64: 128, 128>}, {transform_indices = @transform_1, window_bounds = array<i64: 128, 128>}, {transform_indices = @transform_2, window_bounds = array<i64: 1, 128>}, {transform_indices = @transform_3, window_bounds = array<i64: 128, 128>}]} {
    %c0_i32 = arith.constant 0 : i32
    %0 = arith.cmpi eq, %arg2, %c0_i32 : i32
    %1 = arith.extui %0 : i1 to i32
    %c0_i32_0 = arith.constant 0 : i32
    %2 = arith.cmpi ne, %1, %c0_i32_0 : i32
    scf.if %2 {
      %cst_10 = arith.constant 0.000000e+00 : f32
      %12 = vector.broadcast %cst_10 : f32 to vector<128x128xf32>
      %c0_11 = arith.constant 0 : index
      %c0_12 = arith.constant 0 : index
      %13 = vector.load %arg7[%c0_11, %c0_12] : memref<128x128xf32, #tpu.memory_space<vmem>>, vector<128x128xf32>
      tpu.vector_store %arg7[%c0_11, %c0_12], %12 {strides = array<i32>} : memref<128x128xf32, #tpu.memory_space<vmem>>, vector<128x128xf32>,
    } else {
    }
    %c0 = arith.constant 0 : index
    %c0_1 = arith.constant 0 : index
    %3 = vector.load %arg7[%c0, %c0_1] : memref<128x128xf32, #tpu.memory_space<vmem>>, vector<128x128xf32>
    %c0_2 = arith.constant 0 : index
    %c0_3 = arith.constant 0 : index
    %4 = vector.load %arg3[%c0_2, %c0_3] : memref<128x128xbf16, #tpu.memory_space<vmem>>, vector<128x128xbf16>
    %c0_4 = arith.constant 0 : index
    %c0_5 = arith.constant 0 : index
    %5 = vector.load %arg4[%c0_4, %c0_5] : memref<128x128xbf16, #tpu.memory_space<vmem>>, vector<128x128xbf16>
    %cst = arith.constant dense<0.000000e+00> : vector<128x128xf32>
    %6 = tpu.matmul %4, %5, %cst {dimension_numbers = #tpu.dot_dimension_numbers<[1], [0], [0], [1], [0, 0, 1, 1], [], []>} : vector<128x128xbf16>, vector<128x128xbf16>, vector<128x128xf32> -> vector<128x128xf32>
    %7 = arith.addf %3, %6 : vector<128x128xf32>
    %c0_6 = arith.constant 0 : index
    %c0_7 = arith.constant 0 : index
    %8 = vector.load %arg7[%c0_6, %c0_7] : memref<128x128xf32, #tpu.memory_space<vmem>>, vector<128x128xf32>
    tpu.vector_store %arg7[%c0_6, %c0_7], %7 {strides = array<i32>} : memref<128x128xf32, #tpu.memory_space<vmem>>, vector<128x128xf32>,
    %c0_i32_8 = arith.constant 0 : i32
    %9 = arith.cmpi eq, %arg2, %c0_i32_8 : i32
    %10 = arith.extui %9 : i1 to i32
    %c0_i32_9 = arith.constant 0 : i32
    %11 = arith.cmpi ne, %10, %c0_i32_9 : i32
    scf.if %11 {
      %c0_10 = arith.constant 0 : index
      %c0_11 = arith.constant 0 : index
      %12 = vector.load %arg7[%c0_10, %c0_11] : memref<128x128xf32, #tpu.memory_space<vmem>>, vector<128x128xf32>
      %c0_12 = arith.constant 0 : index
      %c0_13 = arith.constant 0 : index
      %13 = vector.load %arg5[%c0_12, %c0_13] : memref<1x128xf32, #tpu.memory_space<vmem>>, vector<1x128xf32>
      %14 = vector.broadcast %13 : vector<1x128xf32> to vector<128x128xf32>
      %15 = arith.addf %12, %14 : vector<128x128xf32>
      %cst_14 = arith.constant 0.000000e+00 : f32
      %16 = vector.broadcast %cst_14 : f32 to vector<128x128xf32>
      %17 = arith.maximumf %15, %16 : vector<128x128xf32>
      %18 = arith.truncf %17 : vector<128x128xf32> to vector<128x128xbf16>
      %c0_15 = arith.constant 0 : index
      %c0_16 = arith.constant 0 : index
      %19 = vector.load %arg6[%c0_15, %c0_16] : memref<128x128xbf16, #tpu.memory_space<vmem>>, vector<128x128xbf16>
      tpu.vector_store %arg6[%c0_15, %c0_16], %18 {strides = array<i32>} : memref<128x128xbf16, #tpu.memory_space<vmem>>, vector<128x128xbf16>,
    } else {
    }
    return
  }
  func.func @transform_0(%arg0: i32, %arg1: i32, %arg2: i32) -> (i32, i32) {
    %c0_i32 = arith.constant 0 : i32
    return %arg0, %arg2 : i32, i32
  }
  func.func @transform_1(%arg0: i32, %arg1: i32, %arg2: i32) -> (i32, i32) {
    %c0_i32 = arith.constant 0 : i32
    return %arg2, %arg1 : i32, i32
  }
  func.func @transform_2(%arg0: i32, %arg1: i32, %arg2: i32) -> (i32, i32) {
    %c0_i32 = arith.constant 0 : i32
    %c0_i32_0 = arith.constant 0 : i32
    return %c0_i32, %arg1 : i32, i32
  }
  func.func @transform_3(%arg0: i32, %arg1: i32, %arg2: i32) -> (i32, i32) {
    %c0_i32 = arith.constant 0 : i32
    return %arg0, %arg1 : i32, i32
  }
}

module attributes {stable_mosaic.version = 11 : i64} {
  func.func @_mm_kernel(%arg0: i32, %arg1: i32, %arg2: i32, %arg3: memref<32x128xbf16, #tpu.memory_space<vmem>>, %arg4: memref<128x128xbf16, #tpu.memory_space<vmem>>, %arg5: memref<1x128xf32, #tpu.memory_space<vmem>>, %arg6: memref<32x128xbf16, #tpu.memory_space<vmem>>, %arg7: memref<32x128xf32, #tpu.memory_space<vmem>>) attributes {dimension_semantics = [#tpu.dimension_semantics<parallel>, #tpu.dimension_semantics<parallel>, #tpu.dimension_semantics<arbitrary>], iteration_bounds = array<i64: 1, 1, 1>, scalar_prefetch = 0 : i64, scratch_operands = 1 : i64, tpu.core_type = #tpu.core_type<tc>, window_params = [{transform_indices = @transform_0, window_bounds = array<i64: 32, 128>}, {transform_indices = @transform_1, window_bounds = array<i64: 128, 128>}, {transform_indices = @transform_2, window_bounds = array<i64: 1, 128>}, {transform_indices = @transform_3, window_bounds = array<i64: 32, 128>}]} {
    %c0_i32 = arith.constant 0 : i32
    %0 = arith.cmpi eq, %arg2, %c0_i32 : i32
    %1 = arith.extui %0 : i1 to i32
    %c0_i32_0 = arith.constant 0 : i32
    %2 = arith.cmpi ne, %1, %c0_i32_0 : i32
    scf.if %2 {
      %cst_10 = arith.constant 0.000000e+00 : f32
      %12 = vector.broadcast %cst_10 : f32 to vector<32x128xf32>
      %c0_11 = arith.constant 0 : index
      %c0_12 = arith.constant 0 : index
      %13 = vector.load %arg7[%c0_11, %c0_12] : memref<32x128xf32, #tpu.memory_space<vmem>>, vector<32x128xf32>
      tpu.vector_store %arg7[%c0_11, %c0_12], %12 {strides = array<i32>} : memref<32x128xf32, #tpu.memory_space<vmem>>, vector<32x128xf32>,
    } else {
    }
    %c0 = arith.constant 0 : index
    %c0_1 = arith.constant 0 : index
    %3 = vector.load %arg7[%c0, %c0_1] : memref<32x128xf32, #tpu.memory_space<vmem>>, vector<32x128xf32>
    %c0_2 = arith.constant 0 : index
    %c0_3 = arith.constant 0 : index
    %4 = vector.load %arg3[%c0_2, %c0_3] : memref<32x128xbf16, #tpu.memory_space<vmem>>, vector<32x128xbf16>
    %c0_4 = arith.constant 0 : index
    %c0_5 = arith.constant 0 : index
    %5 = vector.load %arg4[%c0_4, %c0_5] : memref<128x128xbf16, #tpu.memory_space<vmem>>, vector<128x128xbf16>
    %cst = arith.constant dense<0.000000e+00> : vector<32x128xf32>
    %6 = tpu.matmul %4, %5, %cst {dimension_numbers = #tpu.dot_dimension_numbers<[1], [0], [0], [1], [0, 0, 1, 1], [], []>} : vector<32x128xbf16>, vector<128x128xbf16>, vector<32x128xf32> -> vector<32x128xf32>
    %7 = arith.addf %3, %6 : vector<32x128xf32>
    %c0_6 = arith.constant 0 : index
    %c0_7 = arith.constant 0 : index
    %8 = vector.load %arg7[%c0_6, %c0_7] : memref<32x128xf32, #tpu.memory_space<vmem>>, vector<32x128xf32>
    tpu.vector_store %arg7[%c0_6, %c0_7], %7 {strides = array<i32>} : memref<32x128xf32, #tpu.memory_space<vmem>>, vector<32x128xf32>,
    %c0_i32_8 = arith.constant 0 : i32
    %9 = arith.cmpi eq, %arg2, %c0_i32_8 : i32
    %10 = arith.extui %9 : i1 to i32
    %c0_i32_9 = arith.constant 0 : i32
    %11 = arith.cmpi ne, %10, %c0_i32_9 : i32
    scf.if %11 {
      %c0_10 = arith.constant 0 : index
      %c0_11 = arith.constant 0 : index
      %12 = vector.load %arg7[%c0_10, %c0_11] : memref<32x128xf32, #tpu.memory_space<vmem>>, vector<32x128xf32>
      %c0_12 = arith.constant 0 : index
      %c0_13 = arith.constant 0 : index
      %13 = vector.load %arg5[%c0_12, %c0_13] : memref<1x128xf32, #tpu.memory_space<vmem>>, vector<1x128xf32>
      %14 = vector.broadcast %13 : vector<1x128xf32> to vector<32x128xf32>
      %15 = arith.addf %12, %14 : vector<32x128xf32>
      %cst_14 = arith.constant 0.000000e+00 : f32
      %16 = vector.broadcast %cst_14 : f32 to vector<32x128xf32>
      %17 = arith.maximumf %15, %16 : vector<32x128xf32>
      %18 = arith.truncf %17 : vector<32x128xf32> to vector<32x128xbf16>
      %c0_15 = arith.constant 0 : index
      %c0_16 = arith.constant 0 : index
      %19 = vector.load %arg6[%c0_15, %c0_16] : memref<32x128xbf16, #tpu.memory_space<vmem>>, vector<32x128xbf16>
      tpu.vector_store %arg6[%c0_15, %c0_16], %18 {strides = array<i32>} : memref<32x128xbf16, #tpu.memory_space<vmem>>, vector<32x128xbf16>,
    } else {
    }
    return
  }
  func.func @transform_0(%arg0: i32, %arg1: i32, %arg2: i32) -> (i32, i32) {
    %c0_i32 = arith.constant 0 : i32
    return %arg0, %arg2 : i32, i32
  }
  func.func @transform_1(%arg0: i32, %arg1: i32, %arg2: i32) -> (i32, i32) {
    %c0_i32 = arith.constant 0 : i32
    return %arg2, %arg1 : i32, i32
  }
  func.func @transform_2(%arg0: i32, %arg1: i32, %arg2: i32) -> (i32, i32) {
    %c0_i32 = arith.constant 0 : i32
    %c0_i32_0 = arith.constant 0 : i32
    return %c0_i32, %arg1 : i32, i32
  }
  func.func @transform_3(%arg0: i32, %arg1: i32, %arg2: i32) -> (i32, i32) {
    %c0_i32 = arith.constant 0 : i32
    return %arg0, %arg1 : i32, i32
  }
}

module attributes {stable_mosaic.version = 11 : i64} {
  func.func @_mm_kernel(%arg0: i32, %arg1: i32, %arg2: i32, %arg3: memref<32x512xbf16, #tpu.memory_space<vmem>>, %arg4: memref<512x128xbf16, #tpu.memory_space<vmem>>, %arg5: memref<1x128xf32, #tpu.memory_space<vmem>>, %arg6: memref<32x128xbf16, #tpu.memory_space<vmem>>, %arg7: memref<32x128xf32, #tpu.memory_space<vmem>>) attributes {dimension_semantics = [#tpu.dimension_semantics<parallel>, #tpu.dimension_semantics<parallel>, #tpu.dimension_semantics<arbitrary>], iteration_bounds = array<i64: 1, 1, 2>, scalar_prefetch = 0 : i64, scratch_operands = 1 : i64, tpu.core_type = #tpu.core_type<tc>, window_params = [{transform_indices = @transform_0, window_bounds = array<i64: 32, 512>}, {transform_indices = @transform_1, window_bounds = array<i64: 512, 128>}, {transform_indices = @transform_2, window_bounds = array<i64: 1, 128>}, {transform_indices = @transform_3, window_bounds = array<i64: 32, 128>}]} {
    %c0_i32 = arith.constant 0 : i32
    %0 = arith.cmpi eq, %arg2, %c0_i32 : i32
    %1 = arith.extui %0 : i1 to i32
    %c0_i32_0 = arith.constant 0 : i32
    %2 = arith.cmpi ne, %1, %c0_i32_0 : i32
    scf.if %2 {
      %cst_9 = arith.constant 0.000000e+00 : f32
      %12 = vector.broadcast %cst_9 : f32 to vector<32x128xf32>
      %c0_10 = arith.constant 0 : index
      %c0_11 = arith.constant 0 : index
      %13 = vector.load %arg7[%c0_10, %c0_11] : memref<32x128xf32, #tpu.memory_space<vmem>>, vector<32x128xf32>
      tpu.vector_store %arg7[%c0_10, %c0_11], %12 {strides = array<i32>} : memref<32x128xf32, #tpu.memory_space<vmem>>, vector<32x128xf32>,
    } else {
    }
    %c0 = arith.constant 0 : index
    %c0_1 = arith.constant 0 : index
    %3 = vector.load %arg7[%c0, %c0_1] : memref<32x128xf32, #tpu.memory_space<vmem>>, vector<32x128xf32>
    %c0_2 = arith.constant 0 : index
    %c0_3 = arith.constant 0 : index
    %4 = vector.load %arg3[%c0_2, %c0_3] : memref<32x512xbf16, #tpu.memory_space<vmem>>, vector<32x512xbf16>
    %c0_4 = arith.constant 0 : index
    %c0_5 = arith.constant 0 : index
    %5 = vector.load %arg4[%c0_4, %c0_5] : memref<512x128xbf16, #tpu.memory_space<vmem>>, vector<512x128xbf16>
    %cst = arith.constant dense<0.000000e+00> : vector<32x128xf32>
    %6 = tpu.matmul %4, %5, %cst {dimension_numbers = #tpu.dot_dimension_numbers<[1], [0], [0], [1], [0, 0, 1, 1], [], []>} : vector<32x512xbf16>, vector<512x128xbf16>, vector<32x128xf32> -> vector<32x128xf32>
    %7 = arith.addf %3, %6 : vector<32x128xf32>
    %c0_6 = arith.constant 0 : index
    %c0_7 = arith.constant 0 : index
    %8 = vector.load %arg7[%c0_6, %c0_7] : memref<32x128xf32, #tpu.memory_space<vmem>>, vector<32x128xf32>
    tpu.vector_store %arg7[%c0_6, %c0_7], %7 {strides = array<i32>} : memref<32x128xf32, #tpu.memory_space<vmem>>, vector<32x128xf32>,
    %c1_i32 = arith.constant 1 : i32
    %9 = arith.cmpi eq, %arg2, %c1_i32 : i32
    %10 = arith.extui %9 : i1 to i32
    %c0_i32_8 = arith.constant 0 : i32
    %11 = arith.cmpi ne, %10, %c0_i32_8 : i32
    scf.if %11 {
      %c0_9 = arith.constant 0 : index
      %c0_10 = arith.constant 0 : index
      %12 = vector.load %arg7[%c0_9, %c0_10] : memref<32x128xf32, #tpu.memory_space<vmem>>, vector<32x128xf32>
      %c0_11 = arith.constant 0 : index
      %c0_12 = arith.constant 0 : index
      %13 = vector.load %arg5[%c0_11, %c0_12] : memref<1x128xf32, #tpu.memory_space<vmem>>, vector<1x128xf32>
      %14 = vector.broadcast %13 : vector<1x128xf32> to vector<32x128xf32>
      %15 = arith.addf %12, %14 : vector<32x128xf32>
      %cst_13 = arith.constant 0.000000e+00 : f32
      %16 = vector.broadcast %cst_13 : f32 to vector<32x128xf32>
      %17 = arith.maximumf %15, %16 : vector<32x128xf32>
      %18 = arith.truncf %17 : vector<32x128xf32> to vector<32x128xbf16>
      %c0_14 = arith.constant 0 : index
      %c0_15 = arith.constant 0 : index
      %19 = vector.load %arg6[%c0_14, %c0_15] : memref<32x128xbf16, #tpu.memory_space<vmem>>, vector<32x128xbf16>
      tpu.vector_store %arg6[%c0_14, %c0_15], %18 {strides = array<i32>} : memref<32x128xbf16, #tpu.memory_space<vmem>>, vector<32x128xbf16>,
    } else {
    }
    return
  }
  func.func @transform_0(%arg0: i32, %arg1: i32, %arg2: i32) -> (i32, i32) {
    %c0_i32 = arith.constant 0 : i32
    return %arg0, %arg2 : i32, i32
  }
  func.func @transform_1(%arg0: i32, %arg1: i32, %arg2: i32) -> (i32, i32) {
    %c0_i32 = arith.constant 0 : i32
    return %arg2, %arg1 : i32, i32
  }
  func.func @transform_2(%arg0: i32, %arg1: i32, %arg2: i32) -> (i32, i32) {
    %c0_i32 = arith.constant 0 : i32
    %c0_i32_0 = arith.constant 0 : i32
    return %c0_i32, %arg1 : i32, i32
  }
  func.func @transform_3(%arg0: i32, %arg1: i32, %arg2: i32) -> (i32, i32) {
    %c0_i32 = arith.constant 0 : i32
    return %arg0, %arg1 : i32, i32
  }
}

module attributes {stable_mosaic.version = 11 : i64} {
  func.func @_mm_kernel(%arg0: i32, %arg1: i32, %arg2: i32, %arg3: memref<32x512xbf16, #tpu.memory_space<vmem>>, %arg4: memref<512x128xbf16, #tpu.memory_space<vmem>>, %arg5: memref<1x128xf32, #tpu.memory_space<vmem>>, %arg6: memref<32x128xbf16, #tpu.memory_space<vmem>>, %arg7: memref<32x128xf32, #tpu.memory_space<vmem>>) attributes {dimension_semantics = [#tpu.dimension_semantics<parallel>, #tpu.dimension_semantics<parallel>, #tpu.dimension_semantics<arbitrary>], iteration_bounds = array<i64: 1, 1, 1>, scalar_prefetch = 0 : i64, scratch_operands = 1 : i64, tpu.core_type = #tpu.core_type<tc>, window_params = [{transform_indices = @transform_0, window_bounds = array<i64: 32, 512>}, {transform_indices = @transform_1, window_bounds = array<i64: 512, 128>}, {transform_indices = @transform_2, window_bounds = array<i64: 1, 128>}, {transform_indices = @transform_3, window_bounds = array<i64: 32, 128>}]} {
    %c0_i32 = arith.constant 0 : i32
    %0 = arith.cmpi eq, %arg2, %c0_i32 : i32
    %1 = arith.extui %0 : i1 to i32
    %c0_i32_0 = arith.constant 0 : i32
    %2 = arith.cmpi ne, %1, %c0_i32_0 : i32
    scf.if %2 {
      %cst_10 = arith.constant 0.000000e+00 : f32
      %12 = vector.broadcast %cst_10 : f32 to vector<32x128xf32>
      %c0_11 = arith.constant 0 : index
      %c0_12 = arith.constant 0 : index
      %13 = vector.load %arg7[%c0_11, %c0_12] : memref<32x128xf32, #tpu.memory_space<vmem>>, vector<32x128xf32>
      tpu.vector_store %arg7[%c0_11, %c0_12], %12 {strides = array<i32>} : memref<32x128xf32, #tpu.memory_space<vmem>>, vector<32x128xf32>,
    } else {
    }
    %c0 = arith.constant 0 : index
    %c0_1 = arith.constant 0 : index
    %3 = vector.load %arg7[%c0, %c0_1] : memref<32x128xf32, #tpu.memory_space<vmem>>, vector<32x128xf32>
    %c0_2 = arith.constant 0 : index
    %c0_3 = arith.constant 0 : index
    %4 = vector.load %arg3[%c0_2, %c0_3] : memref<32x512xbf16, #tpu.memory_space<vmem>>, vector<32x512xbf16>
    %c0_4 = arith.constant 0 : index
    %c0_5 = arith.constant 0 : index
    %5 = vector.load %arg4[%c0_4, %c0_5] : memref<512x128xbf16, #tpu.memory_space<vmem>>, vector<512x128xbf16>
    %cst = arith.constant dense<0.000000e+00> : vector<32x128xf32>
    %6 = tpu.matmul %4, %5, %cst {dimension_numbers = #tpu.dot_dimension_numbers<[1], [0], [0], [1], [0, 0, 1, 1], [], []>} : vector<32x512xbf16>, vector<512x128xbf16>, vector<32x128xf32> -> vector<32x128xf32>
    %7 = arith.addf %3, %6 : vector<32x128xf32>
    %c0_6 = arith.constant 0 : index
    %c0_7 = arith.constant 0 : index
    %8 = vector.load %arg7[%c0_6, %c0_7] : memref<32x128xf32, #tpu.memory_space<vmem>>, vector<32x128xf32>
    tpu.vector_store %arg7[%c0_6, %c0_7], %7 {strides = array<i32>} : memref<32x128xf32, #tpu.memory_space<vmem>>, vector<32x128xf32>,
    %c0_i32_8 = arith.constant 0 : i32
    %9 = arith.cmpi eq, %arg2, %c0_i32_8 : i32
    %10 = arith.extui %9 : i1 to i32
    %c0_i32_9 = arith.constant 0 : i32
    %11 = arith.cmpi ne, %10, %c0_i32_9 : i32
    scf.if %11 {
      %c0_10 = arith.constant 0 : index
      %c0_11 = arith.constant 0 : index
      %12 = vector.load %arg7[%c0_10, %c0_11] : memref<32x128xf32, #tpu.memory_space<vmem>>, vector<32x128xf32>
      %c0_12 = arith.constant 0 : index
      %c0_13 = arith.constant 0 : index
      %13 = vector.load %arg5[%c0_12, %c0_13] : memref<1x128xf32, #tpu.memory_space<vmem>>, vector<1x128xf32>
      %14 = vector.broadcast %13 : vector<1x128xf32> to vector<32x128xf32>
      %15 = arith.addf %12, %14 : vector<32x128xf32>
      %cst_14 = arith.constant 0.000000e+00 : f32
      %16 = vector.broadcast %cst_14 : f32 to vector<32x128xf32>
      %17 = arith.maximumf %15, %16 : vector<32x128xf32>
      %18 = arith.truncf %17 : vector<32x128xf32> to vector<32x128xbf16>
      %c0_15 = arith.constant 0 : index
      %c0_16 = arith.constant 0 : index
      %19 = vector.load %arg6[%c0_15, %c0_16] : memref<32x128xbf16, #tpu.memory_space<vmem>>, vector<32x128xbf16>
      tpu.vector_store %arg6[%c0_15, %c0_16], %18 {strides = array<i32>} : memref<32x128xbf16, #tpu.memory_space<vmem>>, vector<32x128xbf16>,
    } else {
    }
    return
  }
  func.func @transform_0(%arg0: i32, %arg1: i32, %arg2: i32) -> (i32, i32) {
    %c0_i32 = arith.constant 0 : i32
    return %arg0, %arg2 : i32, i32
  }
  func.func @transform_1(%arg0: i32, %arg1: i32, %arg2: i32) -> (i32, i32) {
    %c0_i32 = arith.constant 0 : i32
    return %arg2, %arg1 : i32, i32
  }
  func.func @transform_2(%arg0: i32, %arg1: i32, %arg2: i32) -> (i32, i32) {
    %c0_i32 = arith.constant 0 : i32
    %c0_i32_0 = arith.constant 0 : i32
    return %c0_i32, %arg1 : i32, i32
  }
  func.func @transform_3(%arg0: i32, %arg1: i32, %arg2: i32) -> (i32, i32) {
    %c0_i32 = arith.constant 0 : i32
    return %arg0, %arg1 : i32, i32
  }
}

module attributes {stable_mosaic.version = 11 : i64} {
  func.func @_mm_kernel(%arg0: i32, %arg1: i32, %arg2: i32, %arg3: memref<16x512xbf16, #tpu.memory_space<vmem>>, %arg4: memref<512x256xbf16, #tpu.memory_space<vmem>>, %arg5: memref<1x256xf32, #tpu.memory_space<vmem>>, %arg6: memref<16x256xbf16, #tpu.memory_space<vmem>>, %arg7: memref<16x256xf32, #tpu.memory_space<vmem>>) attributes {dimension_semantics = [#tpu.dimension_semantics<parallel>, #tpu.dimension_semantics<parallel>, #tpu.dimension_semantics<arbitrary>], iteration_bounds = array<i64: 1, 1, 4>, scalar_prefetch = 0 : i64, scratch_operands = 1 : i64, tpu.core_type = #tpu.core_type<tc>, window_params = [{transform_indices = @transform_0, window_bounds = array<i64: 16, 512>}, {transform_indices = @transform_1, window_bounds = array<i64: 512, 256>}, {transform_indices = @transform_2, window_bounds = array<i64: 1, 256>}, {transform_indices = @transform_3, window_bounds = array<i64: 16, 256>}]} {
    %c0_i32 = arith.constant 0 : i32
    %0 = arith.cmpi eq, %arg2, %c0_i32 : i32
    %1 = arith.extui %0 : i1 to i32
    %c0_i32_0 = arith.constant 0 : i32
    %2 = arith.cmpi ne, %1, %c0_i32_0 : i32
    scf.if %2 {
      %cst_9 = arith.constant 0.000000e+00 : f32
      %12 = vector.broadcast %cst_9 : f32 to vector<16x256xf32>
      %c0_10 = arith.constant 0 : index
      %c0_11 = arith.constant 0 : index
      %13 = vector.load %arg7[%c0_10, %c0_11] : memref<16x256xf32, #tpu.memory_space<vmem>>, vector<16x256xf32>
      tpu.vector_store %arg7[%c0_10, %c0_11], %12 {strides = array<i32>} : memref<16x256xf32, #tpu.memory_space<vmem>>, vector<16x256xf32>,
    } else {
    }
    %c0 = arith.constant 0 : index
    %c0_1 = arith.constant 0 : index
    %3 = vector.load %arg7[%c0, %c0_1] : memref<16x256xf32, #tpu.memory_space<vmem>>, vector<16x256xf32>
    %c0_2 = arith.constant 0 : index
    %c0_3 = arith.constant 0 : index
    %4 = vector.load %arg3[%c0_2, %c0_3] : memref<16x512xbf16, #tpu.memory_space<vmem>>, vector<16x512xbf16>
    %c0_4 = arith.constant 0 : index
    %c0_5 = arith.constant 0 : index
    %5 = vector.load %arg4[%c0_4, %c0_5] : memref<512x256xbf16, #tpu.memory_space<vmem>>, vector<512x256xbf16>
    %cst = arith.constant dense<0.000000e+00> : vector<16x256xf32>
    %6 = tpu.matmul %4, %5, %cst {dimension_numbers = #tpu.dot_dimension_numbers<[1], [0], [0], [1], [0, 0, 1, 1], [], []>} : vector<16x512xbf16>, vector<512x256xbf16>, vector<16x256xf32> -> vector<16x256xf32>
    %7 = arith.addf %3, %6 : vector<16x256xf32>
    %c0_6 = arith.constant 0 : index
    %c0_7 = arith.constant 0 : index
    %8 = vector.load %arg7[%c0_6, %c0_7] : memref<16x256xf32, #tpu.memory_space<vmem>>, vector<16x256xf32>
    tpu.vector_store %arg7[%c0_6, %c0_7], %7 {strides = array<i32>} : memref<16x256xf32, #tpu.memory_space<vmem>>, vector<16x256xf32>,
    %c3_i32 = arith.constant 3 : i32
    %9 = arith.cmpi eq, %arg2, %c3_i32 : i32
    %10 = arith.extui %9 : i1 to i32
    %c0_i32_8 = arith.constant 0 : i32
    %11 = arith.cmpi ne, %10, %c0_i32_8 : i32
    scf.if %11 {
      %c0_9 = arith.constant 0 : index
      %c0_10 = arith.constant 0 : index
      %12 = vector.load %arg7[%c0_9, %c0_10] : memref<16x256xf32, #tpu.memory_space<vmem>>, vector<16x256xf32>
      %c0_11 = arith.constant 0 : index
      %c0_12 = arith.constant 0 : index
      %13 = vector.load %arg5[%c0_11, %c0_12] : memref<1x256xf32, #tpu.memory_space<vmem>>, vector<1x256xf32>
      %14 = vector.broadcast %13 : vector<1x256xf32> to vector<16x256xf32>
      %15 = arith.addf %12, %14 : vector<16x256xf32>
      %cst_13 = arith.constant 0.000000e+00 : f32
      %16 = vector.broadcast %cst_13 : f32 to vector<16x256xf32>
      %17 = arith.maximumf %15, %16 : vector<16x256xf32>
      %18 = arith.truncf %17 : vector<16x256xf32> to vector<16x256xbf16>
      %c0_14 = arith.constant 0 : index
      %c0_15 = arith.constant 0 : index
      %19 = vector.load %arg6[%c0_14, %c0_15] : memref<16x256xbf16, #tpu.memory_space<vmem>>, vector<16x256xbf16>
      tpu.vector_store %arg6[%c0_14, %c0_15], %18 {strides = array<i32>} : memref<16x256xbf16, #tpu.memory_space<vmem>>, vector<16x256xbf16>,
    } else {
    }
    return
  }
  func.func @transform_0(%arg0: i32, %arg1: i32, %arg2: i32) -> (i32, i32) {
    %c0_i32 = arith.constant 0 : i32
    return %arg0, %arg2 : i32, i32
  }
  func.func @transform_1(%arg0: i32, %arg1: i32, %arg2: i32) -> (i32, i32) {
    %c0_i32 = arith.constant 0 : i32
    return %arg2, %arg1 : i32, i32
  }
  func.func @transform_2(%arg0: i32, %arg1: i32, %arg2: i32) -> (i32, i32) {
    %c0_i32 = arith.constant 0 : i32
    %c0_i32_0 = arith.constant 0 : i32
    return %c0_i32, %arg1 : i32, i32
  }
  func.func @transform_3(%arg0: i32, %arg1: i32, %arg2: i32) -> (i32, i32) {
    %c0_i32 = arith.constant 0 : i32
    return %arg0, %arg1 : i32, i32
  }
}

module attributes {stable_mosaic.version = 11 : i64} {
  func.func @_attention_kernel(%arg0: i32, %arg1: memref<16x256xbf16, #tpu.memory_space<vmem>>, %arg2: memref<256x128xbf16, #tpu.memory_space<vmem>>, %arg3: memref<1x128xf32, #tpu.memory_space<vmem>>, %arg4: memref<128x128xbf16, #tpu.memory_space<vmem>>, %arg5: memref<1x128xf32, #tpu.memory_space<vmem>>, %arg6: memref<16x256xbf16, #tpu.memory_space<vmem>>) attributes {dimension_semantics = [#tpu.dimension_semantics<arbitrary>], iteration_bounds = array<i64: 1>, scalar_prefetch = 0 : i64, scratch_operands = 0 : i64, tpu.core_type = #tpu.core_type<tc>, window_params = [{pipeline_mode = #tpu.pipeline_mode<synchronous>, transform_indices = @transform_0, window_bounds = array<i64: 16, 256>}, {pipeline_mode = #tpu.pipeline_mode<synchronous>, transform_indices = @transform_1, window_bounds = array<i64: 256, 128>}, {pipeline_mode = #tpu.pipeline_mode<synchronous>, transform_indices = @transform_2, window_bounds = array<i64: 1, 128>}, {pipeline_mode = #tpu.pipeline_mode<synchronous>, transform_indices = @transform_3, window_bounds = array<i64: 128, 128>}, {pipeline_mode = #tpu.pipeline_mode<synchronous>, transform_indices = @transform_4, window_bounds = array<i64: 1, 128>}, {pipeline_mode = #tpu.pipeline_mode<synchronous>, transform_indices = @transform_5, window_bounds = array<i64: 16, 256>}]} {
    %c0 = arith.constant 0 : index
    %c0_0 = arith.constant 0 : index
    %0 = vector.load %arg1[%c0, %c0_0] : memref<16x256xbf16, #tpu.memory_space<vmem>>, vector<16x256xbf16>
    %c0_1 = arith.constant 0 : index
    %c0_2 = arith.constant 0 : index
    %1 = vector.load %arg2[%c0_1, %c0_2] : memref<256x128xbf16, #tpu.memory_space<vmem>>, vector<256x128xbf16>
    %cst = arith.constant dense<0.000000e+00> : vector<16x128xf32>
    %2 = tpu.matmul %0, %1, %cst {dimension_numbers = #tpu.dot_dimension_numbers<[1], [0], [0], [1], [0, 0, 1, 1], [], []>} : vector<16x256xbf16>, vector<256x128xbf16>, vector<16x128xf32> -> vector<16x128xf32>
    %c0_3 = arith.constant 0 : index
    %c0_4 = arith.constant 0 : index
    %3 = vector.load %arg3[%c0_3, %c0_4] : memref<1x128xf32, #tpu.memory_space<vmem>>, vector<1x128xf32>
    %4 = vector.broadcast %3 : vector<1x128xf32> to vector<16x128xf32>
    %5 = arith.addf %2, %4 : vector<16x128xf32>
    %cst_5 = arith.constant 0.000000e+00 : f32
    %6 = vector.broadcast %cst_5 : f32 to vector<16x128xf32>
    %7 = arith.maximumf %5, %6 : vector<16x128xf32>
    %8 = arith.truncf %7 : vector<16x128xf32> to vector<16x128xbf16>
    %c0_6 = arith.constant 0 : index
    %c0_7 = arith.constant 0 : index
    %9 = vector.load %arg4[%c0_6, %c0_7] : memref<128x128xbf16, #tpu.memory_space<vmem>>, vector<128x128xbf16>
    %cst_8 = arith.constant dense<0.000000e+00> : vector<16x128xf32>
    %10 = tpu.matmul %8, %9, %cst_8 {dimension_numbers = #tpu.dot_dimension_numbers<[1], [0], [0], [1], [0, 0, 1, 1], [], []>} : vector<16x128xbf16>, vector<128x128xbf16>, vector<16x128xf32> -> vector<16x128xf32>
    %c0_9 = arith.constant 0 : index
    %c0_10 = arith.constant 0 : index
    %11 = vector.load %arg5[%c0_9, %c0_10] : memref<1x128xf32, #tpu.memory_space<vmem>>, vector<1x128xf32>
    %12 = vector.broadcast %11 : vector<1x128xf32> to vector<16x128xf32>
    %13 = arith.addf %10, %12 : vector<16x128xf32>
    %14 = vector.extract_strided_slice %13 {offsets = [0, 0], sizes = [16, 1], strides = [1, 1]} : vector<16x128xf32> to vector<16x1xf32>
    %cst_11 = arith.constant 0.000000e+00 : f32
    %15 = vector.broadcast %cst_11 : f32 to vector<16x1xf32>
    %16 = arith.subf %15, %14 : vector<16x1xf32>
    %17 = math.exp %16 : vector<16x1xf32>
    %cst_12 = arith.constant 1.000000e+00 : f32
    %18 = vector.broadcast %cst_12 : f32 to vector<16x1xf32>
    %19 = arith.addf %18, %17 : vector<16x1xf32>
    %20 = tpu.reciprocal %19 {approx = true} : vector<16x1xf32> -> vector<16x1xf32>
    %21 = arith.extf %0 : vector<16x256xbf16> to vector<16x256xf32>
    %22 = vector.broadcast %20 : vector<16x1xf32> to vector<16x256xf32>
    %23 = arith.mulf %21, %22 : vector<16x256xf32>
    %24 = arith.truncf %23 : vector<16x256xf32> to vector<16x256xbf16>
    %c0_13 = arith.constant 0 : index
    %c0_14 = arith.constant 0 : index
    %25 = vector.load %arg6[%c0_13, %c0_14] : memref<16x256xbf16, #tpu.memory_space<vmem>>, vector<16x256xbf16>
    tpu.vector_store %arg6[%c0_13, %c0_14], %24 {strides = array<i32>} : memref<16x256xbf16, #tpu.memory_space<vmem>>, vector<16x256xbf16>,
    return
  }
  func.func @transform_0(%arg0: i32) -> (i32, i32) {
    %c0_i32 = arith.constant 0 : i32
    %c0_i32_0 = arith.constant 0 : i32
    %c0_i32_1 = arith.constant 0 : i32
    return %c0_i32, %c0_i32_0 : i32, i32
  }
  func.func @transform_1(%arg0: i32) -> (i32, i32) {
    %c0_i32 = arith.constant 0 : i32
    %c0_i32_0 = arith.constant 0 : i32
    %c0_i32_1 = arith.constant 0 : i32
    return %c0_i32, %c0_i32_0 : i32, i32
  }
  func.func @transform_2(%arg0: i32) -> (i32, i32) {
    %c0_i32 = arith.constant 0 : i32
    %c0_i32_0 = arith.constant 0 : i32
    %c0_i32_1 = arith.constant 0 : i32
    return %c0_i32, %c0_i32_0 : i32, i32
  }
  func.func @transform_3(%arg0: i32) -> (i32, i32) {
    %c0_i32 = arith.constant 0 : i32
    %c0_i32_0 = arith.constant 0 : i32
    %c0_i32_1 = arith.constant 0 : i32
    return %c0_i32, %c0_i32_0 : i32, i32
  }
  func.func @transform_4(%arg0: i32) -> (i32, i32) {
    %c0_i32 = arith.constant 0 : i32
    %c0_i32_0 = arith.constant 0 : i32
    %c0_i32_1 = arith.constant 0 : i32
    return %c0_i32, %c0_i32_0 : i32, i32
  }
  func.func @transform_5(%arg0: i32) -> (i32, i32) {
    %c0_i32 = arith.constant 0 : i32
    %c0_i32_0 = arith.constant 0 : i32
    %c0_i32_1 = arith.constant 0 : i32
    return %c0_i32, %c0_i32_0 : i32, i32
  }
}

module attributes {stable_mosaic.version = 11 : i64} {
  func.func @_mm_kernel(%arg0: i32, %arg1: i32, %arg2: i32, %arg3: memref<16x512xbf16, #tpu.memory_space<vmem>>, %arg4: memref<512x256xbf16, #tpu.memory_space<vmem>>, %arg5: memref<1x256xf32, #tpu.memory_space<vmem>>, %arg6: memref<16x256xbf16, #tpu.memory_space<vmem>>, %arg7: memref<16x256xf32, #tpu.memory_space<vmem>>) attributes {dimension_semantics = [#tpu.dimension_semantics<parallel>, #tpu.dimension_semantics<parallel>, #tpu.dimension_semantics<arbitrary>], iteration_bounds = array<i64: 1, 2, 5>, scalar_prefetch = 0 : i64, scratch_operands = 1 : i64, tpu.core_type = #tpu.core_type<tc>, window_params = [{transform_indices = @transform_0, window_bounds = array<i64: 16, 512>}, {transform_indices = @transform_1, window_bounds = array<i64: 512, 256>}, {transform_indices = @transform_2, window_bounds = array<i64: 1, 256>}, {transform_indices = @transform_3, window_bounds = array<i64: 16, 256>}]} {
    %c0_i32 = arith.constant 0 : i32
    %0 = arith.cmpi eq, %arg2, %c0_i32 : i32
    %1 = arith.extui %0 : i1 to i32
    %c0_i32_0 = arith.constant 0 : i32
    %2 = arith.cmpi ne, %1, %c0_i32_0 : i32
    scf.if %2 {
      %cst_9 = arith.constant 0.000000e+00 : f32
      %12 = vector.broadcast %cst_9 : f32 to vector<16x256xf32>
      %c0_10 = arith.constant 0 : index
      %c0_11 = arith.constant 0 : index
      %13 = vector.load %arg7[%c0_10, %c0_11] : memref<16x256xf32, #tpu.memory_space<vmem>>, vector<16x256xf32>
      tpu.vector_store %arg7[%c0_10, %c0_11], %12 {strides = array<i32>} : memref<16x256xf32, #tpu.memory_space<vmem>>, vector<16x256xf32>,
    } else {
    }
    %c0 = arith.constant 0 : index
    %c0_1 = arith.constant 0 : index
    %3 = vector.load %arg7[%c0, %c0_1] : memref<16x256xf32, #tpu.memory_space<vmem>>, vector<16x256xf32>
    %c0_2 = arith.constant 0 : index
    %c0_3 = arith.constant 0 : index
    %4 = vector.load %arg3[%c0_2, %c0_3] : memref<16x512xbf16, #tpu.memory_space<vmem>>, vector<16x512xbf16>
    %c0_4 = arith.constant 0 : index
    %c0_5 = arith.constant 0 : index
    %5 = vector.load %arg4[%c0_4, %c0_5] : memref<512x256xbf16, #tpu.memory_space<vmem>>, vector<512x256xbf16>
    %cst = arith.constant dense<0.000000e+00> : vector<16x256xf32>
    %6 = tpu.matmul %4, %5, %cst {dimension_numbers = #tpu.dot_dimension_numbers<[1], [0], [0], [1], [0, 0, 1, 1], [], []>} : vector<16x512xbf16>, vector<512x256xbf16>, vector<16x256xf32> -> vector<16x256xf32>
    %7 = arith.addf %3, %6 : vector<16x256xf32>
    %c0_6 = arith.constant 0 : index
    %c0_7 = arith.constant 0 : index
    %8 = vector.load %arg7[%c0_6, %c0_7] : memref<16x256xf32, #tpu.memory_space<vmem>>, vector<16x256xf32>
    tpu.vector_store %arg7[%c0_6, %c0_7], %7 {strides = array<i32>} : memref<16x256xf32, #tpu.memory_space<vmem>>, vector<16x256xf32>,
    %c4_i32 = arith.constant 4 : i32
    %9 = arith.cmpi eq, %arg2, %c4_i32 : i32
    %10 = arith.extui %9 : i1 to i32
    %c0_i32_8 = arith.constant 0 : i32
    %11 = arith.cmpi ne, %10, %c0_i32_8 : i32
    scf.if %11 {
      %c0_9 = arith.constant 0 : index
      %c0_10 = arith.constant 0 : index
      %12 = vector.load %arg7[%c0_9, %c0_10] : memref<16x256xf32, #tpu.memory_space<vmem>>, vector<16x256xf32>
      %c0_11 = arith.constant 0 : index
      %c0_12 = arith.constant 0 : index
      %13 = vector.load %arg5[%c0_11, %c0_12] : memref<1x256xf32, #tpu.memory_space<vmem>>, vector<1x256xf32>
      %14 = vector.broadcast %13 : vector<1x256xf32> to vector<16x256xf32>
      %15 = arith.addf %12, %14 : vector<16x256xf32>
      %cst_13 = arith.constant 0.000000e+00 : f32
      %16 = vector.broadcast %cst_13 : f32 to vector<16x256xf32>
      %17 = arith.maximumf %15, %16 : vector<16x256xf32>
      %18 = arith.truncf %17 : vector<16x256xf32> to vector<16x256xbf16>
      %c0_14 = arith.constant 0 : index
      %c0_15 = arith.constant 0 : index
      %19 = vector.load %arg6[%c0_14, %c0_15] : memref<16x256xbf16, #tpu.memory_space<vmem>>, vector<16x256xbf16>
      tpu.vector_store %arg6[%c0_14, %c0_15], %18 {strides = array<i32>} : memref<16x256xbf16, #tpu.memory_space<vmem>>, vector<16x256xbf16>,
    } else {
    }
    return
  }
  func.func @transform_0(%arg0: i32, %arg1: i32, %arg2: i32) -> (i32, i32) {
    %c0_i32 = arith.constant 0 : i32
    return %arg0, %arg2 : i32, i32
  }
  func.func @transform_1(%arg0: i32, %arg1: i32, %arg2: i32) -> (i32, i32) {
    %c0_i32 = arith.constant 0 : i32
    return %arg2, %arg1 : i32, i32
  }
  func.func @transform_2(%arg0: i32, %arg1: i32, %arg2: i32) -> (i32, i32) {
    %c0_i32 = arith.constant 0 : i32
    %c0_i32_0 = arith.constant 0 : i32
    return %c0_i32, %arg1 : i32, i32
  }
  func.func @transform_3(%arg0: i32, %arg1: i32, %arg2: i32) -> (i32, i32) {
    %c0_i32 = arith.constant 0 : i32
    return %arg0, %arg1 : i32, i32
  }
}

module attributes {stable_mosaic.version = 11 : i64} {
  func.func @_mm_kernel(%arg0: i32, %arg1: i32, %arg2: i32, %arg3: memref<16x512xbf16, #tpu.memory_space<vmem>>, %arg4: memref<512x256xbf16, #tpu.memory_space<vmem>>, %arg5: memref<1x256xf32, #tpu.memory_space<vmem>>, %arg6: memref<16x256xbf16, #tpu.memory_space<vmem>>, %arg7: memref<16x256xf32, #tpu.memory_space<vmem>>) attributes {dimension_semantics = [#tpu.dimension_semantics<parallel>, #tpu.dimension_semantics<parallel>, #tpu.dimension_semantics<arbitrary>], iteration_bounds = array<i64: 1, 2, 7>, scalar_prefetch = 0 : i64, scratch_operands = 1 : i64, tpu.core_type = #tpu.core_type<tc>, window_params = [{transform_indices = @transform_0, window_bounds = array<i64: 16, 512>}, {transform_indices = @transform_1, window_bounds = array<i64: 512, 256>}, {transform_indices = @transform_2, window_bounds = array<i64: 1, 256>}, {transform_indices = @transform_3, window_bounds = array<i64: 16, 256>}]} {
    %c0_i32 = arith.constant 0 : i32
    %0 = arith.cmpi eq, %arg2, %c0_i32 : i32
    %1 = arith.extui %0 : i1 to i32
    %c0_i32_0 = arith.constant 0 : i32
    %2 = arith.cmpi ne, %1, %c0_i32_0 : i32
    scf.if %2 {
      %cst_9 = arith.constant 0.000000e+00 : f32
      %12 = vector.broadcast %cst_9 : f32 to vector<16x256xf32>
      %c0_10 = arith.constant 0 : index
      %c0_11 = arith.constant 0 : index
      %13 = vector.load %arg7[%c0_10, %c0_11] : memref<16x256xf32, #tpu.memory_space<vmem>>, vector<16x256xf32>
      tpu.vector_store %arg7[%c0_10, %c0_11], %12 {strides = array<i32>} : memref<16x256xf32, #tpu.memory_space<vmem>>, vector<16x256xf32>,
    } else {
    }
    %c0 = arith.constant 0 : index
    %c0_1 = arith.constant 0 : index
    %3 = vector.load %arg7[%c0, %c0_1] : memref<16x256xf32, #tpu.memory_space<vmem>>, vector<16x256xf32>
    %c0_2 = arith.constant 0 : index
    %c0_3 = arith.constant 0 : index
    %4 = vector.load %arg3[%c0_2, %c0_3] : memref<16x512xbf16, #tpu.memory_space<vmem>>, vector<16x512xbf16>
    %c0_4 = arith.constant 0 : index
    %c0_5 = arith.constant 0 : index
    %5 = vector.load %arg4[%c0_4, %c0_5] : memref<512x256xbf16, #tpu.memory_space<vmem>>, vector<512x256xbf16>
    %cst = arith.constant dense<0.000000e+00> : vector<16x256xf32>
    %6 = tpu.matmul %4, %5, %cst {dimension_numbers = #tpu.dot_dimension_numbers<[1], [0], [0], [1], [0, 0, 1, 1], [], []>} : vector<16x512xbf16>, vector<512x256xbf16>, vector<16x256xf32> -> vector<16x256xf32>
    %7 = arith.addf %3, %6 : vector<16x256xf32>
    %c0_6 = arith.constant 0 : index
    %c0_7 = arith.constant 0 : index
    %8 = vector.load %arg7[%c0_6, %c0_7] : memref<16x256xf32, #tpu.memory_space<vmem>>, vector<16x256xf32>
    tpu.vector_store %arg7[%c0_6, %c0_7], %7 {strides = array<i32>} : memref<16x256xf32, #tpu.memory_space<vmem>>, vector<16x256xf32>,
    %c6_i32 = arith.constant 6 : i32
    %9 = arith.cmpi eq, %arg2, %c6_i32 : i32
    %10 = arith.extui %9 : i1 to i32
    %c0_i32_8 = arith.constant 0 : i32
    %11 = arith.cmpi ne, %10, %c0_i32_8 : i32
    scf.if %11 {
      %c0_9 = arith.constant 0 : index
      %c0_10 = arith.constant 0 : index
      %12 = vector.load %arg7[%c0_9, %c0_10] : memref<16x256xf32, #tpu.memory_space<vmem>>, vector<16x256xf32>
      %c0_11 = arith.constant 0 : index
      %c0_12 = arith.constant 0 : index
      %13 = vector.load %arg5[%c0_11, %c0_12] : memref<1x256xf32, #tpu.memory_space<vmem>>, vector<1x256xf32>
      %14 = vector.broadcast %13 : vector<1x256xf32> to vector<16x256xf32>
      %15 = arith.addf %12, %14 : vector<16x256xf32>
      %cst_13 = arith.constant 0.000000e+00 : f32
      %16 = vector.broadcast %cst_13 : f32 to vector<16x256xf32>
      %17 = arith.maximumf %15, %16 : vector<16x256xf32>
      %18 = arith.truncf %17 : vector<16x256xf32> to vector<16x256xbf16>
      %c0_14 = arith.constant 0 : index
      %c0_15 = arith.constant 0 : index
      %19 = vector.load %arg6[%c0_14, %c0_15] : memref<16x256xbf16, #tpu.memory_space<vmem>>, vector<16x256xbf16>
      tpu.vector_store %arg6[%c0_14, %c0_15], %18 {strides = array<i32>} : memref<16x256xbf16, #tpu.memory_space<vmem>>, vector<16x256xbf16>,
    } else {
    }
    return
  }
  func.func @transform_0(%arg0: i32, %arg1: i32, %arg2: i32) -> (i32, i32) {
    %c0_i32 = arith.constant 0 : i32
    return %arg0, %arg2 : i32, i32
  }
  func.func @transform_1(%arg0: i32, %arg1: i32, %arg2: i32) -> (i32, i32) {
    %c0_i32 = arith.constant 0 : i32
    return %arg2, %arg1 : i32, i32
  }
  func.func @transform_2(%arg0: i32, %arg1: i32, %arg2: i32) -> (i32, i32) {
    %c0_i32 = arith.constant 0 : i32
    %c0_i32_0 = arith.constant 0 : i32
    return %c0_i32, %arg1 : i32, i32
  }
  func.func @transform_3(%arg0: i32, %arg1: i32, %arg2: i32) -> (i32, i32) {
    %c0_i32 = arith.constant 0 : i32
    return %arg0, %arg1 : i32, i32
  }
}

module attributes {stable_mosaic.version = 11 : i64} {
  func.func @_fc_head_kernel(%arg0: i32, %arg1: memref<16x1024xbf16, #tpu.memory_space<vmem>>, %arg2: memref<1024x512xbf16, #tpu.memory_space<vmem>>, %arg3: memref<1x512xf32, #tpu.memory_space<vmem>>, %arg4: memref<512x256xbf16, #tpu.memory_space<vmem>>, %arg5: memref<1x256xf32, #tpu.memory_space<vmem>>, %arg6: memref<256x128xbf16, #tpu.memory_space<vmem>>, %arg7: memref<1x128xf32, #tpu.memory_space<vmem>>, %arg8: memref<16x128xf32, #tpu.memory_space<vmem>>) attributes {dimension_semantics = [#tpu.dimension_semantics<arbitrary>], iteration_bounds = array<i64: 1>, scalar_prefetch = 0 : i64, scratch_operands = 0 : i64, tpu.core_type = #tpu.core_type<tc>, window_params = [{pipeline_mode = #tpu.pipeline_mode<synchronous>, transform_indices = @transform_0, window_bounds = array<i64: 16, 1024>}, {pipeline_mode = #tpu.pipeline_mode<synchronous>, transform_indices = @transform_1, window_bounds = array<i64: 1024, 512>}, {pipeline_mode = #tpu.pipeline_mode<synchronous>, transform_indices = @transform_2, window_bounds = array<i64: 1, 512>}, {pipeline_mode = #tpu.pipeline_mode<synchronous>, transform_indices = @transform_3, window_bounds = array<i64: 512, 256>}, {pipeline_mode = #tpu.pipeline_mode<synchronous>, transform_indices = @transform_4, window_bounds = array<i64: 1, 256>}, {pipeline_mode = #tpu.pipeline_mode<synchronous>, transform_indices = @transform_5, window_bounds = array<i64: 256, 128>}, {pipeline_mode = #tpu.pipeline_mode<synchronous>, transform_indices = @transform_6, window_bounds = array<i64: 1, 128>}, {pipeline_mode = #tpu.pipeline_mode<synchronous>, transform_indices = @transform_7, window_bounds = array<i64: 16, 128>}]} {
    %c0 = arith.constant 0 : index
    %c0_0 = arith.constant 0 : index
    %0 = vector.load %arg1[%c0, %c0_0] : memref<16x1024xbf16, #tpu.memory_space<vmem>>, vector<16x1024xbf16>
    %c0_1 = arith.constant 0 : index
    %c0_2 = arith.constant 0 : index
    %1 = vector.load %arg2[%c0_1, %c0_2] : memref<1024x512xbf16, #tpu.memory_space<vmem>>, vector<1024x512xbf16>
    %cst = arith.constant dense<0.000000e+00> : vector<16x512xf32>
    %2 = tpu.matmul %0, %1, %cst {dimension_numbers = #tpu.dot_dimension_numbers<[1], [0], [0], [1], [0, 0, 1, 1], [], []>} : vector<16x1024xbf16>, vector<1024x512xbf16>, vector<16x512xf32> -> vector<16x512xf32>
    %c0_3 = arith.constant 0 : index
    %c0_4 = arith.constant 0 : index
    %3 = vector.load %arg3[%c0_3, %c0_4] : memref<1x512xf32, #tpu.memory_space<vmem>>, vector<1x512xf32>
    %4 = vector.broadcast %3 : vector<1x512xf32> to vector<16x512xf32>
    %5 = arith.addf %2, %4 : vector<16x512xf32>
    %cst_5 = arith.constant 0.000000e+00 : f32
    %6 = vector.broadcast %cst_5 : f32 to vector<16x512xf32>
    %7 = arith.maximumf %5, %6 : vector<16x512xf32>
    %8 = arith.truncf %7 : vector<16x512xf32> to vector<16x512xbf16>
    %c0_6 = arith.constant 0 : index
    %c0_7 = arith.constant 0 : index
    %9 = vector.load %arg4[%c0_6, %c0_7] : memref<512x256xbf16, #tpu.memory_space<vmem>>, vector<512x256xbf16>
    %cst_8 = arith.constant dense<0.000000e+00> : vector<16x256xf32>
    %10 = tpu.matmul %8, %9, %cst_8 {dimension_numbers = #tpu.dot_dimension_numbers<[1], [0], [0], [1], [0, 0, 1, 1], [], []>} : vector<16x512xbf16>, vector<512x256xbf16>, vector<16x256xf32> -> vector<16x256xf32>
    %c0_9 = arith.constant 0 : index
    %c0_10 = arith.constant 0 : index
    %11 = vector.load %arg5[%c0_9, %c0_10] : memref<1x256xf32, #tpu.memory_space<vmem>>, vector<1x256xf32>
    %12 = vector.broadcast %11 : vector<1x256xf32> to vector<16x256xf32>
    %13 = arith.addf %10, %12 : vector<16x256xf32>
    %cst_11 = arith.constant 0.000000e+00 : f32
    %14 = vector.broadcast %cst_11 : f32 to vector<16x256xf32>
    %15 = arith.maximumf %13, %14 : vector<16x256xf32>
    %16 = arith.truncf %15 : vector<16x256xf32> to vector<16x256xbf16>
    %c0_12 = arith.constant 0 : index
    %c0_13 = arith.constant 0 : index
    %17 = vector.load %arg6[%c0_12, %c0_13] : memref<256x128xbf16, #tpu.memory_space<vmem>>, vector<256x128xbf16>
    %cst_14 = arith.constant dense<0.000000e+00> : vector<16x128xf32>
    %18 = tpu.matmul %16, %17, %cst_14 {dimension_numbers = #tpu.dot_dimension_numbers<[1], [0], [0], [1], [0, 0, 1, 1], [], []>} : vector<16x256xbf16>, vector<256x128xbf16>, vector<16x128xf32> -> vector<16x128xf32>
    %c0_15 = arith.constant 0 : index
    %c0_16 = arith.constant 0 : index
    %19 = vector.load %arg7[%c0_15, %c0_16] : memref<1x128xf32, #tpu.memory_space<vmem>>, vector<1x128xf32>
    %20 = vector.broadcast %19 : vector<1x128xf32> to vector<16x128xf32>
    %21 = arith.addf %18, %20 : vector<16x128xf32>
    %c0_17 = arith.constant 0 : index
    %c0_18 = arith.constant 0 : index
    %22 = vector.load %arg8[%c0_17, %c0_18] : memref<16x128xf32, #tpu.memory_space<vmem>>, vector<16x128xf32>
    tpu.vector_store %arg8[%c0_17, %c0_18], %21 {strides = array<i32>} : memref<16x128xf32, #tpu.memory_space<vmem>>, vector<16x128xf32>,
    return
  }
  func.func @transform_0(%arg0: i32) -> (i32, i32) {
    %c0_i32 = arith.constant 0 : i32
    %c0_i32_0 = arith.constant 0 : i32
    %c0_i32_1 = arith.constant 0 : i32
    return %c0_i32, %c0_i32_0 : i32, i32
  }
  func.func @transform_1(%arg0: i32) -> (i32, i32) {
    %c0_i32 = arith.constant 0 : i32
    %c0_i32_0 = arith.constant 0 : i32
    %c0_i32_1 = arith.constant 0 : i32
    return %c0_i32, %c0_i32_0 : i32, i32
  }
  func.func @transform_2(%arg0: i32) -> (i32, i32) {
    %c0_i32 = arith.constant 0 : i32
    %c0_i32_0 = arith.constant 0 : i32
    %c0_i32_1 = arith.constant 0 : i32
    return %c0_i32, %c0_i32_0 : i32, i32
  }
  func.func @transform_3(%arg0: i32) -> (i32, i32) {
    %c0_i32 = arith.constant 0 : i32
    %c0_i32_0 = arith.constant 0 : i32
    %c0_i32_1 = arith.constant 0 : i32
    return %c0_i32, %c0_i32_0 : i32, i32
  }
  func.func @transform_4(%arg0: i32) -> (i32, i32) {
    %c0_i32 = arith.constant 0 : i32
    %c0_i32_0 = arith.constant 0 : i32
    %c0_i32_1 = arith.constant 0 : i32
    return %c0_i32, %c0_i32_0 : i32, i32
  }
  func.func @transform_5(%arg0: i32) -> (i32, i32) {
    %c0_i32 = arith.constant 0 : i32
    %c0_i32_0 = arith.constant 0 : i32
    %c0_i32_1 = arith.constant 0 : i32
    return %c0_i32, %c0_i32_0 : i32, i32
  }
  func.func @transform_6(%arg0: i32) -> (i32, i32) {
    %c0_i32 = arith.constant 0 : i32
    %c0_i32_0 = arith.constant 0 : i32
    %c0_i32_1 = arith.constant 0 : i32
    return %c0_i32, %c0_i32_0 : i32, i32
  }
  func.func @transform_7(%arg0: i32) -> (i32, i32) {
    %c0_i32 = arith.constant 0 : i32
    %c0_i32_0 = arith.constant 0 : i32
    %c0_i32_1 = arith.constant 0 : i32
    return %c0_i32, %c0_i32_0 : i32, i32
  }
}

</mosaic_0001>

<bundles_post_ra>
// kernel: custom_cnn_pro_forward.16
= control target key start
LH: loop header
LB: loop body
LE: loop exit
PB: predicated region body
PF: predicated region fallthrough
CT: control target
= control target key end

     0   :  { %8 = vsyncpa [#allocation4], 0  ;;  %s668_s0 = inlined_call_operand.vmem [shape: bf16[128,128], index: 0, kind: input, shape index: {}]   ;;  %s669_s1 = inlined_call_operand.hbm [shape: bf16[128,128], index: 1, kind: input, shape index: {}]   ;;  %s670_s2 = inlined_call_operand.hbm [shape: f32[1,128], index: 2, kind: input, shape index: {}]   ;;  %s671_s3 = inlined_call_operand.vmem [shape: bf16[128,128], index: 3, kind: output, shape index: {}]  }
   0x1   :  { %s16_s14 = sshll.u32 %s669_s1, 4  ;;  %s17_s14 = int_to_ptr.hbm [resolvable:$true] %s16_s14 }
   0x2   :  { %9 = vsyncpa [#allocation6], 0  ;;  %s590_s15 = smov [#allocation3]   ;;  %s30_s19 = sshll.u32 %s670_s2, 4  ;;  %s31_s19 = int_to_ptr.hbm [resolvable:$true] %s30_s19 }
   0x3   :  { %s18_s16 = sshll.u32 %s590_s15, 4  ;;  %s591_s20 = smov 64   ;;  %s19_s16 = int_to_ptr.vmem [resolvable:$true] %s18_s16 }
   0x4   :  { %s592_s21 = smov 4   ;;  %s593_s22 = smov [#allocation5]  }
   0x5   :  { %24 = dma.hbm_to_vmem [thread:$0]  %s17_s14, 1024, %s19_s16, [#allocation4], %s591_s20, %s591_s20, %s592_s21  }
   0x6   :  { %s32_s23 = sshll.u32 %s593_s22, 4  ;;  %s33_s23 = int_to_ptr.vmem [resolvable:$true] %s32_s23 }
   0x7   :  { %35 = dma.hbm_to_vmem [thread:$0]  %s31_s19, 16, %s33_s23, [#allocation6]  }
   0x8   :  { %586 = dma.done.wait [#allocation4], 1024  }
   0x9   :  { %587 = vsyncadd [#allocation4], 4294966272 }
   0xa   :  { %588 = dma.done.wait [#allocation6], 16  }
   0xb   :  { %589 = vsyncadd [#allocation6], 4294967280  ;;  %v461_v0 = vld [vmem:[#allocation3 + $0x38] sm:$0xff]  ;;  %v460_v1 = vld [vmem:[#allocation3 + $0x30] sm:$0xff] }
   0xc   :  { %208 = vmatpush.bf16.msra.mxu0 %v461_v0  ;;  %509 = vmatpush.bf16.msra.mxu1 %v461_v0  ;;  %v459_v2 = vld [vmem:[#allocation3 + $0x28] sm:$0xff]  ;;  %v458_v3 = vld [vmem:[#allocation3 + $0x20] sm:$0xff]  ;;  %v457_v4 = vld [vmem:[#allocation3 + $0x18] sm:$0xff] }
   0xd   :  { %510 = vmatpush.bf16.msra.mxu2 %v461_v0  ;;  %511 = vmatpush.bf16.msra.mxu3 %v461_v0  ;;  %v456_v5 = vld [vmem:[#allocation3 + $0x10] sm:$0xff]  ;;  %v455_v6 = vld [vmem:[#allocation3 + $0x8] sm:$0xff]  ;;  %v454_v7 = vld [vmem:[#allocation3] sm:$0xff] }
   0xe   :  { %v446_v8 = vld [vmem:[%s668_s0] sm:$0xff]  ;;  %v448_v9 = vld [vmem:[%s668_s0 + $0x10] sm:$0xff]  ;;  %v447_v12 = vld [vmem:[%s668_s0 + $0x8] sm:$0xff] }
   0xf   :  { %v450_v10 = vld [vmem:[%s668_s0 + $0x20] sm:$0xff]  ;;  %v452_v11 = vld [vmem:[%s668_s0 + $0x30] sm:$0xff]  ;;  %v449_v13 = vld [vmem:[%s668_s0 + $0x18] sm:$0xff] }
  0x10   :  { %209 = vmatpush.bf16.msra.mxu0 %v460_v1  ;;  %512 = vmatpush.bf16.msra.mxu1 %v460_v1  ;;  %v451_v14 = vld [vmem:[%s668_s0 + $0x28] sm:$0xff]  ;;  %v453_v15 = vld [vmem:[%s668_s0 + $0x38] sm:$0xff]  ;;  %v537_v18 = vld [vmem:[#allocation5] ss:$0 sm:$0xff] }
  0x11   :  { %513 = vmatpush.bf16.msra.mxu2 %v460_v1  ;;  %514 = vmatpush.bf16.msra.mxu3 %v460_v1 }
  0x14   :  { %210 = vmatpush.bf16.msra.mxu0 %v459_v2  ;;  %515 = vmatpush.bf16.msra.mxu1 %v459_v2 }
  0x15   :  { %516 = vmatpush.bf16.msra.mxu2 %v459_v2  ;;  %517 = vmatpush.bf16.msra.mxu3 %v459_v2 }
  0x18   :  { %211 = vmatpush.bf16.msra.mxu0 %v458_v3  ;;  %518 = vmatpush.bf16.msra.mxu1 %v458_v3 }
  0x19   :  { %519 = vmatpush.bf16.msra.mxu2 %v458_v3  ;;  %520 = vmatpush.bf16.msra.mxu3 %v458_v3 }
  0x1c   :  { %212 = vmatpush.bf16.msra.mxu0 %v457_v4  ;;  %521 = vmatpush.bf16.msra.mxu1 %v457_v4 }
  0x1d   :  { %522 = vmatpush.bf16.msra.mxu2 %v457_v4  ;;  %523 = vmatpush.bf16.msra.mxu3 %v457_v4 }
  0x20   :  { %213 = vmatpush.bf16.msra.mxu0 %v456_v5  ;;  %524 = vmatpush.bf16.msra.mxu1 %v456_v5 }
  0x21   :  { %525 = vmatpush.bf16.msra.mxu2 %v456_v5  ;;  %526 = vmatpush.bf16.msra.mxu3 %v456_v5 }
  0x24   :  { %214 = vmatpush.bf16.msra.mxu0 %v455_v6  ;;  %527 = vmatpush.bf16.msra.mxu1 %v455_v6 }
  0x25   :  { %528 = vmatpush.bf16.msra.mxu2 %v455_v6  ;;  %529 = vmatpush.bf16.msra.mxu3 %v455_v6 }
  0x28   :  { %215 = vmatpush.bf16.msra.mxu0 %v454_v7  ;;  %530 = vmatpush.bf16.msra.mxu1 %v454_v7 }
  0x29   :  { %531 = vmatpush.bf16.msra.mxu2 %v454_v7  ;;  %532 = vmatpush.bf16.msra.mxu3 %v454_v7 }
  0x2b   :  { %216 = vmatmul.bf16.vlgmr.msra.gmra.mxu0 %v446_v8  ;;  %226 = vmatmul.bf16.vlgmr.msra.gmra.mxu1 %v448_v9 }
  0x2c   :  { %236 = vmatmul.bf16.vlgmr.msra.gmra.mxu2 %v450_v10  ;;  %246 = vmatmul.bf16.vlgmr.msra.gmra.mxu3 %v452_v11 }
  0x3b   :  { %221 = vmatmul.bf16.gmra.mxu0 %v447_v12  ;;  %231 = vmatmul.bf16.gmra.mxu1 %v449_v13 }
  0x3c   :  { %241 = vmatmul.bf16.gmra.mxu2 %v451_v14  ;;  %251 = vmatmul.bf16.gmra.mxu3 %v453_v15 }
  0xa8   :  { %v217_v16 = vpop.f32.mrf.mxu0  ;;  %v227_v17 = vpop.f32.mrf.mxu1 }
  0xa9   :  { %v312_v19 = vadd.f32 %v537_v18, %v217_v16  ;;  %v316_v20 = vadd.f32 %v537_v18, %v227_v17 }
  0xab   :  { %v328_v27 = vmax.f32 %v312_v19, 0.0  ;;  %v332_v28 = vmax.f32 %v316_v20, 0.0 }
  0xaf   :  { %v237_v21 = vpop.f32.mrf.mxu2  ;;  %v247_v22 = vpop.f32.mrf.mxu3 }
  0xb0   :  { %v219_v23 = vpop.f32.mrf.mxu0  ;;  %v229_v24 = vpop.f32.mrf.mxu1  ;;  %v320_v33 = vadd.f32 %v537_v18, %v237_v21  ;;  %v324_v34 = vadd.f32 %v537_v18, %v247_v22 }
  0xb1   :  { %v313_v25 = vadd.f32 %v537_v18, %v219_v23  ;;  %v317_v26 = vadd.f32 %v537_v18, %v229_v24 }
  0xb2   :  { %v336_v41 = vmax.f32 %v320_v33, 0.0  ;;  %v340_v42 = vmax.f32 %v324_v34, 0.0 }
  0xb3   :  { %v329_v29 = vmax.f32 %v313_v25, 0.0  ;;  %v333_v30 = vmax.f32 %v317_v26, 0.0 }
  0xb5   :  { %v465_v31 = vpack.c.bf16 %v329_v29, %v328_v27  ;;  %v475_v32 = vpack.c.bf16 %v333_v30, %v332_v28 }
  0xb7   :  { %466 = vst [vmem:[%s671_s3] sm:$0xff] %v465_v31   ;;  %v239_v35 = vpop.f32.mrf.mxu2  ;;  %v249_v36 = vpop.f32.mrf.mxu3 }
  0xb8   :  { %503 = vst [vmem:[%s671_s3 + $0x10] sm:$0xff] %v475_v32   ;;  %v321_v37 = vadd.f32 %v537_v18, %v239_v35  ;;  %v325_v38 = vadd.f32 %v537_v18, %v249_v36  ;;  %v222_v39 = vpop.f32.mrf.mxu0  ;;  %v232_v40 = vpop.f32.mrf.mxu1 }
  0xb9   :  { %v314_v47 = vadd.f32 %v537_v18, %v222_v39  ;;  %v318_v48 = vadd.f32 %v537_v18, %v232_v40 }
  0xba   :  { %v337_v43 = vmax.f32 %v321_v37, 0.0  ;;  %v341_v44 = vmax.f32 %v325_v38, 0.0 }
  0xbb   :  { %v330_v55 = vmax.f32 %v314_v47, 0.0  ;;  %v334_v56 = vmax.f32 %v318_v48, 0.0 }
  0xbc   :  { %v485_v45 = vpack.c.bf16 %v337_v43, %v336_v41  ;;  %v495_v46 = vpack.c.bf16 %v341_v44, %v340_v42 }
  0xbe   :  { %505 = vst [vmem:[%s671_s3 + $0x20] sm:$0xff] %v485_v45  }
  0xbf   :  { %507 = vst [vmem:[%s671_s3 + $0x30] sm:$0xff] %v495_v46   ;;  %v242_v49 = vpop.f32.mrf.mxu2  ;;  %v252_v50 = vpop.f32.mrf.mxu3 }
  0xc0   :  { %v224_v51 = vpop.f32.mrf.mxu0  ;;  %v234_v52 = vpop.f32.mrf.mxu1  ;;  %v322_v61 = vadd.f32 %v537_v18, %v242_v49  ;;  %v326_v62 = vadd.f32 %v537_v18, %v252_v50 }
  0xc1   :  { %v315_v53 = vadd.f32 %v537_v18, %v224_v51  ;;  %v319_v54 = vadd.f32 %v537_v18, %v234_v52 }
  0xc2   :  { %v338_v3 = vmax.f32 %v322_v61, 0.0  ;;  %v342_v4 = vmax.f32 %v326_v62, 0.0 }
  0xc3   :  { %v331_v57 = vmax.f32 %v315_v53, 0.0  ;;  %v335_v58 = vmax.f32 %v319_v54, 0.0 }
  0xc5   :  { %v470_v59 = vpack.c.bf16 %v331_v57, %v330_v55  ;;  %v480_v60 = vpack.c.bf16 %v335_v58, %v334_v56 }
  0xc7   :  { %502 = vst [vmem:[%s671_s3 + $0x8] sm:$0xff] %v470_v59   ;;  %v244_v63 = vpop.f32.mrf.mxu2  ;;  %v254_v0 = vpop.f32.mrf.mxu3 }
  0xc8   :  { %504 = vst [vmem:[%s671_s3 + $0x18] sm:$0xff] %v480_v60   ;;  %v323_v1 = vadd.f32 %v537_v18, %v244_v63  ;;  %v327_v2 = vadd.f32 %v537_v18, %v254_v0 }
  0xca   :  { %v339_v5 = vmax.f32 %v323_v1, 0.0  ;;  %v343_v6 = vmax.f32 %v327_v2, 0.0 }
  0xcc   :  { %v490_v7 = vpack.c.bf16 %v339_v5, %v338_v3  ;;  %v500_v8 = vpack.c.bf16 %v343_v6, %v342_v4 }
  0xce   :  { %506 = vst [vmem:[%s671_s3 + $0x28] sm:$0xff] %v490_v7  }
  0xcf   :  { %508 = vst [vmem:[%s671_s3 + $0x38] sm:$0xff] %v500_v8  }
  0xd0   :  { %380 = vsyncpa [#allocation4], 1 }
  0xd1   :  { %381 = vsyncpa [#allocation6], 1 }

// kernel: custom_cnn_pro_forward.17
= control target key start
LH: loop header
LB: loop body
LE: loop exit
PB: predicated region body
PF: predicated region fallthrough
CT: control target
= control target key end

     0   :  { %8 = vsyncpa [#allocation4], 0  ;;  %s1340_s0 = inlined_call_operand.vmem [shape: bf16[128,384], index: 0, kind: input, shape index: {}]   ;;  %s1341_s1 = inlined_call_operand.hbm [shape: bf16[384,128], index: 1, kind: input, shape index: {}]   ;;  %s1342_s2 = inlined_call_operand.hbm [shape: f32[1,128], index: 2, kind: input, shape index: {}]   ;;  %s1343_s3 = inlined_call_operand.vmem [shape: bf16[128,128], index: 3, kind: output, shape index: {}]  }
   0x1   :  { %s16_s14 = sshll.u32 %s1341_s1, 4  ;;  %s17_s14 = int_to_ptr.hbm [resolvable:$true] %s16_s14 }
   0x2   :  { %9 = vsyncpa [#allocation6], 0  ;;  %s1072_s15 = smov [#allocation3]   ;;  %s30_s19 = sshll.u32 %s1342_s2, 4  ;;  %s31_s19 = int_to_ptr.hbm [resolvable:$true] %s30_s19 }
   0x3   :  { %s18_s16 = sshll.u32 %s1072_s15, 4  ;;  %s1073_s20 = smov 64   ;;  %s19_s16 = int_to_ptr.vmem [resolvable:$true] %s18_s16 }
   0x4   :  { %s1074_s21 = smov 4   ;;  %s1075_s22 = smov [#allocation5]  }
   0x5   :  { %24 = dma.hbm_to_vmem [thread:$0]  %s17_s14, 3072, %s19_s16, [#allocation4], %s1073_s20, %s1073_s20, %s1074_s21  }
   0x6   :  { %s32_s23 = sshll.u32 %s1075_s22, 4  ;;  %s33_s23 = int_to_ptr.vmem [resolvable:$true] %s32_s23 }
   0x7   :  { %35 = dma.hbm_to_vmem [thread:$0]  %s31_s19, 16, %s33_s23, [#allocation6]  }
   0x8   :  { %1068 = dma.done.wait [#allocation4], 3072  }
   0x9   :  { %1069 = vsyncadd [#allocation4], 4294964224 }
   0xa   :  { %1070 = dma.done.wait [#allocation6], 16  }
   0xb   :  { %1071 = vsyncadd [#allocation6], 4294967280  ;;  %v927_v0 = vld [vmem:[#allocation3 + $0x38] sm:$0xff]  ;;  %v926_v3 = vld [vmem:[#allocation3 + $0x30] sm:$0xff] }
   0xc   :  { %v1102_v1 = vld [vmem:[#allocation3 + $0x78] sm:$0xff]  ;;  %432 = vmatpush.bf16.msra.mxu0 %v927_v0  ;;  %991 = vmatpush.bf16.msra.mxu3 %v927_v0  ;;  %v1108_v4 = vld [vmem:[#allocation3 + $0x70] sm:$0xff]  ;;  %v925_v6 = vld [vmem:[#allocation3 + $0x28] sm:$0xff] }
   0xd   :  { %v1104_v2 = vld [vmem:[#allocation3 + $0xb8] sm:$0xff]  ;;  %481 = vmatpush.bf16.msra.mxu1 %v1102_v1  ;;  %v1110_v5 = vld [vmem:[#allocation3 + $0xb0] sm:$0xff]  ;;  %v933_v7 = vld [vmem:[#allocation3 + $0x68] sm:$0xff] }
   0xe   :  { %530 = vmatpush.bf16.msra.mxu2 %v1104_v2  ;;  %v1114_v8 = vld [vmem:[#allocation3 + $0xa8] sm:$0xff]  ;;  %v924_v9 = vld [vmem:[#allocation3 + $0x20] sm:$0xff]  ;;  %v923_v12 = vld [vmem:[#allocation3 + $0x18] sm:$0xff] }
   0xf   :  { %v932_v10 = vld [vmem:[#allocation3 + $0x60] sm:$0xff]  ;;  %v931_v13 = vld [vmem:[#allocation3 + $0x58] sm:$0xff]  ;;  %v922_v15 = vld [vmem:[#allocation3 + $0x10] sm:$0xff] }
  0x10   :  { %433 = vmatpush.bf16.msra.mxu0 %v926_v3  ;;  %992 = vmatpush.bf16.msra.mxu3 %v926_v3  ;;  %v1117_v11 = vld [vmem:[#allocation3 + $0xa0] sm:$0xff]  ;;  %v1120_v14 = vld [vmem:[#allocation3 + $0x98] sm:$0xff]  ;;  %v930_v16 = vld [vmem:[#allocation3 + $0x50] sm:$0xff] }
  0x11   :  { %482 = vmatpush.bf16.msra.mxu1 %v1108_v4  ;;  %v1123_v17 = vld [vmem:[#allocation3 + $0x90] sm:$0xff]  ;;  %v921_v18 = vld [vmem:[#allocation3 + $0x8] sm:$0xff]  ;;  %v920_v21 = vld [vmem:[#allocation3] sm:$0xff] }
  0x12   :  { %531 = vmatpush.bf16.msra.mxu2 %v1110_v5  ;;  %v929_v19 = vld [vmem:[#allocation3 + $0x48] sm:$0xff]  ;;  %v928_v22 = vld [vmem:[#allocation3 + $0x40] sm:$0xff]  ;;  %v778_v26 = vld [vmem:[%s1340_s0 + $0x90] sm:$0xf] }
  0x13   :  { %v1126_v20 = vld [vmem:[#allocation3 + $0x88] sm:$0xff]  ;;  %v1128_v23 = vld [vmem:[#allocation3 + $0x80] sm:$0xff]  ;;  %v915_v27 = vld [vmem:[%s1340_s0 + $0x98] sm:$0xf0] }
  0x14   :  { %434 = vmatpush.bf16.msra.mxu0 %v925_v6  ;;  %993 = vmatpush.bf16.msra.mxu3 %v925_v6  ;;  %v706_v24 = vld [vmem:[%s1340_s0] sm:$0xf]  ;;  %v897_v25 = vld [vmem:[%s1340_s0 + $0x8] sm:$0xf0]  ;;  %v896_v28 = vld [vmem:[%s1340_s0 + $0x4] sm:$0xf]  ;;  %v779_v33 = vor.u32 %v915_v27, %v778_v26 }
  0x15   :  { %483 = vmatpush.bf16.msra.mxu1 %v933_v7  ;;  %v708_v29 = vld [vmem:[%s1340_s0 + $0xc] sm:$0xf0]  ;;  %v714_v30 = vld [vmem:[%s1340_s0 + $0x8] sm:$0xf]  ;;  %v898_v31 = vld [vmem:[%s1340_s0 + $0x10] sm:$0xf0]  ;;  %v707_v32 = vor.u32 %v897_v25, %v706_v24 }
  0x16   :  { %532 = vmatpush.bf16.msra.mxu2 %v1114_v8  ;;  %v711_v34 = vor.u32 %v896_v28, %v708_v29  ;;  %v715_v35 = vor.u32 %v898_v31, %v714_v30  ;;  %v718_v36 = vld [vmem:[%s1340_s0 + $0x18] sm:$0xf]  ;;  %v900_v37 = vld [vmem:[%s1340_s0 + $0x20] sm:$0xf0]  ;;  %v790_v38 = vld [vmem:[%s1340_s0 + $0xa8] sm:$0xf] }
  0x17   :  { %v918_v39 = vld [vmem:[%s1340_s0 + $0xb0] sm:$0xf0]  ;;  %v899_v40 = vld [vmem:[%s1340_s0 + $0x1c] sm:$0xf]  ;;  %v720_v41 = vld [vmem:[%s1340_s0 + $0x24] sm:$0xf0]  ;;  %v719_v44 = vor.u32 %v900_v37, %v718_v36 }
  0x18   :  { %435 = vmatpush.bf16.msra.mxu0 %v924_v9  ;;  %994 = vmatpush.bf16.msra.mxu3 %v924_v9  ;;  %v726_v42 = vld [vmem:[%s1340_s0 + $0x20] sm:$0xf]  ;;  %v901_v43 = vld [vmem:[%s1340_s0 + $0x28] sm:$0xf0]  ;;  %v791_v45 = vor.u32 %v918_v39, %v790_v38  ;;  %v723_v46 = vor.u32 %v899_v40, %v720_v41  ;;  %v730_v48 = vld [vmem:[%s1340_s0 + $0x30] sm:$0xf] }
  0x19   :  { %484 = vmatpush.bf16.msra.mxu1 %v932_v10  ;;  %v727_v47 = vor.u32 %v901_v43, %v726_v42  ;;  %v903_v49 = vld [vmem:[%s1340_s0 + $0x38] sm:$0xf0]  ;;  %v902_v50 = vld [vmem:[%s1340_s0 + $0x34] sm:$0xf]  ;;  %v780_v52 = vld [vmem:[%s1340_s0 + $0x9c] sm:$0xf0] }
  0x1a   :  { %533 = vmatpush.bf16.msra.mxu2 %v1117_v11  ;;  %v914_v51 = vld [vmem:[%s1340_s0 + $0x94] sm:$0xf]  ;;  %v732_v53 = vld [vmem:[%s1340_s0 + $0x3c] sm:$0xf0]  ;;  %v738_v54 = vld [vmem:[%s1340_s0 + $0x38] sm:$0xf]  ;;  %v731_v56 = vor.u32 %v903_v49, %v730_v48 }
  0x1b   :  { %v904_v55 = vld [vmem:[%s1340_s0 + $0x40] sm:$0xf0]  ;;  %v783_v57 = vor.u32 %v914_v51, %v780_v52  ;;  %v735_v58 = vor.u32 %v902_v50, %v732_v53  ;;  %v742_v60 = vld [vmem:[%s1340_s0 + $0x48] sm:$0xf]  ;;  %v906_v61 = vld [vmem:[%s1340_s0 + $0x50] sm:$0xf0] }
  0x1c   :  { %436 = vmatpush.bf16.msra.mxu0 %v923_v12  ;;  %995 = vmatpush.bf16.msra.mxu3 %v923_v12  ;;  %v739_v59 = vor.u32 %v904_v55, %v738_v54  ;;  %v905_v62 = vld [vmem:[%s1340_s0 + $0x4c] sm:$0xf]  ;;  %v792_v0 = vld [vmem:[%s1340_s0 + $0xb4] sm:$0xf0]  ;;  %v907_v3 = vld [vmem:[%s1340_s0 + $0x58] sm:$0xf0] }
  0x1d   :  { %485 = vmatpush.bf16.msra.mxu1 %v931_v13  ;;  %v917_v63 = vld [vmem:[%s1340_s0 + $0xac] sm:$0xf]  ;;  %v916_v12 = vld [vmem:[%s1340_s0 + $0xa0] sm:$0xf0]  ;;  %v919_v24 = vld [vmem:[%s1340_s0 + $0xb8] sm:$0xf0] }
  0x1e   :  { %534 = vmatpush.bf16.msra.mxu2 %v1120_v14  ;;  %v909_v9 = vld [vmem:[%s1340_s0 + $0x68] sm:$0xf0]  ;;  %v768_v25 = vld [vmem:[%s1340_s0 + $0x84] sm:$0xf0]  ;;  %v774_v26 = vld [vmem:[%s1340_s0 + $0x80] sm:$0xf] }
  0x1f   :  { %v913_v27 = vld [vmem:[%s1340_s0 + $0x88] sm:$0xf0]  ;;  %v1288_v40 = vld [vmem:[#allocation5] ss:$0 sm:$0xff] }
  0x20   :  { %437 = vmatpush.bf16.msra.mxu0 %v922_v15  ;;  %996 = vmatpush.bf16.msra.mxu3 %v922_v15  ;;  %v910_v15 = vld [vmem:[%s1340_s0 + $0x70] sm:$0xf0]  ;;  %v775_v31 = vor.u32 %v913_v27, %v774_v26 }
  0x21   :  { %486 = vmatpush.bf16.msra.mxu1 %v930_v16 }
  0x22   :  { %535 = vmatpush.bf16.msra.mxu2 %v1123_v17 }
  0x24   :  { %438 = vmatpush.bf16.msra.mxu0 %v921_v18  ;;  %997 = vmatpush.bf16.msra.mxu3 %v921_v18 }
  0x25   :  { %487 = vmatpush.bf16.msra.mxu1 %v929_v19 }
  0x26   :  { %536 = vmatpush.bf16.msra.mxu2 %v1126_v20 }
  0x28   :  { %439 = vmatpush.bf16.msra.mxu0 %v920_v21  ;;  %998 = vmatpush.bf16.msra.mxu3 %v920_v21  ;;  %v912_v21 = vld [vmem:[%s1340_s0 + $0x80] sm:$0xf0] }
  0x29   :  { %488 = vmatpush.bf16.msra.mxu1 %v928_v22 }
  0x2a   :  { %537 = vmatpush.bf16.msra.mxu2 %v1128_v23 }
  0x2b   :  { %440 = vmatmul.bf16.vlgmr.msra.gmra.mxu0 %v707_v32  ;;  %470 = vmatmul.bf16.vlgmr.msra.gmra.mxu3 %v779_v33 }
  0x2c   :  { %999 = vmatpush.bf16.msrb.mxu3 %v1102_v1  ;;  %489 = vmatmul.bf16.vlgmr.msra.gmra.mxu1 %v711_v34  ;;  %v744_v1 = vld [vmem:[%s1340_s0 + $0x54] sm:$0xf0] }
  0x2d   :  { %538 = vmatmul.bf16.vlgmr.msra.gmra.mxu2 %v715_v35  ;;  %v747_v6 = vor.u32 %v905_v62, %v744_v1 }
  0x30   :  { %1000 = vmatpush.bf16.msrb.mxu3 %v1108_v4  ;;  %v743_v4 = vor.u32 %v906_v61, %v742_v60 }
  0x34   :  { %1001 = vmatpush.bf16.msrb.mxu3 %v933_v7 }
  0x38   :  { %1002 = vmatpush.bf16.msrb.mxu3 %v932_v10  ;;  %v908_v10 = vld [vmem:[%s1340_s0 + $0x64] sm:$0xf] }
  0x3b   :  { %445 = vmatmul.bf16.gmra.mxu0 %v719_v44  ;;  %475 = vmatmul.bf16.gmra.mxu3 %v791_v45 }
  0x3c   :  { %1003 = vmatpush.bf16.msrb.mxu3 %v931_v13  ;;  %494 = vmatmul.bf16.gmra.mxu1 %v723_v46  ;;  %v756_v13 = vld [vmem:[%s1340_s0 + $0x6c] sm:$0xf0] }
  0x3d   :  { %543 = vmatmul.bf16.gmra.mxu2 %v727_v47  ;;  %v759_v18 = vor.u32 %v908_v10, %v756_v13 }
  0x40   :  { %1004 = vmatpush.bf16.msrb.mxu3 %v930_v16 }
  0x44   :  { %1005 = vmatpush.bf16.msrb.mxu3 %v929_v19 }
  0x48   :  { %1006 = vmatpush.bf16.msrb.mxu3 %v928_v22  ;;  %v911_v22 = vld [vmem:[%s1340_s0 + $0x7c] sm:$0xf] }
  0x49   :  { %v771_v30 = vor.u32 %v911_v22, %v768_v25 }
  0x4b   :  { %450 = vmatmul.bf16.gmra.mxu0 %v731_v56  ;;  %519 = vmatmul.bf16.vlgmr.msrb.gmra.mxu3 %v783_v57 }
  0x4c   :  { %1007 = vmatpush.bf16.msra.mxu3 %v1104_v2  ;;  %499 = vmatmul.bf16.gmra.mxu1 %v735_v58  ;;  %v750_v2 = vld [vmem:[%s1340_s0 + $0x50] sm:$0xf] }
  0x4d   :  { %548 = vmatmul.bf16.gmra.mxu2 %v739_v59  ;;  %v751_v7 = vor.u32 %v907_v3, %v750_v2 }
  0x50   :  { %1008 = vmatpush.bf16.msra.mxu3 %v1110_v5  ;;  %v795_v5 = vor.u32 %v917_v63, %v792_v0 }
  0x54   :  { %1009 = vmatpush.bf16.msra.mxu3 %v1114_v8  ;;  %v754_v8 = vld [vmem:[%s1340_s0 + $0x60] sm:$0xf] }
  0x55   :  { %v755_v16 = vor.u32 %v909_v9, %v754_v8 }
  0x58   :  { %1010 = vmatpush.bf16.msra.mxu3 %v1117_v11  ;;  %v786_v11 = vld [vmem:[%s1340_s0 + $0x98] sm:$0xf] }
  0x5b   :  { %455 = vmatmul.bf16.gmra.mxu0 %v743_v4  ;;  %524 = vmatmul.bf16.gmra.mxu3 %v795_v5 }
  0x5c   :  { %1011 = vmatpush.bf16.msra.mxu3 %v1120_v14  ;;  %504 = vmatmul.bf16.gmra.mxu1 %v747_v6  ;;  %v762_v14 = vld [vmem:[%s1340_s0 + $0x68] sm:$0xf] }
  0x5d   :  { %553 = vmatmul.bf16.gmra.mxu2 %v751_v7  ;;  %v763_v19 = vor.u32 %v910_v15, %v762_v14 }
  0x60   :  { %1012 = vmatpush.bf16.msra.mxu3 %v1123_v17  ;;  %v787_v17 = vor.u32 %v916_v12, %v786_v11 }
  0x64   :  { %1013 = vmatpush.bf16.msra.mxu3 %v1126_v20  ;;  %v766_v20 = vld [vmem:[%s1340_s0 + $0x78] sm:$0xf] }
  0x65   :  { %v767_v28 = vor.u32 %v912_v21, %v766_v20 }
  0x68   :  { %1014 = vmatpush.bf16.msra.mxu3 %v1128_v23  ;;  %v798_v23 = vld [vmem:[%s1340_s0 + $0xb0] sm:$0xf] }
  0x69   :  { %v799_v29 = vor.u32 %v919_v24, %v798_v23 }
  0x6b   :  { %460 = vmatmul.bf16.gmra.mxu0 %v755_v16  ;;  %568 = vmatmul.bf16.vlgmr.msra.gmra.mxu3 %v787_v17 }
  0x6c   :  { %509 = vmatmul.bf16.gmra.mxu1 %v759_v18 }
  0x6d   :  { %558 = vmatmul.bf16.gmra.mxu2 %v763_v19 }
  0x7b   :  { %465 = vmatmul.bf16.gmra.mxu0 %v767_v28  ;;  %573 = vmatmul.bf16.gmra.mxu3 %v799_v29 }
  0x7c   :  { %514 = vmatmul.bf16.gmra.mxu1 %v771_v30 }
  0x7d   :  { %563 = vmatmul.bf16.gmra.mxu2 %v775_v31 }
  0xa8   :  { %v441_v32 = vpop.f32.mrf.mxu0 }
  0xa9   :  { %v490_v33 = vpop.f32.mrf.mxu1 }
  0xaa   :  { %v491_v36 = vadd.f32 %v490_v33, %v441_v32 }
  0xae   :  { %v1286_v34 = vpop.f32.mrf.mxu3 }
  0xb0   :  { %v539_v35 = vpop.f32.mrf.mxu2  ;;  %v443_v37 = vpop.f32.mrf.mxu0 }
  0xb1   :  { %v492_v38 = vpop.f32.mrf.mxu1  ;;  %v540_v39 = vadd.f32 %v539_v35, %v491_v36 }
  0xb2   :  { %v493_v41 = vadd.f32 %v492_v38, %v443_v37 }
  0xb3   :  { %v634_v44 = vadd.f32 %v1288_v40, %v540_v39 }
  0xb5   :  { %v650_v49 = vmax.f32 %v634_v44, 0.0 }
  0xb6   :  { %v1290_v42 = vpop.f32.mrf.mxu3 }
  0xb8   :  { %v541_v43 = vpop.f32.mrf.mxu2  ;;  %v446_v46 = vpop.f32.mrf.mxu0 }
  0xb9   :  { %v542_v45 = vadd.f32 %v541_v43, %v493_v41  ;;  %v495_v47 = vpop.f32.mrf.mxu1 }
  0xba   :  { %v496_v54 = vadd.f32 %v495_v47, %v446_v46 }
  0xbb   :  { %v635_v48 = vadd.f32 %v1288_v40, %v542_v45 }
  0xbd   :  { %v651_v50 = vmax.f32 %v635_v48, 0.0 }
  0xbe   :  { %v1294_v52 = vpop.f32.mrf.mxu3 }
  0xbf   :  { %v947_v51 = vpack.c.bf16 %v651_v50, %v650_v49 }
  0xc0   :  { %v544_v53 = vpop.f32.mrf.mxu2  ;;  %v448_v55 = vpop.f32.mrf.mxu0 }
  0xc1   :  { %948 = vst [vmem:[%s1343_s3] sm:$0xff] %v947_v51   ;;  %v497_v56 = vpop.f32.mrf.mxu1  ;;  %v545_v57 = vadd.f32 %v544_v53, %v496_v54 }
  0xc2   :  { %v498_v58 = vadd.f32 %v497_v56, %v448_v55 }
  0xc3   :  { %v636_v61 = vadd.f32 %v1288_v40, %v545_v57 }
  0xc5   :  { %v652_v2 = vmax.f32 %v636_v61, 0.0 }
  0xc6   :  { %v1299_v59 = vpop.f32.mrf.mxu3 }
  0xc8   :  { %v546_v60 = vpop.f32.mrf.mxu2  ;;  %v451_v63 = vpop.f32.mrf.mxu0 }
  0xc9   :  { %v547_v62 = vadd.f32 %v546_v60, %v498_v58  ;;  %v500_v0 = vpop.f32.mrf.mxu1 }
  0xca   :  { %v501_v7 = vadd.f32 %v500_v0, %v451_v63 }
  0xcb   :  { %v637_v1 = vadd.f32 %v1288_v40, %v547_v62 }
  0xcd   :  { %v653_v3 = vmax.f32 %v637_v1, 0.0 }
  0xce   :  { %v520_v5 = vpop.f32.mrf.mxu3 }
  0xcf   :  { %v952_v4 = vpack.c.bf16 %v653_v3, %v652_v2  ;;  %v521_v46 = vadd.f32 %v520_v5, %v1286_v34 }
  0xd0   :  { %v549_v6 = vpop.f32.mrf.mxu2  ;;  %v453_v8 = vpop.f32.mrf.mxu0 }
  0xd1   :  { %984 = vst [vmem:[%s1343_s3 + $0x8] sm:$0xff] %v952_v4   ;;  %v502_v9 = vpop.f32.mrf.mxu1  ;;  %v550_v10 = vadd.f32 %v549_v6, %v501_v7 }
  0xd2   :  { %v503_v11 = vadd.f32 %v502_v9, %v453_v8 }
  0xd3   :  { %v638_v14 = vadd.f32 %v1288_v40, %v550_v10 }
  0xd5   :  { %v654_v19 = vmax.f32 %v638_v14, 0.0 }
  0xd6   :  { %v522_v12 = vpop.f32.mrf.mxu3 }
  0xd7   :  { %v523_v50 = vadd.f32 %v522_v12, %v1290_v42 }
  0xd8   :  { %v551_v13 = vpop.f32.mrf.mxu2  ;;  %v456_v16 = vpop.f32.mrf.mxu0 }
  0xd9   :  { %v552_v15 = vadd.f32 %v551_v13, %v503_v11  ;;  %v505_v17 = vpop.f32.mrf.mxu1 }
  0xda   :  { %v506_v24 = vadd.f32 %v505_v17, %v456_v16 }
  0xdb   :  { %v639_v18 = vadd.f32 %v1288_v40, %v552_v15 }
  0xdd   :  { %v655_v20 = vmax.f32 %v639_v18, 0.0 }
  0xde   :  { %v525_v22 = vpop.f32.mrf.mxu3 }
  0xdf   :  { %v957_v21 = vpack.c.bf16 %v655_v20, %v654_v19  ;;  %v526_v7 = vadd.f32 %v525_v22, %v1294_v52 }
  0xe0   :  { %v554_v23 = vpop.f32.mrf.mxu2  ;;  %v458_v25 = vpop.f32.mrf.mxu0 }
  0xe1   :  { %985 = vst [vmem:[%s1343_s3 + $0x10] sm:$0xff] %v957_v21   ;;  %v507_v26 = vpop.f32.mrf.mxu1  ;;  %v555_v27 = vadd.f32 %v554_v23, %v506_v24 }
  0xe2   :  { %v508_v28 = vadd.f32 %v507_v26, %v458_v25 }
  0xe3   :  { %v640_v31 = vadd.f32 %v1288_v40, %v555_v27 }
  0xe5   :  { %v656_v37 = vmax.f32 %v640_v31, 0.0 }
  0xe6   :  { %v527_v29 = vpop.f32.mrf.mxu3 }
  0xe7   :  { %v528_v12 = vadd.f32 %v527_v29, %v1299_v59 }
  0xe8   :  { %v556_v30 = vpop.f32.mrf.mxu2  ;;  %v461_v33 = vpop.f32.mrf.mxu0 }
  0xe9   :  { %v557_v32 = vadd.f32 %v556_v30, %v508_v28  ;;  %v510_v35 = vpop.f32.mrf.mxu1 }
  0xea   :  { %v511_v44 = vadd.f32 %v510_v35, %v461_v33 }
  0xeb   :  { %v641_v36 = vadd.f32 %v1288_v40, %v557_v32 }
  0xed   :  { %v657_v38 = vmax.f32 %v641_v36, 0.0 }
  0xee   :  { %v569_v41 = vpop.f32.mrf.mxu3 }
  0xef   :  { %v962_v39 = vpack.c.bf16 %v657_v38, %v656_v37  ;;  %v570_v48 = vadd.f32 %v569_v41, %v521_v46 }
  0xf0   :  { %v559_v43 = vpop.f32.mrf.mxu2  ;;  %v463_v45 = vpop.f32.mrf.mxu0 }
  0xf1   :  { %986 = vst [vmem:[%s1343_s3 + $0x18] sm:$0xff] %v962_v39   ;;  %v512_v47 = vpop.f32.mrf.mxu1  ;;  %v560_v49 = vadd.f32 %v559_v43, %v511_v44  ;;  %v646_v54 = vadd.f32 %v1288_v40, %v570_v48 }
  0xf2   :  { %v513_v51 = vadd.f32 %v512_v47, %v463_v45 }
  0xf3   :  { %v642_v57 = vadd.f32 %v1288_v40, %v560_v49  ;;  %v662_v63 = vmax.f32 %v646_v54, 0.0 }
  0xf5   :  { %v658_v1 = vmax.f32 %v642_v57, 0.0 }
  0xf6   :  { %v571_v53 = vpop.f32.mrf.mxu3 }
  0xf7   :  { %v572_v56 = vadd.f32 %v571_v53, %v523_v50 }
  0xf8   :  { %v561_v55 = vpop.f32.mrf.mxu2  ;;  %v466_v61 = vpop.f32.mrf.mxu0 }
  0xf9   :  { %v562_v58 = vadd.f32 %v561_v55, %v513_v51  ;;  %v647_v60 = vadd.f32 %v1288_v40, %v572_v56  ;;  %v515_v62 = vpop.f32.mrf.mxu1 }
  0xfa   :  { %v516_v6 = vadd.f32 %v515_v62, %v466_v61 }
  0xfb   :  { %v643_v34 = vadd.f32 %v1288_v40, %v562_v58  ;;  %v663_v0 = vmax.f32 %v647_v60, 0.0 }
  0xfd   :  { %v659_v2 = vmax.f32 %v643_v34, 0.0  ;;  %v977_v42 = vpack.c.bf16 %v663_v0, %v662_v63 }
  0xfe   :  { %v574_v4 = vpop.f32.mrf.mxu3 }
  0xff   :  { %v967_v3 = vpack.c.bf16 %v659_v2, %v658_v1  ;;  %989 = vst [vmem:[%s1343_s3 + $0x30] sm:$0xff] %v977_v42   ;;  %v575_v8 = vadd.f32 %v574_v4, %v526_v7 }
 0x100   :  { %v564_v5 = vpop.f32.mrf.mxu2  ;;  %v468_v9 = vpop.f32.mrf.mxu0 }
 0x101   :  { %987 = vst [vmem:[%s1343_s3 + $0x20] sm:$0xff] %v967_v3   ;;  %v517_v10 = vpop.f32.mrf.mxu1  ;;  %v565_v11 = vadd.f32 %v564_v5, %v516_v6  ;;  %v648_v15 = vadd.f32 %v1288_v40, %v575_v8 }
 0x102   :  { %v518_v13 = vadd.f32 %v517_v10, %v468_v9 }
 0x103   :  { %v644_v18 = vadd.f32 %v1288_v40, %v565_v11  ;;  %v664_v52 = vmax.f32 %v648_v15, 0.0 }
 0x105   :  { %v660_v23 = vmax.f32 %v644_v18, 0.0 }
 0x106   :  { %v576_v14 = vpop.f32.mrf.mxu3 }
 0x107   :  { %v577_v17 = vadd.f32 %v576_v14, %v528_v12 }
 0x108   :  { %v566_v16 = vpop.f32.mrf.mxu2 }
 0x109   :  { %v567_v19 = vadd.f32 %v566_v16, %v518_v13  ;;  %v649_v20 = vadd.f32 %v1288_v40, %v577_v17 }
 0x10b   :  { %v645_v21 = vadd.f32 %v1288_v40, %v567_v19  ;;  %v665_v22 = vmax.f32 %v649_v20, 0.0 }
 0x10d   :  { %v661_v24 = vmax.f32 %v645_v21, 0.0  ;;  %v982_v25 = vpack.c.bf16 %v665_v22, %v664_v52 }
 0x10f   :  { %v972_v26 = vpack.c.bf16 %v661_v24, %v660_v23  ;;  %990 = vst [vmem:[%s1343_s3 + $0x38] sm:$0xff] %v982_v25  }
 0x111   :  { %988 = vst [vmem:[%s1343_s3 + $0x28] sm:$0xff] %v972_v26  }
 0x112   :  { %702 = vsyncpa [#allocation4], 1 }
 0x113   :  { %703 = vsyncpa [#allocation6], 1 }

// kernel: custom_cnn_pro_forward.18
= control target key start
LH: loop header
LB: loop body
LE: loop exit
PB: predicated region body
PF: predicated region fallthrough
CT: control target
= control target key end

     0   :  { %8 = vsyncpa [#allocation5], 0  ;;  %s2101_s0 = inlined_call_operand.vmem [shape: bf16[128,1024], index: 0, kind: input, shape index: {}]   ;;  %s2102_s1 = inlined_call_operand.hbm [shape: bf16[1024,128], index: 1, kind: input, shape index: {}]   ;;  %s2103_s2 = inlined_call_operand.vmem [shape: f32[1,128], index: 2, kind: input, shape index: {}]   ;;  %s2104_s3 = inlined_call_operand.vmem [shape: bf16[128,128], index: 3, kind: output, shape index: {}]  }
   0x1   :  { %10 = vsyncpa [#allocation5 + $0x1], 0  ;;  %s1814_s12 = smov 0   ;;  %s1816_s13 = smov 0  }
   0x2   :  { %s1818_s14 = smov 0   ;;  %s1820_s15 = smov 0  }
   0x3   :  { %s1822_s16 = smov 0   ;;  %s1824_s17 = smov 0  }
   0x4 LB: > { %s1269_s18 = sadd.s32 4294967295, %s1789_s17   ;;  %s28_s19 = sadd.s32 1, %s1785_s16  ;;  %s1789_s17 = sphi %s1824_s17, %s16_s17   ;;  %s1785_s16 = sphi %s1822_s16, %s2111_s16   ;;  %s1781_s15 = sphi %s1820_s15, %s2110_s15   ;;  %s1777_s14 = sphi %s1818_s14, %s2109_s14   ;;  %s1773_s13 = sphi %s1816_s13, %s2108_s13   ;;  %s1769_s12 = sphi %s1814_s12, %s2107_s12  }
   0x5   : > { %p29_p0 = scmp.ge.s32.totalorder %s28_s19, 2  ;;  %s44_s20 = sadd.s32 1, %s1777_s14 }
   0x6   : > { %p51_p1 = scmp.ne.s32.totalorder %s1777_s14, %s1773_s13  ;;  %p52_p2 = scmp.eq.s32.totalorder %s1789_s17, 0 }
   0x7   : > { %s2113_s19 = smov (%p29_p0, %s28_s19), 0  ;;  %p85_p4 = scmp.ne.s32.totalorder %s1773_s13, %s1769_s12 }
   0x8   : > { %p1850_p3 = por %p52_p2, %p51_p1  ;;  %s40_s22 = ssub.s32 %s1785_s16, %s2113_s19 }
   0x9   : > { %p86_p5 = scmp.eq.s32.totalorder %s1269_s18, 0  ;;  %p42_p6 = scmp.eq.s32.totalorder %s40_s22, 0 }
   0xa   : > { %p1272_p8 = scmp.ge.s32.totalorder %s1789_s17, 2 }
   0xb   : > { %p1857_p7 = por %p86_p5, %p85_p4 }
   0xc   : > { %s1862_s24 = scalar_select %p42_p6, %s1777_s14, %s44_s20  }
   0xd   : > { %165 = sbr.rel (%p1272_p8) target bundleno = 60 (0x3c), region = 20 }
  0x12   : > { %168 = sbr.rel (!%p1850_p3) target bundleno = 54 (0x36), region = 24  ;;  %s170_s25 = sand.u32 (%p1850_p3), 1, %s1777_s14  }
  0x13   : > { %s1544_s26 = sshll.u32 (%p1850_p3), %s1785_s16, 4  ;;  %s1273_s27 = sshll.u32 (%p1850_p3), %s170_s25, 8 }
  0x14   : > { %s1872_s30 = scalar_lea.vmem (%p1850_p3), %s2101_s0, %s1544_s26  ;;  %s1877_s4 = scalar_lea.vmem (%p1850_p3), [#allocation3], %s1273_s27 }
  0x15   : > { %v191_v0 = vld [vmem:[%s1872_s30] sm:$0xff] (%p1850_p3)  ;;  %v193_v1 = vld [vmem:[%s1872_s30 + $0x8] sm:$0xff] (%p1850_p3) }
  0x16   : > { %v195_v2 = vld [vmem:[%s1872_s30 + $0x20] sm:$0xff] (%p1850_p3)  ;;  %192 = vst [vmem:[%s1877_s4] sm:$0xff] (%p1850_p3), %v191_v0  ;;  %v197_v3 = vld [vmem:[%s1872_s30 + $0x28] sm:$0xff] (%p1850_p3) }
  0x17   : > { %194 = vst [vmem:[%s1877_s4 + $0x8] sm:$0xff] %v193_v1  ;;  %v199_v4 = vld [vmem:[%s1872_s30 + $0x40] sm:$0xff]  ;;  %v201_v5 = vld [vmem:[%s1872_s30 + $0x48] sm:$0xff] }
  0x18   : > { %196 = vst [vmem:[%s1877_s4 + $0x10] sm:$0xff] %v195_v2  ;;  %v203_v6 = vld [vmem:[%s1872_s30 + $0x60] sm:$0xff]  ;;  %v205_v7 = vld [vmem:[%s1872_s30 + $0x68] sm:$0xff] }
  0x19   : > { %198 = vst [vmem:[%s1877_s4 + $0x18] sm:$0xff] %v197_v3  ;;  %v207_v8 = vld [vmem:[%s1872_s30 + $0x80] sm:$0xff]  ;;  %v209_v9 = vld [vmem:[%s1872_s30 + $0x88] sm:$0xff] }
  0x1a   : > { %200 = vst [vmem:[%s1877_s4 + $0x20] sm:$0xff] %v199_v4  ;;  %v211_v10 = vld [vmem:[%s1872_s30 + $0xa0] sm:$0xff]  ;;  %v213_v11 = vld [vmem:[%s1872_s30 + $0xa8] sm:$0xff] }
  0x1b   : > { %202 = vst [vmem:[%s1877_s4 + $0x28] sm:$0xff] %v201_v5  ;;  %v215_v12 = vld [vmem:[%s1872_s30 + $0xc0] sm:$0xff]  ;;  %v217_v13 = vld [vmem:[%s1872_s30 + $0xc8] sm:$0xff] }
  0x1c   : > { %204 = vst [vmem:[%s1877_s4 + $0x30] sm:$0xff] %v203_v6  ;;  %v219_v14 = vld [vmem:[%s1872_s30 + $0xe0] sm:$0xff]  ;;  %v221_v15 = vld [vmem:[%s1872_s30 + $0xe8] sm:$0xff] }
  0x1d   : > { %206 = vst [vmem:[%s1877_s4 + $0x38] sm:$0xff] %v205_v7  ;;  %v223_v16 = vld [vmem:[%s1872_s30 + $0x100] sm:$0xff]  ;;  %v225_v17 = vld [vmem:[%s1872_s30 + $0x108] sm:$0xff] }
  0x1e   : > { %208 = vst [vmem:[%s1877_s4 + $0x40] sm:$0xff] %v207_v8  ;;  %v227_v18 = vld [vmem:[%s1872_s30 + $0x120] sm:$0xff]  ;;  %v229_v19 = vld [vmem:[%s1872_s30 + $0x128] sm:$0xff] }
  0x1f   : > { %210 = vst [vmem:[%s1877_s4 + $0x48] sm:$0xff] %v209_v9  ;;  %v231_v20 = vld [vmem:[%s1872_s30 + $0x140] sm:$0xff]  ;;  %v233_v21 = vld [vmem:[%s1872_s30 + $0x148] sm:$0xff] }
  0x20   : > { %212 = vst [vmem:[%s1877_s4 + $0x50] sm:$0xff] %v211_v10  ;;  %v235_v22 = vld [vmem:[%s1872_s30 + $0x160] sm:$0xff]  ;;  %v237_v23 = vld [vmem:[%s1872_s30 + $0x168] sm:$0xff] }
  0x21   : > { %214 = vst [vmem:[%s1877_s4 + $0x58] sm:$0xff] %v213_v11  ;;  %v239_v24 = vld [vmem:[%s1872_s30 + $0x180] sm:$0xff]  ;;  %v241_v25 = vld [vmem:[%s1872_s30 + $0x188] sm:$0xff] }
  0x22   : > { %216 = vst [vmem:[%s1877_s4 + $0x60] sm:$0xff] %v215_v12  ;;  %v243_v26 = vld [vmem:[%s1872_s30 + $0x1a0] sm:$0xff]  ;;  %v245_v27 = vld [vmem:[%s1872_s30 + $0x1a8] sm:$0xff] }
  0x23   : > { %218 = vst [vmem:[%s1877_s4 + $0x68] sm:$0xff] %v217_v13  ;;  %v247_v28 = vld [vmem:[%s1872_s30 + $0x1c0] sm:$0xff]  ;;  %v249_v29 = vld [vmem:[%s1872_s30 + $0x1c8] sm:$0xff] }
  0x24   : > { %220 = vst [vmem:[%s1877_s4 + $0x70] sm:$0xff] %v219_v14  ;;  %v251_v30 = vld [vmem:[%s1872_s30 + $0x1e0] sm:$0xff]  ;;  %v253_v31 = vld [vmem:[%s1872_s30 + $0x1e8] sm:$0xff] }
  0x25   : > { %222 = vst [vmem:[%s1877_s4 + $0x78] sm:$0xff] %v221_v15 }
  0x26   : > { %224 = vst [vmem:[%s1877_s4 + $0x80] sm:$0xff] %v223_v16 }
  0x27   : > { %226 = vst [vmem:[%s1877_s4 + $0x88] sm:$0xff] %v225_v17 }
  0x28   : > { %228 = vst [vmem:[%s1877_s4 + $0x90] sm:$0xff] %v227_v18 }
  0x29   : > { %230 = vst [vmem:[%s1877_s4 + $0x98] sm:$0xff] %v229_v19 }
  0x2a   : > { %232 = vst [vmem:[%s1877_s4 + $0xa0] sm:$0xff] %v231_v20 }
  0x2b   : > { %234 = vst [vmem:[%s1877_s4 + $0xa8] sm:$0xff] %v233_v21 }
  0x2c   : > { %236 = vst [vmem:[%s1877_s4 + $0xb0] sm:$0xff] %v235_v22 }
  0x2d   : > { %238 = vst [vmem:[%s1877_s4 + $0xb8] sm:$0xff] %v237_v23 }
  0x2e   : > { %240 = vst [vmem:[%s1877_s4 + $0xc0] sm:$0xff] %v239_v24 }
  0x2f   : > { %242 = vst [vmem:[%s1877_s4 + $0xc8] sm:$0xff] %v241_v25 }
  0x30   : > { %244 = vst [vmem:[%s1877_s4 + $0xd0] sm:$0xff] %v243_v26 }
  0x31   : > { %246 = vst [vmem:[%s1877_s4 + $0xd8] sm:$0xff] %v245_v27 }
  0x32   : > { %248 = vst [vmem:[%s1877_s4 + $0xe0] sm:$0xff] %v247_v28 }
  0x33   : > { %250 = vst [vmem:[%s1877_s4 + $0xe8] sm:$0xff] %v249_v29 }
  0x34   : > { %252 = vst [vmem:[%s1877_s4 + $0xf0] sm:$0xff] %v251_v30 }
  0x35   : > { %254 = vst [vmem:[%s1877_s4 + $0xf8] sm:$0xff] %v253_v31 }
  0x36 PF: > { %s261_s5 = sand.u32 1, %s1777_s14   ;;  %s1545_s6 = sshll.u32 %s1785_s16, 8 }
  0x37   : > { %s1276_s7 = sshll.u32 %s261_s5, 8  ;;  %s271_s10 = scalar_lea.hbm %s2102_s1, %s1545_s6 }
  0x38   : > { %s272_s11 = sshll.u32 %s271_s10, 4  ;;  %s265_s12 = scalar_lea.vmem [#allocation4], %s1276_s7  ;;  %s273_s11 = int_to_ptr.hbm [resolvable:$true] %s272_s11 }
  0x39   : > { %s274_s18 = sshll.u32 %s265_s12, 4  ;;  %s262_s20 = scalar_lea.sflag [#allocation5], %s261_s5  ;;  %s275_s18 = int_to_ptr.vmem [resolvable:$true] %s274_s18 }
  0x3a   : > { %s1791_s22 = smov 64   ;;  %s1792_s25 = smov 4  }
  0x3b   : > { %1657 = dma.hbm_to_vmem [thread:$0]  (%p1850_p3), %s273_s11, 4096, %s275_s18, %s262_s20, %s1791_s22, %s1791_s22, %s1792_s25  }
  0x3c PF: > { %p1279_p9 = scmp.ge.s32.totalorder %s1789_s17, 1  ;;  %p282_p10 = scmp.lt.s32.totalorder %s1789_s17, 3 }
  0x3e   : > { %p283_p11 = pnand %p1279_p9, %p282_p10 }
  0x3f   : > { %s289_s26 = sand.u32 (!%p283_p11), 1, %s1773_s13  }
  0x40   : > { %286 = sbr.rel (%p283_p11) target bundleno = 403 (0x193), region = 51  ;;  %s1280_s27 = sshll.u32 (!%p283_p11), %s289_s26, 8 }
  0x41   : > { %s1950_s28 = scalar_lea.vmem (!%p283_p11), [#allocation3], %s1280_s27  ;;  %s296_s29 = scalar_lea.sflag (!%p283_p11), [#allocation5], %s289_s26 }
  0x42   : > { %s1952_s30 = scalar_lea.vmem (!%p283_p11), [#allocation4], %s1280_s27 }
  0x45   : > { %1764 = dma.done.wait (%p1857_p7), %s296_s29, 4096  }
  0x46   : > { %1766 = vsyncadd (%p1857_p7), %s296_s29, 4294963200  ;;  %p1282_p12 = scmp.ne.s32.totalorder %s1781_s15, 0 }
  0x48   : > { %351 = sbr.rel (%p1282_p12) target bundleno = 94 (0x5e), region = 63 }
  0x4d   : > { %v1793_v32 = vmov 0.0  }
  0x4e   : > { %352 = vst [vmem:[#allocation2 + $0x30] sm:$0xff] %v1793_v32 }
  0x4f   : > { %353 = vst [vmem:[#allocation2] sm:$0xff] %v1793_v32 }
  0x50   : > { %354 = vst [vmem:[#allocation2 + $0x58] sm:$0xff] %v1793_v32 }
  0x51   : > { %355 = vst [vmem:[#allocation2 + $0x18] sm:$0xff] %v1793_v32 }
  0x52   : > { %356 = vst [vmem:[#allocation2 + $0x50] sm:$0xff] %v1793_v32 }
  0x53   : > { %357 = vst [vmem:[#allocation2 + $0x68] sm:$0xff] %v1793_v32 }
  0x54   : > { %358 = vst [vmem:[#allocation2 + $0x8] sm:$0xff] %v1793_v32 }
  0x55   : > { %359 = vst [vmem:[#allocation2 + $0x48] sm:$0xff] %v1793_v32 }
  0x56   : > { %360 = vst [vmem:[#allocation2 + $0x40] sm:$0xff] %v1793_v32 }
  0x57   : > { %361 = vst [vmem:[#allocation2 + $0x20] sm:$0xff] %v1793_v32 }
  0x58   : > { %362 = vst [vmem:[#allocation2 + $0x10] sm:$0xff] %v1793_v32 }
  0x59   : > { %363 = vst [vmem:[#allocation2 + $0x38] sm:$0xff] %v1793_v32 }
  0x5a   : > { %364 = vst [vmem:[#allocation2 + $0x60] sm:$0xff] %v1793_v32 }
  0x5b   : > { %365 = vst [vmem:[#allocation2 + $0x70] sm:$0xff] %v1793_v32 }
  0x5c   : > { %366 = vst [vmem:[#allocation2 + $0x78] sm:$0xff] %v1793_v32 }
  0x5d   : > { %367 = vst [vmem:[#allocation2 + $0x28] sm:$0xff] %v1793_v32 }
  0x5e PF: > { %v1585_v33 = vld [vmem:[%s1952_s30 + $0x38] sm:$0xff]  ;;  %v1584_v37 = vld [vmem:[%s1952_s30 + $0x30] sm:$0xff]  ;;  %v1583_v41 = vld [vmem:[%s1952_s30 + $0x28] sm:$0xff]  ;;  %p1539_p13 = scmp.ne.s32.totalorder %s1781_s15, 1 }
  0x5f   : > { %v1593_v34 = vld [vmem:[%s1952_s30 + $0x78] sm:$0xff]  ;;  %832 = vmatpush.bf16.msra.mxu0 %v1585_v33  ;;  %v1592_v38 = vld [vmem:[%s1952_s30 + $0x70] sm:$0xff]  ;;  %v1591_v42 = vld [vmem:[%s1952_s30 + $0x68] sm:$0xff] }
  0x60   : > { %v1601_v35 = vld [vmem:[%s1952_s30 + $0xb8] sm:$0xff]  ;;  %881 = vmatpush.bf16.msra.mxu1 %v1593_v34  ;;  %v1600_v39 = vld [vmem:[%s1952_s30 + $0xb0] sm:$0xff]  ;;  %v1599_v43 = vld [vmem:[%s1952_s30 + $0xa8] sm:$0xff] }
  0x61   : > { %v1609_v36 = vld [vmem:[%s1952_s30 + $0xf8] sm:$0xff]  ;;  %930 = vmatpush.bf16.msra.mxu2 %v1601_v35  ;;  %v1608_v40 = vld [vmem:[%s1952_s30 + $0xf0] sm:$0xff]  ;;  %v1607_v44 = vld [vmem:[%s1952_s30 + $0xe8] sm:$0xff] }
  0x62   : > { %979 = vmatpush.bf16.msra.mxu3 %v1609_v36  ;;  %v1582_v45 = vld [vmem:[%s1952_s30 + $0x20] sm:$0xff]  ;;  %v1581_v49 = vld [vmem:[%s1952_s30 + $0x18] sm:$0xff]  ;;  %v1580_v53 = vld [vmem:[%s1952_s30 + $0x10] sm:$0xff] }
  0x63   : > { %833 = vmatpush.bf16.msra.mxu0 %v1584_v37  ;;  %v1590_v46 = vld [vmem:[%s1952_s30 + $0x60] sm:$0xff]  ;;  %v1589_v50 = vld [vmem:[%s1952_s30 + $0x58] sm:$0xff]  ;;  %v1588_v54 = vld [vmem:[%s1952_s30 + $0x50] sm:$0xff] }
  0x64   : > { %882 = vmatpush.bf16.msra.mxu1 %v1592_v38  ;;  %v1598_v47 = vld [vmem:[%s1952_s30 + $0xa0] sm:$0xff]  ;;  %v1597_v51 = vld [vmem:[%s1952_s30 + $0x98] sm:$0xff]  ;;  %v1596_v55 = vld [vmem:[%s1952_s30 + $0x90] sm:$0xff] }
  0x65   : > { %931 = vmatpush.bf16.msra.mxu2 %v1600_v39  ;;  %v1606_v48 = vld [vmem:[%s1952_s30 + $0xe0] sm:$0xff]  ;;  %v1605_v52 = vld [vmem:[%s1952_s30 + $0xd8] sm:$0xff]  ;;  %v1604_v56 = vld [vmem:[%s1952_s30 + $0xd0] sm:$0xff] }
  0x66   : > { %980 = vmatpush.bf16.msra.mxu3 %v1608_v40  ;;  %v1579_v57 = vld [vmem:[%s1952_s30 + $0x8] sm:$0xff]  ;;  %v1578_v61 = vld [vmem:[%s1952_s30] sm:$0xff]  ;;  %v1548_v2 = vld [vmem:[%s1950_s28 + $0xc] sm:$0xf0] }
  0x67   : > { %834 = vmatpush.bf16.msra.mxu0 %v1583_v41  ;;  %v1587_v58 = vld [vmem:[%s1952_s30 + $0x48] sm:$0xff]  ;;  %v1586_v62 = vld [vmem:[%s1952_s30 + $0x40] sm:$0xff]  ;;  %v1287_v4 = vld [vmem:[%s1950_s28 + $0x10] sm:$0xf0] }
  0x68   : > { %883 = vmatpush.bf16.msra.mxu1 %v1591_v42  ;;  %v1595_v59 = vld [vmem:[%s1952_s30 + $0x88] sm:$0xff]  ;;  %v1594_v63 = vld [vmem:[%s1952_s30 + $0x80] sm:$0xff]  ;;  %v1549_v6 = vld [vmem:[%s1950_s28 + $0x14] sm:$0xf0] }
  0x69   : > { %932 = vmatpush.bf16.msra.mxu2 %v1599_v43  ;;  %v1603_v60 = vld [vmem:[%s1952_s30 + $0xc8] sm:$0xff]  ;;  %v1602_v0 = vld [vmem:[%s1952_s30 + $0xc0] sm:$0xff]  ;;  %v1295_v8 = vld [vmem:[%s1950_s28 + $0x18] sm:$0xf0] }
  0x6a   : > { %981 = vmatpush.bf16.msra.mxu3 %v1607_v44  ;;  %v1285_v1 = vld [vmem:[%s1950_s28] sm:$0xf]  ;;  %v1546_v3 = vld [vmem:[%s1950_s28 + $0x4] sm:$0xf]  ;;  %v1293_v5 = vld [vmem:[%s1950_s28 + $0x8] sm:$0xf] }
  0x6b   : > { %835 = vmatpush.bf16.msra.mxu0 %v1582_v45  ;;  %v1547_v7 = vld [vmem:[%s1950_s28 + $0xc] sm:$0xf]  ;;  %v1286_v9 = vor.u32 %v1548_v2, %v1285_v1  ;;  %v1290_v10 = vor.u32 %v1546_v3, %v1287_v4  ;;  %v1294_v11 = vor.u32 %v1549_v6, %v1293_v5  ;;  %v1301_v13 = vld [vmem:[%s1950_s28 + $0x20] sm:$0xf]  ;;  %v1552_v14 = vld [vmem:[%s1950_s28 + $0x2c] sm:$0xf0] }
  0x6c   : > { %884 = vmatpush.bf16.msra.mxu1 %v1590_v46  ;;  %v1298_v12 = vor.u32 %v1547_v7, %v1295_v8  ;;  %v1550_v15 = vld [vmem:[%s1950_s28 + $0x24] sm:$0xf]  ;;  %v1303_v16 = vld [vmem:[%s1950_s28 + $0x30] sm:$0xf0]  ;;  %v1309_v17 = vld [vmem:[%s1950_s28 + $0x28] sm:$0xf]  ;;  %v1302_v21 = vor.u32 %v1552_v14, %v1301_v13 }
  0x6d   : > { %933 = vmatpush.bf16.msra.mxu2 %v1598_v47  ;;  %v1553_v18 = vld [vmem:[%s1950_s28 + $0x34] sm:$0xf0]  ;;  %v1551_v19 = vld [vmem:[%s1950_s28 + $0x2c] sm:$0xf]  ;;  %v1311_v20 = vld [vmem:[%s1950_s28 + $0x38] sm:$0xf0]  ;;  %v1306_v22 = vor.u32 %v1550_v15, %v1303_v16 }
  0x6e   : > { %982 = vmatpush.bf16.msra.mxu3 %v1606_v48  ;;  %v1310_v23 = vor.u32 %v1553_v18, %v1309_v17  ;;  %v1314_v24 = vor.u32 %v1551_v19, %v1311_v20  ;;  %v1317_v25 = vld [vmem:[%s1950_s28 + $0x40] sm:$0xf]  ;;  %v1556_v26 = vld [vmem:[%s1950_s28 + $0x4c] sm:$0xf0]  ;;  %v1554_v27 = vld [vmem:[%s1950_s28 + $0x44] sm:$0xf] }
  0x6f   : > { %836 = vmatpush.bf16.msra.mxu0 %v1581_v49  ;;  %v1319_v28 = vld [vmem:[%s1950_s28 + $0x50] sm:$0xf0]  ;;  %v1325_v29 = vld [vmem:[%s1950_s28 + $0x48] sm:$0xf]  ;;  %v1557_v30 = vld [vmem:[%s1950_s28 + $0x54] sm:$0xf0]  ;;  %v1318_v33 = vor.u32 %v1556_v26, %v1317_v25 }
  0x70   : > { %885 = vmatpush.bf16.msra.mxu1 %v1589_v50  ;;  %v1555_v31 = vld [vmem:[%s1950_s28 + $0x4c] sm:$0xf]  ;;  %v1327_v32 = vld [vmem:[%s1950_s28 + $0x58] sm:$0xf0]  ;;  %v1322_v34 = vor.u32 %v1554_v27, %v1319_v28  ;;  %v1326_v35 = vor.u32 %v1557_v30, %v1325_v29  ;;  %v1333_v37 = vld [vmem:[%s1950_s28 + $0x60] sm:$0xf] }
  0x71   : > { %934 = vmatpush.bf16.msra.mxu2 %v1597_v51  ;;  %v1330_v36 = vor.u32 %v1555_v31, %v1327_v32  ;;  %v1560_v38 = vld [vmem:[%s1950_s28 + $0x6c] sm:$0xf0]  ;;  %v1558_v39 = vld [vmem:[%s1950_s28 + $0x64] sm:$0xf]  ;;  %v1335_v40 = vld [vmem:[%s1950_s28 + $0x70] sm:$0xf0] }
  0x72   : > { %983 = vmatpush.bf16.msra.mxu3 %v1605_v52  ;;  %v1341_v41 = vld [vmem:[%s1950_s28 + $0x68] sm:$0xf]  ;;  %v1561_v42 = vld [vmem:[%s1950_s28 + $0x74] sm:$0xf0]  ;;  %v1559_v43 = vld [vmem:[%s1950_s28 + $0x6c] sm:$0xf]  ;;  %v1334_v45 = vor.u32 %v1560_v38, %v1333_v37  ;;  %v1338_v46 = vor.u32 %v1558_v39, %v1335_v40 }
  0x73   : > { %837 = vmatpush.bf16.msra.mxu0 %v1580_v53  ;;  %v1343_v44 = vld [vmem:[%s1950_s28 + $0x78] sm:$0xf0]  ;;  %v1342_v47 = vor.u32 %v1561_v42, %v1341_v41  ;;  %v1349_v49 = vld [vmem:[%s1950_s28 + $0x80] sm:$0xf]  ;;  %v1564_v50 = vld [vmem:[%s1950_s28 + $0x8c] sm:$0xf0] }
  0x74   : > { %886 = vmatpush.bf16.msra.mxu1 %v1588_v54  ;;  %v1346_v48 = vor.u32 %v1559_v43, %v1343_v44  ;;  %v1562_v51 = vld [vmem:[%s1950_s28 + $0x84] sm:$0xf]  ;;  %v1351_v52 = vld [vmem:[%s1950_s28 + $0x90] sm:$0xf0]  ;;  %v1357_v53 = vld [vmem:[%s1950_s28 + $0x88] sm:$0xf] }
  0x75   : > { %935 = vmatpush.bf16.msra.mxu2 %v1596_v55  ;;  %v1565_v54 = vld [vmem:[%s1950_s28 + $0x94] sm:$0xf0]  ;;  %v1563_v55 = vld [vmem:[%s1950_s28 + $0x8c] sm:$0xf]  ;;  %v1373_v1 = vld [vmem:[%s1950_s28 + $0xa8] sm:$0xf] }
  0x76   : > { %984 = vmatpush.bf16.msra.mxu3 %v1604_v56  ;;  %v1359_v56 = vld [vmem:[%s1950_s28 + $0x98] sm:$0xf0]  ;;  %v1569_v2 = vld [vmem:[%s1950_s28 + $0xb4] sm:$0xf0]  ;;  %v1567_v3 = vld [vmem:[%s1950_s28 + $0xac] sm:$0xf] }
  0x77   : > { %838 = vmatpush.bf16.msra.mxu0 %v1579_v57  ;;  %v1350_v57 = vor.u32 %v1564_v50, %v1349_v49  ;;  %v1375_v4 = vld [vmem:[%s1950_s28 + $0xb8] sm:$0xf0]  ;;  %v1374_v7 = vor.u32 %v1569_v2, %v1373_v1  ;;  %v1389_v13 = vld [vmem:[%s1950_s28 + $0xc8] sm:$0xf]  ;;  %v1573_v14 = vld [vmem:[%s1950_s28 + $0xd4] sm:$0xf0] }
  0x78   : > { %887 = vmatpush.bf16.msra.mxu1 %v1587_v58  ;;  %v1354_v58 = vor.u32 %v1562_v51, %v1351_v52  ;;  %v1378_v8 = vor.u32 %v1567_v3, %v1375_v4  ;;  %v1571_v15 = vld [vmem:[%s1950_s28 + $0xcc] sm:$0xf]  ;;  %v1391_v16 = vld [vmem:[%s1950_s28 + $0xd8] sm:$0xf0]  ;;  %v1390_v19 = vor.u32 %v1573_v14, %v1389_v13  ;;  %v1405_v25 = vld [vmem:[%s1950_s28 + $0xe8] sm:$0xf] }
  0x79   : > { %936 = vmatpush.bf16.msra.mxu2 %v1595_v59  ;;  %v1358_v59 = vor.u32 %v1565_v54, %v1357_v53  ;;  %v1394_v20 = vor.u32 %v1571_v15, %v1391_v16  ;;  %v1577_v26 = vld [vmem:[%s1950_s28 + $0xf4] sm:$0xf0]  ;;  %v1575_v27 = vld [vmem:[%s1950_s28 + $0xec] sm:$0xf]  ;;  %v1407_v28 = vld [vmem:[%s1950_s28 + $0xf8] sm:$0xf0] }
  0x7a   : > { %985 = vmatpush.bf16.msra.mxu3 %v1603_v60  ;;  %v1362_v60 = vor.u32 %v1563_v55, %v1359_v56  ;;  %v1406_v31 = vor.u32 %v1577_v26, %v1405_v25  ;;  %v1410_v32 = vor.u32 %v1575_v27, %v1407_v28  ;;  %v368_v41 = vld [vmem:[#allocation2 + $0x30] sm:$0xff]  ;;  %v369_v50 = vld [vmem:[#allocation2] sm:$0xff]  ;;  %v371_v4 = vld [vmem:[#allocation2 + $0x18] sm:$0xff] }
  0x7b   : > { %839 = vmatpush.bf16.msra.mxu0 %v1578_v61  ;;  %v1365_v61 = vld [vmem:[%s1950_s28 + $0xa0] sm:$0xf]  ;;  %v372_v13 = vld [vmem:[#allocation2 + $0x50] sm:$0xff] }
  0x7c   : > { %888 = vmatpush.bf16.msra.mxu1 %v1586_v62  ;;  %v1568_v62 = vld [vmem:[%s1950_s28 + $0xac] sm:$0xf0] }
  0x7d   : > { %937 = vmatpush.bf16.msra.mxu2 %v1594_v63  ;;  %v1566_v63 = vld [vmem:[%s1950_s28 + $0xa4] sm:$0xf]  ;;  %v1366_v5 = vor.u32 %v1568_v62, %v1365_v61 }
  0x7e   : > { %986 = vmatpush.bf16.msra.mxu3 %v1602_v0  ;;  %840 = vmatmul.bf16.vlgmr.msra.gmra.mxu0 %v1286_v9  ;;  %v1367_v0 = vld [vmem:[%s1950_s28 + $0xb0] sm:$0xf0]  ;;  %v1381_v9 = vld [vmem:[%s1950_s28 + $0xc0] sm:$0xf] }
  0x7f   : > { %889 = vmatmul.bf16.vlgmr.msra.gmra.mxu1 %v1290_v10  ;;  %v1370_v6 = vor.u32 %v1566_v63, %v1367_v0  ;;  %v1572_v10 = vld [vmem:[%s1950_s28 + $0xcc] sm:$0xf0] }
  0x80   : > { %938 = vmatmul.bf16.vlgmr.msra.gmra.mxu2 %v1294_v11  ;;  %v1570_v11 = vld [vmem:[%s1950_s28 + $0xc4] sm:$0xf]  ;;  %v1382_v17 = vor.u32 %v1572_v10, %v1381_v9 }
  0x81   : > { %987 = vmatmul.bf16.vlgmr.msra.gmra.mxu3 %v1298_v12  ;;  %v1383_v12 = vld [vmem:[%s1950_s28 + $0xd0] sm:$0xf0] }
  0x82   : > { %v1386_v18 = vor.u32 %v1570_v11, %v1383_v12 }
  0x8e   : > { %845 = vmatmul.bf16.gmra.mxu0 %v1302_v21  ;;  %v1397_v21 = vld [vmem:[%s1950_s28 + $0xe0] sm:$0xf] }
  0x8f   : > { %894 = vmatmul.bf16.gmra.mxu1 %v1306_v22  ;;  %v1576_v22 = vld [vmem:[%s1950_s28 + $0xec] sm:$0xf0] }
  0x90   : > { %943 = vmatmul.bf16.gmra.mxu2 %v1310_v23  ;;  %v1574_v23 = vld [vmem:[%s1950_s28 + $0xe4] sm:$0xf]  ;;  %v1398_v29 = vor.u32 %v1576_v22, %v1397_v21  ;;  %v373_v22 = vld [vmem:[#allocation2 + $0x68] sm:$0xff] }
  0x91   : > { %992 = vmatmul.bf16.gmra.mxu3 %v1314_v24  ;;  %v1399_v24 = vld [vmem:[%s1950_s28 + $0xf0] sm:$0xf0] }
  0x92   : > { %v1402_v30 = vor.u32 %v1574_v23, %v1399_v24 }
  0x9e   : > { %850 = vmatmul.bf16.gmra.mxu0 %v1318_v33 }
  0x9f   : > { %899 = vmatmul.bf16.gmra.mxu1 %v1322_v34 }
  0xa0   : > { %948 = vmatmul.bf16.gmra.mxu2 %v1326_v35 }
  0xa1   : > { %997 = vmatmul.bf16.gmra.mxu3 %v1330_v36 }
  0xae   : > { %855 = vmatmul.bf16.gmra.mxu0 %v1334_v45 }
  0xaf   : > { %904 = vmatmul.bf16.gmra.mxu1 %v1338_v46 }
  0xb0   : > { %953 = vmatmul.bf16.gmra.mxu2 %v1342_v47 }
  0xb1   : > { %1002 = vmatmul.bf16.gmra.mxu3 %v1346_v48 }
  0xbe   : > { %860 = vmatmul.bf16.gmra.mxu0 %v1350_v57 }
  0xbf   : > { %909 = vmatmul.bf16.gmra.mxu1 %v1354_v58 }
  0xc0   : > { %958 = vmatmul.bf16.gmra.mxu2 %v1358_v59  ;;  %v370_v59 = vld [vmem:[#allocation2 + $0x58] sm:$0xff] }
  0xc1   : > { %1007 = vmatmul.bf16.gmra.mxu3 %v1362_v60 }
  0xce   : > { %865 = vmatmul.bf16.gmra.mxu0 %v1366_v5 }
  0xcf   : > { %914 = vmatmul.bf16.gmra.mxu1 %v1370_v6 }
  0xd0   : > { %963 = vmatmul.bf16.gmra.mxu2 %v1374_v7 }
  0xd1   : > { %1012 = vmatmul.bf16.gmra.mxu3 %v1378_v8 }
  0xde   : > { %870 = vmatmul.bf16.gmra.mxu0 %v1382_v17 }
  0xdf   : > { %919 = vmatmul.bf16.gmra.mxu1 %v1386_v18 }
  0xe0   : > { %968 = vmatmul.bf16.gmra.mxu2 %v1390_v19 }
  0xe1   : > { %1017 = vmatmul.bf16.gmra.mxu3 %v1394_v20 }
  0xee   : > { %875 = vmatmul.bf16.gmra.mxu0 %v1398_v29 }
  0xef   : > { %924 = vmatmul.bf16.gmra.mxu1 %v1402_v30 }
  0xf0   : > { %973 = vmatmul.bf16.gmra.mxu2 %v1406_v31  ;;  %v374_v31 = vld [vmem:[#allocation2 + $0x8] sm:$0xff] }
  0xf1   : > { %1022 = vmatmul.bf16.gmra.mxu3 %v1410_v32 }
  0xfb   : > { %v841_v33 = vpop.f32.mrf.mxu0 }
  0xfc   : > { %v890_v34 = vpop.f32.mrf.mxu1 }
  0xfd   : > { %v891_v35 = vadd.f32 %v890_v34, %v841_v33 }
 0x103   : > { %v939_v36 = vpop.f32.mrf.mxu2  ;;  %v843_v39 = vpop.f32.mrf.mxu0 }
 0x104   : > { %v988_v37 = vpop.f32.mrf.mxu3  ;;  %v940_v38 = vadd.f32 %v939_v36, %v891_v35  ;;  %v892_v40 = vpop.f32.mrf.mxu1 }
 0x105   : > { %v893_v44 = vadd.f32 %v892_v40, %v843_v39  ;;  %v375_v40 = vld [vmem:[#allocation2 + $0x48] sm:$0xff] }
 0x106   : > { %v989_v42 = vadd.f32 %v988_v37, %v940_v38 }
 0x108   : > { %v1028_v43 = vadd.f32 %v989_v42, %v368_v41 }
 0x10a   : > { %1044 = vst [vmem:[#allocation2 + $0x30] sm:$0xff] %v1028_v43 }
 0x10b   : > { %v941_v45 = vpop.f32.mrf.mxu2  ;;  %v846_v48 = vpop.f32.mrf.mxu0 }
 0x10c   : > { %v990_v46 = vpop.f32.mrf.mxu3  ;;  %v942_v47 = vadd.f32 %v941_v45, %v893_v44  ;;  %v895_v49 = vpop.f32.mrf.mxu1 }
 0x10d   : > { %v896_v53 = vadd.f32 %v895_v49, %v846_v48  ;;  %v376_v49 = vld [vmem:[#allocation2 + $0x40] sm:$0xff] }
 0x10e   : > { %v991_v51 = vadd.f32 %v990_v46, %v942_v47 }
 0x110   : > { %v1029_v52 = vadd.f32 %v991_v51, %v369_v50 }
 0x112   : > { %1045 = vst [vmem:[#allocation2] sm:$0xff] %v1029_v52 }
 0x113   : > { %v944_v54 = vpop.f32.mrf.mxu2  ;;  %v848_v57 = vpop.f32.mrf.mxu0 }
 0x114   : > { %v993_v55 = vpop.f32.mrf.mxu3  ;;  %v945_v56 = vadd.f32 %v944_v54, %v896_v53  ;;  %v897_v58 = vpop.f32.mrf.mxu1 }
 0x115   : > { %v898_v62 = vadd.f32 %v897_v58, %v848_v57  ;;  %v377_v58 = vld [vmem:[#allocation2 + $0x20] sm:$0xff] }
 0x116   : > { %v994_v60 = vadd.f32 %v993_v55, %v945_v56 }
 0x118   : > { %v1030_v61 = vadd.f32 %v994_v60, %v370_v59 }
 0x11a   : > { %1046 = vst [vmem:[#allocation2 + $0x58] sm:$0xff] %v1030_v61 }
 0x11b   : > { %v946_v63 = vpop.f32.mrf.mxu2  ;;  %v851_v2 = vpop.f32.mrf.mxu0 }
 0x11c   : > { %v995_v0 = vpop.f32.mrf.mxu3  ;;  %v947_v1 = vadd.f32 %v946_v63, %v898_v62  ;;  %v900_v3 = vpop.f32.mrf.mxu1 }
 0x11d   : > { %v901_v7 = vadd.f32 %v900_v3, %v851_v2  ;;  %v378_v3 = vld [vmem:[#allocation2 + $0x10] sm:$0xff] }
 0x11e   : > { %v996_v5 = vadd.f32 %v995_v0, %v947_v1 }
 0x120   : > { %v1031_v6 = vadd.f32 %v996_v5, %v371_v4 }
 0x122   : > { %1047 = vst [vmem:[#allocation2 + $0x18] sm:$0xff] %v1031_v6 }
 0x123   : > { %v949_v8 = vpop.f32.mrf.mxu2  ;;  %v853_v11 = vpop.f32.mrf.mxu0 }
 0x124   : > { %v998_v9 = vpop.f32.mrf.mxu3  ;;  %v950_v10 = vadd.f32 %v949_v8, %v901_v7  ;;  %v902_v12 = vpop.f32.mrf.mxu1 }
 0x125   : > { %v903_v16 = vadd.f32 %v902_v12, %v853_v11  ;;  %v379_v12 = vld [vmem:[#allocation2 + $0x38] sm:$0xff] }
 0x126   : > { %v999_v14 = vadd.f32 %v998_v9, %v950_v10 }
 0x128   : > { %v1032_v15 = vadd.f32 %v999_v14, %v372_v13 }
 0x12a   : > { %1048 = vst [vmem:[#allocation2 + $0x50] sm:$0xff] %v1032_v15 }
 0x12b   : > { %v951_v17 = vpop.f32.mrf.mxu2  ;;  %v856_v20 = vpop.f32.mrf.mxu0 }
 0x12c   : > { %v1000_v18 = vpop.f32.mrf.mxu3  ;;  %v952_v19 = vadd.f32 %v951_v17, %v903_v16  ;;  %v905_v21 = vpop.f32.mrf.mxu1 }
 0x12d   : > { %v906_v25 = vadd.f32 %v905_v21, %v856_v20  ;;  %v380_v21 = vld [vmem:[#allocation2 + $0x60] sm:$0xff] }
 0x12e   : > { %v1001_v23 = vadd.f32 %v1000_v18, %v952_v19 }
 0x130   : > { %v1033_v24 = vadd.f32 %v1001_v23, %v373_v22 }
 0x132   : > { %1049 = vst [vmem:[#allocation2 + $0x68] sm:$0xff] %v1033_v24 }
 0x133   : > { %v954_v26 = vpop.f32.mrf.mxu2  ;;  %v858_v29 = vpop.f32.mrf.mxu0 }
 0x134   : > { %v1003_v27 = vpop.f32.mrf.mxu3  ;;  %v955_v28 = vadd.f32 %v954_v26, %v906_v25  ;;  %v907_v30 = vpop.f32.mrf.mxu1 }
 0x135   : > { %v908_v34 = vadd.f32 %v907_v30, %v858_v29 }
 0x136   : > { %v1004_v32 = vadd.f32 %v1003_v27, %v955_v28  ;;  %v381_v28 = vld [vmem:[#allocation2 + $0x70] sm:$0xff] }
 0x138   : > { %v1034_v33 = vadd.f32 %v1004_v32, %v374_v31 }
 0x13a   : > { %1050 = vst [vmem:[#allocation2 + $0x8] sm:$0xff] %v1034_v33 }
 0x13b   : > { %v956_v35 = vpop.f32.mrf.mxu2  ;;  %v861_v38 = vpop.f32.mrf.mxu0 }
 0x13c   : > { %v1005_v36 = vpop.f32.mrf.mxu3  ;;  %v957_v37 = vadd.f32 %v956_v35, %v908_v34  ;;  %v910_v39 = vpop.f32.mrf.mxu1 }
 0x13d   : > { %v911_v43 = vadd.f32 %v910_v39, %v861_v38 }
 0x13e   : > { %v1006_v41 = vadd.f32 %v1005_v36, %v957_v37  ;;  %v382_v37 = vld [vmem:[#allocation2 + $0x78] sm:$0xff] }
 0x140   : > { %v1035_v42 = vadd.f32 %v1006_v41, %v375_v40 }
 0x142   : > { %1051 = vst [vmem:[#allocation2 + $0x48] sm:$0xff] %v1035_v42 }
 0x143   : > { %v959_v44 = vpop.f32.mrf.mxu2  ;;  %v863_v47 = vpop.f32.mrf.mxu0 }
 0x144   : > { %v1008_v45 = vpop.f32.mrf.mxu3  ;;  %v960_v46 = vadd.f32 %v959_v44, %v911_v43  ;;  %v912_v48 = vpop.f32.mrf.mxu1 }
 0x145   : > { %v913_v52 = vadd.f32 %v912_v48, %v863_v47 }
 0x146   : > { %v1009_v50 = vadd.f32 %v1008_v45, %v960_v46  ;;  %v383_v45 = vld [vmem:[#allocation2 + $0x28] sm:$0xff] }
 0x148   : > { %v1036_v51 = vadd.f32 %v1009_v50, %v376_v49 }
 0x14a   : > { %1052 = vst [vmem:[#allocation2 + $0x40] sm:$0xff] %v1036_v51 }
 0x14b   : > { %v961_v53 = vpop.f32.mrf.mxu2  ;;  %v866_v56 = vpop.f32.mrf.mxu0 }
 0x14c   : > { %v1010_v54 = vpop.f32.mrf.mxu3  ;;  %v962_v55 = vadd.f32 %v961_v53, %v913_v52  ;;  %v915_v57 = vpop.f32.mrf.mxu1 }
 0x14d   : > { %v916_v61 = vadd.f32 %v915_v57, %v866_v56 }
 0x14e   : > { %v1011_v59 = vadd.f32 %v1010_v54, %v962_v55 }
 0x150   : > { %v1037_v60 = vadd.f32 %v1011_v59, %v377_v58 }
 0x152   : > { %1053 = vst [vmem:[#allocation2 + $0x20] sm:$0xff] %v1037_v60 }
 0x153   : > { %v964_v62 = vpop.f32.mrf.mxu2  ;;  %v868_v1 = vpop.f32.mrf.mxu0 }
 0x154   : > { %v1013_v63 = vpop.f32.mrf.mxu3  ;;  %v965_v0 = vadd.f32 %v964_v62, %v916_v61  ;;  %v917_v2 = vpop.f32.mrf.mxu1 }
 0x155   : > { %v918_v6 = vadd.f32 %v917_v2, %v868_v1 }
 0x156   : > { %v1014_v4 = vadd.f32 %v1013_v63, %v965_v0 }
 0x158   : > { %v1038_v5 = vadd.f32 %v1014_v4, %v378_v3 }
 0x15a   : > { %1054 = vst [vmem:[#allocation2 + $0x10] sm:$0xff] %v1038_v5 }
 0x15b   : > { %v966_v7 = vpop.f32.mrf.mxu2  ;;  %v871_v10 = vpop.f32.mrf.mxu0 }
 0x15c   : > { %v1015_v8 = vpop.f32.mrf.mxu3  ;;  %v967_v9 = vadd.f32 %v966_v7, %v918_v6  ;;  %v920_v11 = vpop.f32.mrf.mxu1 }
 0x15d   : > { %v921_v15 = vadd.f32 %v920_v11, %v871_v10 }
 0x15e   : > { %v1016_v13 = vadd.f32 %v1015_v8, %v967_v9 }
 0x160   : > { %v1039_v14 = vadd.f32 %v1016_v13, %v379_v12 }
 0x162   : > { %1055 = vst [vmem:[#allocation2 + $0x38] sm:$0xff] %v1039_v14 }
 0x163   : > { %v969_v16 = vpop.f32.mrf.mxu2  ;;  %v873_v19 = vpop.f32.mrf.mxu0 }
 0x164   : > { %v1018_v17 = vpop.f32.mrf.mxu3  ;;  %v970_v18 = vadd.f32 %v969_v16, %v921_v15  ;;  %v922_v20 = vpop.f32.mrf.mxu1 }
 0x165   : > { %v923_v24 = vadd.f32 %v922_v20, %v873_v19 }
 0x166   : > { %v1019_v22 = vadd.f32 %v1018_v17, %v970_v18 }
 0x168   : > { %v1040_v23 = vadd.f32 %v1019_v22, %v380_v21 }
 0x16a   : > { %1056 = vst [vmem:[#allocation2 + $0x60] sm:$0xff] %v1040_v23 }
 0x16b   : > { %v971_v25 = vpop.f32.mrf.mxu2  ;;  %v876_v29 = vpop.f32.mrf.mxu0 }
 0x16c   : > { %v1020_v26 = vpop.f32.mrf.mxu3  ;;  %v972_v27 = vadd.f32 %v971_v25, %v923_v24  ;;  %v925_v30 = vpop.f32.mrf.mxu1 }
 0x16d   : > { %v926_v33 = vadd.f32 %v925_v30, %v876_v29 }
 0x16e   : > { %v1021_v31 = vadd.f32 %v1020_v26, %v972_v27 }
 0x170   : > { %v1041_v32 = vadd.f32 %v1021_v31, %v381_v28 }
 0x172   : > { %1057 = vst [vmem:[#allocation2 + $0x70] sm:$0xff] %v1041_v32 }
 0x173   : > { %v974_v34 = vpop.f32.mrf.mxu2  ;;  %v878_v39 = vpop.f32.mrf.mxu0 }
 0x174   : > { %v1023_v35 = vpop.f32.mrf.mxu3  ;;  %v975_v36 = vadd.f32 %v974_v34, %v926_v33  ;;  %v927_v40 = vpop.f32.mrf.mxu1 }
 0x175   : > { %v928_v42 = vadd.f32 %v927_v40, %v878_v39 }
 0x176   : > { %v1024_v38 = vadd.f32 %v1023_v35, %v975_v36 }
 0x178   : > { %v1042_v41 = vadd.f32 %v1024_v38, %v382_v37 }
 0x17a   : > { %1058 = vst [vmem:[#allocation2 + $0x78] sm:$0xff] %v1042_v41 }
 0x17b   : > { %v976_v43 = vpop.f32.mrf.mxu2 }
 0x17c   : > { %v977_v44 = vadd.f32 %v976_v43, %v928_v42  ;;  %v1025_v46 = vpop.f32.mrf.mxu3 }
 0x17e   : > { %v1026_v47 = vadd.f32 %v1025_v46, %v977_v44  ;;  %1063 = sbr.rel (%p1539_p13) target bundleno = 403 (0x193), region = 67 }
 0x180   : > { %v1043_v48 = vadd.f32 %v1026_v47, %v383_v45 }
 0x182   : > { %1059 = vst [vmem:[#allocation2 + $0x28] sm:$0xff] %v1043_v48 }
 0x183   : > { %v1064_v49 = vld [vmem:[#allocation2 + $0x30] sm:$0xff]  ;;  %v1065_v50 = vld [vmem:[#allocation2] sm:$0xff]  ;;  %v1066_v52 = vld [vmem:[#allocation2 + $0x58] sm:$0xff] }
 0x184   : > { %v1710_v51 = vld [vmem:[%s2103_s2] ss:$0 sm:$0xff]  ;;  %v1067_v53 = vld [vmem:[#allocation2 + $0x18] sm:$0xff]  ;;  %v1068_v54 = vld [vmem:[#allocation2 + $0x50] sm:$0xff] }
 0x185   : > { %v1069_v55 = vld [vmem:[#allocation2 + $0x68] sm:$0xff]  ;;  %v1084_v57 = vadd.f32 %v1710_v51, %v1064_v49  ;;  %v1085_v58 = vadd.f32 %v1710_v51, %v1065_v50  ;;  %v1086_v59 = vadd.f32 %v1710_v51, %v1066_v52  ;;  %v1087_v60 = vadd.f32 %v1710_v51, %v1067_v53  ;;  %v1072_v2 = vld [vmem:[#allocation2 + $0x40] sm:$0xff]  ;;  %v1074_v8 = vld [vmem:[#allocation2 + $0x10] sm:$0xff] }
 0x186   : > { %v1070_v56 = vld [vmem:[#allocation2 + $0x8] sm:$0xff]  ;;  %v1088_v62 = vadd.f32 %v1710_v51, %v1068_v54  ;;  %v1089_v63 = vadd.f32 %v1710_v51, %v1069_v55  ;;  %v1073_v3 = vld [vmem:[#allocation2 + $0x20] sm:$0xff]  ;;  %v1075_v9 = vld [vmem:[#allocation2 + $0x38] sm:$0xff]  ;;  %v1092_v18 = vadd.f32 %v1710_v51, %v1072_v2  ;;  %v1094_v24 = vadd.f32 %v1710_v51, %v1074_v8 }
 0x187   : > { %v1071_v61 = vld [vmem:[#allocation2 + $0x48] sm:$0xff]  ;;  %v1090_v0 = vadd.f32 %v1710_v51, %v1070_v56  ;;  %v1100_v4 = vmax.f32 %v1084_v57, 0.0  ;;  %v1101_v5 = vmax.f32 %v1085_v58, 0.0  ;;  %v1102_v6 = vmax.f32 %v1086_v59, 0.0  ;;  %v1076_v14 = vld [vmem:[#allocation2 + $0x60] sm:$0xff]  ;;  %v1077_v15 = vld [vmem:[#allocation2 + $0x70] sm:$0xff] }
 0x188   : > { %v1091_v1 = vadd.f32 %v1710_v51, %v1071_v61  ;;  %v1103_v7 = vmax.f32 %v1087_v60, 0.0  ;;  %v1104_v10 = vmax.f32 %v1088_v62, 0.0  ;;  %v1105_v11 = vmax.f32 %v1089_v63, 0.0  ;;  %v1078_v20 = vld [vmem:[#allocation2 + $0x78] sm:$0xff] }
 0x189   : > { %v1106_v12 = vmax.f32 %v1090_v0, 0.0  ;;  %v1613_v16 = vpack.c.bf16 %v1101_v5, %v1100_v4  ;;  %v1093_v19 = vadd.f32 %v1710_v51, %v1073_v3  ;;  %v1079_v21 = vld [vmem:[#allocation2 + $0x28] sm:$0xff]  ;;  %v1095_v25 = vadd.f32 %v1710_v51, %v1075_v9 }
 0x18a   : > { %v1107_v13 = vmax.f32 %v1091_v1, 0.0  ;;  %v1618_v17 = vpack.c.bf16 %v1103_v7, %v1102_v6  ;;  %v1623_v22 = vpack.c.bf16 %v1105_v11, %v1104_v10  ;;  %v1108_v26 = vmax.f32 %v1092_v18, 0.0 }
 0x18b   : > { %1614 = vst [vmem:[%s2104_s3] sm:$0xff] %v1613_v16   ;;  %v1109_v27 = vmax.f32 %v1093_v19, 0.0  ;;  %v1096_v28 = vadd.f32 %v1710_v51, %v1076_v14  ;;  %v1097_v29 = vadd.f32 %v1710_v51, %v1077_v15  ;;  %v1110_v30 = vmax.f32 %v1094_v24, 0.0 }
 0x18c   : > { %v1628_v23 = vpack.c.bf16 %v1107_v13, %v1106_v12  ;;  %1650 = vst [vmem:[%s2104_s3 + $0x8] sm:$0xff] %v1618_v17   ;;  %v1111_v31 = vmax.f32 %v1095_v25, 0.0  ;;  %v1098_v32 = vadd.f32 %v1710_v51, %v1078_v20  ;;  %v1099_v33 = vadd.f32 %v1710_v51, %v1079_v21 }
 0x18d   : > { %1651 = vst [vmem:[%s2104_s3 + $0x10] sm:$0xff] %v1623_v22   ;;  %v1633_v34 = vpack.c.bf16 %v1109_v27, %v1108_v26  ;;  %v1112_v35 = vmax.f32 %v1096_v28, 0.0  ;;  %v1113_v36 = vmax.f32 %v1097_v29, 0.0 }
 0x18e   : > { %1652 = vst [vmem:[%s2104_s3 + $0x18] sm:$0xff] %v1628_v23   ;;  %v1638_v37 = vpack.c.bf16 %v1111_v31, %v1110_v30  ;;  %v1114_v38 = vmax.f32 %v1098_v32, 0.0  ;;  %v1115_v39 = vmax.f32 %v1099_v33, 0.0 }
 0x18f   : > { %1653 = vst [vmem:[%s2104_s3 + $0x20] sm:$0xff] %v1633_v34   ;;  %v1643_v40 = vpack.c.bf16 %v1113_v36, %v1112_v35 }
 0x190   : > { %1654 = vst [vmem:[%s2104_s3 + $0x28] sm:$0xff] %v1638_v37   ;;  %v1648_v41 = vpack.c.bf16 %v1115_v39, %v1114_v38 }
 0x191   : > { %1655 = vst [vmem:[%s2104_s3 + $0x30] sm:$0xff] %v1643_v40  }
 0x192   : > { %1656 = vst [vmem:[%s2104_s3 + $0x38] sm:$0xff] %v1648_v41  }
 0x193 PF: > { %s16_s17 = sadd.s32 1, %s1789_s17   ;;  %s2107_s12 = smov %s1773_s13 }
 0x194   : > { %p13_p0 = scmp.ge.s32.totalorder %s16_s17, 4   ;;  %s2108_s13 = smov %s1777_s14 }
 0x195   : > { %s2109_s14 = smov %s1862_s24  ;;  %s2110_s15 = smov %s1785_s16 }
 0x196   : > { %s2111_s16 = smov %s2113_s19  ;;  %15 = sbr.rel (!%p13_p0) target bundleno = 4 (0x4), region = 114 }
 0x19b   :  { %1176 = vsyncpa [#allocation5], 1 }
 0x19c   :  { %1178 = vsyncpa [#allocation5 + $0x1], 1 }

// kernel: custom_cnn_pro_forward.20
= control target key start
LH: loop header
LB: loop body
LE: loop exit
PB: predicated region body
PF: predicated region fallthrough
CT: control target
= control target key end

     0   :  { %s597_s1 = inlined_call_operand.vmem [shape: bf16[128,128], index: 1, kind: input, shape index: {}]   ;;  %s598_s2 = inlined_call_operand.vmem [shape: f32[1,128], index: 2, kind: input, shape index: {}]   ;;  %s599_s0 = inlined_call_operand.vmem [shape: bf16[128,128], index: 0, kind: input, shape index: {}]   ;;  %s600_s3 = inlined_call_operand.vmem [shape: bf16[128,128], index: 3, kind: output, shape index: {}]  }
   0x1   :  { %v429_v0 = vld [vmem:[%s597_s1 + $0x38] sm:$0xff]  ;;  %v428_v1 = vld [vmem:[%s597_s1 + $0x30] sm:$0xff]  ;;  %v427_v2 = vld [vmem:[%s597_s1 + $0x28] sm:$0xff] }
   0x2   :  { %178 = vmatpush.bf16.msra.mxu0 %v429_v0  ;;  %477 = vmatpush.bf16.msra.mxu1 %v429_v0  ;;  %v426_v3 = vld [vmem:[%s597_s1 + $0x20] sm:$0xff]  ;;  %v425_v4 = vld [vmem:[%s597_s1 + $0x18] sm:$0xff]  ;;  %v424_v5 = vld [vmem:[%s597_s1 + $0x10] sm:$0xff] }
   0x3   :  { %478 = vmatpush.bf16.msra.mxu2 %v429_v0  ;;  %479 = vmatpush.bf16.msra.mxu3 %v429_v0  ;;  %v423_v6 = vld [vmem:[%s597_s1 + $0x8] sm:$0xff]  ;;  %v422_v7 = vld [vmem:[%s597_s1] sm:$0xff]  ;;  %v416_v9 = vld [vmem:[%s599_s0 + $0x10] sm:$0xff] }
   0x4   :  { %v414_v8 = vld [vmem:[%s599_s0] sm:$0xff]  ;;  %v420_v11 = vld [vmem:[%s599_s0 + $0x30] sm:$0xff]  ;;  %v415_v12 = vld [vmem:[%s599_s0 + $0x8] sm:$0xff] }
   0x5   :  { %v418_v10 = vld [vmem:[%s599_s0 + $0x20] sm:$0xff]  ;;  %v417_v13 = vld [vmem:[%s599_s0 + $0x18] sm:$0xff]  ;;  %v419_v14 = vld [vmem:[%s599_s0 + $0x28] sm:$0xff] }
   0x6   :  { %179 = vmatpush.bf16.msra.mxu0 %v428_v1  ;;  %480 = vmatpush.bf16.msra.mxu1 %v428_v1  ;;  %v421_v15 = vld [vmem:[%s599_s0 + $0x38] sm:$0xff]  ;;  %v501_v18 = vld [vmem:[%s598_s2] ss:$0 sm:$0xff] }
   0x7   :  { %481 = vmatpush.bf16.msra.mxu2 %v428_v1  ;;  %482 = vmatpush.bf16.msra.mxu3 %v428_v1 }
   0xa   :  { %180 = vmatpush.bf16.msra.mxu0 %v427_v2  ;;  %483 = vmatpush.bf16.msra.mxu1 %v427_v2 }
   0xb   :  { %484 = vmatpush.bf16.msra.mxu2 %v427_v2  ;;  %485 = vmatpush.bf16.msra.mxu3 %v427_v2 }
   0xe   :  { %181 = vmatpush.bf16.msra.mxu0 %v426_v3  ;;  %486 = vmatpush.bf16.msra.mxu1 %v426_v3 }
   0xf   :  { %487 = vmatpush.bf16.msra.mxu2 %v426_v3  ;;  %488 = vmatpush.bf16.msra.mxu3 %v426_v3 }
  0x12   :  { %182 = vmatpush.bf16.msra.mxu0 %v425_v4  ;;  %489 = vmatpush.bf16.msra.mxu1 %v425_v4 }
  0x13   :  { %490 = vmatpush.bf16.msra.mxu2 %v425_v4  ;;  %491 = vmatpush.bf16.msra.mxu3 %v425_v4 }
  0x16   :  { %183 = vmatpush.bf16.msra.mxu0 %v424_v5  ;;  %492 = vmatpush.bf16.msra.mxu1 %v424_v5 }
  0x17   :  { %493 = vmatpush.bf16.msra.mxu2 %v424_v5  ;;  %494 = vmatpush.bf16.msra.mxu3 %v424_v5 }
  0x1a   :  { %184 = vmatpush.bf16.msra.mxu0 %v423_v6  ;;  %495 = vmatpush.bf16.msra.mxu1 %v423_v6 }
  0x1b   :  { %496 = vmatpush.bf16.msra.mxu2 %v423_v6  ;;  %497 = vmatpush.bf16.msra.mxu3 %v423_v6 }
  0x1e   :  { %185 = vmatpush.bf16.msra.mxu0 %v422_v7  ;;  %498 = vmatpush.bf16.msra.mxu1 %v422_v7 }
  0x1f   :  { %499 = vmatpush.bf16.msra.mxu2 %v422_v7  ;;  %500 = vmatpush.bf16.msra.mxu3 %v422_v7 }
  0x21   :  { %186 = vmatmul.bf16.vlgmr.msra.gmra.mxu0 %v414_v8  ;;  %196 = vmatmul.bf16.vlgmr.msra.gmra.mxu1 %v416_v9 }
  0x22   :  { %206 = vmatmul.bf16.vlgmr.msra.gmra.mxu2 %v418_v10  ;;  %216 = vmatmul.bf16.vlgmr.msra.gmra.mxu3 %v420_v11 }
  0x31   :  { %191 = vmatmul.bf16.gmra.mxu0 %v415_v12  ;;  %201 = vmatmul.bf16.gmra.mxu1 %v417_v13 }
  0x32   :  { %211 = vmatmul.bf16.gmra.mxu2 %v419_v14  ;;  %221 = vmatmul.bf16.gmra.mxu3 %v421_v15 }
  0x9e   :  { %v187_v16 = vpop.f32.mrf.mxu0  ;;  %v197_v17 = vpop.f32.mrf.mxu1 }
  0x9f   :  { %v282_v19 = vadd.f32 %v501_v18, %v187_v16  ;;  %v286_v20 = vadd.f32 %v501_v18, %v197_v17 }
  0xa1   :  { %v298_v27 = vmax.f32 %v282_v19, 0.0  ;;  %v302_v28 = vmax.f32 %v286_v20, 0.0 }
  0xa5   :  { %v207_v21 = vpop.f32.mrf.mxu2  ;;  %v217_v22 = vpop.f32.mrf.mxu3 }
  0xa6   :  { %v189_v23 = vpop.f32.mrf.mxu0  ;;  %v199_v24 = vpop.f32.mrf.mxu1  ;;  %v290_v33 = vadd.f32 %v501_v18, %v207_v21  ;;  %v294_v34 = vadd.f32 %v501_v18, %v217_v22 }
  0xa7   :  { %v283_v25 = vadd.f32 %v501_v18, %v189_v23  ;;  %v287_v26 = vadd.f32 %v501_v18, %v199_v24 }
  0xa8   :  { %v306_v41 = vmax.f32 %v290_v33, 0.0  ;;  %v310_v42 = vmax.f32 %v294_v34, 0.0 }
  0xa9   :  { %v299_v29 = vmax.f32 %v283_v25, 0.0  ;;  %v303_v30 = vmax.f32 %v287_v26, 0.0 }
  0xab   :  { %v433_v31 = vpack.c.bf16 %v299_v29, %v298_v27  ;;  %v443_v32 = vpack.c.bf16 %v303_v30, %v302_v28 }
  0xad   :  { %434 = vst [vmem:[%s600_s3] sm:$0xff] %v433_v31   ;;  %v209_v35 = vpop.f32.mrf.mxu2  ;;  %v219_v36 = vpop.f32.mrf.mxu3 }
  0xae   :  { %471 = vst [vmem:[%s600_s3 + $0x10] sm:$0xff] %v443_v32   ;;  %v291_v37 = vadd.f32 %v501_v18, %v209_v35  ;;  %v295_v38 = vadd.f32 %v501_v18, %v219_v36  ;;  %v192_v39 = vpop.f32.mrf.mxu0  ;;  %v202_v40 = vpop.f32.mrf.mxu1 }
  0xaf   :  { %v284_v47 = vadd.f32 %v501_v18, %v192_v39  ;;  %v288_v48 = vadd.f32 %v501_v18, %v202_v40 }
  0xb0   :  { %v307_v43 = vmax.f32 %v291_v37, 0.0  ;;  %v311_v44 = vmax.f32 %v295_v38, 0.0 }
  0xb1   :  { %v300_v55 = vmax.f32 %v284_v47, 0.0  ;;  %v304_v56 = vmax.f32 %v288_v48, 0.0 }
  0xb2   :  { %v453_v45 = vpack.c.bf16 %v307_v43, %v306_v41  ;;  %v463_v46 = vpack.c.bf16 %v311_v44, %v310_v42 }
  0xb4   :  { %473 = vst [vmem:[%s600_s3 + $0x20] sm:$0xff] %v453_v45  }
  0xb5   :  { %475 = vst [vmem:[%s600_s3 + $0x30] sm:$0xff] %v463_v46   ;;  %v212_v49 = vpop.f32.mrf.mxu2  ;;  %v222_v50 = vpop.f32.mrf.mxu3 }
  0xb6   :  { %v194_v51 = vpop.f32.mrf.mxu0  ;;  %v204_v52 = vpop.f32.mrf.mxu1  ;;  %v292_v61 = vadd.f32 %v501_v18, %v212_v49  ;;  %v296_v62 = vadd.f32 %v501_v18, %v222_v50 }
  0xb7   :  { %v285_v53 = vadd.f32 %v501_v18, %v194_v51  ;;  %v289_v54 = vadd.f32 %v501_v18, %v204_v52 }
  0xb8   :  { %v308_v3 = vmax.f32 %v292_v61, 0.0  ;;  %v312_v4 = vmax.f32 %v296_v62, 0.0 }
  0xb9   :  { %v301_v57 = vmax.f32 %v285_v53, 0.0  ;;  %v305_v58 = vmax.f32 %v289_v54, 0.0 }
  0xbb   :  { %v438_v59 = vpack.c.bf16 %v301_v57, %v300_v55  ;;  %v448_v60 = vpack.c.bf16 %v305_v58, %v304_v56 }
  0xbd   :  { %470 = vst [vmem:[%s600_s3 + $0x8] sm:$0xff] %v438_v59   ;;  %v214_v63 = vpop.f32.mrf.mxu2  ;;  %v224_v0 = vpop.f32.mrf.mxu3 }
  0xbe   :  { %472 = vst [vmem:[%s600_s3 + $0x18] sm:$0xff] %v448_v60   ;;  %v293_v1 = vadd.f32 %v501_v18, %v214_v63  ;;  %v297_v2 = vadd.f32 %v501_v18, %v224_v0 }
  0xc0   :  { %v309_v5 = vmax.f32 %v293_v1, 0.0  ;;  %v313_v6 = vmax.f32 %v297_v2, 0.0 }
  0xc2   :  { %v458_v7 = vpack.c.bf16 %v309_v5, %v308_v3  ;;  %v468_v8 = vpack.c.bf16 %v313_v6, %v312_v4 }
  0xc4   :  { %474 = vst [vmem:[%s600_s3 + $0x28] sm:$0xff] %v458_v7  }
  0xc5   :  { %476 = vst [vmem:[%s600_s3 + $0x38] sm:$0xff] %v468_v8  }

// kernel: custom_cnn_pro_forward.19
= control target key start
LH: loop header
LB: loop body
LE: loop exit
PB: predicated region body
PF: predicated region fallthrough
CT: control target
= control target key end

     0   :  { %s1734_s12 = smov 0   ;;  %s1736_s13 = smov 0   ;;  %s1996_s0 = inlined_call_operand.vmem [shape: bf16[128,2048], index: 0, kind: input, shape index: {}]   ;;  %s1997_s1 = inlined_call_operand.vmem [shape: bf16[2048,128], index: 1, kind: input, shape index: {}]   ;;  %s1998_s2 = inlined_call_operand.vmem [shape: f32[1,128], index: 2, kind: input, shape index: {}]   ;;  %s1999_s3 = inlined_call_operand.vmem [shape: bf16[128,128], index: 3, kind: output, shape index: {}]  }
   0x1   :  { %s1738_s14 = smov 0   ;;  %s1740_s15 = smov 0  }
   0x2   :  { %s1742_s16 = smov 0  }
   0x3 LB: > { %s25_s17 = sadd.s32 1, %s1707_s15  ;;  %p48_p1 = scmp.ne.s32.totalorder %s1699_s13, %s1695_s12  ;;  %s1711_s16 = sphi %s1742_s16, %s13_s16   ;;  %s1707_s15 = sphi %s1740_s15, %s2003_s15   ;;  %s1703_s14 = sphi %s1738_s14, %s2002_s14   ;;  %s1699_s13 = sphi %s1736_s13, %s2001_s13   ;;  %s1695_s12 = sphi %s1734_s12, %s2000_s12  }
   0x4   : > { %p26_p0 = scmp.ge.s32.totalorder %s25_s17, 4  ;;  %p49_p2 = scmp.eq.s32.totalorder %s1711_s16, 0 }
   0x5   : > { %s41_s19 = sadd.s32 1, %s1699_s13  ;;  %p1249_p5 = scmp.ge.s32.totalorder %s1711_s16, 4 }
   0x6   : > { %s2005_s17 = smov (%p26_p0, %s25_s17), 0  ;;  %p50_p3 = por %p49_p2, %p48_p1 }
   0x7   : > { %s37_s18 = ssub.s32 %s1707_s15, %s2005_s17  ;;  %162 = sbr.rel (%p1249_p5) target bundleno = 48 (0x30), region = 20 }
   0x8   : > { %p39_p4 = scmp.eq.s32.totalorder %s37_s18, 0 }
   0xa   : > { %s1769_s20 = scalar_select %p39_p4, %s1699_s13, %s41_s19  }
   0xc   : > { %165 = sbr.rel (!%p50_p3) target bundleno = 48 (0x30), region = 24  ;;  %s167_s21 = sand.u32 (%p50_p3), 1, %s1699_s13  }
   0xd   : > { %s1519_s22 = sshll.u32 (%p50_p3), %s1707_s15, 4  ;;  %s1250_s23 = sshll.u32 (%p50_p3), %s167_s21, 8 }
   0xe   : > { %s1777_s26 = scalar_lea.vmem (%p50_p3), %s1996_s0, %s1519_s22  ;;  %s1782_s27 = scalar_lea.vmem (%p50_p3), [#allocation3], %s1250_s23 }
   0xf   : > { %v188_v0 = vld [vmem:[%s1777_s26] sm:$0xff] (%p50_p3)  ;;  %v190_v1 = vld [vmem:[%s1777_s26 + $0x8] sm:$0xff] (%p50_p3) }
  0x10   : > { %v192_v2 = vld [vmem:[%s1777_s26 + $0x40] sm:$0xff] (%p50_p3)  ;;  %189 = vst [vmem:[%s1782_s27] sm:$0xff] (%p50_p3), %v188_v0  ;;  %v194_v3 = vld [vmem:[%s1777_s26 + $0x48] sm:$0xff] (%p50_p3) }
  0x11   : > { %191 = vst [vmem:[%s1782_s27 + $0x8] sm:$0xff] %v190_v1  ;;  %v196_v4 = vld [vmem:[%s1777_s26 + $0x80] sm:$0xff]  ;;  %v198_v5 = vld [vmem:[%s1777_s26 + $0x88] sm:$0xff] }
  0x12   : > { %193 = vst [vmem:[%s1782_s27 + $0x10] sm:$0xff] %v192_v2  ;;  %v200_v6 = vld [vmem:[%s1777_s26 + $0xc0] sm:$0xff]  ;;  %v202_v7 = vld [vmem:[%s1777_s26 + $0xc8] sm:$0xff] }
  0x13   : > { %195 = vst [vmem:[%s1782_s27 + $0x18] sm:$0xff] %v194_v3  ;;  %v204_v8 = vld [vmem:[%s1777_s26 + $0x100] sm:$0xff]  ;;  %v206_v9 = vld [vmem:[%s1777_s26 + $0x108] sm:$0xff] }
  0x14   : > { %197 = vst [vmem:[%s1782_s27 + $0x20] sm:$0xff] %v196_v4  ;;  %v208_v10 = vld [vmem:[%s1777_s26 + $0x140] sm:$0xff]  ;;  %v210_v11 = vld [vmem:[%s1777_s26 + $0x148] sm:$0xff] }
  0x15   : > { %199 = vst [vmem:[%s1782_s27 + $0x28] sm:$0xff] %v198_v5  ;;  %v212_v12 = vld [vmem:[%s1777_s26 + $0x180] sm:$0xff]  ;;  %v214_v13 = vld [vmem:[%s1777_s26 + $0x188] sm:$0xff] }
  0x16   : > { %201 = vst [vmem:[%s1782_s27 + $0x30] sm:$0xff] %v200_v6  ;;  %v216_v14 = vld [vmem:[%s1777_s26 + $0x1c0] sm:$0xff]  ;;  %v218_v15 = vld [vmem:[%s1777_s26 + $0x1c8] sm:$0xff] }
  0x17   : > { %203 = vst [vmem:[%s1782_s27 + $0x38] sm:$0xff] %v202_v7  ;;  %v220_v16 = vld [vmem:[%s1777_s26 + $0x200] sm:$0xff]  ;;  %v222_v17 = vld [vmem:[%s1777_s26 + $0x208] sm:$0xff] }
  0x18   : > { %205 = vst [vmem:[%s1782_s27 + $0x40] sm:$0xff] %v204_v8  ;;  %v224_v18 = vld [vmem:[%s1777_s26 + $0x240] sm:$0xff]  ;;  %v226_v19 = vld [vmem:[%s1777_s26 + $0x248] sm:$0xff] }
  0x19   : > { %207 = vst [vmem:[%s1782_s27 + $0x48] sm:$0xff] %v206_v9  ;;  %v228_v20 = vld [vmem:[%s1777_s26 + $0x280] sm:$0xff]  ;;  %v230_v21 = vld [vmem:[%s1777_s26 + $0x288] sm:$0xff] }
  0x1a   : > { %209 = vst [vmem:[%s1782_s27 + $0x50] sm:$0xff] %v208_v10  ;;  %v232_v22 = vld [vmem:[%s1777_s26 + $0x2c0] sm:$0xff]  ;;  %v234_v23 = vld [vmem:[%s1777_s26 + $0x2c8] sm:$0xff] }
  0x1b   : > { %211 = vst [vmem:[%s1782_s27 + $0x58] sm:$0xff] %v210_v11  ;;  %v236_v24 = vld [vmem:[%s1777_s26 + $0x300] sm:$0xff]  ;;  %v238_v25 = vld [vmem:[%s1777_s26 + $0x308] sm:$0xff] }
  0x1c   : > { %213 = vst [vmem:[%s1782_s27 + $0x60] sm:$0xff] %v212_v12  ;;  %v240_v26 = vld [vmem:[%s1777_s26 + $0x340] sm:$0xff]  ;;  %v242_v27 = vld [vmem:[%s1777_s26 + $0x348] sm:$0xff] }
  0x1d   : > { %215 = vst [vmem:[%s1782_s27 + $0x68] sm:$0xff] %v214_v13  ;;  %v244_v28 = vld [vmem:[%s1777_s26 + $0x380] sm:$0xff]  ;;  %v246_v29 = vld [vmem:[%s1777_s26 + $0x388] sm:$0xff] }
  0x1e   : > { %217 = vst [vmem:[%s1782_s27 + $0x70] sm:$0xff] %v216_v14  ;;  %v248_v30 = vld [vmem:[%s1777_s26 + $0x3c0] sm:$0xff]  ;;  %v250_v31 = vld [vmem:[%s1777_s26 + $0x3c8] sm:$0xff] }
  0x1f   : > { %219 = vst [vmem:[%s1782_s27 + $0x78] sm:$0xff] %v218_v15 }
  0x20   : > { %221 = vst [vmem:[%s1782_s27 + $0x80] sm:$0xff] %v220_v16 }
  0x21   : > { %223 = vst [vmem:[%s1782_s27 + $0x88] sm:$0xff] %v222_v17 }
  0x22   : > { %225 = vst [vmem:[%s1782_s27 + $0x90] sm:$0xff] %v224_v18 }
  0x23   : > { %227 = vst [vmem:[%s1782_s27 + $0x98] sm:$0xff] %v226_v19 }
  0x24   : > { %229 = vst [vmem:[%s1782_s27 + $0xa0] sm:$0xff] %v228_v20 }
  0x25   : > { %231 = vst [vmem:[%s1782_s27 + $0xa8] sm:$0xff] %v230_v21 }
  0x26   : > { %233 = vst [vmem:[%s1782_s27 + $0xb0] sm:$0xff] %v232_v22 }
  0x27   : > { %235 = vst [vmem:[%s1782_s27 + $0xb8] sm:$0xff] %v234_v23 }
  0x28   : > { %237 = vst [vmem:[%s1782_s27 + $0xc0] sm:$0xff] %v236_v24 }
  0x29   : > { %239 = vst [vmem:[%s1782_s27 + $0xc8] sm:$0xff] %v238_v25 }
  0x2a   : > { %241 = vst [vmem:[%s1782_s27 + $0xd0] sm:$0xff] %v240_v26 }
  0x2b   : > { %243 = vst [vmem:[%s1782_s27 + $0xd8] sm:$0xff] %v242_v27 }
  0x2c   : > { %245 = vst [vmem:[%s1782_s27 + $0xe0] sm:$0xff] %v244_v28 }
  0x2d   : > { %247 = vst [vmem:[%s1782_s27 + $0xe8] sm:$0xff] %v246_v29 }
  0x2e   : > { %249 = vst [vmem:[%s1782_s27 + $0xf0] sm:$0xff] %v248_v30 }
  0x2f   : > { %251 = vst [vmem:[%s1782_s27 + $0xf8] sm:$0xff] %v250_v31 }
  0x30 PF: > { %p1253_p6 = scmp.ge.s32.totalorder %s1711_s16, 1  ;;  %p268_p7 = scmp.lt.s32.totalorder %s1711_s16, 5 }
  0x32   : > { %p269_p8 = pnand %p1253_p6, %p268_p7 }
  0x33   : > { %s275_s28 = sand.u32 (!%p269_p8), 1, %s1695_s12   ;;  %s1255_s29 = sshll.u32 (!%p269_p8), %s1703_s14, 6 }
  0x34   : > { %272 = sbr.rel (%p269_p8) target bundleno = 388 (0x184), region = 51  ;;  %s1254_s30 = sshll.u32 (!%p269_p8), %s275_s28, 8 }
  0x35   : > { %p315_p9 = scmp.lt.s32.totalorder (!%p269_p8), %s1255_s29, 255  ;;  %s1854_s8 = scalar_lea.vmem (!%p269_p8), [#allocation3], %s1254_s30 }
  0x36   : > { %p1257_p10 = scmp.ne.s32.totalorder (!%p269_p8), %s1703_s14, 0 }
  0x39   : > { %s2007_s29 = smov (!%p315_p9, %s1255_s29), 255  ;;  %338 = sbr.rel (%p1257_p10) target bundleno = 79 (0x4f), region = 59 }
  0x3a   : > { %s1256_s4 = sshll.u32 %s2007_s29, 2 }
  0x3b   : > { %s1852_s7 = scalar_lea.vmem %s1997_s1, %s1256_s4 }
  0x3e   : > { %v1713_v32 = vmov 0.0  }
  0x3f   : > { %339 = vst [vmem:[#allocation2 + $0x30] sm:$0xff] %v1713_v32 }
  0x40   : > { %340 = vst [vmem:[#allocation2] sm:$0xff] %v1713_v32 }
  0x41   : > { %341 = vst [vmem:[#allocation2 + $0x58] sm:$0xff] %v1713_v32 }
  0x42   : > { %342 = vst [vmem:[#allocation2 + $0x18] sm:$0xff] %v1713_v32 }
  0x43   : > { %343 = vst [vmem:[#allocation2 + $0x50] sm:$0xff] %v1713_v32 }
  0x44   : > { %344 = vst [vmem:[#allocation2 + $0x68] sm:$0xff] %v1713_v32 }
  0x45   : > { %345 = vst [vmem:[#allocation2 + $0x8] sm:$0xff] %v1713_v32 }
  0x46   : > { %346 = vst [vmem:[#allocation2 + $0x48] sm:$0xff] %v1713_v32 }
  0x47   : > { %347 = vst [vmem:[#allocation2 + $0x40] sm:$0xff] %v1713_v32 }
  0x48   : > { %348 = vst [vmem:[#allocation2 + $0x20] sm:$0xff] %v1713_v32 }
  0x49   : > { %349 = vst [vmem:[#allocation2 + $0x10] sm:$0xff] %v1713_v32 }
  0x4a   : > { %350 = vst [vmem:[#allocation2 + $0x38] sm:$0xff] %v1713_v32 }
  0x4b   : > { %351 = vst [vmem:[#allocation2 + $0x60] sm:$0xff] %v1713_v32 }
  0x4c   : > { %352 = vst [vmem:[#allocation2 + $0x70] sm:$0xff] %v1713_v32 }
  0x4d   : > { %353 = vst [vmem:[#allocation2 + $0x78] sm:$0xff] %v1713_v32 }
  0x4e   : > { %354 = vst [vmem:[#allocation2 + $0x28] sm:$0xff] %v1713_v32 }
  0x4f PF: > { %v1559_v33 = vld [vmem:[%s1852_s7 + $0x38] sm:$0xff]  ;;  %v1558_v37 = vld [vmem:[%s1852_s7 + $0x30] sm:$0xff]  ;;  %v1557_v41 = vld [vmem:[%s1852_s7 + $0x28] sm:$0xff]  ;;  %p1514_p11 = scmp.ne.s32.totalorder %s1703_s14, 3 }
  0x50   : > { %v1567_v34 = vld [vmem:[%s1852_s7 + $0x78] sm:$0xff]  ;;  %819 = vmatpush.bf16.msra.mxu0 %v1559_v33  ;;  %v1566_v38 = vld [vmem:[%s1852_s7 + $0x70] sm:$0xff]  ;;  %v1565_v42 = vld [vmem:[%s1852_s7 + $0x68] sm:$0xff] }
  0x51   : > { %v1575_v35 = vld [vmem:[%s1852_s7 + $0xb8] sm:$0xff]  ;;  %868 = vmatpush.bf16.msra.mxu1 %v1567_v34  ;;  %v1574_v39 = vld [vmem:[%s1852_s7 + $0xb0] sm:$0xff]  ;;  %v1573_v43 = vld [vmem:[%s1852_s7 + $0xa8] sm:$0xff] }
  0x52   : > { %v1583_v36 = vld [vmem:[%s1852_s7 + $0xf8] sm:$0xff]  ;;  %917 = vmatpush.bf16.msra.mxu2 %v1575_v35  ;;  %v1582_v40 = vld [vmem:[%s1852_s7 + $0xf0] sm:$0xff]  ;;  %v1581_v44 = vld [vmem:[%s1852_s7 + $0xe8] sm:$0xff] }
  0x53   : > { %966 = vmatpush.bf16.msra.mxu3 %v1583_v36  ;;  %v1556_v45 = vld [vmem:[%s1852_s7 + $0x20] sm:$0xff]  ;;  %v1555_v49 = vld [vmem:[%s1852_s7 + $0x18] sm:$0xff]  ;;  %v1554_v53 = vld [vmem:[%s1852_s7 + $0x10] sm:$0xff] }
  0x54   : > { %820 = vmatpush.bf16.msra.mxu0 %v1558_v37  ;;  %v1564_v46 = vld [vmem:[%s1852_s7 + $0x60] sm:$0xff]  ;;  %v1563_v50 = vld [vmem:[%s1852_s7 + $0x58] sm:$0xff]  ;;  %v1562_v54 = vld [vmem:[%s1852_s7 + $0x50] sm:$0xff] }
  0x55   : > { %869 = vmatpush.bf16.msra.mxu1 %v1566_v38  ;;  %v1572_v47 = vld [vmem:[%s1852_s7 + $0xa0] sm:$0xff]  ;;  %v1571_v51 = vld [vmem:[%s1852_s7 + $0x98] sm:$0xff]  ;;  %v1570_v55 = vld [vmem:[%s1852_s7 + $0x90] sm:$0xff] }
  0x56   : > { %918 = vmatpush.bf16.msra.mxu2 %v1574_v39  ;;  %v1580_v48 = vld [vmem:[%s1852_s7 + $0xe0] sm:$0xff]  ;;  %v1579_v52 = vld [vmem:[%s1852_s7 + $0xd8] sm:$0xff]  ;;  %v1578_v56 = vld [vmem:[%s1852_s7 + $0xd0] sm:$0xff] }
  0x57   : > { %967 = vmatpush.bf16.msra.mxu3 %v1582_v40  ;;  %v1553_v57 = vld [vmem:[%s1852_s7 + $0x8] sm:$0xff]  ;;  %v1552_v61 = vld [vmem:[%s1852_s7] sm:$0xff]  ;;  %v1522_v2 = vld [vmem:[%s1854_s8 + $0xc] sm:$0xf0] }
  0x58   : > { %821 = vmatpush.bf16.msra.mxu0 %v1557_v41  ;;  %v1561_v58 = vld [vmem:[%s1852_s7 + $0x48] sm:$0xff]  ;;  %v1560_v62 = vld [vmem:[%s1852_s7 + $0x40] sm:$0xff]  ;;  %v1262_v4 = vld [vmem:[%s1854_s8 + $0x10] sm:$0xf0] }
  0x59   : > { %870 = vmatpush.bf16.msra.mxu1 %v1565_v42  ;;  %v1569_v59 = vld [vmem:[%s1852_s7 + $0x88] sm:$0xff]  ;;  %v1568_v63 = vld [vmem:[%s1852_s7 + $0x80] sm:$0xff]  ;;  %v1523_v6 = vld [vmem:[%s1854_s8 + $0x14] sm:$0xf0] }
  0x5a   : > { %919 = vmatpush.bf16.msra.mxu2 %v1573_v43  ;;  %v1577_v60 = vld [vmem:[%s1852_s7 + $0xc8] sm:$0xff]  ;;  %v1576_v0 = vld [vmem:[%s1852_s7 + $0xc0] sm:$0xff]  ;;  %v1270_v8 = vld [vmem:[%s1854_s8 + $0x18] sm:$0xf0] }
  0x5b   : > { %968 = vmatpush.bf16.msra.mxu3 %v1581_v44  ;;  %v1260_v1 = vld [vmem:[%s1854_s8] sm:$0xf]  ;;  %v1520_v3 = vld [vmem:[%s1854_s8 + $0x4] sm:$0xf]  ;;  %v1268_v5 = vld [vmem:[%s1854_s8 + $0x8] sm:$0xf] }
  0x5c   : > { %822 = vmatpush.bf16.msra.mxu0 %v1556_v45  ;;  %v1521_v7 = vld [vmem:[%s1854_s8 + $0xc] sm:$0xf]  ;;  %v1261_v9 = vor.u32 %v1522_v2, %v1260_v1  ;;  %v1265_v10 = vor.u32 %v1520_v3, %v1262_v4  ;;  %v1269_v11 = vor.u32 %v1523_v6, %v1268_v5  ;;  %v1276_v13 = vld [vmem:[%s1854_s8 + $0x20] sm:$0xf]  ;;  %v1526_v14 = vld [vmem:[%s1854_s8 + $0x2c] sm:$0xf0] }
  0x5d   : > { %871 = vmatpush.bf16.msra.mxu1 %v1564_v46  ;;  %v1273_v12 = vor.u32 %v1521_v7, %v1270_v8  ;;  %v1524_v15 = vld [vmem:[%s1854_s8 + $0x24] sm:$0xf]  ;;  %v1278_v16 = vld [vmem:[%s1854_s8 + $0x30] sm:$0xf0]  ;;  %v1284_v17 = vld [vmem:[%s1854_s8 + $0x28] sm:$0xf]  ;;  %v1277_v21 = vor.u32 %v1526_v14, %v1276_v13 }
  0x5e   : > { %920 = vmatpush.bf16.msra.mxu2 %v1572_v47  ;;  %v1527_v18 = vld [vmem:[%s1854_s8 + $0x34] sm:$0xf0]  ;;  %v1525_v19 = vld [vmem:[%s1854_s8 + $0x2c] sm:$0xf]  ;;  %v1286_v20 = vld [vmem:[%s1854_s8 + $0x38] sm:$0xf0]  ;;  %v1281_v22 = vor.u32 %v1524_v15, %v1278_v16 }
  0x5f   : > { %969 = vmatpush.bf16.msra.mxu3 %v1580_v48  ;;  %v1285_v23 = vor.u32 %v1527_v18, %v1284_v17  ;;  %v1289_v24 = vor.u32 %v1525_v19, %v1286_v20  ;;  %v1292_v25 = vld [vmem:[%s1854_s8 + $0x40] sm:$0xf]  ;;  %v1530_v26 = vld [vmem:[%s1854_s8 + $0x4c] sm:$0xf0]  ;;  %v1528_v27 = vld [vmem:[%s1854_s8 + $0x44] sm:$0xf] }
  0x60   : > { %823 = vmatpush.bf16.msra.mxu0 %v1555_v49  ;;  %v1294_v28 = vld [vmem:[%s1854_s8 + $0x50] sm:$0xf0]  ;;  %v1300_v29 = vld [vmem:[%s1854_s8 + $0x48] sm:$0xf]  ;;  %v1531_v30 = vld [vmem:[%s1854_s8 + $0x54] sm:$0xf0]  ;;  %v1293_v33 = vor.u32 %v1530_v26, %v1292_v25 }
  0x61   : > { %872 = vmatpush.bf16.msra.mxu1 %v1563_v50  ;;  %v1529_v31 = vld [vmem:[%s1854_s8 + $0x4c] sm:$0xf]  ;;  %v1302_v32 = vld [vmem:[%s1854_s8 + $0x58] sm:$0xf0]  ;;  %v1297_v34 = vor.u32 %v1528_v27, %v1294_v28  ;;  %v1301_v35 = vor.u32 %v1531_v30, %v1300_v29  ;;  %v1308_v37 = vld [vmem:[%s1854_s8 + $0x60] sm:$0xf] }
  0x62   : > { %921 = vmatpush.bf16.msra.mxu2 %v1571_v51  ;;  %v1305_v36 = vor.u32 %v1529_v31, %v1302_v32  ;;  %v1534_v38 = vld [vmem:[%s1854_s8 + $0x6c] sm:$0xf0]  ;;  %v1532_v39 = vld [vmem:[%s1854_s8 + $0x64] sm:$0xf]  ;;  %v1310_v40 = vld [vmem:[%s1854_s8 + $0x70] sm:$0xf0] }
  0x63   : > { %970 = vmatpush.bf16.msra.mxu3 %v1579_v52  ;;  %v1316_v41 = vld [vmem:[%s1854_s8 + $0x68] sm:$0xf]  ;;  %v1535_v42 = vld [vmem:[%s1854_s8 + $0x74] sm:$0xf0]  ;;  %v1533_v43 = vld [vmem:[%s1854_s8 + $0x6c] sm:$0xf]  ;;  %v1309_v45 = vor.u32 %v1534_v38, %v1308_v37  ;;  %v1313_v46 = vor.u32 %v1532_v39, %v1310_v40 }
  0x64   : > { %824 = vmatpush.bf16.msra.mxu0 %v1554_v53  ;;  %v1318_v44 = vld [vmem:[%s1854_s8 + $0x78] sm:$0xf0]  ;;  %v1317_v47 = vor.u32 %v1535_v42, %v1316_v41  ;;  %v1324_v49 = vld [vmem:[%s1854_s8 + $0x80] sm:$0xf]  ;;  %v1538_v50 = vld [vmem:[%s1854_s8 + $0x8c] sm:$0xf0] }
  0x65   : > { %873 = vmatpush.bf16.msra.mxu1 %v1562_v54  ;;  %v1321_v48 = vor.u32 %v1533_v43, %v1318_v44  ;;  %v1536_v51 = vld [vmem:[%s1854_s8 + $0x84] sm:$0xf]  ;;  %v1326_v52 = vld [vmem:[%s1854_s8 + $0x90] sm:$0xf0]  ;;  %v1332_v53 = vld [vmem:[%s1854_s8 + $0x88] sm:$0xf] }
  0x66   : > { %922 = vmatpush.bf16.msra.mxu2 %v1570_v55  ;;  %v1539_v54 = vld [vmem:[%s1854_s8 + $0x94] sm:$0xf0]  ;;  %v1537_v55 = vld [vmem:[%s1854_s8 + $0x8c] sm:$0xf]  ;;  %v1348_v1 = vld [vmem:[%s1854_s8 + $0xa8] sm:$0xf] }
  0x67   : > { %971 = vmatpush.bf16.msra.mxu3 %v1578_v56  ;;  %v1334_v56 = vld [vmem:[%s1854_s8 + $0x98] sm:$0xf0]  ;;  %v1543_v2 = vld [vmem:[%s1854_s8 + $0xb4] sm:$0xf0]  ;;  %v1541_v3 = vld [vmem:[%s1854_s8 + $0xac] sm:$0xf] }
  0x68   : > { %825 = vmatpush.bf16.msra.mxu0 %v1553_v57  ;;  %v1325_v57 = vor.u32 %v1538_v50, %v1324_v49  ;;  %v1350_v4 = vld [vmem:[%s1854_s8 + $0xb8] sm:$0xf0]  ;;  %v1349_v7 = vor.u32 %v1543_v2, %v1348_v1  ;;  %v1364_v13 = vld [vmem:[%s1854_s8 + $0xc8] sm:$0xf]  ;;  %v1547_v14 = vld [vmem:[%s1854_s8 + $0xd4] sm:$0xf0] }
  0x69   : > { %874 = vmatpush.bf16.msra.mxu1 %v1561_v58  ;;  %v1329_v58 = vor.u32 %v1536_v51, %v1326_v52  ;;  %v1353_v8 = vor.u32 %v1541_v3, %v1350_v4  ;;  %v1545_v15 = vld [vmem:[%s1854_s8 + $0xcc] sm:$0xf]  ;;  %v1366_v16 = vld [vmem:[%s1854_s8 + $0xd8] sm:$0xf0]  ;;  %v1365_v19 = vor.u32 %v1547_v14, %v1364_v13  ;;  %v1380_v25 = vld [vmem:[%s1854_s8 + $0xe8] sm:$0xf] }
  0x6a   : > { %923 = vmatpush.bf16.msra.mxu2 %v1569_v59  ;;  %v1333_v59 = vor.u32 %v1539_v54, %v1332_v53  ;;  %v1369_v20 = vor.u32 %v1545_v15, %v1366_v16  ;;  %v1551_v26 = vld [vmem:[%s1854_s8 + $0xf4] sm:$0xf0]  ;;  %v1549_v27 = vld [vmem:[%s1854_s8 + $0xec] sm:$0xf]  ;;  %v1382_v28 = vld [vmem:[%s1854_s8 + $0xf8] sm:$0xf0] }
  0x6b   : > { %972 = vmatpush.bf16.msra.mxu3 %v1577_v60  ;;  %v1337_v60 = vor.u32 %v1537_v55, %v1334_v56  ;;  %v1381_v31 = vor.u32 %v1551_v26, %v1380_v25  ;;  %v1385_v32 = vor.u32 %v1549_v27, %v1382_v28  ;;  %v355_v41 = vld [vmem:[#allocation2 + $0x30] sm:$0xff]  ;;  %v356_v50 = vld [vmem:[#allocation2] sm:$0xff]  ;;  %v358_v4 = vld [vmem:[#allocation2 + $0x18] sm:$0xff] }
  0x6c   : > { %826 = vmatpush.bf16.msra.mxu0 %v1552_v61  ;;  %v1340_v61 = vld [vmem:[%s1854_s8 + $0xa0] sm:$0xf]  ;;  %v359_v13 = vld [vmem:[#allocation2 + $0x50] sm:$0xff] }
  0x6d   : > { %875 = vmatpush.bf16.msra.mxu1 %v1560_v62  ;;  %v1542_v62 = vld [vmem:[%s1854_s8 + $0xac] sm:$0xf0] }
  0x6e   : > { %924 = vmatpush.bf16.msra.mxu2 %v1568_v63  ;;  %v1540_v63 = vld [vmem:[%s1854_s8 + $0xa4] sm:$0xf]  ;;  %v1341_v5 = vor.u32 %v1542_v62, %v1340_v61 }
  0x6f   : > { %973 = vmatpush.bf16.msra.mxu3 %v1576_v0  ;;  %827 = vmatmul.bf16.vlgmr.msra.gmra.mxu0 %v1261_v9  ;;  %v1342_v0 = vld [vmem:[%s1854_s8 + $0xb0] sm:$0xf0]  ;;  %v1356_v9 = vld [vmem:[%s1854_s8 + $0xc0] sm:$0xf] }
  0x70   : > { %876 = vmatmul.bf16.vlgmr.msra.gmra.mxu1 %v1265_v10  ;;  %v1345_v6 = vor.u32 %v1540_v63, %v1342_v0  ;;  %v1546_v10 = vld [vmem:[%s1854_s8 + $0xcc] sm:$0xf0] }
  0x71   : > { %925 = vmatmul.bf16.vlgmr.msra.gmra.mxu2 %v1269_v11  ;;  %v1544_v11 = vld [vmem:[%s1854_s8 + $0xc4] sm:$0xf]  ;;  %v1357_v17 = vor.u32 %v1546_v10, %v1356_v9 }
  0x72   : > { %974 = vmatmul.bf16.vlgmr.msra.gmra.mxu3 %v1273_v12  ;;  %v1358_v12 = vld [vmem:[%s1854_s8 + $0xd0] sm:$0xf0] }
  0x73   : > { %v1361_v18 = vor.u32 %v1544_v11, %v1358_v12 }
  0x7f   : > { %832 = vmatmul.bf16.gmra.mxu0 %v1277_v21  ;;  %v1372_v21 = vld [vmem:[%s1854_s8 + $0xe0] sm:$0xf] }
  0x80   : > { %881 = vmatmul.bf16.gmra.mxu1 %v1281_v22  ;;  %v1550_v22 = vld [vmem:[%s1854_s8 + $0xec] sm:$0xf0] }
  0x81   : > { %930 = vmatmul.bf16.gmra.mxu2 %v1285_v23  ;;  %v1548_v23 = vld [vmem:[%s1854_s8 + $0xe4] sm:$0xf]  ;;  %v1373_v29 = vor.u32 %v1550_v22, %v1372_v21  ;;  %v360_v22 = vld [vmem:[#allocation2 + $0x68] sm:$0xff] }
  0x82   : > { %979 = vmatmul.bf16.gmra.mxu3 %v1289_v24  ;;  %v1374_v24 = vld [vmem:[%s1854_s8 + $0xf0] sm:$0xf0] }
  0x83   : > { %v1377_v30 = vor.u32 %v1548_v23, %v1374_v24 }
  0x8f   : > { %837 = vmatmul.bf16.gmra.mxu0 %v1293_v33 }
  0x90   : > { %886 = vmatmul.bf16.gmra.mxu1 %v1297_v34 }
  0x91   : > { %935 = vmatmul.bf16.gmra.mxu2 %v1301_v35 }
  0x92   : > { %984 = vmatmul.bf16.gmra.mxu3 %v1305_v36 }
  0x9f   : > { %842 = vmatmul.bf16.gmra.mxu0 %v1309_v45 }
  0xa0   : > { %891 = vmatmul.bf16.gmra.mxu1 %v1313_v46 }
  0xa1   : > { %940 = vmatmul.bf16.gmra.mxu2 %v1317_v47 }
  0xa2   : > { %989 = vmatmul.bf16.gmra.mxu3 %v1321_v48 }
  0xaf   : > { %847 = vmatmul.bf16.gmra.mxu0 %v1325_v57 }
  0xb0   : > { %896 = vmatmul.bf16.gmra.mxu1 %v1329_v58 }
  0xb1   : > { %945 = vmatmul.bf16.gmra.mxu2 %v1333_v59  ;;  %v357_v59 = vld [vmem:[#allocation2 + $0x58] sm:$0xff] }
  0xb2   : > { %994 = vmatmul.bf16.gmra.mxu3 %v1337_v60 }
  0xbf   : > { %852 = vmatmul.bf16.gmra.mxu0 %v1341_v5 }
  0xc0   : > { %901 = vmatmul.bf16.gmra.mxu1 %v1345_v6 }
  0xc1   : > { %950 = vmatmul.bf16.gmra.mxu2 %v1349_v7 }
  0xc2   : > { %999 = vmatmul.bf16.gmra.mxu3 %v1353_v8 }
  0xcf   : > { %857 = vmatmul.bf16.gmra.mxu0 %v1357_v17 }
  0xd0   : > { %906 = vmatmul.bf16.gmra.mxu1 %v1361_v18 }
  0xd1   : > { %955 = vmatmul.bf16.gmra.mxu2 %v1365_v19 }
  0xd2   : > { %1004 = vmatmul.bf16.gmra.mxu3 %v1369_v20 }
  0xdf   : > { %862 = vmatmul.bf16.gmra.mxu0 %v1373_v29 }
  0xe0   : > { %911 = vmatmul.bf16.gmra.mxu1 %v1377_v30 }
  0xe1   : > { %960 = vmatmul.bf16.gmra.mxu2 %v1381_v31  ;;  %v361_v31 = vld [vmem:[#allocation2 + $0x8] sm:$0xff] }
  0xe2   : > { %1009 = vmatmul.bf16.gmra.mxu3 %v1385_v32 }
  0xec   : > { %v828_v33 = vpop.f32.mrf.mxu0 }
  0xed   : > { %v877_v34 = vpop.f32.mrf.mxu1 }
  0xee   : > { %v878_v35 = vadd.f32 %v877_v34, %v828_v33 }
  0xf4   : > { %v926_v36 = vpop.f32.mrf.mxu2  ;;  %v830_v39 = vpop.f32.mrf.mxu0 }
  0xf5   : > { %v975_v37 = vpop.f32.mrf.mxu3  ;;  %v927_v38 = vadd.f32 %v926_v36, %v878_v35  ;;  %v879_v40 = vpop.f32.mrf.mxu1 }
  0xf6   : > { %v880_v44 = vadd.f32 %v879_v40, %v830_v39  ;;  %v362_v40 = vld [vmem:[#allocation2 + $0x48] sm:$0xff] }
  0xf7   : > { %v976_v42 = vadd.f32 %v975_v37, %v927_v38 }
  0xf9   : > { %v1015_v43 = vadd.f32 %v976_v42, %v355_v41 }
  0xfb   : > { %1031 = vst [vmem:[#allocation2 + $0x30] sm:$0xff] %v1015_v43 }
  0xfc   : > { %v928_v45 = vpop.f32.mrf.mxu2  ;;  %v833_v48 = vpop.f32.mrf.mxu0 }
  0xfd   : > { %v977_v46 = vpop.f32.mrf.mxu3  ;;  %v929_v47 = vadd.f32 %v928_v45, %v880_v44  ;;  %v882_v49 = vpop.f32.mrf.mxu1 }
  0xfe   : > { %v883_v53 = vadd.f32 %v882_v49, %v833_v48  ;;  %v363_v49 = vld [vmem:[#allocation2 + $0x40] sm:$0xff] }
  0xff   : > { %v978_v51 = vadd.f32 %v977_v46, %v929_v47 }
 0x101   : > { %v1016_v52 = vadd.f32 %v978_v51, %v356_v50 }
 0x103   : > { %1032 = vst [vmem:[#allocation2] sm:$0xff] %v1016_v52 }
 0x104   : > { %v931_v54 = vpop.f32.mrf.mxu2  ;;  %v835_v57 = vpop.f32.mrf.mxu0 }
 0x105   : > { %v980_v55 = vpop.f32.mrf.mxu3  ;;  %v932_v56 = vadd.f32 %v931_v54, %v883_v53  ;;  %v884_v58 = vpop.f32.mrf.mxu1 }
 0x106   : > { %v885_v62 = vadd.f32 %v884_v58, %v835_v57  ;;  %v364_v58 = vld [vmem:[#allocation2 + $0x20] sm:$0xff] }
 0x107   : > { %v981_v60 = vadd.f32 %v980_v55, %v932_v56 }
 0x109   : > { %v1017_v61 = vadd.f32 %v981_v60, %v357_v59 }
 0x10b   : > { %1033 = vst [vmem:[#allocation2 + $0x58] sm:$0xff] %v1017_v61 }
 0x10c   : > { %v933_v63 = vpop.f32.mrf.mxu2  ;;  %v838_v2 = vpop.f32.mrf.mxu0 }
 0x10d   : > { %v982_v0 = vpop.f32.mrf.mxu3  ;;  %v934_v1 = vadd.f32 %v933_v63, %v885_v62  ;;  %v887_v3 = vpop.f32.mrf.mxu1 }
 0x10e   : > { %v888_v7 = vadd.f32 %v887_v3, %v838_v2  ;;  %v365_v3 = vld [vmem:[#allocation2 + $0x10] sm:$0xff] }
 0x10f   : > { %v983_v5 = vadd.f32 %v982_v0, %v934_v1 }
 0x111   : > { %v1018_v6 = vadd.f32 %v983_v5, %v358_v4 }
 0x113   : > { %1034 = vst [vmem:[#allocation2 + $0x18] sm:$0xff] %v1018_v6 }
 0x114   : > { %v936_v8 = vpop.f32.mrf.mxu2  ;;  %v840_v11 = vpop.f32.mrf.mxu0 }
 0x115   : > { %v985_v9 = vpop.f32.mrf.mxu3  ;;  %v937_v10 = vadd.f32 %v936_v8, %v888_v7  ;;  %v889_v12 = vpop.f32.mrf.mxu1 }
 0x116   : > { %v890_v16 = vadd.f32 %v889_v12, %v840_v11  ;;  %v366_v12 = vld [vmem:[#allocation2 + $0x38] sm:$0xff] }
 0x117   : > { %v986_v14 = vadd.f32 %v985_v9, %v937_v10 }
 0x119   : > { %v1019_v15 = vadd.f32 %v986_v14, %v359_v13 }
 0x11b   : > { %1035 = vst [vmem:[#allocation2 + $0x50] sm:$0xff] %v1019_v15 }
 0x11c   : > { %v938_v17 = vpop.f32.mrf.mxu2  ;;  %v843_v20 = vpop.f32.mrf.mxu0 }
 0x11d   : > { %v987_v18 = vpop.f32.mrf.mxu3  ;;  %v939_v19 = vadd.f32 %v938_v17, %v890_v16  ;;  %v892_v21 = vpop.f32.mrf.mxu1 }
 0x11e   : > { %v893_v25 = vadd.f32 %v892_v21, %v843_v20  ;;  %v367_v21 = vld [vmem:[#allocation2 + $0x60] sm:$0xff] }
 0x11f   : > { %v988_v23 = vadd.f32 %v987_v18, %v939_v19 }
 0x121   : > { %v1020_v24 = vadd.f32 %v988_v23, %v360_v22 }
 0x123   : > { %1036 = vst [vmem:[#allocation2 + $0x68] sm:$0xff] %v1020_v24 }
 0x124   : > { %v941_v26 = vpop.f32.mrf.mxu2  ;;  %v845_v29 = vpop.f32.mrf.mxu0 }
 0x125   : > { %v990_v27 = vpop.f32.mrf.mxu3  ;;  %v942_v28 = vadd.f32 %v941_v26, %v893_v25  ;;  %v894_v30 = vpop.f32.mrf.mxu1 }
 0x126   : > { %v895_v34 = vadd.f32 %v894_v30, %v845_v29 }
 0x127   : > { %v991_v32 = vadd.f32 %v990_v27, %v942_v28  ;;  %v368_v28 = vld [vmem:[#allocation2 + $0x70] sm:$0xff] }
 0x129   : > { %v1021_v33 = vadd.f32 %v991_v32, %v361_v31 }
 0x12b   : > { %1037 = vst [vmem:[#allocation2 + $0x8] sm:$0xff] %v1021_v33 }
 0x12c   : > { %v943_v35 = vpop.f32.mrf.mxu2  ;;  %v848_v38 = vpop.f32.mrf.mxu0 }
 0x12d   : > { %v992_v36 = vpop.f32.mrf.mxu3  ;;  %v944_v37 = vadd.f32 %v943_v35, %v895_v34  ;;  %v897_v39 = vpop.f32.mrf.mxu1 }
 0x12e   : > { %v898_v43 = vadd.f32 %v897_v39, %v848_v38 }
 0x12f   : > { %v993_v41 = vadd.f32 %v992_v36, %v944_v37  ;;  %v369_v37 = vld [vmem:[#allocation2 + $0x78] sm:$0xff] }
 0x131   : > { %v1022_v42 = vadd.f32 %v993_v41, %v362_v40 }
 0x133   : > { %1038 = vst [vmem:[#allocation2 + $0x48] sm:$0xff] %v1022_v42 }
 0x134   : > { %v946_v44 = vpop.f32.mrf.mxu2  ;;  %v850_v47 = vpop.f32.mrf.mxu0 }
 0x135   : > { %v995_v45 = vpop.f32.mrf.mxu3  ;;  %v947_v46 = vadd.f32 %v946_v44, %v898_v43  ;;  %v899_v48 = vpop.f32.mrf.mxu1 }
 0x136   : > { %v900_v52 = vadd.f32 %v899_v48, %v850_v47 }
 0x137   : > { %v996_v50 = vadd.f32 %v995_v45, %v947_v46  ;;  %v370_v45 = vld [vmem:[#allocation2 + $0x28] sm:$0xff] }
 0x139   : > { %v1023_v51 = vadd.f32 %v996_v50, %v363_v49 }
 0x13b   : > { %1039 = vst [vmem:[#allocation2 + $0x40] sm:$0xff] %v1023_v51 }
 0x13c   : > { %v948_v53 = vpop.f32.mrf.mxu2  ;;  %v853_v56 = vpop.f32.mrf.mxu0 }
 0x13d   : > { %v997_v54 = vpop.f32.mrf.mxu3  ;;  %v949_v55 = vadd.f32 %v948_v53, %v900_v52  ;;  %v902_v57 = vpop.f32.mrf.mxu1 }
 0x13e   : > { %v903_v61 = vadd.f32 %v902_v57, %v853_v56 }
 0x13f   : > { %v998_v59 = vadd.f32 %v997_v54, %v949_v55 }
 0x141   : > { %v1024_v60 = vadd.f32 %v998_v59, %v364_v58 }
 0x143   : > { %1040 = vst [vmem:[#allocation2 + $0x20] sm:$0xff] %v1024_v60 }
 0x144   : > { %v951_v62 = vpop.f32.mrf.mxu2  ;;  %v855_v1 = vpop.f32.mrf.mxu0 }
 0x145   : > { %v1000_v63 = vpop.f32.mrf.mxu3  ;;  %v952_v0 = vadd.f32 %v951_v62, %v903_v61  ;;  %v904_v2 = vpop.f32.mrf.mxu1 }
 0x146   : > { %v905_v6 = vadd.f32 %v904_v2, %v855_v1 }
 0x147   : > { %v1001_v4 = vadd.f32 %v1000_v63, %v952_v0 }
 0x149   : > { %v1025_v5 = vadd.f32 %v1001_v4, %v365_v3 }
 0x14b   : > { %1041 = vst [vmem:[#allocation2 + $0x10] sm:$0xff] %v1025_v5 }
 0x14c   : > { %v953_v7 = vpop.f32.mrf.mxu2  ;;  %v858_v10 = vpop.f32.mrf.mxu0 }
 0x14d   : > { %v1002_v8 = vpop.f32.mrf.mxu3  ;;  %v954_v9 = vadd.f32 %v953_v7, %v905_v6  ;;  %v907_v11 = vpop.f32.mrf.mxu1 }
 0x14e   : > { %v908_v15 = vadd.f32 %v907_v11, %v858_v10 }
 0x14f   : > { %v1003_v13 = vadd.f32 %v1002_v8, %v954_v9 }
 0x151   : > { %v1026_v14 = vadd.f32 %v1003_v13, %v366_v12 }
 0x153   : > { %1042 = vst [vmem:[#allocation2 + $0x38] sm:$0xff] %v1026_v14 }
 0x154   : > { %v956_v16 = vpop.f32.mrf.mxu2  ;;  %v860_v19 = vpop.f32.mrf.mxu0 }
 0x155   : > { %v1005_v17 = vpop.f32.mrf.mxu3  ;;  %v957_v18 = vadd.f32 %v956_v16, %v908_v15  ;;  %v909_v20 = vpop.f32.mrf.mxu1 }
 0x156   : > { %v910_v24 = vadd.f32 %v909_v20, %v860_v19 }
 0x157   : > { %v1006_v22 = vadd.f32 %v1005_v17, %v957_v18 }
 0x159   : > { %v1027_v23 = vadd.f32 %v1006_v22, %v367_v21 }
 0x15b   : > { %1043 = vst [vmem:[#allocation2 + $0x60] sm:$0xff] %v1027_v23 }
 0x15c   : > { %v958_v25 = vpop.f32.mrf.mxu2  ;;  %v863_v29 = vpop.f32.mrf.mxu0 }
 0x15d   : > { %v1007_v26 = vpop.f32.mrf.mxu3  ;;  %v959_v27 = vadd.f32 %v958_v25, %v910_v24  ;;  %v912_v30 = vpop.f32.mrf.mxu1 }
 0x15e   : > { %v913_v33 = vadd.f32 %v912_v30, %v863_v29 }
 0x15f   : > { %v1008_v31 = vadd.f32 %v1007_v26, %v959_v27 }
 0x161   : > { %v1028_v32 = vadd.f32 %v1008_v31, %v368_v28 }
 0x163   : > { %1044 = vst [vmem:[#allocation2 + $0x70] sm:$0xff] %v1028_v32 }
 0x164   : > { %v961_v34 = vpop.f32.mrf.mxu2  ;;  %v865_v39 = vpop.f32.mrf.mxu0 }
 0x165   : > { %v1010_v35 = vpop.f32.mrf.mxu3  ;;  %v962_v36 = vadd.f32 %v961_v34, %v913_v33  ;;  %v914_v40 = vpop.f32.mrf.mxu1 }
 0x166   : > { %v915_v42 = vadd.f32 %v914_v40, %v865_v39 }
 0x167   : > { %v1011_v38 = vadd.f32 %v1010_v35, %v962_v36 }
 0x169   : > { %v1029_v41 = vadd.f32 %v1011_v38, %v369_v37 }
 0x16b   : > { %1045 = vst [vmem:[#allocation2 + $0x78] sm:$0xff] %v1029_v41 }
 0x16c   : > { %v963_v43 = vpop.f32.mrf.mxu2 }
 0x16d   : > { %v964_v44 = vadd.f32 %v963_v43, %v915_v42  ;;  %v1012_v46 = vpop.f32.mrf.mxu3 }
 0x16f   : > { %v1013_v47 = vadd.f32 %v1012_v46, %v964_v44  ;;  %1050 = sbr.rel (%p1514_p11) target bundleno = 388 (0x184), region = 63 }
 0x171   : > { %v1030_v48 = vadd.f32 %v1013_v47, %v370_v45 }
 0x173   : > { %1046 = vst [vmem:[#allocation2 + $0x28] sm:$0xff] %v1030_v48 }
 0x174   : > { %v1051_v49 = vld [vmem:[#allocation2 + $0x30] sm:$0xff]  ;;  %v1052_v50 = vld [vmem:[#allocation2] sm:$0xff]  ;;  %v1053_v52 = vld [vmem:[#allocation2 + $0x58] sm:$0xff] }
 0x175   : > { %v1672_v51 = vld [vmem:[%s1998_s2] ss:$0 sm:$0xff]  ;;  %v1054_v53 = vld [vmem:[#allocation2 + $0x18] sm:$0xff]  ;;  %v1055_v54 = vld [vmem:[#allocation2 + $0x50] sm:$0xff] }
 0x176   : > { %v1056_v55 = vld [vmem:[#allocation2 + $0x68] sm:$0xff]  ;;  %v1071_v57 = vadd.f32 %v1672_v51, %v1051_v49  ;;  %v1072_v58 = vadd.f32 %v1672_v51, %v1052_v50  ;;  %v1073_v59 = vadd.f32 %v1672_v51, %v1053_v52  ;;  %v1074_v60 = vadd.f32 %v1672_v51, %v1054_v53  ;;  %v1059_v2 = vld [vmem:[#allocation2 + $0x40] sm:$0xff]  ;;  %v1061_v8 = vld [vmem:[#allocation2 + $0x10] sm:$0xff] }
 0x177   : > { %v1057_v56 = vld [vmem:[#allocation2 + $0x8] sm:$0xff]  ;;  %v1075_v62 = vadd.f32 %v1672_v51, %v1055_v54  ;;  %v1076_v63 = vadd.f32 %v1672_v51, %v1056_v55  ;;  %v1060_v3 = vld [vmem:[#allocation2 + $0x20] sm:$0xff]  ;;  %v1062_v9 = vld [vmem:[#allocation2 + $0x38] sm:$0xff]  ;;  %v1079_v18 = vadd.f32 %v1672_v51, %v1059_v2  ;;  %v1081_v24 = vadd.f32 %v1672_v51, %v1061_v8 }
 0x178   : > { %v1058_v61 = vld [vmem:[#allocation2 + $0x48] sm:$0xff]  ;;  %v1077_v0 = vadd.f32 %v1672_v51, %v1057_v56  ;;  %v1087_v4 = vmax.f32 %v1071_v57, 0.0  ;;  %v1088_v5 = vmax.f32 %v1072_v58, 0.0  ;;  %v1089_v6 = vmax.f32 %v1073_v59, 0.0  ;;  %v1063_v14 = vld [vmem:[#allocation2 + $0x60] sm:$0xff]  ;;  %v1064_v15 = vld [vmem:[#allocation2 + $0x70] sm:$0xff] }
 0x179   : > { %v1078_v1 = vadd.f32 %v1672_v51, %v1058_v61  ;;  %v1090_v7 = vmax.f32 %v1074_v60, 0.0  ;;  %v1091_v10 = vmax.f32 %v1075_v62, 0.0  ;;  %v1092_v11 = vmax.f32 %v1076_v63, 0.0  ;;  %v1065_v20 = vld [vmem:[#allocation2 + $0x78] sm:$0xff] }
 0x17a   : > { %v1093_v12 = vmax.f32 %v1077_v0, 0.0  ;;  %v1587_v16 = vpack.c.bf16 %v1088_v5, %v1087_v4  ;;  %v1080_v19 = vadd.f32 %v1672_v51, %v1060_v3  ;;  %v1066_v21 = vld [vmem:[#allocation2 + $0x28] sm:$0xff]  ;;  %v1082_v25 = vadd.f32 %v1672_v51, %v1062_v9 }
 0x17b   : > { %v1094_v13 = vmax.f32 %v1078_v1, 0.0  ;;  %v1592_v17 = vpack.c.bf16 %v1090_v7, %v1089_v6  ;;  %v1597_v22 = vpack.c.bf16 %v1092_v11, %v1091_v10  ;;  %v1095_v26 = vmax.f32 %v1079_v18, 0.0 }
 0x17c   : > { %1588 = vst [vmem:[%s1999_s3] sm:$0xff] %v1587_v16   ;;  %v1096_v27 = vmax.f32 %v1080_v19, 0.0  ;;  %v1083_v28 = vadd.f32 %v1672_v51, %v1063_v14  ;;  %v1084_v29 = vadd.f32 %v1672_v51, %v1064_v15  ;;  %v1097_v30 = vmax.f32 %v1081_v24, 0.0 }
 0x17d   : > { %v1602_v23 = vpack.c.bf16 %v1094_v13, %v1093_v12  ;;  %1624 = vst [vmem:[%s1999_s3 + $0x8] sm:$0xff] %v1592_v17   ;;  %v1098_v31 = vmax.f32 %v1082_v25, 0.0  ;;  %v1085_v32 = vadd.f32 %v1672_v51, %v1065_v20  ;;  %v1086_v33 = vadd.f32 %v1672_v51, %v1066_v21 }
 0x17e   : > { %1625 = vst [vmem:[%s1999_s3 + $0x10] sm:$0xff] %v1597_v22   ;;  %v1607_v34 = vpack.c.bf16 %v1096_v27, %v1095_v26  ;;  %v1099_v35 = vmax.f32 %v1083_v28, 0.0  ;;  %v1100_v36 = vmax.f32 %v1084_v29, 0.0 }
 0x17f   : > { %1626 = vst [vmem:[%s1999_s3 + $0x18] sm:$0xff] %v1602_v23   ;;  %v1612_v37 = vpack.c.bf16 %v1098_v31, %v1097_v30  ;;  %v1101_v38 = vmax.f32 %v1085_v32, 0.0  ;;  %v1102_v39 = vmax.f32 %v1086_v33, 0.0 }
 0x180   : > { %1627 = vst [vmem:[%s1999_s3 + $0x20] sm:$0xff] %v1607_v34   ;;  %v1617_v40 = vpack.c.bf16 %v1100_v36, %v1099_v35 }
 0x181   : > { %1628 = vst [vmem:[%s1999_s3 + $0x28] sm:$0xff] %v1612_v37   ;;  %v1622_v41 = vpack.c.bf16 %v1102_v39, %v1101_v38 }
 0x182   : > { %1629 = vst [vmem:[%s1999_s3 + $0x30] sm:$0xff] %v1617_v40  }
 0x183   : > { %1630 = vst [vmem:[%s1999_s3 + $0x38] sm:$0xff] %v1622_v41  }
 0x184 PF: > { %s13_s16 = sadd.s32 1, %s1711_s16   ;;  %s2000_s12 = smov %s1699_s13 }
 0x185   : > { %p10_p12 = scmp.ge.s32.totalorder %s13_s16, 6   ;;  %s2001_s13 = smov %s1769_s20 }
 0x186   : > { %s2002_s14 = smov %s1707_s15  ;;  %s2003_s15 = smov %s2005_s17 }
 0x187   :  { %12 = sbr.rel (!%p10_p12) target bundleno = 3 (0x3), region = 104 }

// kernel: custom_cnn_pro_forward.22
= control target key start
LH: loop header
LB: loop body
LE: loop exit
PB: predicated region body
PF: predicated region fallthrough
CT: control target
= control target key end

     0   :  { %8 = vsyncpa [#allocation4], 0  ;;  %s280_s15 = smov [#allocation3]   ;;  %s281_s17 = smov 64   ;;  %s321_s0 = inlined_call_operand.vmem [shape: bf16[32,128], index: 0, kind: input, shape index: {}]   ;;  %s322_s1 = inlined_call_operand.hbm [shape: bf16[128,128], index: 1, kind: input, shape index: {}]   ;;  %s323_s2 = inlined_call_operand.vmem [shape: f32[1,128], index: 2, kind: input, shape index: {}]   ;;  %s324_s3 = inlined_call_operand.vmem [shape: bf16[32,128], index: 3, kind: output, shape index: {}]  }
   0x1   :  { %s15_s14 = sshll.u32 %s322_s1, 4  ;;  %s17_s16 = sshll.u32 %s280_s15, 4  ;;  %s16_s14 = int_to_ptr.hbm [resolvable:$true] %s15_s14  ;;  %s18_s16 = int_to_ptr.vmem [resolvable:$true] %s17_s16 }
   0x2   :  { %s282_s18 = smov 4  }
   0x3   :  { %23 = dma.hbm_to_vmem [thread:$0]  %s16_s14, 1024, %s18_s16, [#allocation4], %s281_s17, %s281_s17, %s282_s18  }
   0x4   :  { %278 = dma.done.wait [#allocation4], 1024  }
   0x5   :  { %279 = vsyncadd [#allocation4], 4294966272  ;;  %v230_v0 = vld [vmem:[#allocation3 + $0x38] sm:$0xff]  ;;  %v229_v1 = vld [vmem:[#allocation3 + $0x30] sm:$0xff] }
   0x6   :  { %122 = vmatpush.bf16.msra.mxu0 %v230_v0  ;;  %242 = vmatpush.bf16.msra.mxu1 %v230_v0  ;;  %v228_v2 = vld [vmem:[#allocation3 + $0x28] sm:$0xff]  ;;  %v227_v3 = vld [vmem:[#allocation3 + $0x20] sm:$0xff]  ;;  %v226_v4 = vld [vmem:[#allocation3 + $0x18] sm:$0xff] }
   0x7   :  { %v225_v5 = vld [vmem:[#allocation3 + $0x10] sm:$0xff]  ;;  %v224_v6 = vld [vmem:[#allocation3 + $0x8] sm:$0xff]  ;;  %v223_v7 = vld [vmem:[#allocation3] sm:$0xff] }
   0x8   :  { %v221_v8 = vld [vmem:[%s321_s0] sm:$0xff]  ;;  %v222_v9 = vld [vmem:[%s321_s0 + $0x8] sm:$0xff] }
   0x9   :  { %v253_v12 = vld [vmem:[%s323_s2] ss:$0 sm:$0xff] }
   0xa   :  { %123 = vmatpush.bf16.msra.mxu0 %v229_v1  ;;  %243 = vmatpush.bf16.msra.mxu1 %v229_v1 }
   0xe   :  { %124 = vmatpush.bf16.msra.mxu0 %v228_v2  ;;  %244 = vmatpush.bf16.msra.mxu1 %v228_v2 }
  0x12   :  { %125 = vmatpush.bf16.msra.mxu0 %v227_v3  ;;  %245 = vmatpush.bf16.msra.mxu1 %v227_v3 }
  0x16   :  { %126 = vmatpush.bf16.msra.mxu0 %v226_v4  ;;  %246 = vmatpush.bf16.msra.mxu1 %v226_v4 }
  0x1a   :  { %127 = vmatpush.bf16.msra.mxu0 %v225_v5  ;;  %247 = vmatpush.bf16.msra.mxu1 %v225_v5 }
  0x1e   :  { %128 = vmatpush.bf16.msra.mxu0 %v224_v6  ;;  %248 = vmatpush.bf16.msra.mxu1 %v224_v6 }
  0x22   :  { %129 = vmatpush.bf16.msra.mxu0 %v223_v7  ;;  %249 = vmatpush.bf16.msra.mxu1 %v223_v7 }
  0x25   :  { %130 = vmatmul.bf16.vlgmr.msra.gmra.mxu0 %v221_v8  ;;  %135 = vmatmul.bf16.vlgmr.msra.gmra.mxu1 %v222_v9 }
  0xa2   :  { %v131_v10 = vpop.f32.mrf.mxu0  ;;  %v136_v11 = vpop.f32.mrf.mxu1 }
  0xa3   :  { %v160_v13 = vadd.f32 %v253_v12, %v131_v10  ;;  %v162_v14 = vadd.f32 %v253_v12, %v136_v11 }
  0xa5   :  { %v164_v19 = vmax.f32 %v160_v13, 0.0  ;;  %v166_v20 = vmax.f32 %v162_v14, 0.0 }
  0xaa   :  { %v133_v15 = vpop.f32.mrf.mxu0  ;;  %v138_v16 = vpop.f32.mrf.mxu1 }
  0xab   :  { %v161_v17 = vadd.f32 %v253_v12, %v133_v15  ;;  %v163_v18 = vadd.f32 %v253_v12, %v138_v16 }
  0xad   :  { %v165_v21 = vmax.f32 %v161_v17, 0.0  ;;  %v167_v22 = vmax.f32 %v163_v18, 0.0 }
  0xaf   :  { %v234_v23 = vpack.c.bf16 %v165_v21, %v164_v19  ;;  %v239_v24 = vpack.c.bf16 %v167_v22, %v166_v20 }
  0xb1   :  { %235 = vst [vmem:[%s324_s3] sm:$0xff] %v234_v23  }
  0xb2   :  { %241 = vst [vmem:[%s324_s3 + $0x8] sm:$0xff] %v239_v24  }
  0xb3   :  { %180 = vsyncpa [#allocation4], 1 }

// kernel: custom_cnn_pro_forward.21
= control target key start
LH: loop header
LB: loop body
LE: loop exit
PB: predicated region body
PF: predicated region fallthrough
CT: control target
= control target key end

     0   :  { %8 = vsyncpa [#allocation5], 0  ;;  %s1391_s0 = inlined_call_operand.vmem [shape: bf16[32,1024], index: 0, kind: input, shape index: {}]   ;;  %s1392_s1 = inlined_call_operand.hbm [shape: bf16[1024,128], index: 1, kind: input, shape index: {}]   ;;  %s1393_s2 = inlined_call_operand.vmem [shape: f32[1,128], index: 2, kind: input, shape index: {}]   ;;  %s1394_s3 = inlined_call_operand.vmem [shape: bf16[32,128], index: 3, kind: output, shape index: {}]  }
   0x1   :  { %10 = vsyncpa [#allocation5 + $0x1], 0  ;;  %s1238_s12 = smov 0   ;;  %s1240_s13 = smov 0  }
   0x2   :  { %s1242_s14 = smov 0   ;;  %s1244_s15 = smov 0  }
   0x3   :  { %s1246_s16 = smov 0   ;;  %s1248_s17 = smov 0  }
   0x4 LB: > { %s849_s18 = sadd.s32 4294967295, %s1213_s17   ;;  %s28_s19 = sadd.s32 1, %s1209_s16  ;;  %s1213_s17 = sphi %s1248_s17, %s16_s17   ;;  %s1209_s16 = sphi %s1246_s16, %s1401_s16   ;;  %s1205_s15 = sphi %s1244_s15, %s1400_s15   ;;  %s1201_s14 = sphi %s1242_s14, %s1399_s14   ;;  %s1197_s13 = sphi %s1240_s13, %s1398_s13   ;;  %s1193_s12 = sphi %s1238_s12, %s1397_s12  }
   0x5   : > { %p29_p0 = scmp.ge.s32.totalorder %s28_s19, 2  ;;  %s44_s20 = sadd.s32 1, %s1201_s14 }
   0x6   : > { %p51_p1 = scmp.ne.s32.totalorder %s1201_s14, %s1197_s13  ;;  %p52_p2 = scmp.eq.s32.totalorder %s1213_s17, 0 }
   0x7   : > { %s1403_s19 = smov (%p29_p0, %s28_s19), 0  ;;  %p85_p4 = scmp.ne.s32.totalorder %s1197_s13, %s1193_s12 }
   0x8   : > { %p1274_p3 = por %p52_p2, %p51_p1  ;;  %s40_s22 = ssub.s32 %s1209_s16, %s1403_s19 }
   0x9   : > { %p86_p5 = scmp.eq.s32.totalorder %s849_s18, 0  ;;  %p42_p6 = scmp.eq.s32.totalorder %s40_s22, 0 }
   0xa   : > { %p852_p8 = scmp.ge.s32.totalorder %s1213_s17, 2 }
   0xb   : > { %p1281_p7 = por %p86_p5, %p85_p4 }
   0xc   : > { %s1286_s24 = scalar_select %p42_p6, %s1201_s14, %s44_s20  }
   0xd   : > { %165 = sbr.rel (%p852_p8) target bundleno = 36 (0x24), region = 20 }
  0x12   : > { %168 = sbr.rel (!%p1274_p3) target bundleno = 30 (0x1e), region = 24  ;;  %s170_s25 = sand.u32 (%p1274_p3), 1, %s1201_s14  }
  0x13   : > { %s1028_s26 = sshll.u32 (%p1274_p3), %s1209_s16, 4  ;;  %s853_s27 = sshll.u32 (%p1274_p3), %s170_s25, 6 }
  0x14   : > { %s178_s30 = scalar_lea.vmem (%p1274_p3), %s1391_s0, %s1028_s26  ;;  %s172_s4 = scalar_lea.vmem (%p1274_p3), [#allocation3], %s853_s27 }
  0x15   : > { %v191_v0 = vld [vmem:[%s178_s30] sm:$0xff] (%p1274_p3)  ;;  %v193_v1 = vld [vmem:[%s178_s30 + $0x8] sm:$0xff] (%p1274_p3) }
  0x16   : > { %v195_v2 = vld [vmem:[%s178_s30 + $0x20] sm:$0xff] (%p1274_p3)  ;;  %192 = vst [vmem:[%s172_s4] sm:$0xff] (%p1274_p3), %v191_v0  ;;  %v197_v3 = vld [vmem:[%s178_s30 + $0x28] sm:$0xff] (%p1274_p3) }
  0x17   : > { %194 = vst [vmem:[%s172_s4 + $0x8] sm:$0xff] %v193_v1  ;;  %v199_v4 = vld [vmem:[%s178_s30 + $0x40] sm:$0xff]  ;;  %v201_v5 = vld [vmem:[%s178_s30 + $0x48] sm:$0xff] }
  0x18   : > { %196 = vst [vmem:[%s172_s4 + $0x10] sm:$0xff] %v195_v2  ;;  %v203_v6 = vld [vmem:[%s178_s30 + $0x60] sm:$0xff]  ;;  %v205_v7 = vld [vmem:[%s178_s30 + $0x68] sm:$0xff] }
  0x19   : > { %198 = vst [vmem:[%s172_s4 + $0x18] sm:$0xff] %v197_v3 }
  0x1a   : > { %200 = vst [vmem:[%s172_s4 + $0x20] sm:$0xff] %v199_v4 }
  0x1b   : > { %202 = vst [vmem:[%s172_s4 + $0x28] sm:$0xff] %v201_v5 }
  0x1c   : > { %204 = vst [vmem:[%s172_s4 + $0x30] sm:$0xff] %v203_v6 }
  0x1d   : > { %206 = vst [vmem:[%s172_s4 + $0x38] sm:$0xff] %v205_v7 }
  0x1e PF: > { %s213_s5 = sand.u32 1, %s1201_s14   ;;  %s1029_s6 = sshll.u32 %s1209_s16, 8 }
  0x1f   : > { %s856_s7 = sshll.u32 %s213_s5, 8  ;;  %s223_s10 = scalar_lea.hbm %s1392_s1, %s1029_s6 }
  0x20   : > { %s224_s11 = sshll.u32 %s223_s10, 4  ;;  %s217_s12 = scalar_lea.vmem [#allocation4], %s856_s7  ;;  %s225_s11 = int_to_ptr.hbm [resolvable:$true] %s224_s11 }
  0x21   : > { %s226_s18 = sshll.u32 %s217_s12, 4  ;;  %s214_s20 = scalar_lea.sflag [#allocation5], %s213_s5  ;;  %s227_s18 = int_to_ptr.vmem [resolvable:$true] %s226_s18 }
  0x22   : > { %s1215_s22 = smov 64   ;;  %s1216_s25 = smov 4  }
  0x23   : > { %1081 = dma.hbm_to_vmem [thread:$0]  (%p1274_p3), %s225_s11, 4096, %s227_s18, %s214_s20, %s1215_s22, %s1215_s22, %s1216_s25  }
  0x24 PF: > { %p859_p9 = scmp.ge.s32.totalorder %s1213_s17, 1  ;;  %p234_p10 = scmp.lt.s32.totalorder %s1213_s17, 3 }
  0x26   : > { %p235_p11 = pnand %p859_p9, %p234_p10 }
  0x27   : > { %s241_s26 = sand.u32 (!%p235_p11), 1, %s1197_s13  }
  0x28   : > { %238 = sbr.rel (%p235_p11) target bundleno = 269 (0x10d), region = 51  ;;  %s860_s27 = sshll.u32 (!%p235_p11), %s241_s26, 6 }
  0x29   : > { %s861_s28 = sshll.u32 (!%p235_p11), %s241_s26, 8  ;;  %s1306_s29 = scalar_lea.vmem (!%p235_p11), [#allocation3], %s860_s27 }
  0x2a   : > { %s248_s30 = scalar_lea.sflag (!%p235_p11), [#allocation5], %s241_s26  ;;  %s1308_s4 = scalar_lea.vmem (!%p235_p11), [#allocation4], %s861_s28 }
  0x2d   : > { %1188 = dma.done.wait (%p1281_p7), %s248_s30, 4096  }
  0x2e   : > { %1190 = vsyncadd (%p1281_p7), %s248_s30, 4294963200  ;;  %p862_p12 = scmp.ne.s32.totalorder %s1205_s15, 0 }
  0x30   : > { %303 = sbr.rel (%p862_p12) target bundleno = 58 (0x3a), region = 63 }
  0x35   : > { %v1217_v8 = vmov 0.0  }
  0x36   : > { %304 = vst [vmem:[#allocation2 + $0x10] sm:$0xff] %v1217_v8 }
  0x37   : > { %305 = vst [vmem:[#allocation2] sm:$0xff] %v1217_v8 }
  0x38   : > { %306 = vst [vmem:[#allocation2 + $0x18] sm:$0xff] %v1217_v8 }
  0x39   : > { %307 = vst [vmem:[#allocation2 + $0x8] sm:$0xff] %v1217_v8 }
  0x3a PF: > { %v1045_v9 = vld [vmem:[%s1308_s4 + $0x38] sm:$0xff]  ;;  %v1044_v13 = vld [vmem:[%s1308_s4 + $0x30] sm:$0xff]  ;;  %v1043_v17 = vld [vmem:[%s1308_s4 + $0x28] sm:$0xff]  ;;  %p1023_p13 = scmp.ne.s32.totalorder %s1205_s15, 1 }
  0x3b   : > { %v1053_v10 = vld [vmem:[%s1308_s4 + $0x78] sm:$0xff]  ;;  %616 = vmatpush.bf16.msra.mxu0 %v1045_v9  ;;  %v1052_v14 = vld [vmem:[%s1308_s4 + $0x70] sm:$0xff]  ;;  %v1051_v18 = vld [vmem:[%s1308_s4 + $0x68] sm:$0xff] }
  0x3c   : > { %v1061_v11 = vld [vmem:[%s1308_s4 + $0xb8] sm:$0xff]  ;;  %635 = vmatpush.bf16.msra.mxu1 %v1053_v10  ;;  %v1060_v15 = vld [vmem:[%s1308_s4 + $0xb0] sm:$0xff]  ;;  %v1059_v19 = vld [vmem:[%s1308_s4 + $0xa8] sm:$0xff] }
  0x3d   : > { %v1069_v12 = vld [vmem:[%s1308_s4 + $0xf8] sm:$0xff]  ;;  %654 = vmatpush.bf16.msra.mxu2 %v1061_v11  ;;  %v1068_v16 = vld [vmem:[%s1308_s4 + $0xf0] sm:$0xff]  ;;  %v1067_v20 = vld [vmem:[%s1308_s4 + $0xe8] sm:$0xff] }
  0x3e   : > { %673 = vmatpush.bf16.msra.mxu3 %v1069_v12  ;;  %v1042_v21 = vld [vmem:[%s1308_s4 + $0x20] sm:$0xff]  ;;  %v1041_v25 = vld [vmem:[%s1308_s4 + $0x18] sm:$0xff]  ;;  %v1040_v29 = vld [vmem:[%s1308_s4 + $0x10] sm:$0xff] }
  0x3f   : > { %617 = vmatpush.bf16.msra.mxu0 %v1044_v13  ;;  %v1050_v22 = vld [vmem:[%s1308_s4 + $0x60] sm:$0xff]  ;;  %v1049_v26 = vld [vmem:[%s1308_s4 + $0x58] sm:$0xff]  ;;  %v1048_v30 = vld [vmem:[%s1308_s4 + $0x50] sm:$0xff] }
  0x40   : > { %636 = vmatpush.bf16.msra.mxu1 %v1052_v14  ;;  %v1058_v23 = vld [vmem:[%s1308_s4 + $0xa0] sm:$0xff]  ;;  %v1057_v27 = vld [vmem:[%s1308_s4 + $0x98] sm:$0xff]  ;;  %v1056_v31 = vld [vmem:[%s1308_s4 + $0x90] sm:$0xff] }
  0x41   : > { %655 = vmatpush.bf16.msra.mxu2 %v1060_v15  ;;  %v1066_v24 = vld [vmem:[%s1308_s4 + $0xe0] sm:$0xff]  ;;  %v1065_v28 = vld [vmem:[%s1308_s4 + $0xd8] sm:$0xff]  ;;  %v1064_v32 = vld [vmem:[%s1308_s4 + $0xd0] sm:$0xff] }
  0x42   : > { %674 = vmatpush.bf16.msra.mxu3 %v1068_v16  ;;  %v1039_v33 = vld [vmem:[%s1308_s4 + $0x8] sm:$0xff]  ;;  %v1038_v37 = vld [vmem:[%s1308_s4] sm:$0xff]  ;;  %v1032_v42 = vld [vmem:[%s1306_s29 + $0xc] sm:$0xf0] }
  0x43   : > { %618 = vmatpush.bf16.msra.mxu0 %v1043_v17  ;;  %v1047_v34 = vld [vmem:[%s1308_s4 + $0x48] sm:$0xff]  ;;  %v1046_v38 = vld [vmem:[%s1308_s4 + $0x40] sm:$0xff]  ;;  %v867_v44 = vld [vmem:[%s1306_s29 + $0x10] sm:$0xf0] }
  0x44   : > { %637 = vmatpush.bf16.msra.mxu1 %v1051_v18  ;;  %v1055_v35 = vld [vmem:[%s1308_s4 + $0x88] sm:$0xff]  ;;  %v1054_v39 = vld [vmem:[%s1308_s4 + $0x80] sm:$0xff]  ;;  %v1033_v46 = vld [vmem:[%s1306_s29 + $0x14] sm:$0xf0] }
  0x45   : > { %656 = vmatpush.bf16.msra.mxu2 %v1059_v19  ;;  %v1063_v36 = vld [vmem:[%s1308_s4 + $0xc8] sm:$0xff]  ;;  %v1062_v40 = vld [vmem:[%s1308_s4 + $0xc0] sm:$0xff]  ;;  %v875_v48 = vld [vmem:[%s1306_s29 + $0x18] sm:$0xf0] }
  0x46   : > { %675 = vmatpush.bf16.msra.mxu3 %v1067_v20  ;;  %v865_v41 = vld [vmem:[%s1306_s29] sm:$0xf]  ;;  %v1030_v43 = vld [vmem:[%s1306_s29 + $0x4] sm:$0xf]  ;;  %v873_v45 = vld [vmem:[%s1306_s29 + $0x8] sm:$0xf] }
  0x47   : > { %619 = vmatpush.bf16.msra.mxu0 %v1042_v21  ;;  %v1031_v47 = vld [vmem:[%s1306_s29 + $0xc] sm:$0xf]  ;;  %v866_v49 = vor.u32 %v1032_v42, %v865_v41  ;;  %v870_v50 = vor.u32 %v1030_v43, %v867_v44  ;;  %v874_v51 = vor.u32 %v1033_v46, %v873_v45  ;;  %v881_v53 = vld [vmem:[%s1306_s29 + $0x20] sm:$0xf]  ;;  %v1036_v54 = vld [vmem:[%s1306_s29 + $0x2c] sm:$0xf0] }
  0x48   : > { %638 = vmatpush.bf16.msra.mxu1 %v1050_v22  ;;  %v878_v52 = vor.u32 %v1031_v47, %v875_v48  ;;  %v1034_v55 = vld [vmem:[%s1306_s29 + $0x24] sm:$0xf]  ;;  %v883_v56 = vld [vmem:[%s1306_s29 + $0x30] sm:$0xf0]  ;;  %v889_v57 = vld [vmem:[%s1306_s29 + $0x28] sm:$0xf]  ;;  %v882_v61 = vor.u32 %v1036_v54, %v881_v53 }
  0x49   : > { %657 = vmatpush.bf16.msra.mxu2 %v1058_v23  ;;  %v1037_v58 = vld [vmem:[%s1306_s29 + $0x34] sm:$0xf0]  ;;  %v1035_v59 = vld [vmem:[%s1306_s29 + $0x2c] sm:$0xf]  ;;  %v891_v60 = vld [vmem:[%s1306_s29 + $0x38] sm:$0xf0]  ;;  %v886_v62 = vor.u32 %v1034_v55, %v883_v56 }
  0x4a   : > { %676 = vmatpush.bf16.msra.mxu3 %v1066_v24  ;;  %v890_v63 = vor.u32 %v1037_v58, %v889_v57  ;;  %v894_v0 = vor.u32 %v1035_v59, %v891_v60  ;;  %v308_v9 = vld [vmem:[#allocation2 + $0x10] sm:$0xff]  ;;  %v309_v16 = vld [vmem:[#allocation2] sm:$0xff] }
  0x4b   : > { %620 = vmatpush.bf16.msra.mxu0 %v1041_v25  ;;  %v310_v25 = vld [vmem:[#allocation2 + $0x18] sm:$0xff] }
  0x4c   : > { %639 = vmatpush.bf16.msra.mxu1 %v1049_v26 }
  0x4d   : > { %658 = vmatpush.bf16.msra.mxu2 %v1057_v27 }
  0x4e   : > { %677 = vmatpush.bf16.msra.mxu3 %v1065_v28 }
  0x4f   : > { %621 = vmatpush.bf16.msra.mxu0 %v1040_v29 }
  0x50   : > { %640 = vmatpush.bf16.msra.mxu1 %v1048_v30 }
  0x51   : > { %659 = vmatpush.bf16.msra.mxu2 %v1056_v31 }
  0x52   : > { %678 = vmatpush.bf16.msra.mxu3 %v1064_v32 }
  0x53   : > { %622 = vmatpush.bf16.msra.mxu0 %v1039_v33  ;;  %v311_v33 = vld [vmem:[#allocation2 + $0x8] sm:$0xff] }
  0x54   : > { %641 = vmatpush.bf16.msra.mxu1 %v1047_v34 }
  0x55   : > { %660 = vmatpush.bf16.msra.mxu2 %v1055_v35 }
  0x56   : > { %679 = vmatpush.bf16.msra.mxu3 %v1063_v36 }
  0x57   : > { %623 = vmatpush.bf16.msra.mxu0 %v1038_v37 }
  0x58   : > { %642 = vmatpush.bf16.msra.mxu1 %v1046_v38 }
  0x59   : > { %661 = vmatpush.bf16.msra.mxu2 %v1054_v39 }
  0x5a   : > { %680 = vmatpush.bf16.msra.mxu3 %v1062_v40  ;;  %624 = vmatmul.bf16.vlgmr.msra.gmra.mxu0 %v866_v49 }
  0x5b   : > { %643 = vmatmul.bf16.vlgmr.msra.gmra.mxu1 %v870_v50 }
  0x5c   : > { %662 = vmatmul.bf16.vlgmr.msra.gmra.mxu2 %v874_v51 }
  0x5d   : > { %681 = vmatmul.bf16.vlgmr.msra.gmra.mxu3 %v878_v52 }
  0x6a   : > { %629 = vmatmul.bf16.gmra.mxu0 %v882_v61 }
  0x6b   : > { %648 = vmatmul.bf16.gmra.mxu1 %v886_v62 }
  0x6c   : > { %667 = vmatmul.bf16.gmra.mxu2 %v890_v63 }
  0x6d   : > { %686 = vmatmul.bf16.gmra.mxu3 %v894_v0 }
  0xd7   : > { %v625_v1 = vpop.f32.mrf.mxu0 }
  0xd8   : > { %v644_v2 = vpop.f32.mrf.mxu1 }
  0xd9   : > { %v645_v3 = vadd.f32 %v644_v2, %v625_v1 }
  0xdf   : > { %v663_v4 = vpop.f32.mrf.mxu2  ;;  %v627_v7 = vpop.f32.mrf.mxu0 }
  0xe0   : > { %v682_v5 = vpop.f32.mrf.mxu3  ;;  %v664_v6 = vadd.f32 %v663_v4, %v645_v3  ;;  %v646_v8 = vpop.f32.mrf.mxu1 }
  0xe1   : > { %v647_v12 = vadd.f32 %v646_v8, %v627_v7 }
  0xe2   : > { %v683_v10 = vadd.f32 %v682_v5, %v664_v6 }
  0xe4   : > { %v692_v11 = vadd.f32 %v683_v10, %v308_v9 }
  0xe6   : > { %696 = vst [vmem:[#allocation2 + $0x10] sm:$0xff] %v692_v11 }
  0xe7   : > { %v665_v13 = vpop.f32.mrf.mxu2  ;;  %v630_v17 = vpop.f32.mrf.mxu0 }
  0xe8   : > { %v684_v14 = vpop.f32.mrf.mxu3  ;;  %v666_v15 = vadd.f32 %v665_v13, %v647_v12  ;;  %v649_v18 = vpop.f32.mrf.mxu1 }
  0xe9   : > { %v650_v21 = vadd.f32 %v649_v18, %v630_v17 }
  0xea   : > { %v685_v19 = vadd.f32 %v684_v14, %v666_v15 }
  0xec   : > { %v693_v20 = vadd.f32 %v685_v19, %v309_v16 }
  0xee   : > { %697 = vst [vmem:[#allocation2] sm:$0xff] %v693_v20 }
  0xef   : > { %v668_v22 = vpop.f32.mrf.mxu2  ;;  %v632_v27 = vpop.f32.mrf.mxu0 }
  0xf0   : > { %v687_v23 = vpop.f32.mrf.mxu3  ;;  %v669_v24 = vadd.f32 %v668_v22, %v650_v21  ;;  %v651_v28 = vpop.f32.mrf.mxu1 }
  0xf1   : > { %v652_v30 = vadd.f32 %v651_v28, %v632_v27 }
  0xf2   : > { %v688_v26 = vadd.f32 %v687_v23, %v669_v24 }
  0xf4   : > { %v694_v29 = vadd.f32 %v688_v26, %v310_v25 }
  0xf6   : > { %698 = vst [vmem:[#allocation2 + $0x18] sm:$0xff] %v694_v29 }
  0xf7   : > { %v670_v31 = vpop.f32.mrf.mxu2 }
  0xf8   : > { %v671_v32 = vadd.f32 %v670_v31, %v652_v30  ;;  %v689_v34 = vpop.f32.mrf.mxu3 }
  0xfa   : > { %v690_v35 = vadd.f32 %v689_v34, %v671_v32  ;;  %703 = sbr.rel (%p1023_p13) target bundleno = 269 (0x10d), region = 67 }
  0xfc   : > { %v695_v36 = vadd.f32 %v690_v35, %v311_v33 }
  0xfe   : > { %699 = vst [vmem:[#allocation2 + $0x8] sm:$0xff] %v695_v36 }
  0xff   : > { %v704_v37 = vld [vmem:[#allocation2 + $0x10] sm:$0xff]  ;;  %v705_v38 = vld [vmem:[#allocation2] sm:$0xff]  ;;  %v706_v40 = vld [vmem:[#allocation2 + $0x18] sm:$0xff] }
 0x100   : > { %v1134_v39 = vld [vmem:[%s1393_s2] ss:$0 sm:$0xff] }
 0x101   : > { %v712_v42 = vadd.f32 %v1134_v39, %v704_v37  ;;  %v713_v43 = vadd.f32 %v1134_v39, %v705_v38  ;;  %v714_v44 = vadd.f32 %v1134_v39, %v706_v40 }
 0x103   : > { %v716_v46 = vmax.f32 %v712_v42, 0.0  ;;  %v717_v47 = vmax.f32 %v713_v43, 0.0  ;;  %v718_v48 = vmax.f32 %v714_v44, 0.0 }
 0x105   : > { %v707_v41 = vld [vmem:[#allocation2 + $0x8] sm:$0xff]  ;;  %v1073_v50 = vpack.c.bf16 %v717_v47, %v716_v46 }
 0x106   : > { %v715_v45 = vadd.f32 %v1134_v39, %v707_v41 }
 0x107   : > { %1074 = vst [vmem:[%s1394_s3] sm:$0xff] %v1073_v50  }
 0x108   : > { %v719_v49 = vmax.f32 %v715_v45, 0.0 }
 0x10a   : > { %v1078_v51 = vpack.c.bf16 %v719_v49, %v718_v48 }
 0x10c   : > { %1080 = vst [vmem:[%s1394_s3 + $0x8] sm:$0xff] %v1078_v51  }
 0x10d PF: > { %s16_s17 = sadd.s32 1, %s1213_s17   ;;  %s1397_s12 = smov %s1197_s13 }
 0x10e   : > { %p13_p0 = scmp.ge.s32.totalorder %s16_s17, 4   ;;  %s1398_s13 = smov %s1201_s14 }
 0x10f   : > { %s1399_s14 = smov %s1286_s24  ;;  %s1400_s15 = smov %s1209_s16 }
 0x110   : > { %s1401_s16 = smov %s1403_s19  ;;  %15 = sbr.rel (!%p13_p0) target bundleno = 4 (0x4), region = 114 }
 0x115   :  { %756 = vsyncpa [#allocation5], 1 }
 0x116   :  { %758 = vsyncpa [#allocation5 + $0x1], 1 }

// kernel: custom_cnn_pro_forward.23
= control target key start
LH: loop header
LB: loop body
LE: loop exit
PB: predicated region body
PF: predicated region fallthrough
CT: control target
= control target key end

     0   :  { %8 = vsyncpa [#allocation4], 0  ;;  %s703_s15 = smov [#allocation3]   ;;  %s704_s17 = smov 64   ;;  %s786_s0 = inlined_call_operand.vmem [shape: bf16[32,512], index: 0, kind: input, shape index: {}]   ;;  %s787_s1 = inlined_call_operand.hbm [shape: bf16[512,128], index: 1, kind: input, shape index: {}]   ;;  %s788_s2 = inlined_call_operand.vmem [shape: f32[1,128], index: 2, kind: input, shape index: {}]   ;;  %s789_s3 = inlined_call_operand.vmem [shape: bf16[32,128], index: 3, kind: output, shape index: {}]  }
   0x1   :  { %s15_s14 = sshll.u32 %s787_s1, 4  ;;  %s17_s16 = sshll.u32 %s703_s15, 4  ;;  %s16_s14 = int_to_ptr.hbm [resolvable:$true] %s15_s14  ;;  %s18_s16 = int_to_ptr.vmem [resolvable:$true] %s17_s16 }
   0x2   :  { %s705_s18 = smov 4  }
   0x3   :  { %23 = dma.hbm_to_vmem [thread:$0]  %s16_s14, 4096, %s18_s16, [#allocation4], %s704_s17, %s704_s17, %s705_s18  }
   0x4   :  { %701 = dma.done.wait [#allocation4], 4096  }
   0x5   :  { %702 = vsyncadd [#allocation4], 4294963200  ;;  %v637_v0 = vld [vmem:[#allocation3 + $0x38] sm:$0xff]  ;;  %v636_v4 = vld [vmem:[#allocation3 + $0x30] sm:$0xff] }
   0x6   :  { %v645_v1 = vld [vmem:[#allocation3 + $0x78] sm:$0xff]  ;;  %346 = vmatpush.bf16.msra.mxu0 %v637_v0  ;;  %v644_v5 = vld [vmem:[#allocation3 + $0x70] sm:$0xff]  ;;  %v635_v8 = vld [vmem:[#allocation3 + $0x28] sm:$0xff] }
   0x7   :  { %v653_v2 = vld [vmem:[#allocation3 + $0xb8] sm:$0xff]  ;;  %365 = vmatpush.bf16.msra.mxu1 %v645_v1  ;;  %v652_v6 = vld [vmem:[#allocation3 + $0xb0] sm:$0xff]  ;;  %v643_v9 = vld [vmem:[#allocation3 + $0x68] sm:$0xff] }
   0x8   :  { %v661_v3 = vld [vmem:[#allocation3 + $0xf8] sm:$0xff]  ;;  %384 = vmatpush.bf16.msra.mxu2 %v653_v2  ;;  %v660_v7 = vld [vmem:[#allocation3 + $0xf0] sm:$0xff]  ;;  %v651_v10 = vld [vmem:[#allocation3 + $0xa8] sm:$0xff] }
   0x9   :  { %403 = vmatpush.bf16.msra.mxu3 %v661_v3  ;;  %v659_v11 = vld [vmem:[#allocation3 + $0xe8] sm:$0xff]  ;;  %v634_v12 = vld [vmem:[#allocation3 + $0x20] sm:$0xff]  ;;  %v633_v16 = vld [vmem:[#allocation3 + $0x18] sm:$0xff] }
   0xa   :  { %347 = vmatpush.bf16.msra.mxu0 %v636_v4  ;;  %v642_v13 = vld [vmem:[#allocation3 + $0x60] sm:$0xff]  ;;  %v641_v17 = vld [vmem:[#allocation3 + $0x58] sm:$0xff]  ;;  %v632_v20 = vld [vmem:[#allocation3 + $0x10] sm:$0xff] }
   0xb   :  { %366 = vmatpush.bf16.msra.mxu1 %v644_v5  ;;  %v650_v14 = vld [vmem:[#allocation3 + $0xa0] sm:$0xff]  ;;  %v649_v18 = vld [vmem:[#allocation3 + $0x98] sm:$0xff]  ;;  %v640_v21 = vld [vmem:[#allocation3 + $0x50] sm:$0xff] }
   0xc   :  { %385 = vmatpush.bf16.msra.mxu2 %v652_v6  ;;  %v658_v15 = vld [vmem:[#allocation3 + $0xe0] sm:$0xff]  ;;  %v657_v19 = vld [vmem:[#allocation3 + $0xd8] sm:$0xff]  ;;  %v648_v22 = vld [vmem:[#allocation3 + $0x90] sm:$0xff] }
   0xd   :  { %404 = vmatpush.bf16.msra.mxu3 %v660_v7  ;;  %v656_v23 = vld [vmem:[#allocation3 + $0xd0] sm:$0xff]  ;;  %v631_v24 = vld [vmem:[#allocation3 + $0x8] sm:$0xff]  ;;  %v630_v28 = vld [vmem:[#allocation3] sm:$0xff] }
   0xe   :  { %348 = vmatpush.bf16.msra.mxu0 %v635_v8  ;;  %v639_v25 = vld [vmem:[#allocation3 + $0x48] sm:$0xff]  ;;  %v638_v29 = vld [vmem:[#allocation3 + $0x40] sm:$0xff]  ;;  %v624_v33 = vld [vmem:[%s786_s0 + $0xc] sm:$0xf0] }
   0xf   :  { %367 = vmatpush.bf16.msra.mxu1 %v643_v9  ;;  %v647_v26 = vld [vmem:[#allocation3 + $0x88] sm:$0xff]  ;;  %v646_v30 = vld [vmem:[#allocation3 + $0x80] sm:$0xff]  ;;  %v466_v35 = vld [vmem:[%s786_s0 + $0x10] sm:$0xf0] }
  0x10   :  { %386 = vmatpush.bf16.msra.mxu2 %v651_v10  ;;  %v655_v27 = vld [vmem:[#allocation3 + $0xc8] sm:$0xff]  ;;  %v654_v31 = vld [vmem:[#allocation3 + $0xc0] sm:$0xff]  ;;  %v625_v37 = vld [vmem:[%s786_s0 + $0x14] sm:$0xf0] }
  0x11   :  { %405 = vmatpush.bf16.msra.mxu3 %v659_v11  ;;  %v464_v32 = vld [vmem:[%s786_s0] sm:$0xf]  ;;  %v622_v34 = vld [vmem:[%s786_s0 + $0x4] sm:$0xf]  ;;  %v472_v36 = vld [vmem:[%s786_s0 + $0x8] sm:$0xf] }
  0x12   :  { %349 = vmatpush.bf16.msra.mxu0 %v634_v12  ;;  %v623_v38 = vld [vmem:[%s786_s0 + $0xc] sm:$0xf]  ;;  %v474_v39 = vld [vmem:[%s786_s0 + $0x18] sm:$0xf0]  ;;  %v465_v40 = vor.u32 %v624_v33, %v464_v32  ;;  %v469_v41 = vor.u32 %v622_v34, %v466_v35  ;;  %v473_v42 = vor.u32 %v625_v37, %v472_v36  ;;  %v480_v44 = vld [vmem:[%s786_s0 + $0x20] sm:$0xf] }
  0x13   :  { %368 = vmatpush.bf16.msra.mxu1 %v642_v13  ;;  %v477_v43 = vor.u32 %v623_v38, %v474_v39  ;;  %v628_v45 = vld [vmem:[%s786_s0 + $0x2c] sm:$0xf0]  ;;  %v626_v46 = vld [vmem:[%s786_s0 + $0x24] sm:$0xf]  ;;  %v482_v47 = vld [vmem:[%s786_s0 + $0x30] sm:$0xf0] }
  0x14   :  { %387 = vmatpush.bf16.msra.mxu2 %v650_v14  ;;  %v488_v48 = vld [vmem:[%s786_s0 + $0x28] sm:$0xf]  ;;  %v629_v49 = vld [vmem:[%s786_s0 + $0x34] sm:$0xf0]  ;;  %v627_v50 = vld [vmem:[%s786_s0 + $0x2c] sm:$0xf]  ;;  %v481_v52 = vor.u32 %v628_v45, %v480_v44  ;;  %v485_v53 = vor.u32 %v626_v46, %v482_v47 }
  0x15   :  { %406 = vmatpush.bf16.msra.mxu3 %v658_v15  ;;  %v490_v51 = vld [vmem:[%s786_s0 + $0x38] sm:$0xf0]  ;;  %v489_v54 = vor.u32 %v629_v49, %v488_v48  ;;  %v676_v1 = vld [vmem:[%s788_s2] ss:$0 sm:$0xff] }
  0x16   :  { %350 = vmatpush.bf16.msra.mxu0 %v633_v16  ;;  %v493_v55 = vor.u32 %v627_v50, %v490_v51 }
  0x17   :  { %369 = vmatpush.bf16.msra.mxu1 %v641_v17 }
  0x18   :  { %388 = vmatpush.bf16.msra.mxu2 %v649_v18 }
  0x19   :  { %407 = vmatpush.bf16.msra.mxu3 %v657_v19 }
  0x1a   :  { %351 = vmatpush.bf16.msra.mxu0 %v632_v20 }
  0x1b   :  { %370 = vmatpush.bf16.msra.mxu1 %v640_v21 }
  0x1c   :  { %389 = vmatpush.bf16.msra.mxu2 %v648_v22 }
  0x1d   :  { %408 = vmatpush.bf16.msra.mxu3 %v656_v23 }
  0x1e   :  { %352 = vmatpush.bf16.msra.mxu0 %v631_v24 }
  0x1f   :  { %371 = vmatpush.bf16.msra.mxu1 %v639_v25 }
  0x20   :  { %390 = vmatpush.bf16.msra.mxu2 %v647_v26 }
  0x21   :  { %409 = vmatpush.bf16.msra.mxu3 %v655_v27 }
  0x22   :  { %353 = vmatpush.bf16.msra.mxu0 %v630_v28 }
  0x23   :  { %372 = vmatpush.bf16.msra.mxu1 %v638_v29 }
  0x24   :  { %391 = vmatpush.bf16.msra.mxu2 %v646_v30 }
  0x25   :  { %410 = vmatpush.bf16.msra.mxu3 %v654_v31  ;;  %354 = vmatmul.bf16.vlgmr.msra.gmra.mxu0 %v465_v40 }
  0x26   :  { %373 = vmatmul.bf16.vlgmr.msra.gmra.mxu1 %v469_v41 }
  0x27   :  { %392 = vmatmul.bf16.vlgmr.msra.gmra.mxu2 %v473_v42 }
  0x28   :  { %411 = vmatmul.bf16.vlgmr.msra.gmra.mxu3 %v477_v43 }
  0x35   :  { %359 = vmatmul.bf16.gmra.mxu0 %v481_v52 }
  0x36   :  { %378 = vmatmul.bf16.gmra.mxu1 %v485_v53 }
  0x37   :  { %397 = vmatmul.bf16.gmra.mxu2 %v489_v54 }
  0x38   :  { %416 = vmatmul.bf16.gmra.mxu3 %v493_v55 }
  0xa2   :  { %v355_v56 = vpop.f32.mrf.mxu0 }
  0xa3   :  { %v374_v57 = vpop.f32.mrf.mxu1 }
  0xa4   :  { %v375_v58 = vadd.f32 %v374_v57, %v355_v56 }
  0xaa   :  { %v393_v59 = vpop.f32.mrf.mxu2  ;;  %v357_v61 = vpop.f32.mrf.mxu0 }
  0xab   :  { %v412_v60 = vpop.f32.mrf.mxu3  ;;  %v376_v62 = vpop.f32.mrf.mxu1  ;;  %v394_v63 = vadd.f32 %v393_v59, %v375_v58 }
  0xac   :  { %v377_v2 = vadd.f32 %v376_v62, %v357_v61 }
  0xad   :  { %v413_v0 = vadd.f32 %v412_v60, %v394_v63 }
  0xaf   :  { %v441_v8 = vadd.f32 %v676_v1, %v413_v0 }
  0xb1   :  { %v445_v11 = vmax.f32 %v441_v8, 0.0 }
  0xb2   :  { %v395_v3 = vpop.f32.mrf.mxu2  ;;  %v360_v6 = vpop.f32.mrf.mxu0 }
  0xb3   :  { %v414_v4 = vpop.f32.mrf.mxu3  ;;  %v396_v5 = vadd.f32 %v395_v3, %v377_v2  ;;  %v379_v7 = vpop.f32.mrf.mxu1 }
  0xb4   :  { %v380_v13 = vadd.f32 %v379_v7, %v360_v6 }
  0xb5   :  { %v415_v9 = vadd.f32 %v414_v4, %v396_v5 }
  0xb7   :  { %v442_v10 = vadd.f32 %v676_v1, %v415_v9 }
  0xb9   :  { %v446_v12 = vmax.f32 %v442_v10, 0.0 }
  0xba   :  { %v398_v14 = vpop.f32.mrf.mxu2  ;;  %v362_v18 = vpop.f32.mrf.mxu0 }
  0xbb   :  { %v417_v15 = vpop.f32.mrf.mxu3  ;;  %v665_v16 = vpack.c.bf16 %v446_v12, %v445_v11  ;;  %v399_v17 = vadd.f32 %v398_v14, %v380_v13  ;;  %v381_v19 = vpop.f32.mrf.mxu1 }
  0xbc   :  { %v382_v21 = vadd.f32 %v381_v19, %v362_v18 }
  0xbd   :  { %666 = vst [vmem:[%s789_s3] sm:$0xff] %v665_v16   ;;  %v418_v20 = vadd.f32 %v417_v15, %v399_v17 }
  0xbf   :  { %v443_v25 = vadd.f32 %v676_v1, %v418_v20 }
  0xc1   :  { %v447_v28 = vmax.f32 %v443_v25, 0.0 }
  0xc2   :  { %v400_v22 = vpop.f32.mrf.mxu2 }
  0xc3   :  { %v401_v23 = vadd.f32 %v400_v22, %v382_v21  ;;  %v419_v24 = vpop.f32.mrf.mxu3 }
  0xc5   :  { %v420_v26 = vadd.f32 %v419_v24, %v401_v23 }
  0xc7   :  { %v444_v27 = vadd.f32 %v676_v1, %v420_v26 }
  0xc9   :  { %v448_v29 = vmax.f32 %v444_v27, 0.0 }
  0xcb   :  { %v670_v30 = vpack.c.bf16 %v448_v29, %v447_v28 }
  0xcd   :  { %672 = vst [vmem:[%s789_s3 + $0x8] sm:$0xff] %v670_v30  }
  0xce   :  { %461 = vsyncpa [#allocation4], 1 }

// kernel: custom_cnn_pro_forward.26
= control target key start
LH: loop header
LB: loop body
LE: loop exit
PB: predicated region body
PF: predicated region fallthrough
CT: control target
= control target key end

     0   :  { %s1448_s12 = smov 0   ;;  %s1450_s13 = smov 0   ;;  %s1680_s0 = inlined_call_operand.vmem [shape: bf16[16,2048], index: 0, kind: input, shape index: {}]   ;;  %s1681_s1 = inlined_call_operand.vmem [shape: bf16[2048,256], index: 1, kind: input, shape index: {}]   ;;  %s1682_s2 = inlined_call_operand.vmem [shape: f32[1,256], index: 2, kind: input, shape index: {}]   ;;  %s1683_s3 = inlined_call_operand.vmem [shape: bf16[16,256], index: 3, kind: output, shape index: {}]  }
   0x1   :  { %s1452_s14 = smov 0   ;;  %s1454_s15 = smov 0  }
   0x2   :  { %s1456_s16 = smov 0  }
   0x3 LB: > { %s25_s17 = sadd.s32 1, %s1421_s15  ;;  %p48_p1 = scmp.ne.s32.totalorder %s1413_s13, %s1409_s12  ;;  %s1425_s16 = sphi %s1456_s16, %s13_s16   ;;  %s1421_s15 = sphi %s1454_s15, %s1687_s15   ;;  %s1417_s14 = sphi %s1452_s14, %s1686_s14   ;;  %s1413_s13 = sphi %s1450_s13, %s1685_s13   ;;  %s1409_s12 = sphi %s1448_s12, %s1684_s12  }
   0x4   : > { %p26_p0 = scmp.ge.s32.totalorder %s25_s17, 4  ;;  %p49_p2 = scmp.eq.s32.totalorder %s1425_s16, 0 }
   0x5   : > { %s41_s19 = sadd.s32 1, %s1413_s13  ;;  %p989_p5 = scmp.ge.s32.totalorder %s1425_s16, 4 }
   0x6   : > { %s1689_s17 = smov (%p26_p0, %s25_s17), 0  ;;  %p50_p3 = por %p49_p2, %p48_p1 }
   0x7   : > { %s37_s18 = ssub.s32 %s1421_s15, %s1689_s17  ;;  %164 = sbr.rel (%p989_p5) target bundleno = 20 (0x14), region = 20 }
   0x8   : > { %p39_p4 = scmp.eq.s32.totalorder %s37_s18, 0 }
   0xa   : > { %s1483_s20 = scalar_select %p39_p4, %s1413_s13, %s41_s19  }
   0xc   : > { %167 = sbr.rel (!%p50_p3) target bundleno = 20 (0x14), region = 24  ;;  %s169_s21 = sand.u32 (%p50_p3), 1, %s1413_s13  }
   0xd   : > { %s1276_s22 = sshll.u32 (%p50_p3), %s1421_s15, 4  ;;  %s990_s23 = sshll.u32 (%p50_p3), %s169_s21, 5 }
   0xe   : > { %s177_s26 = scalar_lea.vmem (%p50_p3), %s1680_s0, %s1276_s22  ;;  %s171_s27 = scalar_lea.vmem (%p50_p3), [#allocation3], %s990_s23 }
   0xf   : > { %v190_v0 = vld [vmem:[%s177_s26] sm:$0xff] (%p50_p3)  ;;  %v192_v1 = vld [vmem:[%s177_s26 + $0x8] sm:$0xff] (%p50_p3) }
  0x10   : > { %v194_v2 = vld [vmem:[%s177_s26 + $0x40] sm:$0xff] (%p50_p3)  ;;  %191 = vst [vmem:[%s171_s27] sm:$0xff] (%p50_p3), %v190_v0  ;;  %v196_v3 = vld [vmem:[%s177_s26 + $0x48] sm:$0xff] (%p50_p3) }
  0x11   : > { %193 = vst [vmem:[%s171_s27 + $0x8] sm:$0xff] %v192_v1 }
  0x12   : > { %195 = vst [vmem:[%s171_s27 + $0x10] sm:$0xff] %v194_v2 }
  0x13   : > { %197 = vst [vmem:[%s171_s27 + $0x18] sm:$0xff] %v196_v3 }
  0x14 PF: > { %p993_p6 = scmp.ge.s32.totalorder %s1425_s16, 1  ;;  %p217_p7 = scmp.lt.s32.totalorder %s1425_s16, 5 }
  0x16   : > { %p218_p8 = pnand %p993_p6, %p217_p7 }
  0x17   : > { %s224_s28 = sand.u32 (!%p218_p8), 1, %s1409_s12   ;;  %s995_s29 = sshll.u32 (!%p218_p8), %s1417_s14, 6 }
  0x18   : > { %221 = sbr.rel (%p218_p8) target bundleno = 268 (0x10c), region = 51  ;;  %s994_s30 = sshll.u32 (!%p218_p8), %s224_s28, 5 }
  0x19   : > { %p270_p9 = scmp.lt.s32.totalorder (!%p218_p8), %s995_s29, 255  ;;  %s1500_s8 = scalar_lea.vmem (!%p218_p8), [#allocation3], %s994_s30 }
  0x1a   : > { %p998_p10 = scmp.ne.s32.totalorder (!%p218_p8), %s1417_s14, 0 }
  0x1d   : > { %s1691_s29 = smov (!%p270_p9, %s995_s29), 255  ;;  %300 = sbr.rel (%p998_p10) target bundleno = 39 (0x27), region = 59 }
  0x1e   : > { %s1277_s4 = sshll.u32 %s1691_s29, 3 }
  0x1f   : > { %s1498_s7 = scalar_lea.vmem %s1681_s1, %s1277_s4 }
  0x22   : > { %v1427_v4 = vmov 0.0  }
  0x23   : > { %301 = vst [vmem:[#allocation2 + $0x10] sm:$0xff] %v1427_v4 }
  0x24   : > { %302 = vst [vmem:[#allocation2] sm:$0xff] %v1427_v4 }
  0x25   : > { %303 = vst [vmem:[#allocation2 + $0x18] sm:$0xff] %v1427_v4 }
  0x26   : > { %304 = vst [vmem:[#allocation2 + $0x8] sm:$0xff] %v1427_v4 }
  0x27 PF: > { %v1073_v5 = vld [vmem:[%s1498_s7 + $0x70] sm:$0xf]  ;;  %v1297_v6 = vld [vmem:[%s1498_s7 + $0x74] sm:$0xf0]  ;;  %v1065_v16 = vld [vmem:[%s1498_s7 + $0x60] sm:$0xf] }
  0x28   : > { %v1137_v7 = vld [vmem:[%s1498_s7 + $0xf0] sm:$0xf]  ;;  %v1074_v8 = vor.u32 %v1297_v6, %v1073_v5  ;;  %v1313_v9 = vld [vmem:[%s1498_s7 + $0xf4] sm:$0xf0]  ;;  %v1295_v18 = vld [vmem:[%s1498_s7 + $0x64] sm:$0xf0] }
  0x29   : > { %v1201_v10 = vld [vmem:[%s1498_s7 + $0x170] sm:$0xf]  ;;  %v1329_v11 = vld [vmem:[%s1498_s7 + $0x174] sm:$0xf0]  ;;  %v1138_v12 = vor.u32 %v1313_v9, %v1137_v7  ;;  %v1129_v19 = vld [vmem:[%s1498_s7 + $0xe0] sm:$0xf]  ;;  %v1066_v21 = vor.u32 %v1295_v18, %v1065_v16 }
  0x2a   : > { %v1202_v13 = vor.u32 %v1329_v11, %v1201_v10  ;;  %v1265_v14 = vld [vmem:[%s1498_s7 + $0x1f0] sm:$0xf]  ;;  %v1345_v15 = vld [vmem:[%s1498_s7 + $0x1f4] sm:$0xf0]  ;;  %717 = vmatpush.bf16.msra.mxu0 %v1074_v8  ;;  %v1311_v20 = vld [vmem:[%s1498_s7 + $0xe4] sm:$0xf0] }
  0x2b   : > { %v1266_v17 = vor.u32 %v1345_v15, %v1265_v14  ;;  %731 = vmatpush.bf16.msra.mxu1 %v1138_v12  ;;  %v1130_v22 = vor.u32 %v1311_v20, %v1129_v19  ;;  %v1193_v23 = vld [vmem:[%s1498_s7 + $0x160] sm:$0xf]  ;;  %v1327_v24 = vld [vmem:[%s1498_s7 + $0x164] sm:$0xf0]  ;;  %v1057_v28 = vld [vmem:[%s1498_s7 + $0x50] sm:$0xf] }
  0x2c   : > { %745 = vmatpush.bf16.msra.mxu2 %v1202_v13  ;;  %v1257_v25 = vld [vmem:[%s1498_s7 + $0x1e0] sm:$0xf]  ;;  %v1194_v26 = vor.u32 %v1327_v24, %v1193_v23  ;;  %v1343_v27 = vld [vmem:[%s1498_s7 + $0x1e4] sm:$0xf0]  ;;  %v1293_v29 = vld [vmem:[%s1498_s7 + $0x54] sm:$0xf0] }
  0x2d   : > { %759 = vmatpush.bf16.msra.mxu3 %v1266_v17  ;;  %v1258_v30 = vor.u32 %v1343_v27, %v1257_v25  ;;  %v1121_v31 = vld [vmem:[%s1498_s7 + $0xd0] sm:$0xf]  ;;  %v1309_v32 = vld [vmem:[%s1498_s7 + $0xd4] sm:$0xf0]  ;;  %v1058_v34 = vor.u32 %v1293_v29, %v1057_v28  ;;  %v1049_v40 = vld [vmem:[%s1498_s7 + $0x40] sm:$0xf] }
  0x2e   : > { %v1185_v33 = vld [vmem:[%s1498_s7 + $0x150] sm:$0xf]  ;;  %718 = vmatpush.bf16.msra.mxu0 %v1066_v21  ;;  %v1325_v35 = vld [vmem:[%s1498_s7 + $0x154] sm:$0xf0]  ;;  %v1122_v38 = vor.u32 %v1309_v32, %v1121_v31  ;;  %v1291_v41 = vld [vmem:[%s1498_s7 + $0x44] sm:$0xf0] }
  0x2f   : > { %v1249_v36 = vld [vmem:[%s1498_s7 + $0x1d0] sm:$0xf]  ;;  %v1341_v37 = vld [vmem:[%s1498_s7 + $0x1d4] sm:$0xf0]  ;;  %732 = vmatpush.bf16.msra.mxu1 %v1130_v22  ;;  %v1186_v39 = vor.u32 %v1325_v35, %v1185_v33  ;;  %v1113_v42 = vld [vmem:[%s1498_s7 + $0xc0] sm:$0xf]  ;;  %v1050_v49 = vor.u32 %v1291_v41, %v1049_v40 }
  0x30   : > { %746 = vmatpush.bf16.msra.mxu2 %v1194_v26  ;;  %v1250_v43 = vor.u32 %v1341_v37, %v1249_v36  ;;  %v1307_v44 = vld [vmem:[%s1498_s7 + $0xc4] sm:$0xf0]  ;;  %v1177_v45 = vld [vmem:[%s1498_s7 + $0x140] sm:$0xf]  ;;  %v1041_v52 = vld [vmem:[%s1498_s7 + $0x30] sm:$0xf] }
  0x31   : > { %760 = vmatpush.bf16.msra.mxu3 %v1258_v30  ;;  %v1323_v46 = vld [vmem:[%s1498_s7 + $0x144] sm:$0xf0]  ;;  %v1241_v47 = vld [vmem:[%s1498_s7 + $0x1c0] sm:$0xf]  ;;  %v1114_v50 = vor.u32 %v1307_v44, %v1113_v42  ;;  %v1289_v53 = vld [vmem:[%s1498_s7 + $0x34] sm:$0xf0] }
  0x32   : > { %v1339_v48 = vld [vmem:[%s1498_s7 + $0x1c4] sm:$0xf0]  ;;  %719 = vmatpush.bf16.msra.mxu0 %v1058_v34  ;;  %v1178_v51 = vor.u32 %v1323_v46, %v1177_v45  ;;  %v1105_v54 = vld [vmem:[%s1498_s7 + $0xb0] sm:$0xf]  ;;  %v1305_v56 = vld [vmem:[%s1498_s7 + $0xb4] sm:$0xf0]  ;;  %v1042_v61 = vor.u32 %v1289_v53, %v1041_v52 }
  0x33   : > { %733 = vmatpush.bf16.msra.mxu1 %v1122_v38  ;;  %v1242_v55 = vor.u32 %v1339_v48, %v1241_v47  ;;  %v1169_v57 = vld [vmem:[%s1498_s7 + $0x130] sm:$0xf]  ;;  %v1321_v58 = vld [vmem:[%s1498_s7 + $0x134] sm:$0xf0]  ;;  %v1106_v62 = vor.u32 %v1305_v56, %v1105_v54  ;;  %v1033_v0 = vld [vmem:[%s1498_s7 + $0x20] sm:$0xf] }
  0x34   : > { %747 = vmatpush.bf16.msra.mxu2 %v1186_v39  ;;  %v1233_v59 = vld [vmem:[%s1498_s7 + $0x1b0] sm:$0xf]  ;;  %v1337_v60 = vld [vmem:[%s1498_s7 + $0x1b4] sm:$0xf0]  ;;  %v1170_v63 = vor.u32 %v1321_v58, %v1169_v57  ;;  %v1287_v1 = vld [vmem:[%s1498_s7 + $0x24] sm:$0xf0] }
  0x35   : > { %761 = vmatpush.bf16.msra.mxu3 %v1250_v43  ;;  %v1097_v2 = vld [vmem:[%s1498_s7 + $0xa0] sm:$0xf]  ;;  %v1234_v3 = vor.u32 %v1337_v60, %v1233_v59  ;;  %v1303_v4 = vld [vmem:[%s1498_s7 + $0xa4] sm:$0xf0]  ;;  %v1034_v9 = vor.u32 %v1287_v1, %v1033_v0  ;;  %v1025_v12 = vld [vmem:[%s1498_s7 + $0x10] sm:$0xf] }
  0x36   : > { %720 = vmatpush.bf16.msra.mxu0 %v1050_v49  ;;  %v1161_v5 = vld [vmem:[%s1498_s7 + $0x120] sm:$0xf]  ;;  %v1319_v6 = vld [vmem:[%s1498_s7 + $0x124] sm:$0xf0]  ;;  %v1098_v10 = vor.u32 %v1303_v4, %v1097_v2  ;;  %v1285_v13 = vld [vmem:[%s1498_s7 + $0x14] sm:$0xf0] }
  0x37   : > { %734 = vmatpush.bf16.msra.mxu1 %v1114_v50  ;;  %v1225_v7 = vld [vmem:[%s1498_s7 + $0x1a0] sm:$0xf]  ;;  %v1335_v8 = vld [vmem:[%s1498_s7 + $0x1a4] sm:$0xf0]  ;;  %v1162_v11 = vor.u32 %v1319_v6, %v1161_v5  ;;  %v1089_v14 = vld [vmem:[%s1498_s7 + $0x90] sm:$0xf]  ;;  %v1026_v22 = vor.u32 %v1285_v13, %v1025_v12 }
  0x38   : > { %748 = vmatpush.bf16.msra.mxu2 %v1178_v51  ;;  %v1226_v15 = vor.u32 %v1335_v8, %v1225_v7  ;;  %v1301_v16 = vld [vmem:[%s1498_s7 + $0x94] sm:$0xf0]  ;;  %v1153_v17 = vld [vmem:[%s1498_s7 + $0x110] sm:$0xf]  ;;  %v1017_v21 = vld [vmem:[%s1498_s7] sm:$0xf] }
  0x39   : > { %762 = vmatpush.bf16.msra.mxu3 %v1242_v55  ;;  %v1317_v18 = vld [vmem:[%s1498_s7 + $0x114] sm:$0xf0]  ;;  %v1217_v19 = vld [vmem:[%s1498_s7 + $0x190] sm:$0xf]  ;;  %v1283_v23 = vld [vmem:[%s1498_s7 + $0x4] sm:$0xf0]  ;;  %v1090_v26 = vor.u32 %v1301_v16, %v1089_v14 }
  0x3a   : > { %721 = vmatpush.bf16.msra.mxu0 %v1042_v61  ;;  %v1333_v20 = vld [vmem:[%s1498_s7 + $0x194] sm:$0xf0]  ;;  %v1081_v24 = vld [vmem:[%s1498_s7 + $0x80] sm:$0xf]  ;;  %v1299_v25 = vld [vmem:[%s1498_s7 + $0x84] sm:$0xf0]  ;;  %v1154_v27 = vor.u32 %v1317_v18, %v1153_v17  ;;  %v1018_v38 = vor.u32 %v1283_v23, %v1017_v21 }
  0x3b   : > { %735 = vmatpush.bf16.msra.mxu1 %v1106_v62  ;;  %v1145_v28 = vld [vmem:[%s1498_s7 + $0x100] sm:$0xf]  ;;  %v1315_v29 = vld [vmem:[%s1498_s7 + $0x104] sm:$0xf0]  ;;  %v1218_v31 = vor.u32 %v1333_v20, %v1217_v19  ;;  %v1296_v33 = vld [vmem:[%s1498_s7 + $0x74] sm:$0xf]  ;;  %v1082_v42 = vor.u32 %v1299_v25, %v1081_v24 }
  0x3c   : > { %749 = vmatpush.bf16.msra.mxu2 %v1170_v63  ;;  %v1209_v30 = vld [vmem:[%s1498_s7 + $0x180] sm:$0xf]  ;;  %v1331_v32 = vld [vmem:[%s1498_s7 + $0x184] sm:$0xf0]  ;;  %v1075_v34 = vld [vmem:[%s1498_s7 + $0x78] sm:$0xf0]  ;;  %v1146_v43 = vor.u32 %v1315_v29, %v1145_v28 }
  0x3d   : > { %763 = vmatpush.bf16.msra.mxu3 %v1234_v3  ;;  %v1312_v35 = vld [vmem:[%s1498_s7 + $0xf4] sm:$0xf]  ;;  %v1139_v36 = vld [vmem:[%s1498_s7 + $0xf8] sm:$0xf0]  ;;  %v1294_v44 = vld [vmem:[%s1498_s7 + $0x64] sm:$0xf]  ;;  %v1210_v48 = vor.u32 %v1331_v32, %v1209_v30  ;;  %v1078_v49 = vor.u32 %v1296_v33, %v1075_v34 }
  0x3e   : > { %722 = vmatpush.bf16.msra.mxu0 %v1034_v9  ;;  %v1328_v37 = vld [vmem:[%s1498_s7 + $0x174] sm:$0xf]  ;;  %v1203_v39 = vld [vmem:[%s1498_s7 + $0x178] sm:$0xf0]  ;;  %v1067_v45 = vld [vmem:[%s1498_s7 + $0x68] sm:$0xf0]  ;;  %v1142_v54 = vor.u32 %v1312_v35, %v1139_v36 }
  0x3f   : > { %736 = vmatpush.bf16.msra.mxu1 %v1098_v10  ;;  %v1344_v40 = vld [vmem:[%s1498_s7 + $0x1f4] sm:$0xf]  ;;  %v1267_v41 = vld [vmem:[%s1498_s7 + $0x1f8] sm:$0xf0]  ;;  %v1009_v46 = vld [vmem:[%s1500_s8 + $0x8] sm:$0xf]  ;;  %v1206_v55 = vor.u32 %v1328_v37, %v1203_v39  ;;  %v1070_v4 = vor.u32 %v1294_v44, %v1067_v45 }
  0x40   : > { %750 = vmatpush.bf16.msra.mxu2 %v1162_v11  ;;  %v1281_v47 = vld [vmem:[%s1500_s8 + $0x14] sm:$0xf0]  ;;  %v1310_v50 = vld [vmem:[%s1498_s7 + $0xe4] sm:$0xf]  ;;  %v1131_v51 = vld [vmem:[%s1498_s7 + $0xe8] sm:$0xf0]  ;;  %v1270_v59 = vor.u32 %v1344_v40, %v1267_v41 }
  0x41   : > { %764 = vmatpush.bf16.msra.mxu3 %v1226_v15  ;;  %v1326_v52 = vld [vmem:[%s1498_s7 + $0x164] sm:$0xf]  ;;  %v1195_v53 = vld [vmem:[%s1498_s7 + $0x168] sm:$0xf0]  ;;  %v1011_v57 = vld [vmem:[%s1500_s8 + $0x18] sm:$0xf0]  ;;  %v1586_v60 = vor.u32 %v1281_v47, %v1009_v46  ;;  %v1134_v6 = vor.u32 %v1310_v50, %v1131_v51 }
  0x42   : > { %723 = vmatpush.bf16.msra.mxu0 %v1026_v22  ;;  %v1279_v56 = vld [vmem:[%s1500_s8 + $0xc] sm:$0xf]  ;;  %v1001_v58 = vld [vmem:[%s1500_s8] sm:$0xf]  ;;  %v1280_v61 = vld [vmem:[%s1500_s8 + $0xc] sm:$0xf0]  ;;  %v1198_v7 = vor.u32 %v1326_v52, %v1195_v53 }
  0x43   : > { %737 = vmatpush.bf16.msra.mxu1 %v1090_v26  ;;  %v1278_v62 = vld [vmem:[%s1500_s8 + $0x4] sm:$0xf]  ;;  %v1003_v63 = vld [vmem:[%s1500_s8 + $0x10] sm:$0xf0]  ;;  %v1259_v1 = vld [vmem:[%s1498_s7 + $0x1e8] sm:$0xf0]  ;;  %v1593_v2 = vor.u32 %v1279_v56, %v1011_v57  ;;  %v1595_v3 = vor.u32 %v1280_v61, %v1001_v58 }
  0x44   : > { %751 = vmatpush.bf16.msra.mxu2 %v1154_v27  ;;  %v1342_v0 = vld [vmem:[%s1498_s7 + $0x1e4] sm:$0xf]  ;;  %v1597_v5 = vor.u32 %v1278_v62, %v1003_v63  ;;  %v1292_v8 = vld [vmem:[%s1498_s7 + $0x54] sm:$0xf]  ;;  %v1059_v9 = vld [vmem:[%s1498_s7 + $0x58] sm:$0xf0] }
  0x45   : > { %765 = vmatpush.bf16.msra.mxu3 %v1218_v31  ;;  %v1308_v10 = vld [vmem:[%s1498_s7 + $0xd4] sm:$0xf]  ;;  %v1262_v11 = vor.u32 %v1342_v0, %v1259_v1  ;;  %v1123_v12 = vld [vmem:[%s1498_s7 + $0xd8] sm:$0xf0]  ;;  %v1062_v17 = vor.u32 %v1292_v8, %v1059_v9  ;;  %v1290_v20 = vld [vmem:[%s1498_s7 + $0x44] sm:$0xf] }
  0x46   : > { %724 = vmatpush.bf16.msra.mxu0 %v1018_v38  ;;  %v1324_v13 = vld [vmem:[%s1498_s7 + $0x154] sm:$0xf]  ;;  %v1187_v14 = vld [vmem:[%s1498_s7 + $0x158] sm:$0xf0]  ;;  %v1126_v18 = vor.u32 %v1308_v10, %v1123_v12  ;;  %v1051_v21 = vld [vmem:[%s1498_s7 + $0x48] sm:$0xf0] }
  0x47   : > { %738 = vmatpush.bf16.msra.mxu1 %v1082_v42  ;;  %v1340_v15 = vld [vmem:[%s1498_s7 + $0x1d4] sm:$0xf]  ;;  %v1251_v16 = vld [vmem:[%s1498_s7 + $0x1d8] sm:$0xf0]  ;;  %v1190_v19 = vor.u32 %v1324_v13, %v1187_v14  ;;  %v1306_v22 = vld [vmem:[%s1498_s7 + $0xc4] sm:$0xf]  ;;  %v1054_v29 = vor.u32 %v1290_v20, %v1051_v21 }
  0x48   : > { %752 = vmatpush.bf16.msra.mxu2 %v1146_v43  ;;  %v1254_v23 = vor.u32 %v1340_v15, %v1251_v16  ;;  %v1115_v24 = vld [vmem:[%s1498_s7 + $0xc8] sm:$0xf0]  ;;  %v1322_v25 = vld [vmem:[%s1498_s7 + $0x144] sm:$0xf]  ;;  %v1288_v32 = vld [vmem:[%s1498_s7 + $0x34] sm:$0xf] }
  0x49   : > { %766 = vmatpush.bf16.msra.mxu3 %v1210_v48  ;;  %725 = vmatmul.bf16.vlgmr.msra.gmra.mxu0 %v1595_v3  ;;  %v1179_v26 = vld [vmem:[%s1498_s7 + $0x148] sm:$0xf0]  ;;  %v1338_v27 = vld [vmem:[%s1498_s7 + $0x1c4] sm:$0xf]  ;;  %v1118_v30 = vor.u32 %v1306_v22, %v1115_v24  ;;  %v1043_v33 = vld [vmem:[%s1498_s7 + $0x38] sm:$0xf0] }
  0x4a   : > { %773 = vmatpush.bf16.msrb.mxu0 %v1078_v49  ;;  %739 = vmatmul.bf16.vlgmr.msra.gmra.mxu1 %v1597_v5  ;;  %v1243_v28 = vld [vmem:[%s1498_s7 + $0x1c8] sm:$0xf0]  ;;  %v1182_v31 = vor.u32 %v1322_v25, %v1179_v26  ;;  %v1304_v34 = vld [vmem:[%s1498_s7 + $0xb4] sm:$0xf]  ;;  %v1107_v36 = vld [vmem:[%s1498_s7 + $0xb8] sm:$0xf0]  ;;  %v1046_v41 = vor.u32 %v1288_v32, %v1043_v33 }
  0x4b   : > { %787 = vmatpush.bf16.msrb.mxu1 %v1142_v54  ;;  %753 = vmatmul.bf16.vlgmr.msra.gmra.mxu2 %v1586_v60  ;;  %v1246_v35 = vor.u32 %v1338_v27, %v1243_v28  ;;  %v1320_v37 = vld [vmem:[%s1498_s7 + $0x134] sm:$0xf]  ;;  %v1171_v38 = vld [vmem:[%s1498_s7 + $0x138] sm:$0xf0]  ;;  %v1110_v42 = vor.u32 %v1304_v34, %v1107_v36  ;;  %v1286_v44 = vld [vmem:[%s1498_s7 + $0x24] sm:$0xf] }
  0x4c   : > { %801 = vmatpush.bf16.msrb.mxu2 %v1206_v55  ;;  %767 = vmatmul.bf16.vlgmr.msra.gmra.mxu3 %v1593_v2  ;;  %v1336_v39 = vld [vmem:[%s1498_s7 + $0x1b4] sm:$0xf]  ;;  %v1235_v40 = vld [vmem:[%s1498_s7 + $0x1b8] sm:$0xf0]  ;;  %v1174_v43 = vor.u32 %v1320_v37, %v1171_v38  ;;  %v1035_v45 = vld [vmem:[%s1498_s7 + $0x28] sm:$0xf0] }
  0x4d   : > { %815 = vmatpush.bf16.msrb.mxu3 %v1270_v59  ;;  %v1302_v46 = vld [vmem:[%s1498_s7 + $0xa4] sm:$0xf]  ;;  %v1238_v47 = vor.u32 %v1336_v39, %v1235_v40  ;;  %v1099_v48 = vld [vmem:[%s1498_s7 + $0xa8] sm:$0xf0]  ;;  %v1038_v53 = vor.u32 %v1286_v44, %v1035_v45  ;;  %v1284_v56 = vld [vmem:[%s1498_s7 + $0x14] sm:$0xf] }
  0x4e   : > { %774 = vmatpush.bf16.msrb.mxu0 %v1070_v4  ;;  %v1318_v49 = vld [vmem:[%s1498_s7 + $0x124] sm:$0xf]  ;;  %v1163_v50 = vld [vmem:[%s1498_s7 + $0x128] sm:$0xf0]  ;;  %v1102_v54 = vor.u32 %v1302_v46, %v1099_v48  ;;  %v1027_v57 = vld [vmem:[%s1498_s7 + $0x18] sm:$0xf0] }
  0x4f   : > { %788 = vmatpush.bf16.msrb.mxu1 %v1134_v6  ;;  %v1334_v51 = vld [vmem:[%s1498_s7 + $0x1a4] sm:$0xf]  ;;  %v1227_v52 = vld [vmem:[%s1498_s7 + $0x1a8] sm:$0xf0]  ;;  %v1166_v55 = vor.u32 %v1318_v49, %v1163_v50  ;;  %v1300_v58 = vld [vmem:[%s1498_s7 + $0x94] sm:$0xf]  ;;  %v1030_v4 = vor.u32 %v1284_v56, %v1027_v57 }
  0x50   : > { %802 = vmatpush.bf16.msrb.mxu2 %v1198_v7  ;;  %v1230_v59 = vor.u32 %v1334_v51, %v1227_v52  ;;  %v1091_v61 = vld [vmem:[%s1498_s7 + $0x98] sm:$0xf0]  ;;  %v1316_v62 = vld [vmem:[%s1498_s7 + $0x114] sm:$0xf]  ;;  %v1282_v8 = vld [vmem:[%s1498_s7 + $0x4] sm:$0xf] }
  0x51   : > { %816 = vmatpush.bf16.msrb.mxu3 %v1262_v11  ;;  %v1155_v63 = vld [vmem:[%s1498_s7 + $0x118] sm:$0xf0]  ;;  %v1332_v0 = vld [vmem:[%s1498_s7 + $0x194] sm:$0xf]  ;;  %v1094_v6 = vor.u32 %v1300_v58, %v1091_v61  ;;  %v1019_v9 = vld [vmem:[%s1498_s7 + $0x8] sm:$0xf0] }
  0x52   : > { %775 = vmatpush.bf16.msrb.mxu0 %v1062_v17  ;;  %v1219_v1 = vld [vmem:[%s1498_s7 + $0x198] sm:$0xf0]  ;;  %v1158_v7 = vor.u32 %v1316_v62, %v1155_v63  ;;  %v1298_v10 = vld [vmem:[%s1498_s7 + $0x84] sm:$0xf]  ;;  %v1083_v12 = vld [vmem:[%s1498_s7 + $0x88] sm:$0xf0]  ;;  %v1022_v17 = vor.u32 %v1282_v8, %v1019_v9 }
  0x53   : > { %789 = vmatpush.bf16.msrb.mxu1 %v1126_v18  ;;  %v1222_v11 = vor.u32 %v1332_v0, %v1219_v1  ;;  %v1314_v13 = vld [vmem:[%s1498_s7 + $0x104] sm:$0xf]  ;;  %v1147_v14 = vld [vmem:[%s1498_s7 + $0x108] sm:$0xf0]  ;;  %v1086_v18 = vor.u32 %v1298_v10, %v1083_v12  ;;  %v305_v27 = vld [vmem:[#allocation2 + $0x10] sm:$0xff]  ;;  %p1271_p11 = scmp.ne.s32.totalorder %s1417_s14, 3 }
  0x54   : > { %803 = vmatpush.bf16.msrb.mxu2 %v1190_v19  ;;  %v1330_v15 = vld [vmem:[%s1498_s7 + $0x184] sm:$0xf]  ;;  %v1211_v16 = vld [vmem:[%s1498_s7 + $0x188] sm:$0xf0]  ;;  %v1150_v19 = vor.u32 %v1314_v13, %v1147_v14  ;;  %v307_v34 = vld [vmem:[#allocation2 + $0x18] sm:$0xff] }
  0x55   : > { %817 = vmatpush.bf16.msrb.mxu3 %v1254_v23  ;;  %v1214_v20 = vor.u32 %v1330_v15, %v1211_v16  ;;  %v308_v49 = vld [vmem:[#allocation2 + $0x8] sm:$0xff] }
  0x56   : > { %776 = vmatpush.bf16.msrb.mxu0 %v1054_v29 }
  0x57   : > { %790 = vmatpush.bf16.msrb.mxu1 %v1118_v30 }
  0x58   : > { %804 = vmatpush.bf16.msrb.mxu2 %v1182_v31 }
  0x59   : > { %818 = vmatpush.bf16.msrb.mxu3 %v1246_v35 }
  0x5a   : > { %777 = vmatpush.bf16.msrb.mxu0 %v1046_v41  ;;  %v306_v41 = vld [vmem:[#allocation2] sm:$0xff] }
  0x5b   : > { %791 = vmatpush.bf16.msrb.mxu1 %v1110_v42 }
  0x5c   : > { %805 = vmatpush.bf16.msrb.mxu2 %v1174_v43 }
  0x5d   : > { %819 = vmatpush.bf16.msrb.mxu3 %v1238_v47 }
  0x5e   : > { %778 = vmatpush.bf16.msrb.mxu0 %v1038_v53 }
  0x5f   : > { %792 = vmatpush.bf16.msrb.mxu1 %v1102_v54 }
  0x60   : > { %806 = vmatpush.bf16.msrb.mxu2 %v1166_v55 }
  0x61   : > { %820 = vmatpush.bf16.msrb.mxu3 %v1230_v59 }
  0x62   : > { %779 = vmatpush.bf16.msrb.mxu0 %v1030_v4 }
  0x63   : > { %793 = vmatpush.bf16.msrb.mxu1 %v1094_v6 }
  0x64   : > { %807 = vmatpush.bf16.msrb.mxu2 %v1158_v7 }
  0x65   : > { %821 = vmatpush.bf16.msrb.mxu3 %v1222_v11 }
  0x66   : > { %780 = vmatpush.bf16.msrb.mxu0 %v1022_v17 }
  0x67   : > { %794 = vmatpush.bf16.msrb.mxu1 %v1086_v18 }
  0x68   : > { %808 = vmatpush.bf16.msrb.mxu2 %v1150_v19 }
  0x69   : > { %822 = vmatpush.bf16.msrb.mxu3 %v1214_v20  ;;  %781 = vmatmul.bf16.vlgmr.msrb.gmra.mxu0 %v1595_v3 }
  0x6a   : > { %795 = vmatmul.bf16.vlgmr.msrb.gmra.mxu1 %v1597_v5 }
  0x6b   : > { %809 = vmatmul.bf16.vlgmr.msrb.gmra.mxu2 %v1586_v60 }
  0x6c   : > { %823 = vmatmul.bf16.vlgmr.msrb.gmra.mxu3 %v1593_v2 }
  0xc6   : > { %v726_v21 = vpop.f32.mrf.mxu0 }
  0xc7   : > { %v740_v22 = vpop.f32.mrf.mxu1 }
  0xc8   : > { %v741_v23 = vadd.f32 %v740_v22, %v726_v21 }
  0xce   : > { %v754_v24 = vpop.f32.mrf.mxu2  ;;  %v728_v29 = vpop.f32.mrf.mxu0 }
  0xcf   : > { %v755_v25 = vadd.f32 %v754_v24, %v741_v23  ;;  %v768_v26 = vpop.f32.mrf.mxu3  ;;  %v742_v30 = vpop.f32.mrf.mxu1 }
  0xd0   : > { %v743_v32 = vadd.f32 %v742_v30, %v728_v29 }
  0xd1   : > { %v769_v28 = vadd.f32 %v768_v26, %v755_v25 }
  0xd3   : > { %v829_v31 = vadd.f32 %v769_v28, %v305_v27 }
  0xd5   : > { %833 = vst [vmem:[#allocation2 + $0x10] sm:$0xff] %v829_v31 }
  0xd6   : > { %v756_v3 = vpop.f32.mrf.mxu2 }
  0xd7   : > { %v757_v33 = vadd.f32 %v756_v3, %v743_v32  ;;  %v770_v5 = vpop.f32.mrf.mxu3 }
  0xd9   : > { %v771_v60 = vadd.f32 %v770_v5, %v757_v33 }
  0xdb   : > { %v831_v35 = vadd.f32 %v771_v60, %v307_v34 }
  0xdd   : > { %835 = vst [vmem:[#allocation2 + $0x18] sm:$0xff] %v831_v35 }
  0xe6   : > { %v782_v2 = vpop.f32.mrf.mxu0 }
  0xe7   : > { %v796_v36 = vpop.f32.mrf.mxu1 }
  0xe8   : > { %v797_v37 = vadd.f32 %v796_v36, %v782_v2 }
  0xee   : > { %v810_v38 = vpop.f32.mrf.mxu2  ;;  %v784_v43 = vpop.f32.mrf.mxu0 }
  0xef   : > { %v811_v39 = vadd.f32 %v810_v38, %v797_v37  ;;  %v824_v40 = vpop.f32.mrf.mxu3  ;;  %v798_v44 = vpop.f32.mrf.mxu1 }
  0xf0   : > { %v799_v46 = vadd.f32 %v798_v44, %v784_v43 }
  0xf1   : > { %v825_v42 = vadd.f32 %v824_v40, %v811_v39 }
  0xf3   : > { %v830_v45 = vadd.f32 %v825_v42, %v306_v41 }
  0xf5   : > { %834 = vst [vmem:[#allocation2] sm:$0xff] %v830_v45 }
  0xf6   : > { %v812_v47 = vpop.f32.mrf.mxu2 }
  0xf7   : > { %v813_v48 = vadd.f32 %v812_v47, %v799_v46  ;;  %v826_v50 = vpop.f32.mrf.mxu3 }
  0xf9   : > { %v827_v51 = vadd.f32 %v826_v50, %v813_v48  ;;  %840 = sbr.rel (%p1271_p11) target bundleno = 268 (0x10c), region = 63 }
  0xfb   : > { %v832_v52 = vadd.f32 %v827_v51, %v308_v49 }
  0xfd   : > { %836 = vst [vmem:[#allocation2 + $0x8] sm:$0xff] %v832_v52 }
  0xfe   : > { %v841_v53 = vld [vmem:[#allocation2 + $0x10] sm:$0xff]  ;;  %v842_v54 = vld [vmem:[#allocation2] sm:$0xff]  ;;  %v843_v58 = vld [vmem:[#allocation2 + $0x18] sm:$0xff] }
  0xff   : > { %v845_v55 = vld [vmem:[%s1682_s2] sm:$0x3] }
 0x100   : > { %v847_v56 = vperm.slane %v845_v55, 0  ;;  %v848_v57 = vperm.slane %v845_v55, 1 }
 0x102   : > { %v851_v61 = vadd.f32 %v847_v56, %v841_v53  ;;  %v852_v62 = vadd.f32 %v848_v57, %v842_v54  ;;  %v853_v63 = vadd.f32 %v847_v56, %v843_v58 }
 0x104   : > { %v844_v59 = vld [vmem:[#allocation2 + $0x8] sm:$0xff]  ;;  %v855_v1 = vmax.f32 %v851_v61, 0.0  ;;  %v856_v4 = vmax.f32 %v852_v62, 0.0  ;;  %v857_v6 = vmax.f32 %v853_v63, 0.0 }
 0x105   : > { %v854_v0 = vadd.f32 %v848_v57, %v844_v59 }
 0x106   : > { %v859_v8 = vpack.c.bf16 %v856_v4, %v855_v1 }
 0x107   : > { %v858_v7 = vmax.f32 %v854_v0, 0.0 }
 0x108   : > { %861 = vst [vmem:[%s1683_s3] sm:$0xff] %v859_v8 }
 0x109   : > { %v860_v9 = vpack.c.bf16 %v858_v7, %v857_v6 }
 0x10b   : > { %862 = vst [vmem:[%s1683_s3 + $0x8] sm:$0xff] %v860_v9 }
 0x10c PF: > { %s13_s16 = sadd.s32 1, %s1425_s16   ;;  %s1684_s12 = smov %s1413_s13 }
 0x10d   : > { %p10_p12 = scmp.ge.s32.totalorder %s13_s16, 6   ;;  %s1685_s13 = smov %s1483_s20 }
 0x10e   : > { %s1686_s14 = smov %s1421_s15  ;;  %s1687_s15 = smov %s1689_s17 }
 0x10f   :  { %12 = sbr.rel (!%p10_p12) target bundleno = 3 (0x3), region = 104 }

// kernel: custom_cnn_pro_forward.27
= control target key start
LH: loop header
LB: loop body
LE: loop exit
PB: predicated region body
PF: predicated region fallthrough
CT: control target
= control target key end

     0   :  { %10 = vsyncpa [#allocation3], 0  ;;  %s698_s0 = inlined_call_operand.vmem [shape: bf16[16,256], index: 0, kind: input, shape index: {}]   ;;  %s699_s1 = inlined_call_operand.vmem [shape: bf16[256,128], index: 1, kind: input, shape index: {}]   ;;  %s700_s2 = inlined_call_operand.hbm [shape: f32[1,128], index: 2, kind: input, shape index: {}]   ;;  %s701_s3 = inlined_call_operand.hbm [shape: bf16[128,128], index: 3, kind: input, shape index: {}]   ;;  %s702_s4 = inlined_call_operand.hbm [shape: f32[1,128], index: 4, kind: input, shape index: {}]   ;;  %s703_s5 = inlined_call_operand.vmem [shape: bf16[16,256], index: 5, kind: output, shape index: {}]  }
   0x1   :  { %11 = vsyncpa [#allocation5], 0  ;;  %s31_s20 = sshll.u32 %s701_s3, 4  ;;  %s581_s21 = smov [#allocation4]   ;;  %s32_s20 = int_to_ptr.hbm [resolvable:$true] %s31_s20 }
   0x2   :  { %s33_s22 = sshll.u32 %s581_s21, 4  ;;  %s21_s25 = sshll.u32 %s700_s2, 4  ;;  %s34_s22 = int_to_ptr.vmem [resolvable:$true] %s33_s22  ;;  %s22_s25 = int_to_ptr.hbm [resolvable:$true] %s21_s25 }
   0x3   :  { %s582_s26 = smov 64   ;;  %s583_s27 = smov 4  }
   0x4   :  { %39 = dma.hbm_to_vmem [thread:$0]  %s32_s20, 1024, %s34_s22, [#allocation5], %s582_s26, %s582_s26, %s583_s27  }
   0x5   :  { %s584_s28 = smov [#allocation2]   ;;  %s45_s7 = sshll.u32 %s702_s4, 4  ;;  %s46_s7 = int_to_ptr.hbm [resolvable:$true] %s45_s7 }
   0x6   :  { %s23_s29 = sshll.u32 %s584_s28, 4  ;;  %s585_s3 = smov [#allocation6]   ;;  %s24_s29 = int_to_ptr.vmem [resolvable:$true] %s23_s29 }
   0x7   :  { %26 = dma.hbm_to_vmem [thread:$0]  %s22_s25, 16, %s24_s29, [#allocation3]  }
   0x8   :  { %s47_s8 = sshll.u32 %s585_s3, 4  ;;  %s48_s8 = int_to_ptr.vmem [resolvable:$true] %s47_s8 }
   0x9   :  { %50 = dma.hbm_to_vmem [thread:$0]  %s46_s7, 16, %s48_s8, [#allocation5]  }
   0xa   :  { %577 = dma.done.wait [#allocation3], 16  }
   0xb   :  { %578 = vsyncadd [#allocation3], 4294967280 }
   0xc   :  { %579 = dma.done.wait [#allocation5], 1040  }
   0xd   :  { %580 = vsyncadd [#allocation5], 4294966256  ;;  %v471_v0 = vld [vmem:[%s699_s1 + $0x38] sm:$0xff]  ;;  %v470_v2 = vld [vmem:[%s699_s1 + $0x30] sm:$0xff]  ;;  %v586_v42 = vmov 0  }
   0xe   :  { %v479_v1 = vld [vmem:[%s699_s1 + $0x78] sm:$0xff]  ;;  %207 = vmatpush.bf16.msra.mxu0 %v471_v0  ;;  %v478_v3 = vld [vmem:[%s699_s1 + $0x70] sm:$0xff]  ;;  %v469_v4 = vld [vmem:[%s699_s1 + $0x28] sm:$0xff]  ;;  %494 = vset.pattern.permute.xlu0 %v586_v42 }
   0xf   :  { %221 = vmatpush.bf16.msra.mxu1 %v479_v1  ;;  %v477_v5 = vld [vmem:[%s699_s1 + $0x68] sm:$0xff]  ;;  %v487_v6 = vld [vmem:[#allocation4 + $0x38] sm:$0xff]  ;;  %v486_v7 = vld [vmem:[#allocation4 + $0x30] sm:$0xff] }
  0x10   :  { %306 = vmatpush.bf16.msra.mxu2 %v487_v6  ;;  %v468_v8 = vld [vmem:[%s699_s1 + $0x20] sm:$0xff]  ;;  %v485_v10 = vld [vmem:[#allocation4 + $0x28] sm:$0xff]  ;;  %v467_v11 = vld [vmem:[%s699_s1 + $0x18] sm:$0xff] }
  0x11   :  { %v476_v9 = vld [vmem:[%s699_s1 + $0x60] sm:$0xff]  ;;  %v475_v12 = vld [vmem:[%s699_s1 + $0x58] sm:$0xff]  ;;  %v466_v14 = vld [vmem:[%s699_s1 + $0x10] sm:$0xff] }
  0x12   :  { %208 = vmatpush.bf16.msra.mxu0 %v470_v2  ;;  %v484_v13 = vld [vmem:[#allocation4 + $0x20] sm:$0xff]  ;;  %v474_v15 = vld [vmem:[%s699_s1 + $0x50] sm:$0xff]  ;;  %v362_v23 = vld [vmem:[%s698_s0 + $0x8] sm:$0xf0] }
  0x13   :  { %222 = vmatpush.bf16.msra.mxu1 %v478_v3  ;;  %v465_v16 = vld [vmem:[%s699_s1 + $0x8] sm:$0xff]  ;;  %v464_v18 = vld [vmem:[%s699_s1] sm:$0xff]  ;;  %v482_v27 = vld [vmem:[#allocation4 + $0x10] sm:$0xff] }
  0x14   :  { %307 = vmatpush.bf16.msra.mxu2 %v486_v7  ;;  %v473_v17 = vld [vmem:[%s699_s1 + $0x48] sm:$0xff]  ;;  %v472_v19 = vld [vmem:[%s699_s1 + $0x40] sm:$0xff] }
  0x15   :  { %v360_v20 = vld [vmem:[%s698_s0] sm:$0xf]  ;;  %v463_v21 = vld [vmem:[%s698_s0 + $0x4] sm:$0xf0]  ;;  %v462_v22 = vld [vmem:[%s698_s0 + $0x4] sm:$0xf] }
  0x16   :  { %209 = vmatpush.bf16.msra.mxu0 %v469_v4  ;;  %v361_v24 = vor.u32 %v463_v21, %v360_v20  ;;  %v365_v25 = vor.u32 %v462_v22, %v362_v23  ;;  %v483_v26 = vld [vmem:[#allocation4 + $0x18] sm:$0xff]  ;;  %v481_v28 = vld [vmem:[#allocation4 + $0x8] sm:$0xff]  ;;  %v480_v29 = vld [vmem:[#allocation4] sm:$0xff] }
  0x17   :  { %223 = vmatpush.bf16.msra.mxu1 %v477_v5  ;;  %v495_v32 = vld [vmem:[#allocation2] ss:$0 sm:$0xff]  ;;  %v496_v43 = vld [vmem:[#allocation6] ss:$0 sm:$0xff]  ;;  %v64_v0 = vld [vmem:[%s698_s0 + $0x8] sm:$0xff] }
  0x18   :  { %308 = vmatpush.bf16.msra.mxu2 %v485_v10  ;;  %v63_v58 = vld [vmem:[%s698_s0] sm:$0xff]  ;;  %v332_v2 = vunpack.c.l.bf16 %v64_v0  ;;  %v333_v3 = vunpack.c.h.bf16 %v64_v0 }
  0x19   :  { %v330_v59 = vunpack.c.l.bf16 %v63_v58  ;;  %v331_v60 = vunpack.c.h.bf16 %v63_v58 }
  0x1a   :  { %210 = vmatpush.bf16.msra.mxu0 %v468_v8 }
  0x1b   :  { %224 = vmatpush.bf16.msra.mxu1 %v476_v9 }
  0x1c   :  { %309 = vmatpush.bf16.msra.mxu2 %v484_v13 }
  0x1e   :  { %211 = vmatpush.bf16.msra.mxu0 %v467_v11 }
  0x1f   :  { %225 = vmatpush.bf16.msra.mxu1 %v475_v12 }
  0x20   :  { %310 = vmatpush.bf16.msra.mxu2 %v483_v26 }
  0x22   :  { %212 = vmatpush.bf16.msra.mxu0 %v466_v14 }
  0x23   :  { %226 = vmatpush.bf16.msra.mxu1 %v474_v15 }
  0x24   :  { %311 = vmatpush.bf16.msra.mxu2 %v482_v27 }
  0x26   :  { %213 = vmatpush.bf16.msra.mxu0 %v465_v16 }
  0x27   :  { %227 = vmatpush.bf16.msra.mxu1 %v473_v17 }
  0x28   :  { %312 = vmatpush.bf16.msra.mxu2 %v481_v28 }
  0x2a   :  { %214 = vmatpush.bf16.msra.mxu0 %v464_v18 }
  0x2b   :  { %228 = vmatpush.bf16.msra.mxu1 %v472_v19 }
  0x2c   :  { %313 = vmatpush.bf16.msra.mxu2 %v480_v29 }
  0x2d   :  { %215 = vmatmul.bf16.vlgmr.msra.gmra.mxu0 %v361_v24 }
  0x2e   :  { %229 = vmatmul.bf16.vlgmr.msra.gmra.mxu1 %v365_v25 }
  0xaa   :  { %v216_v30 = vpop.f32.mrf.mxu0 }
  0xab   :  { %v230_v31 = vpop.f32.mrf.mxu1  ;;  %v217_v33 = vadd.f32 %v495_v32, %v216_v30 }
  0xad   :  { %v231_v35 = vadd.f32 %v230_v31, %v217_v33 }
  0xaf   :  { %v235_v39 = vmax.f32 %v231_v35, 0.0 }
  0xb2   :  { %v218_v34 = vpop.f32.mrf.mxu0 }
  0xb3   :  { %v219_v36 = vadd.f32 %v495_v32, %v218_v34  ;;  %v232_v37 = vpop.f32.mrf.mxu1 }
  0xb5   :  { %v233_v38 = vadd.f32 %v232_v37, %v219_v36 }
  0xb7   :  { %v236_v40 = vmax.f32 %v233_v38, 0.0 }
  0xb9   :  { %v237_v41 = vpack.c.bf16 %v236_v40, %v235_v39 }
  0xbb   :  { %314 = vmatmul.bf16.vlgmr.msra.gmra.mxu2 %v237_v41 }
 0x13e   :  { %v315_v44 = vpop.f32.mrf.mxu2 }
 0x13f   :  { %v316_v45 = vadd.f32 %v496_v43, %v315_v44 }
 0x141   :  { %v320_v46 = vsub.f32 0.0, %v316_v45 }
 0x143   :  { %v322_v47 = vmul.f32 1.442695, %v320_v46 }
 0x145   :  { %497 = vpow2.f32 %v322_v47 }
 0x146   :  { %v317_v48 = vpop.f32.mrf.mxu2 }
 0x147   :  { %v318_v49 = vadd.f32 %v496_v43, %v317_v48 }
 0x149   :  { %v321_v50 = vsub.f32 0.0, %v318_v49 }
 0x14b   :  { %v498_v51 = vpop.eup %497  ;;  %v324_v52 = vmul.f32 1.442695, %v321_v50 }
 0x14c   :  { %v326_v53 = vadd.f32 1.0, %v498_v51 }
 0x14d   :  { %499 = vpow2.f32 %v324_v52 }
 0x14e   :  { %501 = vrcp.f32 %v326_v53 }
 0x153   :  { %v500_v54 = vpop.eup %499 }
 0x154   :  { %v502_v55 = vpop.eup %501  ;;  %v327_v56 = vadd.f32 1.0, %v500_v54 }
 0x155   :  { %336 = vperm.xlu0 %494, %v502_v55  }
 0x156   :  { %503 = vrcp.f32 %v327_v56 }
 0x15c   :  { %v504_v57 = vpop.eup %503 }
 0x15d   :  { %341 = vperm.xlu0 %494, %v504_v57  }
 0x1c7   :  { %v337_v61 = vpop.permute.xlu0 %336 }
 0x1c8   :  { %v344_v62 = vmul.f32 %v337_v61, %v330_v59  ;;  %v345_v63 = vmul.f32 %v337_v61, %v331_v60 }
 0x1ca   :  { %v348_v1 = vpack.c.bf16 %v345_v63, %v344_v62 }
 0x1cc   :  { %350 = vst [vmem:[%s703_s5] sm:$0xff] %v348_v1 }
 0x1cf   :  { %v342_v4 = vpop.permute.xlu0 %341 }
 0x1d0   :  { %v346_v5 = vmul.f32 %v342_v4, %v332_v2  ;;  %v347_v6 = vmul.f32 %v342_v4, %v333_v3 }
 0x1d2   :  { %v349_v7 = vpack.c.bf16 %v347_v6, %v346_v5 }
 0x1d4   :  { %351 = vst [vmem:[%s703_s5 + $0x8] sm:$0xff] %v349_v7 }
 0x1d5   :  { %356 = vsyncpa [#allocation3], 1 }
 0x1d6   :  { %357 = vsyncpa [#allocation5], 1 }

// kernel: custom_cnn_pro_forward.28
= control target key start
LH: loop header
LB: loop body
LE: loop exit
PB: predicated region body
PF: predicated region fallthrough
CT: control target
= control target key end

     0   :  { %s2309_s0 = inlined_call_operand.vmem [shape: bf16[16,2560], index: 0, kind: input, shape index: {}]   ;;  %s2310_s1 = inlined_call_operand.vmem [shape: bf16[2560,512], index: 1, kind: input, shape index: {}]   ;;  %s2311_s2 = inlined_call_operand.vmem [shape: f32[1,512], index: 2, kind: input, shape index: {}]   ;;  %s2312_s3 = inlined_call_operand.vmem [shape: bf16[16,512], index: 3, kind: output, shape index: {}]  }
   0x1   :  { %2314 = sst [smem:[#allocation7_spill]] %s2309_s0 }
   0x2   :  { %2315 = sst [smem:[#allocation8_spill]] %s2310_s1 }
   0x3   :  { %s1843_s12 = smov 0   ;;  %s1845_s13 = smov 0  }
   0x4   :  { %s1847_s14 = smov 0   ;;  %s1849_s15 = smov 0  }
   0x5   :  { %s1851_s16 = smov 0   ;;  %s1853_s17 = smov 0  }
   0x6   :  { %s1855_s18 = smov 0   ;;  %s1857_s19 = smov 0  }
   0x7   :  { %s1859_s20 = smov 0   ;;  %s1861_s21 = smov 0  }
   0x8   :  { %s1863_s22 = smov 0  }
   0x9 LB: > { %s1278_s23 = sadd.s32 4294967295, %s1820_s22   ;;  %s25_s24 = sadd.s32 1, %s1812_s20  ;;  %s1820_s22 = sphi %s1863_s22, %s13_s22   ;;  %s1816_s21 = sphi %s1861_s21, %s2332_s21   ;;  %s1812_s20 = sphi %s1859_s20, %s2331_s20   ;;  %s1808_s19 = sphi %s1857_s19, %s2330_s19   ;;  %s1804_s18 = sphi %s1855_s18, %s2329_s18   ;;  %s1800_s17 = sphi %s1853_s17, %s2328_s17   ;;  %s1796_s16 = sphi %s1851_s16, %s2327_s16   ;;  %s1792_s15 = sphi %s1849_s15, %s2326_s15   ;;  %s1788_s14 = sphi %s1847_s14, %s2325_s14   ;;  %s1784_s13 = sphi %s1845_s13, %s2324_s13   ;;  %s1780_s12 = sphi %s1843_s12, %s2323_s12  }
   0xa   : > { %p26_p0 = scmp.ge.s32.totalorder %s25_s24, 5  ;;  %s28_s25 = sadd.s32 1, %s1816_s21 }
   0xb   : > { %s41_s26 = sadd.s32 1, %s1800_s17  ;;  %p48_p1 = scmp.ne.s32.totalorder %s1800_s17, %s1796_s16 }
   0xc   : > { %s2334_s24 = smov (%p26_p0, %s25_s24), 0  ;;  %s2336_s25 = smov (!%p26_p0, %s28_s25), %s1816_s21 }
   0xd   : > { %s37_s27 = ssub.s32 %s1812_s20, %s2334_s24  ;;  %p49_p2 = scmp.eq.s32.totalorder %s1820_s22, 0 }
   0xe   : > { %p30_p3 = scmp.ge.s32.totalorder %s2336_s25, 2  ;;  %p39_p4 = scmp.eq.s32.totalorder %s37_s27, 0 }
   0xf   : > { %p1910_p5 = por %p49_p2, %p48_p1  ;;  %s69_s29 = sadd.s32 1, %s1792_s15 }
  0x10   : > { %s2338_s25 = smov (%p30_p3, %s2336_s25), 0  ;;  %p76_p6 = scmp.ne.s32.totalorder %s1792_s15, %s1788_s14 }
  0x11   : > { %2317 = sst [smem:[#allocation6_spill]] %s2338_s25  ;;  %s65_s4 = ssub.s32 %s1816_s21, %s2338_s25 }
  0x12   : > { %s1918_s30 = scalar_select %p39_p4, %s1800_s17, %s41_s26  }
  0x13   : > { %s66_s5 = sor.u32 %s65_s4, %s37_s27  ;;  %p121_p7 = scmp.eq.s32.totalorder %s65_s4, 0 }
  0x14   : > { %p67_p8 = scmp.eq.s32.totalorder %s66_s5, 0  ;;  %p1924_p9 = por %p76_p6, %p49_p2 }
  0x15   : > { %s123_s7 = sadd.s32 1, %s1784_s13  ;;  %p133_p10 = scmp.ne.s32.totalorder %s1784_s13, %s1780_s12 }
  0x16   : > { %s1932_s8 = scalar_select %p67_p8, %s1792_s15, %s69_s29  }
  0x17   : > { %s1935_s9 = scalar_select %p121_p7, %s1784_s13, %s123_s7  }
  0x18   : > { %p134_p11 = scmp.eq.s32.totalorder %s1278_s23, 9  ;;  %p1281_p13 = scmp.ge.s32.totalorder %s1820_s22, 10 }
  0x1a   : > { %p1937_p12 = por %p134_p11, %p133_p10  ;;  %156 = sbr.rel (%p1281_p13) target bundleno = 119 (0x77), region = 16 }
  0x1f   : > { %159 = sbr.rel (!%p1910_p5) target bundleno = 45 (0x2d), region = 20  ;;  %s161_s11 = sand.u32 (%p1910_p5), 1, %s1800_s17  }
  0x20   : > { %s1574_s26 = sshll.u32 (%p1910_p5), %s1812_s20, 4  ;;  %s1282_s27 = sshll.u32 (%p1910_p5), %s161_s11, 5 }
  0x21   : > { %s2320_s0 = sld [smem:[#allocation7_spill]] (%p1910_p5)  ;;  %s163_s23 = scalar_lea.vmem (%p1910_p5), [#allocation3], %s1282_s27 }
  0x27   : > { %s169_s5 = scalar_lea.vmem %s2320_s0, %s1574_s26 }
  0x28   : > { %v182_v0 = vld [vmem:[%s169_s5] sm:$0xff]  ;;  %v184_v1 = vld [vmem:[%s169_s5 + $0x8] sm:$0xff]  ;;  %v186_v2 = vld [vmem:[%s169_s5 + $0x50] sm:$0xff] }
  0x29   : > { %183 = vst [vmem:[%s163_s23] sm:$0xff] %v182_v0  ;;  %v188_v3 = vld [vmem:[%s169_s5 + $0x58] sm:$0xff] }
  0x2a   : > { %185 = vst [vmem:[%s163_s23 + $0x8] sm:$0xff] %v184_v1 }
  0x2b   : > { %187 = vst [vmem:[%s163_s23 + $0x10] sm:$0xff] %v186_v2 }
  0x2c   : > { %189 = vst [vmem:[%s163_s23 + $0x18] sm:$0xff] %v188_v3 }
  0x2d PF: > { %195 = sbr.rel (!%p1924_p9) target bundleno = 119 (0x77), region = 43  ;;  %s197_s28 = sand.u32 (%p1924_p9), 1, %s1792_s15  }
  0x2e   : > { %s1287_s7 = sshll.u32 (%p1924_p9), %s1816_s21, 1  ;;  %s1285_s11 = sshll.u32 (%p1924_p9), %s197_s28, 9 }
  0x2f   : > { %s1575_s26 = sshll.u32 (%p1924_p9), %s1812_s20, 8  ;;  %s2321_s1 = sld [smem:[#allocation8_spill]] (%p1924_p9) }
  0x30   : > { %s203_s29 = sadd.s32 (%p1924_p9), %s1575_s26, %s1287_s7  ;;  %s1962_s6 = scalar_lea.vmem (%p1924_p9), [#allocation4], %s1285_s11 }
  0x31   : > { %s1289_s4 = sshll.u32 (%p1924_p9), %s203_s29, 2 }
  0x35   : > { %s1957_s5 = scalar_lea.vmem %s2321_s1, %s1289_s4 }
  0x36   : > { %v360_v4 = vld [vmem:[%s1957_s5] sm:$0xff]  ;;  %v362_v5 = vld [vmem:[%s1957_s5 + $0x10] sm:$0xff] }
  0x37   : > { %v364_v6 = vld [vmem:[%s1957_s5 + $0x20] sm:$0xff]  ;;  %361 = vst [vmem:[%s1962_s6] sm:$0xff] %v360_v4  ;;  %v366_v7 = vld [vmem:[%s1957_s5 + $0x30] sm:$0xff] }
  0x38   : > { %363 = vst [vmem:[%s1962_s6 + $0x8] sm:$0xff] %v362_v5  ;;  %v368_v8 = vld [vmem:[%s1957_s5 + $0x40] sm:$0xff]  ;;  %v370_v9 = vld [vmem:[%s1957_s5 + $0x50] sm:$0xff] }
  0x39   : > { %365 = vst [vmem:[%s1962_s6 + $0x10] sm:$0xff] %v364_v6  ;;  %v372_v10 = vld [vmem:[%s1957_s5 + $0x60] sm:$0xff]  ;;  %v374_v11 = vld [vmem:[%s1957_s5 + $0x70] sm:$0xff] }
  0x3a   : > { %367 = vst [vmem:[%s1962_s6 + $0x18] sm:$0xff] %v366_v7  ;;  %v376_v12 = vld [vmem:[%s1957_s5 + $0x80] sm:$0xff]  ;;  %v378_v13 = vld [vmem:[%s1957_s5 + $0x90] sm:$0xff] }
  0x3b   : > { %369 = vst [vmem:[%s1962_s6 + $0x20] sm:$0xff] %v368_v8  ;;  %v380_v14 = vld [vmem:[%s1957_s5 + $0xa0] sm:$0xff]  ;;  %v382_v15 = vld [vmem:[%s1957_s5 + $0xb0] sm:$0xff] }
  0x3c   : > { %371 = vst [vmem:[%s1962_s6 + $0x28] sm:$0xff] %v370_v9  ;;  %v384_v16 = vld [vmem:[%s1957_s5 + $0xc0] sm:$0xff]  ;;  %v386_v17 = vld [vmem:[%s1957_s5 + $0xd0] sm:$0xff] }
  0x3d   : > { %373 = vst [vmem:[%s1962_s6 + $0x30] sm:$0xff] %v372_v10  ;;  %v388_v18 = vld [vmem:[%s1957_s5 + $0xe0] sm:$0xff]  ;;  %v390_v19 = vld [vmem:[%s1957_s5 + $0xf0] sm:$0xff] }
  0x3e   : > { %375 = vst [vmem:[%s1962_s6 + $0x38] sm:$0xff] %v374_v11  ;;  %v392_v20 = vld [vmem:[%s1957_s5 + $0x100] sm:$0xff]  ;;  %v394_v21 = vld [vmem:[%s1957_s5 + $0x110] sm:$0xff] }
  0x3f   : > { %377 = vst [vmem:[%s1962_s6 + $0x40] sm:$0xff] %v376_v12  ;;  %v396_v22 = vld [vmem:[%s1957_s5 + $0x120] sm:$0xff]  ;;  %v398_v23 = vld [vmem:[%s1957_s5 + $0x130] sm:$0xff] }
  0x40   : > { %379 = vst [vmem:[%s1962_s6 + $0x48] sm:$0xff] %v378_v13  ;;  %v400_v24 = vld [vmem:[%s1957_s5 + $0x140] sm:$0xff]  ;;  %v402_v25 = vld [vmem:[%s1957_s5 + $0x150] sm:$0xff] }
  0x41   : > { %381 = vst [vmem:[%s1962_s6 + $0x50] sm:$0xff] %v380_v14  ;;  %v404_v26 = vld [vmem:[%s1957_s5 + $0x160] sm:$0xff]  ;;  %v406_v27 = vld [vmem:[%s1957_s5 + $0x170] sm:$0xff] }
  0x42   : > { %383 = vst [vmem:[%s1962_s6 + $0x58] sm:$0xff] %v382_v15  ;;  %v408_v28 = vld [vmem:[%s1957_s5 + $0x180] sm:$0xff]  ;;  %v410_v29 = vld [vmem:[%s1957_s5 + $0x190] sm:$0xff] }
  0x43   : > { %385 = vst [vmem:[%s1962_s6 + $0x60] sm:$0xff] %v384_v16  ;;  %v412_v30 = vld [vmem:[%s1957_s5 + $0x1a0] sm:$0xff]  ;;  %v414_v31 = vld [vmem:[%s1957_s5 + $0x1b0] sm:$0xff] }
  0x44   : > { %387 = vst [vmem:[%s1962_s6 + $0x68] sm:$0xff] %v386_v17  ;;  %v416_v32 = vld [vmem:[%s1957_s5 + $0x1c0] sm:$0xff]  ;;  %v418_v33 = vld [vmem:[%s1957_s5 + $0x1d0] sm:$0xff] }
  0x45   : > { %389 = vst [vmem:[%s1962_s6 + $0x70] sm:$0xff] %v388_v18  ;;  %v420_v34 = vld [vmem:[%s1957_s5 + $0x1e0] sm:$0xff]  ;;  %v422_v35 = vld [vmem:[%s1957_s5 + $0x1f0] sm:$0xff] }
  0x46   : > { %391 = vst [vmem:[%s1962_s6 + $0x78] sm:$0xff] %v390_v19  ;;  %v424_v36 = vld [vmem:[%s1957_s5 + $0x200] sm:$0xff]  ;;  %v426_v37 = vld [vmem:[%s1957_s5 + $0x210] sm:$0xff] }
  0x47   : > { %393 = vst [vmem:[%s1962_s6 + $0x80] sm:$0xff] %v392_v20  ;;  %v428_v38 = vld [vmem:[%s1957_s5 + $0x220] sm:$0xff]  ;;  %v430_v39 = vld [vmem:[%s1957_s5 + $0x230] sm:$0xff] }
  0x48   : > { %395 = vst [vmem:[%s1962_s6 + $0x88] sm:$0xff] %v394_v21  ;;  %v432_v40 = vld [vmem:[%s1957_s5 + $0x240] sm:$0xff]  ;;  %v434_v41 = vld [vmem:[%s1957_s5 + $0x250] sm:$0xff] }
  0x49   : > { %397 = vst [vmem:[%s1962_s6 + $0x90] sm:$0xff] %v396_v22  ;;  %v436_v42 = vld [vmem:[%s1957_s5 + $0x260] sm:$0xff]  ;;  %v438_v43 = vld [vmem:[%s1957_s5 + $0x270] sm:$0xff] }
  0x4a   : > { %399 = vst [vmem:[%s1962_s6 + $0x98] sm:$0xff] %v398_v23  ;;  %v440_v44 = vld [vmem:[%s1957_s5 + $0x280] sm:$0xff]  ;;  %v442_v45 = vld [vmem:[%s1957_s5 + $0x290] sm:$0xff] }
  0x4b   : > { %401 = vst [vmem:[%s1962_s6 + $0xa0] sm:$0xff] %v400_v24  ;;  %v444_v46 = vld [vmem:[%s1957_s5 + $0x2a0] sm:$0xff]  ;;  %v446_v47 = vld [vmem:[%s1957_s5 + $0x2b0] sm:$0xff] }
  0x4c   : > { %403 = vst [vmem:[%s1962_s6 + $0xa8] sm:$0xff] %v402_v25  ;;  %v448_v48 = vld [vmem:[%s1957_s5 + $0x2c0] sm:$0xff]  ;;  %v450_v49 = vld [vmem:[%s1957_s5 + $0x2d0] sm:$0xff] }
  0x4d   : > { %405 = vst [vmem:[%s1962_s6 + $0xb0] sm:$0xff] %v404_v26  ;;  %v452_v50 = vld [vmem:[%s1957_s5 + $0x2e0] sm:$0xff]  ;;  %v454_v51 = vld [vmem:[%s1957_s5 + $0x2f0] sm:$0xff] }
  0x4e   : > { %407 = vst [vmem:[%s1962_s6 + $0xb8] sm:$0xff] %v406_v27  ;;  %v456_v52 = vld [vmem:[%s1957_s5 + $0x300] sm:$0xff]  ;;  %v458_v53 = vld [vmem:[%s1957_s5 + $0x310] sm:$0xff] }
  0x4f   : > { %409 = vst [vmem:[%s1962_s6 + $0xc0] sm:$0xff] %v408_v28  ;;  %v460_v54 = vld [vmem:[%s1957_s5 + $0x320] sm:$0xff]  ;;  %v462_v55 = vld [vmem:[%s1957_s5 + $0x330] sm:$0xff] }
  0x50   : > { %411 = vst [vmem:[%s1962_s6 + $0xc8] sm:$0xff] %v410_v29  ;;  %v464_v56 = vld [vmem:[%s1957_s5 + $0x340] sm:$0xff]  ;;  %v466_v57 = vld [vmem:[%s1957_s5 + $0x350] sm:$0xff] }
  0x51   : > { %413 = vst [vmem:[%s1962_s6 + $0xd0] sm:$0xff] %v412_v30  ;;  %v468_v58 = vld [vmem:[%s1957_s5 + $0x360] sm:$0xff]  ;;  %v470_v59 = vld [vmem:[%s1957_s5 + $0x370] sm:$0xff] }
  0x52   : > { %415 = vst [vmem:[%s1962_s6 + $0xd8] sm:$0xff] %v414_v31  ;;  %v472_v60 = vld [vmem:[%s1957_s5 + $0x380] sm:$0xff]  ;;  %v474_v61 = vld [vmem:[%s1957_s5 + $0x390] sm:$0xff] }
  0x53   : > { %417 = vst [vmem:[%s1962_s6 + $0xe0] sm:$0xff] %v416_v32  ;;  %v476_v62 = vld [vmem:[%s1957_s5 + $0x3a0] sm:$0xff]  ;;  %v478_v63 = vld [vmem:[%s1957_s5 + $0x3b0] sm:$0xff] }
  0x54   : > { %419 = vst [vmem:[%s1962_s6 + $0xe8] sm:$0xff] %v418_v33  ;;  %v480_v0 = vld [vmem:[%s1957_s5 + $0x3c0] sm:$0xff]  ;;  %v482_v1 = vld [vmem:[%s1957_s5 + $0x3d0] sm:$0xff] }
  0x55   : > { %421 = vst [vmem:[%s1962_s6 + $0xf0] sm:$0xff] %v420_v34  ;;  %v484_v2 = vld [vmem:[%s1957_s5 + $0x3e0] sm:$0xff]  ;;  %v486_v3 = vld [vmem:[%s1957_s5 + $0x3f0] sm:$0xff] }
  0x56   : > { %423 = vst [vmem:[%s1962_s6 + $0xf8] sm:$0xff] %v422_v35 }
  0x57   : > { %425 = vst [vmem:[%s1962_s6 + $0x100] sm:$0xff] %v424_v36 }
  0x58   : > { %427 = vst [vmem:[%s1962_s6 + $0x108] sm:$0xff] %v426_v37 }
  0x59   : > { %429 = vst [vmem:[%s1962_s6 + $0x110] sm:$0xff] %v428_v38 }
  0x5a   : > { %431 = vst [vmem:[%s1962_s6 + $0x118] sm:$0xff] %v430_v39 }
  0x5b   : > { %433 = vst [vmem:[%s1962_s6 + $0x120] sm:$0xff] %v432_v40 }
  0x5c   : > { %435 = vst [vmem:[%s1962_s6 + $0x128] sm:$0xff] %v434_v41 }
  0x5d   : > { %437 = vst [vmem:[%s1962_s6 + $0x130] sm:$0xff] %v436_v42 }
  0x5e   : > { %439 = vst [vmem:[%s1962_s6 + $0x138] sm:$0xff] %v438_v43 }
  0x5f   : > { %441 = vst [vmem:[%s1962_s6 + $0x140] sm:$0xff] %v440_v44 }
  0x60   : > { %443 = vst [vmem:[%s1962_s6 + $0x148] sm:$0xff] %v442_v45 }
  0x61   : > { %445 = vst [vmem:[%s1962_s6 + $0x150] sm:$0xff] %v444_v46 }
  0x62   : > { %447 = vst [vmem:[%s1962_s6 + $0x158] sm:$0xff] %v446_v47 }
  0x63   : > { %449 = vst [vmem:[%s1962_s6 + $0x160] sm:$0xff] %v448_v48 }
  0x64   : > { %451 = vst [vmem:[%s1962_s6 + $0x168] sm:$0xff] %v450_v49 }
  0x65   : > { %453 = vst [vmem:[%s1962_s6 + $0x170] sm:$0xff] %v452_v50 }
  0x66   : > { %455 = vst [vmem:[%s1962_s6 + $0x178] sm:$0xff] %v454_v51 }
  0x67   : > { %457 = vst [vmem:[%s1962_s6 + $0x180] sm:$0xff] %v456_v52 }
  0x68   : > { %459 = vst [vmem:[%s1962_s6 + $0x188] sm:$0xff] %v458_v53 }
  0x69   : > { %461 = vst [vmem:[%s1962_s6 + $0x190] sm:$0xff] %v460_v54 }
  0x6a   : > { %463 = vst [vmem:[%s1962_s6 + $0x198] sm:$0xff] %v462_v55 }
  0x6b   : > { %465 = vst [vmem:[%s1962_s6 + $0x1a0] sm:$0xff] %v464_v56 }
  0x6c   : > { %467 = vst [vmem:[%s1962_s6 + $0x1a8] sm:$0xff] %v466_v57 }
  0x6d   : > { %469 = vst [vmem:[%s1962_s6 + $0x1b0] sm:$0xff] %v468_v58 }
  0x6e   : > { %471 = vst [vmem:[%s1962_s6 + $0x1b8] sm:$0xff] %v470_v59 }
  0x6f   : > { %473 = vst [vmem:[%s1962_s6 + $0x1c0] sm:$0xff] %v472_v60 }
  0x70   : > { %475 = vst [vmem:[%s1962_s6 + $0x1c8] sm:$0xff] %v474_v61 }
  0x71   : > { %477 = vst [vmem:[%s1962_s6 + $0x1d0] sm:$0xff] %v476_v62 }
  0x72   : > { %479 = vst [vmem:[%s1962_s6 + $0x1d8] sm:$0xff] %v478_v63 }
  0x73   : > { %481 = vst [vmem:[%s1962_s6 + $0x1e0] sm:$0xff] %v480_v0 }
  0x74   : > { %483 = vst [vmem:[%s1962_s6 + $0x1e8] sm:$0xff] %v482_v1 }
  0x75   : > { %485 = vst [vmem:[%s1962_s6 + $0x1f0] sm:$0xff] %v484_v2 }
  0x76   : > { %487 = vst [vmem:[%s1962_s6 + $0x1f8] sm:$0xff] %v486_v3 }
  0x77 PF: > { %p1290_p0 = scmp.ge.s32.totalorder %s1820_s22, 1  ;;  %p500_p1 = scmp.lt.s32.totalorder %s1820_s22, 11 }
  0x79   : > { %p501_p2 = pnand %p1290_p0, %p500_p1 }
  0x7a   : > { %s507_s0 = sand.u32 (!%p501_p2), 1, %s1796_s16   ;;  %s514_s23 = sand.u32 (!%p501_p2), 1, %s1788_s14  }
  0x7b   : > { %504 = sbr.rel (%p501_p2) target bundleno = 377 (0x179), region = 85  ;;  %s1291_s28 = sshll.u32 (!%p501_p2), %s507_s0, 5 }
  0x7c   : > { %s1292_s7 = sshll.u32 (!%p501_p2), %s514_s23, 9  ;;  %s541_s11 = sand.u32 (!%p501_p2), 1, %s1780_s12  }
  0x7d   : > { %s1294_s26 = sshll.u32 (!%p501_p2), %s1808_s19, 1  ;;  %s1293_s29 = sshll.u32 (!%p501_p2), %s541_s11, 4 }
  0x7e   : > { %p549_p3 = scmp.lt.s32.totalorder (!%p501_p2), %s1294_s26, 3  ;;  %s2101_s6 = scalar_lea.vmem (!%p501_p2), [#allocation3], %s1291_s28 }
  0x7f   : > { %s2103_s1 = scalar_lea.vmem (!%p501_p2), [#allocation4], %s1292_s7  ;;  %s2105_s25 = scalar_lea.vmem (!%p501_p2), [#allocation5], %s1293_s29 }
  0x80   : > { %s2340_s26 = smov (!%p549_p3, %s1294_s26), 3  ;;  %p1295_p4 = scmp.ne.s32.totalorder %s1804_s18, 0 }
  0x81   : > { %s551_s5 = scalar_lea.vmem %s2311_s2, %s2340_s26 }
  0x82   : > { %558 = sbr.rel (%p1295_p4) target bundleno = 140 (0x8c), region = 97 }
  0x87   : > { %v1822_v4 = vmov 0.0  }
  0x88   : > { %559 = vst [vmem:[#allocation2 + $0x10] sm:$0xff] %v1822_v4 }
  0x89   : > { %560 = vst [vmem:[#allocation2] sm:$0xff] %v1822_v4 }
  0x8a   : > { %561 = vst [vmem:[#allocation2 + $0x18] sm:$0xff] %v1822_v4 }
  0x8b   : > { %562 = vst [vmem:[#allocation2 + $0x8] sm:$0xff] %v1822_v4 }
  0x8c PF: > { %v1370_v5 = vld [vmem:[%s2103_s1 + $0x70] sm:$0xf]  ;;  %v1595_v6 = vld [vmem:[%s2103_s1 + $0x74] sm:$0xf0]  ;;  %v1362_v16 = vld [vmem:[%s2103_s1 + $0x60] sm:$0xf] }
  0x8d   : > { %v1434_v7 = vld [vmem:[%s2103_s1 + $0xf0] sm:$0xf]  ;;  %v1371_v8 = vor.u32 %v1595_v6, %v1370_v5  ;;  %v1611_v9 = vld [vmem:[%s2103_s1 + $0xf4] sm:$0xf0]  ;;  %v1593_v18 = vld [vmem:[%s2103_s1 + $0x64] sm:$0xf0] }
  0x8e   : > { %v1498_v10 = vld [vmem:[%s2103_s1 + $0x170] sm:$0xf]  ;;  %v1627_v11 = vld [vmem:[%s2103_s1 + $0x174] sm:$0xf0]  ;;  %v1435_v12 = vor.u32 %v1611_v9, %v1434_v7  ;;  %v1426_v19 = vld [vmem:[%s2103_s1 + $0xe0] sm:$0xf]  ;;  %v1363_v21 = vor.u32 %v1593_v18, %v1362_v16 }
  0x8f   : > { %v1499_v13 = vor.u32 %v1627_v11, %v1498_v10  ;;  %v1562_v14 = vld [vmem:[%s2103_s1 + $0x1f0] sm:$0xf]  ;;  %v1643_v15 = vld [vmem:[%s2103_s1 + $0x1f4] sm:$0xf0]  ;;  %975 = vmatpush.bf16.msra.mxu0 %v1371_v8  ;;  %v1609_v20 = vld [vmem:[%s2103_s1 + $0xe4] sm:$0xf0] }
  0x90   : > { %v1563_v17 = vor.u32 %v1643_v15, %v1562_v14  ;;  %989 = vmatpush.bf16.msra.mxu1 %v1435_v12  ;;  %v1427_v22 = vor.u32 %v1609_v20, %v1426_v19  ;;  %v1490_v23 = vld [vmem:[%s2103_s1 + $0x160] sm:$0xf]  ;;  %v1625_v24 = vld [vmem:[%s2103_s1 + $0x164] sm:$0xf0]  ;;  %v1354_v28 = vld [vmem:[%s2103_s1 + $0x50] sm:$0xf] }
  0x91   : > { %1003 = vmatpush.bf16.msra.mxu2 %v1499_v13  ;;  %v1554_v25 = vld [vmem:[%s2103_s1 + $0x1e0] sm:$0xf]  ;;  %v1491_v26 = vor.u32 %v1625_v24, %v1490_v23  ;;  %v1641_v27 = vld [vmem:[%s2103_s1 + $0x1e4] sm:$0xf0]  ;;  %v1591_v29 = vld [vmem:[%s2103_s1 + $0x54] sm:$0xf0] }
  0x92   : > { %1017 = vmatpush.bf16.msra.mxu3 %v1563_v17  ;;  %v1555_v30 = vor.u32 %v1641_v27, %v1554_v25  ;;  %v1418_v31 = vld [vmem:[%s2103_s1 + $0xd0] sm:$0xf]  ;;  %v1607_v32 = vld [vmem:[%s2103_s1 + $0xd4] sm:$0xf0]  ;;  %v1355_v34 = vor.u32 %v1591_v29, %v1354_v28  ;;  %v1346_v40 = vld [vmem:[%s2103_s1 + $0x40] sm:$0xf] }
  0x93   : > { %v1482_v33 = vld [vmem:[%s2103_s1 + $0x150] sm:$0xf]  ;;  %976 = vmatpush.bf16.msra.mxu0 %v1363_v21  ;;  %v1623_v35 = vld [vmem:[%s2103_s1 + $0x154] sm:$0xf0]  ;;  %v1419_v38 = vor.u32 %v1607_v32, %v1418_v31  ;;  %v1589_v41 = vld [vmem:[%s2103_s1 + $0x44] sm:$0xf0] }
  0x94   : > { %v1546_v36 = vld [vmem:[%s2103_s1 + $0x1d0] sm:$0xf]  ;;  %v1639_v37 = vld [vmem:[%s2103_s1 + $0x1d4] sm:$0xf0]  ;;  %990 = vmatpush.bf16.msra.mxu1 %v1427_v22  ;;  %v1483_v39 = vor.u32 %v1623_v35, %v1482_v33  ;;  %v1410_v42 = vld [vmem:[%s2103_s1 + $0xc0] sm:$0xf]  ;;  %v1347_v49 = vor.u32 %v1589_v41, %v1346_v40 }
  0x95   : > { %1004 = vmatpush.bf16.msra.mxu2 %v1491_v26  ;;  %v1547_v43 = vor.u32 %v1639_v37, %v1546_v36  ;;  %v1605_v44 = vld [vmem:[%s2103_s1 + $0xc4] sm:$0xf0]  ;;  %v1474_v45 = vld [vmem:[%s2103_s1 + $0x140] sm:$0xf]  ;;  %v1338_v52 = vld [vmem:[%s2103_s1 + $0x30] sm:$0xf] }
  0x96   : > { %1018 = vmatpush.bf16.msra.mxu3 %v1555_v30  ;;  %v1621_v46 = vld [vmem:[%s2103_s1 + $0x144] sm:$0xf0]  ;;  %v1538_v47 = vld [vmem:[%s2103_s1 + $0x1c0] sm:$0xf]  ;;  %v1411_v50 = vor.u32 %v1605_v44, %v1410_v42  ;;  %v1587_v53 = vld [vmem:[%s2103_s1 + $0x34] sm:$0xf0] }
  0x97   : > { %v1637_v48 = vld [vmem:[%s2103_s1 + $0x1c4] sm:$0xf0]  ;;  %977 = vmatpush.bf16.msra.mxu0 %v1355_v34  ;;  %v1475_v51 = vor.u32 %v1621_v46, %v1474_v45  ;;  %v1402_v54 = vld [vmem:[%s2103_s1 + $0xb0] sm:$0xf]  ;;  %v1603_v56 = vld [vmem:[%s2103_s1 + $0xb4] sm:$0xf0]  ;;  %v1339_v61 = vor.u32 %v1587_v53, %v1338_v52 }
  0x98   : > { %991 = vmatpush.bf16.msra.mxu1 %v1419_v38  ;;  %v1539_v55 = vor.u32 %v1637_v48, %v1538_v47  ;;  %v1466_v57 = vld [vmem:[%s2103_s1 + $0x130] sm:$0xf]  ;;  %v1619_v58 = vld [vmem:[%s2103_s1 + $0x134] sm:$0xf0]  ;;  %v1403_v62 = vor.u32 %v1603_v56, %v1402_v54  ;;  %v1330_v0 = vld [vmem:[%s2103_s1 + $0x20] sm:$0xf] }
  0x99   : > { %1005 = vmatpush.bf16.msra.mxu2 %v1483_v39  ;;  %v1530_v59 = vld [vmem:[%s2103_s1 + $0x1b0] sm:$0xf]  ;;  %v1635_v60 = vld [vmem:[%s2103_s1 + $0x1b4] sm:$0xf0]  ;;  %v1467_v63 = vor.u32 %v1619_v58, %v1466_v57  ;;  %v1585_v1 = vld [vmem:[%s2103_s1 + $0x24] sm:$0xf0] }
  0x9a   : > { %1019 = vmatpush.bf16.msra.mxu3 %v1547_v43  ;;  %v1394_v2 = vld [vmem:[%s2103_s1 + $0xa0] sm:$0xf]  ;;  %v1531_v3 = vor.u32 %v1635_v60, %v1530_v59  ;;  %v1601_v4 = vld [vmem:[%s2103_s1 + $0xa4] sm:$0xf0]  ;;  %v1331_v9 = vor.u32 %v1585_v1, %v1330_v0  ;;  %v1322_v12 = vld [vmem:[%s2103_s1 + $0x10] sm:$0xf] }
  0x9b   : > { %978 = vmatpush.bf16.msra.mxu0 %v1347_v49  ;;  %v1458_v5 = vld [vmem:[%s2103_s1 + $0x120] sm:$0xf]  ;;  %v1617_v6 = vld [vmem:[%s2103_s1 + $0x124] sm:$0xf0]  ;;  %v1395_v10 = vor.u32 %v1601_v4, %v1394_v2  ;;  %v1583_v13 = vld [vmem:[%s2103_s1 + $0x14] sm:$0xf0] }
  0x9c   : > { %992 = vmatpush.bf16.msra.mxu1 %v1411_v50  ;;  %v1522_v7 = vld [vmem:[%s2103_s1 + $0x1a0] sm:$0xf]  ;;  %v1633_v8 = vld [vmem:[%s2103_s1 + $0x1a4] sm:$0xf0]  ;;  %v1459_v11 = vor.u32 %v1617_v6, %v1458_v5  ;;  %v1386_v14 = vld [vmem:[%s2103_s1 + $0x90] sm:$0xf]  ;;  %v1323_v22 = vor.u32 %v1583_v13, %v1322_v12 }
  0x9d   : > { %1006 = vmatpush.bf16.msra.mxu2 %v1475_v51  ;;  %v1523_v15 = vor.u32 %v1633_v8, %v1522_v7  ;;  %v1599_v16 = vld [vmem:[%s2103_s1 + $0x94] sm:$0xf0]  ;;  %v1450_v17 = vld [vmem:[%s2103_s1 + $0x110] sm:$0xf]  ;;  %v1314_v21 = vld [vmem:[%s2103_s1] sm:$0xf] }
  0x9e   : > { %1020 = vmatpush.bf16.msra.mxu3 %v1539_v55  ;;  %v1615_v18 = vld [vmem:[%s2103_s1 + $0x114] sm:$0xf0]  ;;  %v1514_v19 = vld [vmem:[%s2103_s1 + $0x190] sm:$0xf]  ;;  %v1581_v23 = vld [vmem:[%s2103_s1 + $0x4] sm:$0xf0]  ;;  %v1387_v26 = vor.u32 %v1599_v16, %v1386_v14 }
  0x9f   : > { %979 = vmatpush.bf16.msra.mxu0 %v1339_v61  ;;  %v1631_v20 = vld [vmem:[%s2103_s1 + $0x194] sm:$0xf0]  ;;  %v1378_v24 = vld [vmem:[%s2103_s1 + $0x80] sm:$0xf]  ;;  %v1597_v25 = vld [vmem:[%s2103_s1 + $0x84] sm:$0xf0]  ;;  %v1451_v27 = vor.u32 %v1615_v18, %v1450_v17  ;;  %v1315_v38 = vor.u32 %v1581_v23, %v1314_v21 }
  0xa0   : > { %993 = vmatpush.bf16.msra.mxu1 %v1403_v62  ;;  %v1442_v28 = vld [vmem:[%s2103_s1 + $0x100] sm:$0xf]  ;;  %v1613_v29 = vld [vmem:[%s2103_s1 + $0x104] sm:$0xf0]  ;;  %v1515_v31 = vor.u32 %v1631_v20, %v1514_v19  ;;  %v1594_v33 = vld [vmem:[%s2103_s1 + $0x74] sm:$0xf]  ;;  %v1379_v42 = vor.u32 %v1597_v25, %v1378_v24 }
  0xa1   : > { %1007 = vmatpush.bf16.msra.mxu2 %v1467_v63  ;;  %v1506_v30 = vld [vmem:[%s2103_s1 + $0x180] sm:$0xf]  ;;  %v1629_v32 = vld [vmem:[%s2103_s1 + $0x184] sm:$0xf0]  ;;  %v1372_v34 = vld [vmem:[%s2103_s1 + $0x78] sm:$0xf0]  ;;  %v1443_v43 = vor.u32 %v1613_v29, %v1442_v28 }
  0xa2   : > { %1021 = vmatpush.bf16.msra.mxu3 %v1531_v3  ;;  %v1610_v35 = vld [vmem:[%s2103_s1 + $0xf4] sm:$0xf]  ;;  %v1436_v36 = vld [vmem:[%s2103_s1 + $0xf8] sm:$0xf0]  ;;  %v1592_v44 = vld [vmem:[%s2103_s1 + $0x64] sm:$0xf]  ;;  %v1507_v48 = vor.u32 %v1629_v32, %v1506_v30  ;;  %v1375_v49 = vor.u32 %v1594_v33, %v1372_v34 }
  0xa3   : > { %980 = vmatpush.bf16.msra.mxu0 %v1331_v9  ;;  %v1626_v37 = vld [vmem:[%s2103_s1 + $0x174] sm:$0xf]  ;;  %v1500_v39 = vld [vmem:[%s2103_s1 + $0x178] sm:$0xf0]  ;;  %v1364_v45 = vld [vmem:[%s2103_s1 + $0x68] sm:$0xf0]  ;;  %v1439_v54 = vor.u32 %v1610_v35, %v1436_v36 }
  0xa4   : > { %994 = vmatpush.bf16.msra.mxu1 %v1395_v10  ;;  %v1642_v40 = vld [vmem:[%s2103_s1 + $0x1f4] sm:$0xf]  ;;  %v1564_v41 = vld [vmem:[%s2103_s1 + $0x1f8] sm:$0xf0]  ;;  %v1306_v46 = vld [vmem:[%s2101_s6 + $0x8] sm:$0xf]  ;;  %v1503_v55 = vor.u32 %v1626_v37, %v1500_v39  ;;  %v1367_v4 = vor.u32 %v1592_v44, %v1364_v45 }
  0xa5   : > { %1008 = vmatpush.bf16.msra.mxu2 %v1459_v11  ;;  %v1579_v47 = vld [vmem:[%s2101_s6 + $0x14] sm:$0xf0]  ;;  %v1608_v50 = vld [vmem:[%s2103_s1 + $0xe4] sm:$0xf]  ;;  %v1428_v51 = vld [vmem:[%s2103_s1 + $0xe8] sm:$0xf0]  ;;  %v1567_v59 = vor.u32 %v1642_v40, %v1564_v41 }
  0xa6   : > { %1022 = vmatpush.bf16.msra.mxu3 %v1523_v15  ;;  %v1624_v52 = vld [vmem:[%s2103_s1 + $0x164] sm:$0xf]  ;;  %v1492_v53 = vld [vmem:[%s2103_s1 + $0x168] sm:$0xf0]  ;;  %v1308_v57 = vld [vmem:[%s2101_s6 + $0x18] sm:$0xf0]  ;;  %v2191_v60 = vor.u32 %v1579_v47, %v1306_v46  ;;  %v1431_v6 = vor.u32 %v1608_v50, %v1428_v51 }
  0xa7   : > { %981 = vmatpush.bf16.msra.mxu0 %v1323_v22  ;;  %v1577_v56 = vld [vmem:[%s2101_s6 + $0xc] sm:$0xf]  ;;  %v1298_v58 = vld [vmem:[%s2101_s6] sm:$0xf]  ;;  %v1578_v61 = vld [vmem:[%s2101_s6 + $0xc] sm:$0xf0]  ;;  %v1495_v7 = vor.u32 %v1624_v52, %v1492_v53 }
  0xa8   : > { %995 = vmatpush.bf16.msra.mxu1 %v1387_v26  ;;  %v1576_v62 = vld [vmem:[%s2101_s6 + $0x4] sm:$0xf]  ;;  %v1300_v63 = vld [vmem:[%s2101_s6 + $0x10] sm:$0xf0]  ;;  %v1556_v1 = vld [vmem:[%s2103_s1 + $0x1e8] sm:$0xf0]  ;;  %v2198_v2 = vor.u32 %v1577_v56, %v1308_v57  ;;  %v2200_v3 = vor.u32 %v1578_v61, %v1298_v58 }
  0xa9   : > { %1009 = vmatpush.bf16.msra.mxu2 %v1451_v27  ;;  %v1640_v0 = vld [vmem:[%s2103_s1 + $0x1e4] sm:$0xf]  ;;  %v2202_v5 = vor.u32 %v1576_v62, %v1300_v63  ;;  %v1590_v8 = vld [vmem:[%s2103_s1 + $0x54] sm:$0xf]  ;;  %v1356_v9 = vld [vmem:[%s2103_s1 + $0x58] sm:$0xf0] }
  0xaa   : > { %1023 = vmatpush.bf16.msra.mxu3 %v1515_v31  ;;  %v1606_v10 = vld [vmem:[%s2103_s1 + $0xd4] sm:$0xf]  ;;  %v1559_v11 = vor.u32 %v1640_v0, %v1556_v1  ;;  %v1420_v12 = vld [vmem:[%s2103_s1 + $0xd8] sm:$0xf0]  ;;  %v1359_v17 = vor.u32 %v1590_v8, %v1356_v9  ;;  %v1588_v20 = vld [vmem:[%s2103_s1 + $0x44] sm:$0xf] }
  0xab   : > { %982 = vmatpush.bf16.msra.mxu0 %v1315_v38  ;;  %v1622_v13 = vld [vmem:[%s2103_s1 + $0x154] sm:$0xf]  ;;  %v1484_v14 = vld [vmem:[%s2103_s1 + $0x158] sm:$0xf0]  ;;  %v1423_v18 = vor.u32 %v1606_v10, %v1420_v12  ;;  %v1348_v21 = vld [vmem:[%s2103_s1 + $0x48] sm:$0xf0] }
  0xac   : > { %996 = vmatpush.bf16.msra.mxu1 %v1379_v42  ;;  %v1638_v15 = vld [vmem:[%s2103_s1 + $0x1d4] sm:$0xf]  ;;  %v1548_v16 = vld [vmem:[%s2103_s1 + $0x1d8] sm:$0xf0]  ;;  %v1487_v19 = vor.u32 %v1622_v13, %v1484_v14  ;;  %v1604_v22 = vld [vmem:[%s2103_s1 + $0xc4] sm:$0xf]  ;;  %v1351_v29 = vor.u32 %v1588_v20, %v1348_v21 }
  0xad   : > { %1010 = vmatpush.bf16.msra.mxu2 %v1443_v43  ;;  %v1551_v23 = vor.u32 %v1638_v15, %v1548_v16  ;;  %v1412_v24 = vld [vmem:[%s2103_s1 + $0xc8] sm:$0xf0]  ;;  %v1620_v25 = vld [vmem:[%s2103_s1 + $0x144] sm:$0xf]  ;;  %v1586_v32 = vld [vmem:[%s2103_s1 + $0x34] sm:$0xf] }
  0xae   : > { %1024 = vmatpush.bf16.msra.mxu3 %v1507_v48  ;;  %983 = vmatmul.bf16.vlgmr.msra.gmra.mxu0 %v2200_v3  ;;  %v1476_v26 = vld [vmem:[%s2103_s1 + $0x148] sm:$0xf0]  ;;  %v1636_v27 = vld [vmem:[%s2103_s1 + $0x1c4] sm:$0xf]  ;;  %v1415_v30 = vor.u32 %v1604_v22, %v1412_v24  ;;  %v1340_v33 = vld [vmem:[%s2103_s1 + $0x38] sm:$0xf0] }
  0xaf   : > { %1031 = vmatpush.bf16.msrb.mxu0 %v1375_v49  ;;  %997 = vmatmul.bf16.vlgmr.msra.gmra.mxu1 %v2202_v5  ;;  %v1540_v28 = vld [vmem:[%s2103_s1 + $0x1c8] sm:$0xf0]  ;;  %v1479_v31 = vor.u32 %v1620_v25, %v1476_v26  ;;  %v1602_v34 = vld [vmem:[%s2103_s1 + $0xb4] sm:$0xf]  ;;  %v1404_v36 = vld [vmem:[%s2103_s1 + $0xb8] sm:$0xf0]  ;;  %v1343_v41 = vor.u32 %v1586_v32, %v1340_v33 }
  0xb0   : > { %1045 = vmatpush.bf16.msrb.mxu1 %v1439_v54  ;;  %1011 = vmatmul.bf16.vlgmr.msra.gmra.mxu2 %v2191_v60  ;;  %v1543_v35 = vor.u32 %v1636_v27, %v1540_v28  ;;  %v1618_v37 = vld [vmem:[%s2103_s1 + $0x134] sm:$0xf]  ;;  %v1468_v38 = vld [vmem:[%s2103_s1 + $0x138] sm:$0xf0]  ;;  %v1407_v42 = vor.u32 %v1602_v34, %v1404_v36  ;;  %v1584_v44 = vld [vmem:[%s2103_s1 + $0x24] sm:$0xf] }
  0xb1   : > { %1059 = vmatpush.bf16.msrb.mxu2 %v1503_v55  ;;  %1025 = vmatmul.bf16.vlgmr.msra.gmra.mxu3 %v2198_v2  ;;  %v1634_v39 = vld [vmem:[%s2103_s1 + $0x1b4] sm:$0xf]  ;;  %v1532_v40 = vld [vmem:[%s2103_s1 + $0x1b8] sm:$0xf0]  ;;  %v1471_v43 = vor.u32 %v1618_v37, %v1468_v38  ;;  %v1332_v45 = vld [vmem:[%s2103_s1 + $0x28] sm:$0xf0] }
  0xb2   : > { %1073 = vmatpush.bf16.msrb.mxu3 %v1567_v59  ;;  %v1600_v46 = vld [vmem:[%s2103_s1 + $0xa4] sm:$0xf]  ;;  %v1535_v47 = vor.u32 %v1634_v39, %v1532_v40  ;;  %v1396_v48 = vld [vmem:[%s2103_s1 + $0xa8] sm:$0xf0]  ;;  %v1335_v53 = vor.u32 %v1584_v44, %v1332_v45  ;;  %v1582_v56 = vld [vmem:[%s2103_s1 + $0x14] sm:$0xf] }
  0xb3   : > { %1032 = vmatpush.bf16.msrb.mxu0 %v1367_v4  ;;  %v1616_v49 = vld [vmem:[%s2103_s1 + $0x124] sm:$0xf]  ;;  %v1460_v50 = vld [vmem:[%s2103_s1 + $0x128] sm:$0xf0]  ;;  %v1399_v54 = vor.u32 %v1600_v46, %v1396_v48  ;;  %v1324_v57 = vld [vmem:[%s2103_s1 + $0x18] sm:$0xf0] }
  0xb4   : > { %1046 = vmatpush.bf16.msrb.mxu1 %v1431_v6  ;;  %v1632_v51 = vld [vmem:[%s2103_s1 + $0x1a4] sm:$0xf]  ;;  %v1524_v52 = vld [vmem:[%s2103_s1 + $0x1a8] sm:$0xf0]  ;;  %v1463_v55 = vor.u32 %v1616_v49, %v1460_v50  ;;  %v1598_v58 = vld [vmem:[%s2103_s1 + $0x94] sm:$0xf]  ;;  %v1327_v4 = vor.u32 %v1582_v56, %v1324_v57 }
  0xb5   : > { %1060 = vmatpush.bf16.msrb.mxu2 %v1495_v7  ;;  %v1527_v59 = vor.u32 %v1632_v51, %v1524_v52  ;;  %v1388_v61 = vld [vmem:[%s2103_s1 + $0x98] sm:$0xf0]  ;;  %v1614_v62 = vld [vmem:[%s2103_s1 + $0x114] sm:$0xf]  ;;  %v1580_v8 = vld [vmem:[%s2103_s1 + $0x4] sm:$0xf] }
  0xb6   : > { %1074 = vmatpush.bf16.msrb.mxu3 %v1559_v11  ;;  %v1452_v63 = vld [vmem:[%s2103_s1 + $0x118] sm:$0xf0]  ;;  %v1630_v0 = vld [vmem:[%s2103_s1 + $0x194] sm:$0xf]  ;;  %v1391_v6 = vor.u32 %v1598_v58, %v1388_v61  ;;  %v1316_v9 = vld [vmem:[%s2103_s1 + $0x8] sm:$0xf0] }
  0xb7   : > { %1033 = vmatpush.bf16.msrb.mxu0 %v1359_v17  ;;  %v1516_v1 = vld [vmem:[%s2103_s1 + $0x198] sm:$0xf0]  ;;  %v1455_v7 = vor.u32 %v1614_v62, %v1452_v63  ;;  %v1596_v10 = vld [vmem:[%s2103_s1 + $0x84] sm:$0xf]  ;;  %v1380_v12 = vld [vmem:[%s2103_s1 + $0x88] sm:$0xf0]  ;;  %v1319_v17 = vor.u32 %v1580_v8, %v1316_v9 }
  0xb8   : > { %1047 = vmatpush.bf16.msrb.mxu1 %v1423_v18  ;;  %v1519_v11 = vor.u32 %v1630_v0, %v1516_v1  ;;  %v1612_v13 = vld [vmem:[%s2103_s1 + $0x104] sm:$0xf]  ;;  %v1444_v14 = vld [vmem:[%s2103_s1 + $0x108] sm:$0xf0]  ;;  %v1383_v18 = vor.u32 %v1596_v10, %v1380_v12  ;;  %v563_v27 = vld [vmem:[#allocation2 + $0x10] sm:$0xff]  ;;  %p1568_p5 = scmp.ne.s32.totalorder %s1804_s18, 4 }
  0xb9   : > { %1061 = vmatpush.bf16.msrb.mxu2 %v1487_v19  ;;  %v1628_v15 = vld [vmem:[%s2103_s1 + $0x184] sm:$0xf]  ;;  %v1508_v16 = vld [vmem:[%s2103_s1 + $0x188] sm:$0xf0]  ;;  %v1447_v19 = vor.u32 %v1612_v13, %v1444_v14  ;;  %v565_v34 = vld [vmem:[#allocation2 + $0x18] sm:$0xff] }
  0xba   : > { %1075 = vmatpush.bf16.msrb.mxu3 %v1551_v23  ;;  %v1511_v20 = vor.u32 %v1628_v15, %v1508_v16  ;;  %v566_v49 = vld [vmem:[#allocation2 + $0x8] sm:$0xff] }
  0xbb   : > { %1034 = vmatpush.bf16.msrb.mxu0 %v1351_v29 }
  0xbc   : > { %1048 = vmatpush.bf16.msrb.mxu1 %v1415_v30 }
  0xbd   : > { %1062 = vmatpush.bf16.msrb.mxu2 %v1479_v31 }
  0xbe   : > { %1076 = vmatpush.bf16.msrb.mxu3 %v1543_v35 }
  0xbf   : > { %1035 = vmatpush.bf16.msrb.mxu0 %v1343_v41  ;;  %v564_v41 = vld [vmem:[#allocation2] sm:$0xff] }
  0xc0   : > { %1049 = vmatpush.bf16.msrb.mxu1 %v1407_v42 }
  0xc1   : > { %1063 = vmatpush.bf16.msrb.mxu2 %v1471_v43 }
  0xc2   : > { %1077 = vmatpush.bf16.msrb.mxu3 %v1535_v47 }
  0xc3   : > { %1036 = vmatpush.bf16.msrb.mxu0 %v1335_v53 }
  0xc4   : > { %1050 = vmatpush.bf16.msrb.mxu1 %v1399_v54 }
  0xc5   : > { %1064 = vmatpush.bf16.msrb.mxu2 %v1463_v55 }
  0xc6   : > { %1078 = vmatpush.bf16.msrb.mxu3 %v1527_v59 }
  0xc7   : > { %1037 = vmatpush.bf16.msrb.mxu0 %v1327_v4 }
  0xc8   : > { %1051 = vmatpush.bf16.msrb.mxu1 %v1391_v6 }
  0xc9   : > { %1065 = vmatpush.bf16.msrb.mxu2 %v1455_v7 }
  0xca   : > { %1079 = vmatpush.bf16.msrb.mxu3 %v1519_v11 }
  0xcb   : > { %1038 = vmatpush.bf16.msrb.mxu0 %v1319_v17 }
  0xcc   : > { %1052 = vmatpush.bf16.msrb.mxu1 %v1383_v18 }
  0xcd   : > { %1066 = vmatpush.bf16.msrb.mxu2 %v1447_v19 }
  0xce   : > { %1080 = vmatpush.bf16.msrb.mxu3 %v1511_v20  ;;  %1039 = vmatmul.bf16.vlgmr.msrb.gmra.mxu0 %v2200_v3 }
  0xcf   : > { %1053 = vmatmul.bf16.vlgmr.msrb.gmra.mxu1 %v2202_v5 }
  0xd0   : > { %1067 = vmatmul.bf16.vlgmr.msrb.gmra.mxu2 %v2191_v60 }
  0xd1   : > { %1081 = vmatmul.bf16.vlgmr.msrb.gmra.mxu3 %v2198_v2 }
 0x12b   : > { %v984_v21 = vpop.f32.mrf.mxu0 }
 0x12c   : > { %v998_v22 = vpop.f32.mrf.mxu1 }
 0x12d   : > { %v999_v23 = vadd.f32 %v998_v22, %v984_v21 }
 0x133   : > { %v1012_v24 = vpop.f32.mrf.mxu2  ;;  %v986_v29 = vpop.f32.mrf.mxu0 }
 0x134   : > { %v1013_v25 = vadd.f32 %v1012_v24, %v999_v23  ;;  %v1026_v26 = vpop.f32.mrf.mxu3  ;;  %v1000_v30 = vpop.f32.mrf.mxu1 }
 0x135   : > { %v1001_v32 = vadd.f32 %v1000_v30, %v986_v29 }
 0x136   : > { %v1027_v28 = vadd.f32 %v1026_v26, %v1013_v25 }
 0x138   : > { %v1087_v31 = vadd.f32 %v1027_v28, %v563_v27 }
 0x13a   : > { %1091 = vst [vmem:[#allocation2 + $0x10] sm:$0xff] %v1087_v31 }
 0x13b   : > { %v1014_v3 = vpop.f32.mrf.mxu2 }
 0x13c   : > { %v1015_v33 = vadd.f32 %v1014_v3, %v1001_v32  ;;  %v1028_v5 = vpop.f32.mrf.mxu3 }
 0x13e   : > { %v1029_v60 = vadd.f32 %v1028_v5, %v1015_v33 }
 0x140   : > { %v1089_v35 = vadd.f32 %v1029_v60, %v565_v34 }
 0x142   : > { %1093 = vst [vmem:[#allocation2 + $0x18] sm:$0xff] %v1089_v35 }
 0x14b   : > { %v1040_v2 = vpop.f32.mrf.mxu0 }
 0x14c   : > { %v1054_v36 = vpop.f32.mrf.mxu1 }
 0x14d   : > { %v1055_v37 = vadd.f32 %v1054_v36, %v1040_v2 }
 0x153   : > { %v1068_v38 = vpop.f32.mrf.mxu2  ;;  %v1042_v43 = vpop.f32.mrf.mxu0 }
 0x154   : > { %v1069_v39 = vadd.f32 %v1068_v38, %v1055_v37  ;;  %v1082_v40 = vpop.f32.mrf.mxu3  ;;  %v1056_v44 = vpop.f32.mrf.mxu1 }
 0x155   : > { %v1057_v46 = vadd.f32 %v1056_v44, %v1042_v43 }
 0x156   : > { %v1083_v42 = vadd.f32 %v1082_v40, %v1069_v39 }
 0x158   : > { %v1088_v45 = vadd.f32 %v1083_v42, %v564_v41 }
 0x15a   : > { %1092 = vst [vmem:[#allocation2] sm:$0xff] %v1088_v45 }
 0x15b   : > { %v1070_v47 = vpop.f32.mrf.mxu2 }
 0x15c   : > { %v1071_v48 = vadd.f32 %v1070_v47, %v1057_v46  ;;  %v1084_v50 = vpop.f32.mrf.mxu3 }
 0x15e   : > { %v1085_v51 = vadd.f32 %v1084_v50, %v1071_v48  ;;  %1098 = sbr.rel (%p1568_p5) target bundleno = 369 (0x171), region = 101 }
 0x160   : > { %v1090_v52 = vadd.f32 %v1085_v51, %v566_v49 }
 0x162   : > { %1094 = vst [vmem:[#allocation2 + $0x8] sm:$0xff] %v1090_v52 }
 0x163   : > { %v1099_v53 = vld [vmem:[#allocation2 + $0x10] sm:$0xff]  ;;  %v1100_v54 = vld [vmem:[#allocation2] sm:$0xff]  ;;  %v1101_v58 = vld [vmem:[#allocation2 + $0x18] sm:$0xff] }
 0x164   : > { %v1103_v55 = vld [vmem:[%s551_s5] sm:$0x3] }
 0x165   : > { %v1105_v56 = vperm.slane %v1103_v55, 0  ;;  %v1106_v57 = vperm.slane %v1103_v55, 1 }
 0x167   : > { %v1109_v61 = vadd.f32 %v1105_v56, %v1099_v53  ;;  %v1110_v62 = vadd.f32 %v1106_v57, %v1100_v54  ;;  %v1111_v63 = vadd.f32 %v1105_v56, %v1101_v58 }
 0x169   : > { %v1102_v59 = vld [vmem:[#allocation2 + $0x8] sm:$0xff]  ;;  %v1113_v1 = vmax.f32 %v1109_v61, 0.0  ;;  %v1114_v4 = vmax.f32 %v1110_v62, 0.0  ;;  %v1115_v6 = vmax.f32 %v1111_v63, 0.0 }
 0x16a   : > { %v1112_v0 = vadd.f32 %v1106_v57, %v1102_v59 }
 0x16b   : > { %v1117_v8 = vpack.c.bf16 %v1114_v4, %v1113_v1 }
 0x16c   : > { %v1116_v7 = vmax.f32 %v1112_v0, 0.0 }
 0x16d   : > { %1119 = vst [vmem:[%s2105_s25] sm:$0xff] %v1117_v8 }
 0x16e   : > { %v1118_v9 = vpack.c.bf16 %v1116_v7, %v1115_v6 }
 0x170   : > { %1120 = vst [vmem:[%s2105_s25 + $0x8] sm:$0xff] %v1118_v9 }
 0x171 PF: > { %1127 = sbr.rel (!%p1937_p12) target bundleno = 377 (0x179), region = 105  ;;  %s1644_s14 = sshll.u32 (%p1937_p12), %s1808_s19, 3 }
 0x172   : > { %s1133_s0 = scalar_lea.vmem (%p1937_p12), %s2312_s3, %s1644_s14 }
 0x174   : > { %v1164_v10 = vld [vmem:[%s2105_s25] sm:$0xff] (%p1937_p12) }
 0x175   : > { %1165 = vst [vmem:[%s1133_s0] sm:$0xff] (%p1937_p12), %v1164_v10 }
 0x177   : > { %v1166_v11 = vld [vmem:[%s2105_s25 + $0x8] sm:$0xff] }
 0x178   : > { %1167 = vst [vmem:[%s1133_s0 + $0x10] sm:$0xff] %v1166_v11 }
 0x179 PF: > { %s13_s22 = sadd.s32 1, %s1820_s22   ;;  %s2322_s25 = sld [smem:[#allocation6_spill]] }
 0x17a   : > { %p10_p6 = scmp.ge.s32.totalorder %s13_s22, 12   ;;  %s2323_s12 = smov %s1784_s13 }
 0x17b   : > { %s2324_s13 = smov %s1935_s9  ;;  %s2325_s14 = smov %s1792_s15 }
 0x17c   : > { %s2326_s15 = smov %s1932_s8  ;;  %s2327_s16 = smov %s1800_s17 }
 0x17d   : > { %s2328_s17 = smov %s1918_s30  ;;  %s2329_s18 = smov %s1812_s20 }
 0x17e   : > { %s2330_s19 = smov %s1816_s21  ;;  %s2331_s20 = smov %s2334_s24 }
 0x17f   : > { %s2332_s21 = smov %s2322_s25  ;;  %12 = sbr.rel (!%p10_p6) target bundleno = 9 (0x9), region = 185 }

// kernel: custom_cnn_pro_forward.29
= control target key start
LH: loop header
LB: loop body
LE: loop exit
PB: predicated region body
PF: predicated region fallthrough
CT: control target
= control target key end

     0   :  { %s2309_s0 = inlined_call_operand.vmem [shape: bf16[16,3584], index: 0, kind: input, shape index: {}]   ;;  %s2310_s1 = inlined_call_operand.vmem [shape: bf16[3584,512], index: 1, kind: input, shape index: {}]   ;;  %s2311_s2 = inlined_call_operand.vmem [shape: f32[1,512], index: 2, kind: input, shape index: {}]   ;;  %s2312_s3 = inlined_call_operand.vmem [shape: bf16[16,512], index: 3, kind: output, shape index: {}]  }
   0x1   :  { %2314 = sst [smem:[#allocation7_spill]] %s2309_s0 }
   0x2   :  { %2315 = sst [smem:[#allocation8_spill]] %s2310_s1 }
   0x3   :  { %s1843_s12 = smov 0   ;;  %s1845_s13 = smov 0  }
   0x4   :  { %s1847_s14 = smov 0   ;;  %s1849_s15 = smov 0  }
   0x5   :  { %s1851_s16 = smov 0   ;;  %s1853_s17 = smov 0  }
   0x6   :  { %s1855_s18 = smov 0   ;;  %s1857_s19 = smov 0  }
   0x7   :  { %s1859_s20 = smov 0   ;;  %s1861_s21 = smov 0  }
   0x8   :  { %s1863_s22 = smov 0  }
   0x9 LB: > { %s1278_s23 = sadd.s32 4294967295, %s1820_s22   ;;  %s25_s24 = sadd.s32 1, %s1812_s20  ;;  %s1820_s22 = sphi %s1863_s22, %s13_s22   ;;  %s1816_s21 = sphi %s1861_s21, %s2332_s21   ;;  %s1812_s20 = sphi %s1859_s20, %s2331_s20   ;;  %s1808_s19 = sphi %s1857_s19, %s2330_s19   ;;  %s1804_s18 = sphi %s1855_s18, %s2329_s18   ;;  %s1800_s17 = sphi %s1853_s17, %s2328_s17   ;;  %s1796_s16 = sphi %s1851_s16, %s2327_s16   ;;  %s1792_s15 = sphi %s1849_s15, %s2326_s15   ;;  %s1788_s14 = sphi %s1847_s14, %s2325_s14   ;;  %s1784_s13 = sphi %s1845_s13, %s2324_s13   ;;  %s1780_s12 = sphi %s1843_s12, %s2323_s12  }
   0xa   : > { %p26_p0 = scmp.ge.s32.totalorder %s25_s24, 7  ;;  %s28_s25 = sadd.s32 1, %s1816_s21 }
   0xb   : > { %s41_s26 = sadd.s32 1, %s1800_s17  ;;  %p48_p1 = scmp.ne.s32.totalorder %s1800_s17, %s1796_s16 }
   0xc   : > { %s2334_s24 = smov (%p26_p0, %s25_s24), 0  ;;  %s2336_s25 = smov (!%p26_p0, %s28_s25), %s1816_s21 }
   0xd   : > { %s37_s27 = ssub.s32 %s1812_s20, %s2334_s24  ;;  %p49_p2 = scmp.eq.s32.totalorder %s1820_s22, 0 }
   0xe   : > { %p30_p3 = scmp.ge.s32.totalorder %s2336_s25, 2  ;;  %p39_p4 = scmp.eq.s32.totalorder %s37_s27, 0 }
   0xf   : > { %p1910_p5 = por %p49_p2, %p48_p1  ;;  %s69_s29 = sadd.s32 1, %s1792_s15 }
  0x10   : > { %s2338_s25 = smov (%p30_p3, %s2336_s25), 0  ;;  %p76_p6 = scmp.ne.s32.totalorder %s1792_s15, %s1788_s14 }
  0x11   : > { %2317 = sst [smem:[#allocation6_spill]] %s2338_s25  ;;  %s65_s4 = ssub.s32 %s1816_s21, %s2338_s25 }
  0x12   : > { %s1918_s30 = scalar_select %p39_p4, %s1800_s17, %s41_s26  }
  0x13   : > { %s66_s5 = sor.u32 %s65_s4, %s37_s27  ;;  %p121_p7 = scmp.eq.s32.totalorder %s65_s4, 0 }
  0x14   : > { %p67_p8 = scmp.eq.s32.totalorder %s66_s5, 0  ;;  %p1924_p9 = por %p76_p6, %p49_p2 }
  0x15   : > { %s123_s7 = sadd.s32 1, %s1784_s13  ;;  %p133_p10 = scmp.ne.s32.totalorder %s1784_s13, %s1780_s12 }
  0x16   : > { %s1932_s8 = scalar_select %p67_p8, %s1792_s15, %s69_s29  }
  0x17   : > { %s1935_s9 = scalar_select %p121_p7, %s1784_s13, %s123_s7  }
  0x18   : > { %p134_p11 = scmp.eq.s32.totalorder %s1278_s23, 13  ;;  %p1281_p13 = scmp.ge.s32.totalorder %s1820_s22, 14 }
  0x1a   : > { %p1937_p12 = por %p134_p11, %p133_p10  ;;  %156 = sbr.rel (%p1281_p13) target bundleno = 119 (0x77), region = 16 }
  0x1f   : > { %159 = sbr.rel (!%p1910_p5) target bundleno = 45 (0x2d), region = 20  ;;  %s161_s11 = sand.u32 (%p1910_p5), 1, %s1800_s17  }
  0x20   : > { %s1574_s26 = sshll.u32 (%p1910_p5), %s1812_s20, 4  ;;  %s1282_s27 = sshll.u32 (%p1910_p5), %s161_s11, 5 }
  0x21   : > { %s2320_s0 = sld [smem:[#allocation7_spill]] (%p1910_p5)  ;;  %s163_s23 = scalar_lea.vmem (%p1910_p5), [#allocation3], %s1282_s27 }
  0x27   : > { %s169_s5 = scalar_lea.vmem %s2320_s0, %s1574_s26 }
  0x28   : > { %v182_v0 = vld [vmem:[%s169_s5] sm:$0xff]  ;;  %v184_v1 = vld [vmem:[%s169_s5 + $0x8] sm:$0xff]  ;;  %v186_v2 = vld [vmem:[%s169_s5 + $0x70] sm:$0xff] }
  0x29   : > { %183 = vst [vmem:[%s163_s23] sm:$0xff] %v182_v0  ;;  %v188_v3 = vld [vmem:[%s169_s5 + $0x78] sm:$0xff] }
  0x2a   : > { %185 = vst [vmem:[%s163_s23 + $0x8] sm:$0xff] %v184_v1 }
  0x2b   : > { %187 = vst [vmem:[%s163_s23 + $0x10] sm:$0xff] %v186_v2 }
  0x2c   : > { %189 = vst [vmem:[%s163_s23 + $0x18] sm:$0xff] %v188_v3 }
  0x2d PF: > { %195 = sbr.rel (!%p1924_p9) target bundleno = 119 (0x77), region = 43  ;;  %s197_s28 = sand.u32 (%p1924_p9), 1, %s1792_s15  }
  0x2e   : > { %s1287_s7 = sshll.u32 (%p1924_p9), %s1816_s21, 1  ;;  %s1285_s11 = sshll.u32 (%p1924_p9), %s197_s28, 9 }
  0x2f   : > { %s1575_s26 = sshll.u32 (%p1924_p9), %s1812_s20, 8  ;;  %s2321_s1 = sld [smem:[#allocation8_spill]] (%p1924_p9) }
  0x30   : > { %s203_s29 = sadd.s32 (%p1924_p9), %s1575_s26, %s1287_s7  ;;  %s1962_s6 = scalar_lea.vmem (%p1924_p9), [#allocation4], %s1285_s11 }
  0x31   : > { %s1289_s4 = sshll.u32 (%p1924_p9), %s203_s29, 2 }
  0x35   : > { %s1957_s5 = scalar_lea.vmem %s2321_s1, %s1289_s4 }
  0x36   : > { %v360_v4 = vld [vmem:[%s1957_s5] sm:$0xff]  ;;  %v362_v5 = vld [vmem:[%s1957_s5 + $0x10] sm:$0xff] }
  0x37   : > { %v364_v6 = vld [vmem:[%s1957_s5 + $0x20] sm:$0xff]  ;;  %361 = vst [vmem:[%s1962_s6] sm:$0xff] %v360_v4  ;;  %v366_v7 = vld [vmem:[%s1957_s5 + $0x30] sm:$0xff] }
  0x38   : > { %363 = vst [vmem:[%s1962_s6 + $0x8] sm:$0xff] %v362_v5  ;;  %v368_v8 = vld [vmem:[%s1957_s5 + $0x40] sm:$0xff]  ;;  %v370_v9 = vld [vmem:[%s1957_s5 + $0x50] sm:$0xff] }
  0x39   : > { %365 = vst [vmem:[%s1962_s6 + $0x10] sm:$0xff] %v364_v6  ;;  %v372_v10 = vld [vmem:[%s1957_s5 + $0x60] sm:$0xff]  ;;  %v374_v11 = vld [vmem:[%s1957_s5 + $0x70] sm:$0xff] }
  0x3a   : > { %367 = vst [vmem:[%s1962_s6 + $0x18] sm:$0xff] %v366_v7  ;;  %v376_v12 = vld [vmem:[%s1957_s5 + $0x80] sm:$0xff]  ;;  %v378_v13 = vld [vmem:[%s1957_s5 + $0x90] sm:$0xff] }
  0x3b   : > { %369 = vst [vmem:[%s1962_s6 + $0x20] sm:$0xff] %v368_v8  ;;  %v380_v14 = vld [vmem:[%s1957_s5 + $0xa0] sm:$0xff]  ;;  %v382_v15 = vld [vmem:[%s1957_s5 + $0xb0] sm:$0xff] }
  0x3c   : > { %371 = vst [vmem:[%s1962_s6 + $0x28] sm:$0xff] %v370_v9  ;;  %v384_v16 = vld [vmem:[%s1957_s5 + $0xc0] sm:$0xff]  ;;  %v386_v17 = vld [vmem:[%s1957_s5 + $0xd0] sm:$0xff] }
  0x3d   : > { %373 = vst [vmem:[%s1962_s6 + $0x30] sm:$0xff] %v372_v10  ;;  %v388_v18 = vld [vmem:[%s1957_s5 + $0xe0] sm:$0xff]  ;;  %v390_v19 = vld [vmem:[%s1957_s5 + $0xf0] sm:$0xff] }
  0x3e   : > { %375 = vst [vmem:[%s1962_s6 + $0x38] sm:$0xff] %v374_v11  ;;  %v392_v20 = vld [vmem:[%s1957_s5 + $0x100] sm:$0xff]  ;;  %v394_v21 = vld [vmem:[%s1957_s5 + $0x110] sm:$0xff] }
  0x3f   : > { %377 = vst [vmem:[%s1962_s6 + $0x40] sm:$0xff] %v376_v12  ;;  %v396_v22 = vld [vmem:[%s1957_s5 + $0x120] sm:$0xff]  ;;  %v398_v23 = vld [vmem:[%s1957_s5 + $0x130] sm:$0xff] }
  0x40   : > { %379 = vst [vmem:[%s1962_s6 + $0x48] sm:$0xff] %v378_v13  ;;  %v400_v24 = vld [vmem:[%s1957_s5 + $0x140] sm:$0xff]  ;;  %v402_v25 = vld [vmem:[%s1957_s5 + $0x150] sm:$0xff] }
  0x41   : > { %381 = vst [vmem:[%s1962_s6 + $0x50] sm:$0xff] %v380_v14  ;;  %v404_v26 = vld [vmem:[%s1957_s5 + $0x160] sm:$0xff]  ;;  %v406_v27 = vld [vmem:[%s1957_s5 + $0x170] sm:$0xff] }
  0x42   : > { %383 = vst [vmem:[%s1962_s6 + $0x58] sm:$0xff] %v382_v15  ;;  %v408_v28 = vld [vmem:[%s1957_s5 + $0x180] sm:$0xff]  ;;  %v410_v29 = vld [vmem:[%s1957_s5 + $0x190] sm:$0xff] }
  0x43   : > { %385 = vst [vmem:[%s1962_s6 + $0x60] sm:$0xff] %v384_v16  ;;  %v412_v30 = vld [vmem:[%s1957_s5 + $0x1a0] sm:$0xff]  ;;  %v414_v31 = vld [vmem:[%s1957_s5 + $0x1b0] sm:$0xff] }
  0x44   : > { %387 = vst [vmem:[%s1962_s6 + $0x68] sm:$0xff] %v386_v17  ;;  %v416_v32 = vld [vmem:[%s1957_s5 + $0x1c0] sm:$0xff]  ;;  %v418_v33 = vld [vmem:[%s1957_s5 + $0x1d0] sm:$0xff] }
  0x45   : > { %389 = vst [vmem:[%s1962_s6 + $0x70] sm:$0xff] %v388_v18  ;;  %v420_v34 = vld [vmem:[%s1957_s5 + $0x1e0] sm:$0xff]  ;;  %v422_v35 = vld [vmem:[%s1957_s5 + $0x1f0] sm:$0xff] }
  0x46   : > { %391 = vst [vmem:[%s1962_s6 + $0x78] sm:$0xff] %v390_v19  ;;  %v424_v36 = vld [vmem:[%s1957_s5 + $0x200] sm:$0xff]  ;;  %v426_v37 = vld [vmem:[%s1957_s5 + $0x210] sm:$0xff] }
  0x47   : > { %393 = vst [vmem:[%s1962_s6 + $0x80] sm:$0xff] %v392_v20  ;;  %v428_v38 = vld [vmem:[%s1957_s5 + $0x220] sm:$0xff]  ;;  %v430_v39 = vld [vmem:[%s1957_s5 + $0x230] sm:$0xff] }
  0x48   : > { %395 = vst [vmem:[%s1962_s6 + $0x88] sm:$0xff] %v394_v21  ;;  %v432_v40 = vld [vmem:[%s1957_s5 + $0x240] sm:$0xff]  ;;  %v434_v41 = vld [vmem:[%s1957_s5 + $0x250] sm:$0xff] }
  0x49   : > { %397 = vst [vmem:[%s1962_s6 + $0x90] sm:$0xff] %v396_v22  ;;  %v436_v42 = vld [vmem:[%s1957_s5 + $0x260] sm:$0xff]  ;;  %v438_v43 = vld [vmem:[%s1957_s5 + $0x270] sm:$0xff] }
  0x4a   : > { %399 = vst [vmem:[%s1962_s6 + $0x98] sm:$0xff] %v398_v23  ;;  %v440_v44 = vld [vmem:[%s1957_s5 + $0x280] sm:$0xff]  ;;  %v442_v45 = vld [vmem:[%s1957_s5 + $0x290] sm:$0xff] }
  0x4b   : > { %401 = vst [vmem:[%s1962_s6 + $0xa0] sm:$0xff] %v400_v24  ;;  %v444_v46 = vld [vmem:[%s1957_s5 + $0x2a0] sm:$0xff]  ;;  %v446_v47 = vld [vmem:[%s1957_s5 + $0x2b0] sm:$0xff] }
  0x4c   : > { %403 = vst [vmem:[%s1962_s6 + $0xa8] sm:$0xff] %v402_v25  ;;  %v448_v48 = vld [vmem:[%s1957_s5 + $0x2c0] sm:$0xff]  ;;  %v450_v49 = vld [vmem:[%s1957_s5 + $0x2d0] sm:$0xff] }
  0x4d   : > { %405 = vst [vmem:[%s1962_s6 + $0xb0] sm:$0xff] %v404_v26  ;;  %v452_v50 = vld [vmem:[%s1957_s5 + $0x2e0] sm:$0xff]  ;;  %v454_v51 = vld [vmem:[%s1957_s5 + $0x2f0] sm:$0xff] }
  0x4e   : > { %407 = vst [vmem:[%s1962_s6 + $0xb8] sm:$0xff] %v406_v27  ;;  %v456_v52 = vld [vmem:[%s1957_s5 + $0x300] sm:$0xff]  ;;  %v458_v53 = vld [vmem:[%s1957_s5 + $0x310] sm:$0xff] }
  0x4f   : > { %409 = vst [vmem:[%s1962_s6 + $0xc0] sm:$0xff] %v408_v28  ;;  %v460_v54 = vld [vmem:[%s1957_s5 + $0x320] sm:$0xff]  ;;  %v462_v55 = vld [vmem:[%s1957_s5 + $0x330] sm:$0xff] }
  0x50   : > { %411 = vst [vmem:[%s1962_s6 + $0xc8] sm:$0xff] %v410_v29  ;;  %v464_v56 = vld [vmem:[%s1957_s5 + $0x340] sm:$0xff]  ;;  %v466_v57 = vld [vmem:[%s1957_s5 + $0x350] sm:$0xff] }
  0x51   : > { %413 = vst [vmem:[%s1962_s6 + $0xd0] sm:$0xff] %v412_v30  ;;  %v468_v58 = vld [vmem:[%s1957_s5 + $0x360] sm:$0xff]  ;;  %v470_v59 = vld [vmem:[%s1957_s5 + $0x370] sm:$0xff] }
  0x52   : > { %415 = vst [vmem:[%s1962_s6 + $0xd8] sm:$0xff] %v414_v31  ;;  %v472_v60 = vld [vmem:[%s1957_s5 + $0x380] sm:$0xff]  ;;  %v474_v61 = vld [vmem:[%s1957_s5 + $0x390] sm:$0xff] }
  0x53   : > { %417 = vst [vmem:[%s1962_s6 + $0xe0] sm:$0xff] %v416_v32  ;;  %v476_v62 = vld [vmem:[%s1957_s5 + $0x3a0] sm:$0xff]  ;;  %v478_v63 = vld [vmem:[%s1957_s5 + $0x3b0] sm:$0xff] }
  0x54   : > { %419 = vst [vmem:[%s1962_s6 + $0xe8] sm:$0xff] %v418_v33  ;;  %v480_v0 = vld [vmem:[%s1957_s5 + $0x3c0] sm:$0xff]  ;;  %v482_v1 = vld [vmem:[%s1957_s5 + $0x3d0] sm:$0xff] }
  0x55   : > { %421 = vst [vmem:[%s1962_s6 + $0xf0] sm:$0xff] %v420_v34  ;;  %v484_v2 = vld [vmem:[%s1957_s5 + $0x3e0] sm:$0xff]  ;;  %v486_v3 = vld [vmem:[%s1957_s5 + $0x3f0] sm:$0xff] }
  0x56   : > { %423 = vst [vmem:[%s1962_s6 + $0xf8] sm:$0xff] %v422_v35 }
  0x57   : > { %425 = vst [vmem:[%s1962_s6 + $0x100] sm:$0xff] %v424_v36 }
  0x58   : > { %427 = vst [vmem:[%s1962_s6 + $0x108] sm:$0xff] %v426_v37 }
  0x59   : > { %429 = vst [vmem:[%s1962_s6 + $0x110] sm:$0xff] %v428_v38 }
  0x5a   : > { %431 = vst [vmem:[%s1962_s6 + $0x118] sm:$0xff] %v430_v39 }
  0x5b   : > { %433 = vst [vmem:[%s1962_s6 + $0x120] sm:$0xff] %v432_v40 }
  0x5c   : > { %435 = vst [vmem:[%s1962_s6 + $0x128] sm:$0xff] %v434_v41 }
  0x5d   : > { %437 = vst [vmem:[%s1962_s6 + $0x130] sm:$0xff] %v436_v42 }
  0x5e   : > { %439 = vst [vmem:[%s1962_s6 + $0x138] sm:$0xff] %v438_v43 }
  0x5f   : > { %441 = vst [vmem:[%s1962_s6 + $0x140] sm:$0xff] %v440_v44 }
  0x60   : > { %443 = vst [vmem:[%s1962_s6 + $0x148] sm:$0xff] %v442_v45 }
  0x61   : > { %445 = vst [vmem:[%s1962_s6 + $0x150] sm:$0xff] %v444_v46 }
  0x62   : > { %447 = vst [vmem:[%s1962_s6 + $0x158] sm:$0xff] %v446_v47 }
  0x63   : > { %449 = vst [vmem:[%s1962_s6 + $0x160] sm:$0xff] %v448_v48 }
  0x64   : > { %451 = vst [vmem:[%s1962_s6 + $0x168] sm:$0xff] %v450_v49 }
  0x65   : > { %453 = vst [vmem:[%s1962_s6 + $0x170] sm:$0xff] %v452_v50 }
  0x66   : > { %455 = vst [vmem:[%s1962_s6 + $0x178] sm:$0xff] %v454_v51 }
  0x67   : > { %457 = vst [vmem:[%s1962_s6 + $0x180] sm:$0xff] %v456_v52 }
  0x68   : > { %459 = vst [vmem:[%s1962_s6 + $0x188] sm:$0xff] %v458_v53 }
  0x69   : > { %461 = vst [vmem:[%s1962_s6 + $0x190] sm:$0xff] %v460_v54 }
  0x6a   : > { %463 = vst [vmem:[%s1962_s6 + $0x198] sm:$0xff] %v462_v55 }
  0x6b   : > { %465 = vst [vmem:[%s1962_s6 + $0x1a0] sm:$0xff] %v464_v56 }
  0x6c   : > { %467 = vst [vmem:[%s1962_s6 + $0x1a8] sm:$0xff] %v466_v57 }
  0x6d   : > { %469 = vst [vmem:[%s1962_s6 + $0x1b0] sm:$0xff] %v468_v58 }
  0x6e   : > { %471 = vst [vmem:[%s1962_s6 + $0x1b8] sm:$0xff] %v470_v59 }
  0x6f   : > { %473 = vst [vmem:[%s1962_s6 + $0x1c0] sm:$0xff] %v472_v60 }
  0x70   : > { %475 = vst [vmem:[%s1962_s6 + $0x1c8] sm:$0xff] %v474_v61 }
  0x71   : > { %477 = vst [vmem:[%s1962_s6 + $0x1d0] sm:$0xff] %v476_v62 }
  0x72   : > { %479 = vst [vmem:[%s1962_s6 + $0x1d8] sm:$0xff] %v478_v63 }
  0x73   : > { %481 = vst [vmem:[%s1962_s6 + $0x1e0] sm:$0xff] %v480_v0 }
  0x74   : > { %483 = vst [vmem:[%s1962_s6 + $0x1e8] sm:$0xff] %v482_v1 }
  0x75   : > { %485 = vst [vmem:[%s1962_s6 + $0x1f0] sm:$0xff] %v484_v2 }
  0x76   : > { %487 = vst [vmem:[%s1962_s6 + $0x1f8] sm:$0xff] %v486_v3 }
  0x77 PF: > { %p1290_p0 = scmp.ge.s32.totalorder %s1820_s22, 1  ;;  %p500_p1 = scmp.lt.s32.totalorder %s1820_s22, 15 }
  0x79   : > { %p501_p2 = pnand %p1290_p0, %p500_p1 }
  0x7a   : > { %s507_s0 = sand.u32 (!%p501_p2), 1, %s1796_s16   ;;  %s514_s23 = sand.u32 (!%p501_p2), 1, %s1788_s14  }
  0x7b   : > { %504 = sbr.rel (%p501_p2) target bundleno = 377 (0x179), region = 85  ;;  %s1291_s28 = sshll.u32 (!%p501_p2), %s507_s0, 5 }
  0x7c   : > { %s1292_s7 = sshll.u32 (!%p501_p2), %s514_s23, 9  ;;  %s541_s11 = sand.u32 (!%p501_p2), 1, %s1780_s12  }
  0x7d   : > { %s1294_s26 = sshll.u32 (!%p501_p2), %s1808_s19, 1  ;;  %s1293_s29 = sshll.u32 (!%p501_p2), %s541_s11, 4 }
  0x7e   : > { %p549_p3 = scmp.lt.s32.totalorder (!%p501_p2), %s1294_s26, 3  ;;  %s2101_s6 = scalar_lea.vmem (!%p501_p2), [#allocation3], %s1291_s28 }
  0x7f   : > { %s2103_s1 = scalar_lea.vmem (!%p501_p2), [#allocation4], %s1292_s7  ;;  %s2105_s25 = scalar_lea.vmem (!%p501_p2), [#allocation5], %s1293_s29 }
  0x80   : > { %s2340_s26 = smov (!%p549_p3, %s1294_s26), 3  ;;  %p1295_p4 = scmp.ne.s32.totalorder %s1804_s18, 0 }
  0x81   : > { %s551_s5 = scalar_lea.vmem %s2311_s2, %s2340_s26 }
  0x82   : > { %558 = sbr.rel (%p1295_p4) target bundleno = 140 (0x8c), region = 97 }
  0x87   : > { %v1822_v4 = vmov 0.0  }
  0x88   : > { %559 = vst [vmem:[#allocation2 + $0x10] sm:$0xff] %v1822_v4 }
  0x89   : > { %560 = vst [vmem:[#allocation2] sm:$0xff] %v1822_v4 }
  0x8a   : > { %561 = vst [vmem:[#allocation2 + $0x18] sm:$0xff] %v1822_v4 }
  0x8b   : > { %562 = vst [vmem:[#allocation2 + $0x8] sm:$0xff] %v1822_v4 }
  0x8c PF: > { %v1370_v5 = vld [vmem:[%s2103_s1 + $0x70] sm:$0xf]  ;;  %v1595_v6 = vld [vmem:[%s2103_s1 + $0x74] sm:$0xf0]  ;;  %v1362_v16 = vld [vmem:[%s2103_s1 + $0x60] sm:$0xf] }
  0x8d   : > { %v1434_v7 = vld [vmem:[%s2103_s1 + $0xf0] sm:$0xf]  ;;  %v1371_v8 = vor.u32 %v1595_v6, %v1370_v5  ;;  %v1611_v9 = vld [vmem:[%s2103_s1 + $0xf4] sm:$0xf0]  ;;  %v1593_v18 = vld [vmem:[%s2103_s1 + $0x64] sm:$0xf0] }
  0x8e   : > { %v1498_v10 = vld [vmem:[%s2103_s1 + $0x170] sm:$0xf]  ;;  %v1627_v11 = vld [vmem:[%s2103_s1 + $0x174] sm:$0xf0]  ;;  %v1435_v12 = vor.u32 %v1611_v9, %v1434_v7  ;;  %v1426_v19 = vld [vmem:[%s2103_s1 + $0xe0] sm:$0xf]  ;;  %v1363_v21 = vor.u32 %v1593_v18, %v1362_v16 }
  0x8f   : > { %v1499_v13 = vor.u32 %v1627_v11, %v1498_v10  ;;  %v1562_v14 = vld [vmem:[%s2103_s1 + $0x1f0] sm:$0xf]  ;;  %v1643_v15 = vld [vmem:[%s2103_s1 + $0x1f4] sm:$0xf0]  ;;  %975 = vmatpush.bf16.msra.mxu0 %v1371_v8  ;;  %v1609_v20 = vld [vmem:[%s2103_s1 + $0xe4] sm:$0xf0] }
  0x90   : > { %v1563_v17 = vor.u32 %v1643_v15, %v1562_v14  ;;  %989 = vmatpush.bf16.msra.mxu1 %v1435_v12  ;;  %v1427_v22 = vor.u32 %v1609_v20, %v1426_v19  ;;  %v1490_v23 = vld [vmem:[%s2103_s1 + $0x160] sm:$0xf]  ;;  %v1625_v24 = vld [vmem:[%s2103_s1 + $0x164] sm:$0xf0]  ;;  %v1354_v28 = vld [vmem:[%s2103_s1 + $0x50] sm:$0xf] }
  0x91   : > { %1003 = vmatpush.bf16.msra.mxu2 %v1499_v13  ;;  %v1554_v25 = vld [vmem:[%s2103_s1 + $0x1e0] sm:$0xf]  ;;  %v1491_v26 = vor.u32 %v1625_v24, %v1490_v23  ;;  %v1641_v27 = vld [vmem:[%s2103_s1 + $0x1e4] sm:$0xf0]  ;;  %v1591_v29 = vld [vmem:[%s2103_s1 + $0x54] sm:$0xf0] }
  0x92   : > { %1017 = vmatpush.bf16.msra.mxu3 %v1563_v17  ;;  %v1555_v30 = vor.u32 %v1641_v27, %v1554_v25  ;;  %v1418_v31 = vld [vmem:[%s2103_s1 + $0xd0] sm:$0xf]  ;;  %v1607_v32 = vld [vmem:[%s2103_s1 + $0xd4] sm:$0xf0]  ;;  %v1355_v34 = vor.u32 %v1591_v29, %v1354_v28  ;;  %v1346_v40 = vld [vmem:[%s2103_s1 + $0x40] sm:$0xf] }
  0x93   : > { %v1482_v33 = vld [vmem:[%s2103_s1 + $0x150] sm:$0xf]  ;;  %976 = vmatpush.bf16.msra.mxu0 %v1363_v21  ;;  %v1623_v35 = vld [vmem:[%s2103_s1 + $0x154] sm:$0xf0]  ;;  %v1419_v38 = vor.u32 %v1607_v32, %v1418_v31  ;;  %v1589_v41 = vld [vmem:[%s2103_s1 + $0x44] sm:$0xf0] }
  0x94   : > { %v1546_v36 = vld [vmem:[%s2103_s1 + $0x1d0] sm:$0xf]  ;;  %v1639_v37 = vld [vmem:[%s2103_s1 + $0x1d4] sm:$0xf0]  ;;  %990 = vmatpush.bf16.msra.mxu1 %v1427_v22  ;;  %v1483_v39 = vor.u32 %v1623_v35, %v1482_v33  ;;  %v1410_v42 = vld [vmem:[%s2103_s1 + $0xc0] sm:$0xf]  ;;  %v1347_v49 = vor.u32 %v1589_v41, %v1346_v40 }
  0x95   : > { %1004 = vmatpush.bf16.msra.mxu2 %v1491_v26  ;;  %v1547_v43 = vor.u32 %v1639_v37, %v1546_v36  ;;  %v1605_v44 = vld [vmem:[%s2103_s1 + $0xc4] sm:$0xf0]  ;;  %v1474_v45 = vld [vmem:[%s2103_s1 + $0x140] sm:$0xf]  ;;  %v1338_v52 = vld [vmem:[%s2103_s1 + $0x30] sm:$0xf] }
  0x96   : > { %1018 = vmatpush.bf16.msra.mxu3 %v1555_v30  ;;  %v1621_v46 = vld [vmem:[%s2103_s1 + $0x144] sm:$0xf0]  ;;  %v1538_v47 = vld [vmem:[%s2103_s1 + $0x1c0] sm:$0xf]  ;;  %v1411_v50 = vor.u32 %v1605_v44, %v1410_v42  ;;  %v1587_v53 = vld [vmem:[%s2103_s1 + $0x34] sm:$0xf0] }
  0x97   : > { %v1637_v48 = vld [vmem:[%s2103_s1 + $0x1c4] sm:$0xf0]  ;;  %977 = vmatpush.bf16.msra.mxu0 %v1355_v34  ;;  %v1475_v51 = vor.u32 %v1621_v46, %v1474_v45  ;;  %v1402_v54 = vld [vmem:[%s2103_s1 + $0xb0] sm:$0xf]  ;;  %v1603_v56 = vld [vmem:[%s2103_s1 + $0xb4] sm:$0xf0]  ;;  %v1339_v61 = vor.u32 %v1587_v53, %v1338_v52 }
  0x98   : > { %991 = vmatpush.bf16.msra.mxu1 %v1419_v38  ;;  %v1539_v55 = vor.u32 %v1637_v48, %v1538_v47  ;;  %v1466_v57 = vld [vmem:[%s2103_s1 + $0x130] sm:$0xf]  ;;  %v1619_v58 = vld [vmem:[%s2103_s1 + $0x134] sm:$0xf0]  ;;  %v1403_v62 = vor.u32 %v1603_v56, %v1402_v54  ;;  %v1330_v0 = vld [vmem:[%s2103_s1 + $0x20] sm:$0xf] }
  0x99   : > { %1005 = vmatpush.bf16.msra.mxu2 %v1483_v39  ;;  %v1530_v59 = vld [vmem:[%s2103_s1 + $0x1b0] sm:$0xf]  ;;  %v1635_v60 = vld [vmem:[%s2103_s1 + $0x1b4] sm:$0xf0]  ;;  %v1467_v63 = vor.u32 %v1619_v58, %v1466_v57  ;;  %v1585_v1 = vld [vmem:[%s2103_s1 + $0x24] sm:$0xf0] }
  0x9a   : > { %1019 = vmatpush.bf16.msra.mxu3 %v1547_v43  ;;  %v1394_v2 = vld [vmem:[%s2103_s1 + $0xa0] sm:$0xf]  ;;  %v1531_v3 = vor.u32 %v1635_v60, %v1530_v59  ;;  %v1601_v4 = vld [vmem:[%s2103_s1 + $0xa4] sm:$0xf0]  ;;  %v1331_v9 = vor.u32 %v1585_v1, %v1330_v0  ;;  %v1322_v12 = vld [vmem:[%s2103_s1 + $0x10] sm:$0xf] }
  0x9b   : > { %978 = vmatpush.bf16.msra.mxu0 %v1347_v49  ;;  %v1458_v5 = vld [vmem:[%s2103_s1 + $0x120] sm:$0xf]  ;;  %v1617_v6 = vld [vmem:[%s2103_s1 + $0x124] sm:$0xf0]  ;;  %v1395_v10 = vor.u32 %v1601_v4, %v1394_v2  ;;  %v1583_v13 = vld [vmem:[%s2103_s1 + $0x14] sm:$0xf0] }
  0x9c   : > { %992 = vmatpush.bf16.msra.mxu1 %v1411_v50  ;;  %v1522_v7 = vld [vmem:[%s2103_s1 + $0x1a0] sm:$0xf]  ;;  %v1633_v8 = vld [vmem:[%s2103_s1 + $0x1a4] sm:$0xf0]  ;;  %v1459_v11 = vor.u32 %v1617_v6, %v1458_v5  ;;  %v1386_v14 = vld [vmem:[%s2103_s1 + $0x90] sm:$0xf]  ;;  %v1323_v22 = vor.u32 %v1583_v13, %v1322_v12 }
  0x9d   : > { %1006 = vmatpush.bf16.msra.mxu2 %v1475_v51  ;;  %v1523_v15 = vor.u32 %v1633_v8, %v1522_v7  ;;  %v1599_v16 = vld [vmem:[%s2103_s1 + $0x94] sm:$0xf0]  ;;  %v1450_v17 = vld [vmem:[%s2103_s1 + $0x110] sm:$0xf]  ;;  %v1314_v21 = vld [vmem:[%s2103_s1] sm:$0xf] }
  0x9e   : > { %1020 = vmatpush.bf16.msra.mxu3 %v1539_v55  ;;  %v1615_v18 = vld [vmem:[%s2103_s1 + $0x114] sm:$0xf0]  ;;  %v1514_v19 = vld [vmem:[%s2103_s1 + $0x190] sm:$0xf]  ;;  %v1581_v23 = vld [vmem:[%s2103_s1 + $0x4] sm:$0xf0]  ;;  %v1387_v26 = vor.u32 %v1599_v16, %v1386_v14 }
  0x9f   : > { %979 = vmatpush.bf16.msra.mxu0 %v1339_v61  ;;  %v1631_v20 = vld [vmem:[%s2103_s1 + $0x194] sm:$0xf0]  ;;  %v1378_v24 = vld [vmem:[%s2103_s1 + $0x80] sm:$0xf]  ;;  %v1597_v25 = vld [vmem:[%s2103_s1 + $0x84] sm:$0xf0]  ;;  %v1451_v27 = vor.u32 %v1615_v18, %v1450_v17  ;;  %v1315_v38 = vor.u32 %v1581_v23, %v1314_v21 }
  0xa0   : > { %993 = vmatpush.bf16.msra.mxu1 %v1403_v62  ;;  %v1442_v28 = vld [vmem:[%s2103_s1 + $0x100] sm:$0xf]  ;;  %v1613_v29 = vld [vmem:[%s2103_s1 + $0x104] sm:$0xf0]  ;;  %v1515_v31 = vor.u32 %v1631_v20, %v1514_v19  ;;  %v1594_v33 = vld [vmem:[%s2103_s1 + $0x74] sm:$0xf]  ;;  %v1379_v42 = vor.u32 %v1597_v25, %v1378_v24 }
  0xa1   : > { %1007 = vmatpush.bf16.msra.mxu2 %v1467_v63  ;;  %v1506_v30 = vld [vmem:[%s2103_s1 + $0x180] sm:$0xf]  ;;  %v1629_v32 = vld [vmem:[%s2103_s1 + $0x184] sm:$0xf0]  ;;  %v1372_v34 = vld [vmem:[%s2103_s1 + $0x78] sm:$0xf0]  ;;  %v1443_v43 = vor.u32 %v1613_v29, %v1442_v28 }
  0xa2   : > { %1021 = vmatpush.bf16.msra.mxu3 %v1531_v3  ;;  %v1610_v35 = vld [vmem:[%s2103_s1 + $0xf4] sm:$0xf]  ;;  %v1436_v36 = vld [vmem:[%s2103_s1 + $0xf8] sm:$0xf0]  ;;  %v1592_v44 = vld [vmem:[%s2103_s1 + $0x64] sm:$0xf]  ;;  %v1507_v48 = vor.u32 %v1629_v32, %v1506_v30  ;;  %v1375_v49 = vor.u32 %v1594_v33, %v1372_v34 }
  0xa3   : > { %980 = vmatpush.bf16.msra.mxu0 %v1331_v9  ;;  %v1626_v37 = vld [vmem:[%s2103_s1 + $0x174] sm:$0xf]  ;;  %v1500_v39 = vld [vmem:[%s2103_s1 + $0x178] sm:$0xf0]  ;;  %v1364_v45 = vld [vmem:[%s2103_s1 + $0x68] sm:$0xf0]  ;;  %v1439_v54 = vor.u32 %v1610_v35, %v1436_v36 }
  0xa4   : > { %994 = vmatpush.bf16.msra.mxu1 %v1395_v10  ;;  %v1642_v40 = vld [vmem:[%s2103_s1 + $0x1f4] sm:$0xf]  ;;  %v1564_v41 = vld [vmem:[%s2103_s1 + $0x1f8] sm:$0xf0]  ;;  %v1306_v46 = vld [vmem:[%s2101_s6 + $0x8] sm:$0xf]  ;;  %v1503_v55 = vor.u32 %v1626_v37, %v1500_v39  ;;  %v1367_v4 = vor.u32 %v1592_v44, %v1364_v45 }
  0xa5   : > { %1008 = vmatpush.bf16.msra.mxu2 %v1459_v11  ;;  %v1579_v47 = vld [vmem:[%s2101_s6 + $0x14] sm:$0xf0]  ;;  %v1608_v50 = vld [vmem:[%s2103_s1 + $0xe4] sm:$0xf]  ;;  %v1428_v51 = vld [vmem:[%s2103_s1 + $0xe8] sm:$0xf0]  ;;  %v1567_v59 = vor.u32 %v1642_v40, %v1564_v41 }
  0xa6   : > { %1022 = vmatpush.bf16.msra.mxu3 %v1523_v15  ;;  %v1624_v52 = vld [vmem:[%s2103_s1 + $0x164] sm:$0xf]  ;;  %v1492_v53 = vld [vmem:[%s2103_s1 + $0x168] sm:$0xf0]  ;;  %v1308_v57 = vld [vmem:[%s2101_s6 + $0x18] sm:$0xf0]  ;;  %v2191_v60 = vor.u32 %v1579_v47, %v1306_v46  ;;  %v1431_v6 = vor.u32 %v1608_v50, %v1428_v51 }
  0xa7   : > { %981 = vmatpush.bf16.msra.mxu0 %v1323_v22  ;;  %v1577_v56 = vld [vmem:[%s2101_s6 + $0xc] sm:$0xf]  ;;  %v1298_v58 = vld [vmem:[%s2101_s6] sm:$0xf]  ;;  %v1578_v61 = vld [vmem:[%s2101_s6 + $0xc] sm:$0xf0]  ;;  %v1495_v7 = vor.u32 %v1624_v52, %v1492_v53 }
  0xa8   : > { %995 = vmatpush.bf16.msra.mxu1 %v1387_v26  ;;  %v1576_v62 = vld [vmem:[%s2101_s6 + $0x4] sm:$0xf]  ;;  %v1300_v63 = vld [vmem:[%s2101_s6 + $0x10] sm:$0xf0]  ;;  %v1556_v1 = vld [vmem:[%s2103_s1 + $0x1e8] sm:$0xf0]  ;;  %v2198_v2 = vor.u32 %v1577_v56, %v1308_v57  ;;  %v2200_v3 = vor.u32 %v1578_v61, %v1298_v58 }
  0xa9   : > { %1009 = vmatpush.bf16.msra.mxu2 %v1451_v27  ;;  %v1640_v0 = vld [vmem:[%s2103_s1 + $0x1e4] sm:$0xf]  ;;  %v2202_v5 = vor.u32 %v1576_v62, %v1300_v63  ;;  %v1590_v8 = vld [vmem:[%s2103_s1 + $0x54] sm:$0xf]  ;;  %v1356_v9 = vld [vmem:[%s2103_s1 + $0x58] sm:$0xf0] }
  0xaa   : > { %1023 = vmatpush.bf16.msra.mxu3 %v1515_v31  ;;  %v1606_v10 = vld [vmem:[%s2103_s1 + $0xd4] sm:$0xf]  ;;  %v1559_v11 = vor.u32 %v1640_v0, %v1556_v1  ;;  %v1420_v12 = vld [vmem:[%s2103_s1 + $0xd8] sm:$0xf0]  ;;  %v1359_v17 = vor.u32 %v1590_v8, %v1356_v9  ;;  %v1588_v20 = vld [vmem:[%s2103_s1 + $0x44] sm:$0xf] }
  0xab   : > { %982 = vmatpush.bf16.msra.mxu0 %v1315_v38  ;;  %v1622_v13 = vld [vmem:[%s2103_s1 + $0x154] sm:$0xf]  ;;  %v1484_v14 = vld [vmem:[%s2103_s1 + $0x158] sm:$0xf0]  ;;  %v1423_v18 = vor.u32 %v1606_v10, %v1420_v12  ;;  %v1348_v21 = vld [vmem:[%s2103_s1 + $0x48] sm:$0xf0] }
  0xac   : > { %996 = vmatpush.bf16.msra.mxu1 %v1379_v42  ;;  %v1638_v15 = vld [vmem:[%s2103_s1 + $0x1d4] sm:$0xf]  ;;  %v1548_v16 = vld [vmem:[%s2103_s1 + $0x1d8] sm:$0xf0]  ;;  %v1487_v19 = vor.u32 %v1622_v13, %v1484_v14  ;;  %v1604_v22 = vld [vmem:[%s2103_s1 + $0xc4] sm:$0xf]  ;;  %v1351_v29 = vor.u32 %v1588_v20, %v1348_v21 }
  0xad   : > { %1010 = vmatpush.bf16.msra.mxu2 %v1443_v43  ;;  %v1551_v23 = vor.u32 %v1638_v15, %v1548_v16  ;;  %v1412_v24 = vld [vmem:[%s2103_s1 + $0xc8] sm:$0xf0]  ;;  %v1620_v25 = vld [vmem:[%s2103_s1 + $0x144] sm:$0xf]  ;;  %v1586_v32 = vld [vmem:[%s2103_s1 + $0x34] sm:$0xf] }
  0xae   : > { %1024 = vmatpush.bf16.msra.mxu3 %v1507_v48  ;;  %983 = vmatmul.bf16.vlgmr.msra.gmra.mxu0 %v2200_v3  ;;  %v1476_v26 = vld [vmem:[%s2103_s1 + $0x148] sm:$0xf0]  ;;  %v1636_v27 = vld [vmem:[%s2103_s1 + $0x1c4] sm:$0xf]  ;;  %v1415_v30 = vor.u32 %v1604_v22, %v1412_v24  ;;  %v1340_v33 = vld [vmem:[%s2103_s1 + $0x38] sm:$0xf0] }
  0xaf   : > { %1031 = vmatpush.bf16.msrb.mxu0 %v1375_v49  ;;  %997 = vmatmul.bf16.vlgmr.msra.gmra.mxu1 %v2202_v5  ;;  %v1540_v28 = vld [vmem:[%s2103_s1 + $0x1c8] sm:$0xf0]  ;;  %v1479_v31 = vor.u32 %v1620_v25, %v1476_v26  ;;  %v1602_v34 = vld [vmem:[%s2103_s1 + $0xb4] sm:$0xf]  ;;  %v1404_v36 = vld [vmem:[%s2103_s1 + $0xb8] sm:$0xf0]  ;;  %v1343_v41 = vor.u32 %v1586_v32, %v1340_v33 }
  0xb0   : > { %1045 = vmatpush.bf16.msrb.mxu1 %v1439_v54  ;;  %1011 = vmatmul.bf16.vlgmr.msra.gmra.mxu2 %v2191_v60  ;;  %v1543_v35 = vor.u32 %v1636_v27, %v1540_v28  ;;  %v1618_v37 = vld [vmem:[%s2103_s1 + $0x134] sm:$0xf]  ;;  %v1468_v38 = vld [vmem:[%s2103_s1 + $0x138] sm:$0xf0]  ;;  %v1407_v42 = vor.u32 %v1602_v34, %v1404_v36  ;;  %v1584_v44 = vld [vmem:[%s2103_s1 + $0x24] sm:$0xf] }
  0xb1   : > { %1059 = vmatpush.bf16.msrb.mxu2 %v1503_v55  ;;  %1025 = vmatmul.bf16.vlgmr.msra.gmra.mxu3 %v2198_v2  ;;  %v1634_v39 = vld [vmem:[%s2103_s1 + $0x1b4] sm:$0xf]  ;;  %v1532_v40 = vld [vmem:[%s2103_s1 + $0x1b8] sm:$0xf0]  ;;  %v1471_v43 = vor.u32 %v1618_v37, %v1468_v38  ;;  %v1332_v45 = vld [vmem:[%s2103_s1 + $0x28] sm:$0xf0] }
  0xb2   : > { %1073 = vmatpush.bf16.msrb.mxu3 %v1567_v59  ;;  %v1600_v46 = vld [vmem:[%s2103_s1 + $0xa4] sm:$0xf]  ;;  %v1535_v47 = vor.u32 %v1634_v39, %v1532_v40  ;;  %v1396_v48 = vld [vmem:[%s2103_s1 + $0xa8] sm:$0xf0]  ;;  %v1335_v53 = vor.u32 %v1584_v44, %v1332_v45  ;;  %v1582_v56 = vld [vmem:[%s2103_s1 + $0x14] sm:$0xf] }
  0xb3   : > { %1032 = vmatpush.bf16.msrb.mxu0 %v1367_v4  ;;  %v1616_v49 = vld [vmem:[%s2103_s1 + $0x124] sm:$0xf]  ;;  %v1460_v50 = vld [vmem:[%s2103_s1 + $0x128] sm:$0xf0]  ;;  %v1399_v54 = vor.u32 %v1600_v46, %v1396_v48  ;;  %v1324_v57 = vld [vmem:[%s2103_s1 + $0x18] sm:$0xf0] }
  0xb4   : > { %1046 = vmatpush.bf16.msrb.mxu1 %v1431_v6  ;;  %v1632_v51 = vld [vmem:[%s2103_s1 + $0x1a4] sm:$0xf]  ;;  %v1524_v52 = vld [vmem:[%s2103_s1 + $0x1a8] sm:$0xf0]  ;;  %v1463_v55 = vor.u32 %v1616_v49, %v1460_v50  ;;  %v1598_v58 = vld [vmem:[%s2103_s1 + $0x94] sm:$0xf]  ;;  %v1327_v4 = vor.u32 %v1582_v56, %v1324_v57 }
  0xb5   : > { %1060 = vmatpush.bf16.msrb.mxu2 %v1495_v7  ;;  %v1527_v59 = vor.u32 %v1632_v51, %v1524_v52  ;;  %v1388_v61 = vld [vmem:[%s2103_s1 + $0x98] sm:$0xf0]  ;;  %v1614_v62 = vld [vmem:[%s2103_s1 + $0x114] sm:$0xf]  ;;  %v1580_v8 = vld [vmem:[%s2103_s1 + $0x4] sm:$0xf] }
  0xb6   : > { %1074 = vmatpush.bf16.msrb.mxu3 %v1559_v11  ;;  %v1452_v63 = vld [vmem:[%s2103_s1 + $0x118] sm:$0xf0]  ;;  %v1630_v0 = vld [vmem:[%s2103_s1 + $0x194] sm:$0xf]  ;;  %v1391_v6 = vor.u32 %v1598_v58, %v1388_v61  ;;  %v1316_v9 = vld [vmem:[%s2103_s1 + $0x8] sm:$0xf0] }
  0xb7   : > { %1033 = vmatpush.bf16.msrb.mxu0 %v1359_v17  ;;  %v1516_v1 = vld [vmem:[%s2103_s1 + $0x198] sm:$0xf0]  ;;  %v1455_v7 = vor.u32 %v1614_v62, %v1452_v63  ;;  %v1596_v10 = vld [vmem:[%s2103_s1 + $0x84] sm:$0xf]  ;;  %v1380_v12 = vld [vmem:[%s2103_s1 + $0x88] sm:$0xf0]  ;;  %v1319_v17 = vor.u32 %v1580_v8, %v1316_v9 }
  0xb8   : > { %1047 = vmatpush.bf16.msrb.mxu1 %v1423_v18  ;;  %v1519_v11 = vor.u32 %v1630_v0, %v1516_v1  ;;  %v1612_v13 = vld [vmem:[%s2103_s1 + $0x104] sm:$0xf]  ;;  %v1444_v14 = vld [vmem:[%s2103_s1 + $0x108] sm:$0xf0]  ;;  %v1383_v18 = vor.u32 %v1596_v10, %v1380_v12  ;;  %v563_v27 = vld [vmem:[#allocation2 + $0x10] sm:$0xff]  ;;  %p1568_p5 = scmp.ne.s32.totalorder %s1804_s18, 6 }
  0xb9   : > { %1061 = vmatpush.bf16.msrb.mxu2 %v1487_v19  ;;  %v1628_v15 = vld [vmem:[%s2103_s1 + $0x184] sm:$0xf]  ;;  %v1508_v16 = vld [vmem:[%s2103_s1 + $0x188] sm:$0xf0]  ;;  %v1447_v19 = vor.u32 %v1612_v13, %v1444_v14  ;;  %v565_v34 = vld [vmem:[#allocation2 + $0x18] sm:$0xff] }
  0xba   : > { %1075 = vmatpush.bf16.msrb.mxu3 %v1551_v23  ;;  %v1511_v20 = vor.u32 %v1628_v15, %v1508_v16  ;;  %v566_v49 = vld [vmem:[#allocation2 + $0x8] sm:$0xff] }
  0xbb   : > { %1034 = vmatpush.bf16.msrb.mxu0 %v1351_v29 }
  0xbc   : > { %1048 = vmatpush.bf16.msrb.mxu1 %v1415_v30 }
  0xbd   : > { %1062 = vmatpush.bf16.msrb.mxu2 %v1479_v31 }
  0xbe   : > { %1076 = vmatpush.bf16.msrb.mxu3 %v1543_v35 }
  0xbf   : > { %1035 = vmatpush.bf16.msrb.mxu0 %v1343_v41  ;;  %v564_v41 = vld [vmem:[#allocation2] sm:$0xff] }
  0xc0   : > { %1049 = vmatpush.bf16.msrb.mxu1 %v1407_v42 }
  0xc1   : > { %1063 = vmatpush.bf16.msrb.mxu2 %v1471_v43 }
  0xc2   : > { %1077 = vmatpush.bf16.msrb.mxu3 %v1535_v47 }
  0xc3   : > { %1036 = vmatpush.bf16.msrb.mxu0 %v1335_v53 }
  0xc4   : > { %1050 = vmatpush.bf16.msrb.mxu1 %v1399_v54 }
  0xc5   : > { %1064 = vmatpush.bf16.msrb.mxu2 %v1463_v55 }
  0xc6   : > { %1078 = vmatpush.bf16.msrb.mxu3 %v1527_v59 }
  0xc7   : > { %1037 = vmatpush.bf16.msrb.mxu0 %v1327_v4 }
  0xc8   : > { %1051 = vmatpush.bf16.msrb.mxu1 %v1391_v6 }
  0xc9   : > { %1065 = vmatpush.bf16.msrb.mxu2 %v1455_v7 }
  0xca   : > { %1079 = vmatpush.bf16.msrb.mxu3 %v1519_v11 }
  0xcb   : > { %1038 = vmatpush.bf16.msrb.mxu0 %v1319_v17 }
  0xcc   : > { %1052 = vmatpush.bf16.msrb.mxu1 %v1383_v18 }
  0xcd   : > { %1066 = vmatpush.bf16.msrb.mxu2 %v1447_v19 }
  0xce   : > { %1080 = vmatpush.bf16.msrb.mxu3 %v1511_v20  ;;  %1039 = vmatmul.bf16.vlgmr.msrb.gmra.mxu0 %v2200_v3 }
  0xcf   : > { %1053 = vmatmul.bf16.vlgmr.msrb.gmra.mxu1 %v2202_v5 }
  0xd0   : > { %1067 = vmatmul.bf16.vlgmr.msrb.gmra.mxu2 %v2191_v60 }
  0xd1   : > { %1081 = vmatmul.bf16.vlgmr.msrb.gmra.mxu3 %v2198_v2 }
 0x12b   : > { %v984_v21 = vpop.f32.mrf.mxu0 }
 0x12c   : > { %v998_v22 = vpop.f32.mrf.mxu1 }
 0x12d   : > { %v999_v23 = vadd.f32 %v998_v22, %v984_v21 }
 0x133   : > { %v1012_v24 = vpop.f32.mrf.mxu2  ;;  %v986_v29 = vpop.f32.mrf.mxu0 }
 0x134   : > { %v1013_v25 = vadd.f32 %v1012_v24, %v999_v23  ;;  %v1026_v26 = vpop.f32.mrf.mxu3  ;;  %v1000_v30 = vpop.f32.mrf.mxu1 }
 0x135   : > { %v1001_v32 = vadd.f32 %v1000_v30, %v986_v29 }
 0x136   : > { %v1027_v28 = vadd.f32 %v1026_v26, %v1013_v25 }
 0x138   : > { %v1087_v31 = vadd.f32 %v1027_v28, %v563_v27 }
 0x13a   : > { %1091 = vst [vmem:[#allocation2 + $0x10] sm:$0xff] %v1087_v31 }
 0x13b   : > { %v1014_v3 = vpop.f32.mrf.mxu2 }
 0x13c   : > { %v1015_v33 = vadd.f32 %v1014_v3, %v1001_v32  ;;  %v1028_v5 = vpop.f32.mrf.mxu3 }
 0x13e   : > { %v1029_v60 = vadd.f32 %v1028_v5, %v1015_v33 }
 0x140   : > { %v1089_v35 = vadd.f32 %v1029_v60, %v565_v34 }
 0x142   : > { %1093 = vst [vmem:[#allocation2 + $0x18] sm:$0xff] %v1089_v35 }
 0x14b   : > { %v1040_v2 = vpop.f32.mrf.mxu0 }
 0x14c   : > { %v1054_v36 = vpop.f32.mrf.mxu1 }
 0x14d   : > { %v1055_v37 = vadd.f32 %v1054_v36, %v1040_v2 }
 0x153   : > { %v1068_v38 = vpop.f32.mrf.mxu2  ;;  %v1042_v43 = vpop.f32.mrf.mxu0 }
 0x154   : > { %v1069_v39 = vadd.f32 %v1068_v38, %v1055_v37  ;;  %v1082_v40 = vpop.f32.mrf.mxu3  ;;  %v1056_v44 = vpop.f32.mrf.mxu1 }
 0x155   : > { %v1057_v46 = vadd.f32 %v1056_v44, %v1042_v43 }
 0x156   : > { %v1083_v42 = vadd.f32 %v1082_v40, %v1069_v39 }
 0x158   : > { %v1088_v45 = vadd.f32 %v1083_v42, %v564_v41 }
 0x15a   : > { %1092 = vst [vmem:[#allocation2] sm:$0xff] %v1088_v45 }
 0x15b   : > { %v1070_v47 = vpop.f32.mrf.mxu2 }
 0x15c   : > { %v1071_v48 = vadd.f32 %v1070_v47, %v1057_v46  ;;  %v1084_v50 = vpop.f32.mrf.mxu3 }
 0x15e   : > { %v1085_v51 = vadd.f32 %v1084_v50, %v1071_v48  ;;  %1098 = sbr.rel (%p1568_p5) target bundleno = 369 (0x171), region = 101 }
 0x160   : > { %v1090_v52 = vadd.f32 %v1085_v51, %v566_v49 }
 0x162   : > { %1094 = vst [vmem:[#allocation2 + $0x8] sm:$0xff] %v1090_v52 }
 0x163   : > { %v1099_v53 = vld [vmem:[#allocation2 + $0x10] sm:$0xff]  ;;  %v1100_v54 = vld [vmem:[#allocation2] sm:$0xff]  ;;  %v1101_v58 = vld [vmem:[#allocation2 + $0x18] sm:$0xff] }
 0x164   : > { %v1103_v55 = vld [vmem:[%s551_s5] sm:$0x3] }
 0x165   : > { %v1105_v56 = vperm.slane %v1103_v55, 0  ;;  %v1106_v57 = vperm.slane %v1103_v55, 1 }
 0x167   : > { %v1109_v61 = vadd.f32 %v1105_v56, %v1099_v53  ;;  %v1110_v62 = vadd.f32 %v1106_v57, %v1100_v54  ;;  %v1111_v63 = vadd.f32 %v1105_v56, %v1101_v58 }
 0x169   : > { %v1102_v59 = vld [vmem:[#allocation2 + $0x8] sm:$0xff]  ;;  %v1113_v1 = vmax.f32 %v1109_v61, 0.0  ;;  %v1114_v4 = vmax.f32 %v1110_v62, 0.0  ;;  %v1115_v6 = vmax.f32 %v1111_v63, 0.0 }
 0x16a   : > { %v1112_v0 = vadd.f32 %v1106_v57, %v1102_v59 }
 0x16b   : > { %v1117_v8 = vpack.c.bf16 %v1114_v4, %v1113_v1 }
 0x16c   : > { %v1116_v7 = vmax.f32 %v1112_v0, 0.0 }
 0x16d   : > { %1119 = vst [vmem:[%s2105_s25] sm:$0xff] %v1117_v8 }
 0x16e   : > { %v1118_v9 = vpack.c.bf16 %v1116_v7, %v1115_v6 }
 0x170   : > { %1120 = vst [vmem:[%s2105_s25 + $0x8] sm:$0xff] %v1118_v9 }
 0x171 PF: > { %1127 = sbr.rel (!%p1937_p12) target bundleno = 377 (0x179), region = 105  ;;  %s1644_s14 = sshll.u32 (%p1937_p12), %s1808_s19, 3 }
 0x172   : > { %s1133_s0 = scalar_lea.vmem (%p1937_p12), %s2312_s3, %s1644_s14 }
 0x174   : > { %v1164_v10 = vld [vmem:[%s2105_s25] sm:$0xff] (%p1937_p12) }
 0x175   : > { %1165 = vst [vmem:[%s1133_s0] sm:$0xff] (%p1937_p12), %v1164_v10 }
 0x177   : > { %v1166_v11 = vld [vmem:[%s2105_s25 + $0x8] sm:$0xff] }
 0x178   : > { %1167 = vst [vmem:[%s1133_s0 + $0x10] sm:$0xff] %v1166_v11 }
 0x179 PF: > { %s13_s22 = sadd.s32 1, %s1820_s22   ;;  %s2322_s25 = sld [smem:[#allocation6_spill]] }
 0x17a   : > { %p10_p6 = scmp.ge.s32.totalorder %s13_s22, 16   ;;  %s2323_s12 = smov %s1784_s13 }
 0x17b   : > { %s2324_s13 = smov %s1935_s9  ;;  %s2325_s14 = smov %s1792_s15 }
 0x17c   : > { %s2326_s15 = smov %s1932_s8  ;;  %s2327_s16 = smov %s1800_s17 }
 0x17d   : > { %s2328_s17 = smov %s1918_s30  ;;  %s2329_s18 = smov %s1812_s20 }
 0x17e   : > { %s2330_s19 = smov %s1816_s21  ;;  %s2331_s20 = smov %s2334_s24 }
 0x17f   : > { %s2332_s21 = smov %s2322_s25  ;;  %12 = sbr.rel (!%p10_p6) target bundleno = 9 (0x9), region = 185 }

// kernel: custom_cnn_pro_forward.31
= control target key start
LH: loop header
LB: loop body
LE: loop exit
PB: predicated region body
PF: predicated region fallthrough
CT: control target
= control target key end

     0   :  { %12 = vsyncpa [#allocation3], 0  ;;  %s4883_s0 = inlined_call_operand.vmem [shape: bf16[16,1024], index: 0, kind: input, shape index: {}]   ;;  %s4884_s1 = inlined_call_operand.hbm [shape: bf16[1024,512], index: 1, kind: input, shape index: {}]   ;;  %s4885_s2 = inlined_call_operand.vmem [shape: f32[1,512], index: 2, kind: input, shape index: {}]   ;;  %s4886_s3 = inlined_call_operand.hbm [shape: bf16[512,256], index: 3, kind: input, shape index: {}]   ;;  %s4887_s4 = inlined_call_operand.vmem [shape: f32[1,256], index: 4, kind: input, shape index: {}]   ;;  %s4888_s5 = inlined_call_operand.hbm [shape: bf16[256,128], index: 5, kind: input, shape index: {}]   ;;  %s4889_s6 = inlined_call_operand.hbm [shape: f32[1,128], index: 6, kind: input, shape index: {}]   ;;  %s4890_s7 = inlined_call_operand.vmem [shape: f32[16,128], index: 7, kind: output, shape index: {}]  }
   0x1   :  { %13 = vsyncpa [#allocation5], 0  ;;  %s36_s26 = sshll.u32 %s4886_s3, 4  ;;  %s37_s26 = int_to_ptr.hbm [resolvable:$true] %s36_s26 }
   0x2   :  { %14 = vsyncpa [#allocation8], 0  ;;  %s4651_s27 = smov [#allocation4]   ;;  %s21_s8 = sshll.u32 %s4884_s1, 4  ;;  %s22_s8 = int_to_ptr.hbm [resolvable:$true] %s21_s8 }
   0x3   :  { %s38_s28 = sshll.u32 %s4651_s27, 4  ;;  %s4652_s9 = smov 128   ;;  %s39_s28 = int_to_ptr.vmem [resolvable:$true] %s38_s28 }
   0x4   :  { %s4653_s10 = smov 8   ;;  %s4654_s11 = smov [#allocation2]  }
   0x5   :  { %44 = dma.hbm_to_vmem [thread:$0]  %s37_s26, 8192, %s39_s28, [#allocation5], %s4652_s9, %s4652_s9, %s4653_s10  }
   0x6   :  { %s23_s12 = sshll.u32 %s4654_s11, 4  ;;  %s4655_s13 = smov 256   ;;  %s24_s12 = int_to_ptr.vmem [resolvable:$true] %s23_s12 }
   0x7   :  { %s4656_s14 = smov 16   ;;  %s51_s16 = sshll.u32 %s4888_s5, 4  ;;  %s52_s16 = int_to_ptr.hbm [resolvable:$true] %s51_s16 }
   0x8   :  { %29 = dma.hbm_to_vmem [thread:$0]  %s22_s8, 32768, %s24_s12, [#allocation3], %s4655_s13, %s4655_s13, %s4656_s14  }
   0x9   :  { %s4657_s17 = smov [#allocation6]   ;;  %s65_s20 = sshll.u32 %s4889_s6, 4  ;;  %s66_s20 = int_to_ptr.hbm [resolvable:$true] %s65_s20 }
   0xa   :  { %s53_s18 = sshll.u32 %s4657_s17, 4  ;;  %s4658_s21 = smov 64   ;;  %s54_s18 = int_to_ptr.vmem [resolvable:$true] %s53_s18 }
   0xb   :  { %s4659_s22 = smov 4   ;;  %s4660_s23 = smov [#allocation7]  }
   0xc   :  { %59 = dma.hbm_to_vmem [thread:$0]  %s52_s16, 2048, %s54_s18, [#allocation5], %s4658_s21, %s4658_s21, %s4659_s22  }
   0xd   :  { %s67_s24 = sshll.u32 %s4660_s23, 4  ;;  %s68_s24 = int_to_ptr.vmem [resolvable:$true] %s67_s24 }
   0xe   :  { %70 = dma.hbm_to_vmem [thread:$0]  %s66_s20, 16, %s68_s24, [#allocation8]  }
   0xf   :  { %4645 = dma.done.wait [#allocation3], 32768  }
  0x10   :  { %4646 = vsyncadd [#allocation3], 4294934528 }
  0x11   :  { %4647 = dma.done.wait [#allocation5], 10240  }
  0x12   :  { %4648 = vsyncadd [#allocation5], 4294957056 }
  0x13   :  { %4649 = dma.done.wait [#allocation8], 16  }
  0x14   :  { %4650 = vsyncadd [#allocation8], 4294967280  ;;  %v2964_v0 = vld [vmem:[#allocation2 + $0xe0] sm:$0xf]  ;;  %v4232_v1 = vld [vmem:[#allocation2 + $0xec] sm:$0xf0] }
  0x15   :  { %v3092_v2 = vld [vmem:[#allocation2 + $0x1e0] sm:$0xf]  ;;  %v2965_v3 = vor.u32 %v4232_v1, %v2964_v0  ;;  %v4264_v4 = vld [vmem:[#allocation2 + $0x1ec] sm:$0xf0] }
  0x16   :  { %v3220_v5 = vld [vmem:[#allocation2 + $0x2e0] sm:$0xf]  ;;  %v4296_v6 = vld [vmem:[#allocation2 + $0x2ec] sm:$0xf0]  ;;  %v3093_v7 = vor.u32 %v4264_v4, %v3092_v2 }
  0x17   :  { %v3221_v8 = vor.u32 %v4296_v6, %v3220_v5  ;;  %v3348_v9 = vld [vmem:[#allocation2 + $0x3e0] sm:$0xf]  ;;  %v4328_v10 = vld [vmem:[#allocation2 + $0x3ec] sm:$0xf0]  ;;  %1681 = vmatpush.bf16.msra.mxu0 %v2965_v3 }
  0x18   :  { %v2948_v11 = vld [vmem:[#allocation2 + $0xc0] sm:$0xf]  ;;  %v3349_v12 = vor.u32 %v4328_v10, %v3348_v9  ;;  %v4228_v13 = vld [vmem:[#allocation2 + $0xcc] sm:$0xf0]  ;;  %1695 = vmatpush.bf16.msra.mxu1 %v3093_v7 }
  0x19   :  { %v3076_v14 = vld [vmem:[#allocation2 + $0x1c0] sm:$0xf]  ;;  %v4260_v15 = vld [vmem:[#allocation2 + $0x1cc] sm:$0xf0]  ;;  %1709 = vmatpush.bf16.msra.mxu2 %v3221_v8  ;;  %v2949_v16 = vor.u32 %v4228_v13, %v2948_v11 }
  0x1a   :  { %v3077_v17 = vor.u32 %v4260_v15, %v3076_v14  ;;  %v3204_v18 = vld [vmem:[#allocation2 + $0x2c0] sm:$0xf]  ;;  %v4292_v19 = vld [vmem:[#allocation2 + $0x2cc] sm:$0xf0]  ;;  %1723 = vmatpush.bf16.msra.mxu3 %v3349_v12 }
  0x1b   :  { %v3332_v20 = vld [vmem:[#allocation2 + $0x3c0] sm:$0xf]  ;;  %v3205_v21 = vor.u32 %v4292_v19, %v3204_v18  ;;  %v4324_v22 = vld [vmem:[#allocation2 + $0x3cc] sm:$0xf0]  ;;  %1682 = vmatpush.bf16.msra.mxu0 %v2949_v16 }
  0x1c   :  { %v2932_v23 = vld [vmem:[#allocation2 + $0xa0] sm:$0xf]  ;;  %v4224_v24 = vld [vmem:[#allocation2 + $0xac] sm:$0xf0]  ;;  %v3333_v25 = vor.u32 %v4324_v22, %v3332_v20  ;;  %1696 = vmatpush.bf16.msra.mxu1 %v3077_v17 }
  0x1d   :  { %v3060_v26 = vld [vmem:[#allocation2 + $0x1a0] sm:$0xf]  ;;  %v4256_v27 = vld [vmem:[#allocation2 + $0x1ac] sm:$0xf0]  ;;  %v2933_v29 = vor.u32 %v4224_v24, %v2932_v23  ;;  %1710 = vmatpush.bf16.msra.mxu2 %v3205_v21 }
  0x1e   :  { %v3188_v28 = vld [vmem:[#allocation2 + $0x2a0] sm:$0xf]  ;;  %v4288_v30 = vld [vmem:[#allocation2 + $0x2ac] sm:$0xf0]  ;;  %v3061_v33 = vor.u32 %v4256_v27, %v3060_v26  ;;  %1724 = vmatpush.bf16.msra.mxu3 %v3333_v25 }
  0x1f   :  { %v3316_v31 = vld [vmem:[#allocation2 + $0x3a0] sm:$0xf]  ;;  %v4320_v32 = vld [vmem:[#allocation2 + $0x3ac] sm:$0xf0]  ;;  %v3189_v34 = vor.u32 %v4288_v30, %v3188_v28  ;;  %1683 = vmatpush.bf16.msra.mxu0 %v2933_v29 }
  0x20   :  { %v2916_v35 = vld [vmem:[#allocation2 + $0x80] sm:$0xf]  ;;  %v4220_v36 = vld [vmem:[#allocation2 + $0x8c] sm:$0xf0]  ;;  %v3317_v38 = vor.u32 %v4320_v32, %v3316_v31  ;;  %1697 = vmatpush.bf16.msra.mxu1 %v3061_v33 }
  0x21   :  { %v3044_v37 = vld [vmem:[#allocation2 + $0x180] sm:$0xf]  ;;  %v4252_v39 = vld [vmem:[#allocation2 + $0x18c] sm:$0xf0]  ;;  %v2917_v44 = vor.u32 %v4220_v36, %v2916_v35  ;;  %1711 = vmatpush.bf16.msra.mxu2 %v3189_v34 }
  0x22   :  { %v3172_v40 = vld [vmem:[#allocation2 + $0x280] sm:$0xf]  ;;  %v4284_v41 = vld [vmem:[#allocation2 + $0x28c] sm:$0xf0]  ;;  %v3045_v45 = vor.u32 %v4252_v39, %v3044_v37  ;;  %1725 = vmatpush.bf16.msra.mxu3 %v3317_v38 }
  0x23   :  { %v3300_v42 = vld [vmem:[#allocation2 + $0x380] sm:$0xf]  ;;  %v4316_v43 = vld [vmem:[#allocation2 + $0x38c] sm:$0xf0]  ;;  %v3173_v46 = vor.u32 %v4284_v41, %v3172_v40  ;;  %1684 = vmatpush.bf16.msra.mxu0 %v2917_v44 }
  0x24   :  { %v2900_v47 = vld [vmem:[#allocation2 + $0x60] sm:$0xf]  ;;  %v4216_v48 = vld [vmem:[#allocation2 + $0x6c] sm:$0xf0]  ;;  %v3301_v50 = vor.u32 %v4316_v43, %v3300_v42  ;;  %1698 = vmatpush.bf16.msra.mxu1 %v3045_v45 }
  0x25   :  { %v3028_v49 = vld [vmem:[#allocation2 + $0x160] sm:$0xf]  ;;  %v4248_v51 = vld [vmem:[#allocation2 + $0x16c] sm:$0xf0]  ;;  %v2901_v56 = vor.u32 %v4216_v48, %v2900_v47  ;;  %1712 = vmatpush.bf16.msra.mxu2 %v3173_v46 }
  0x26   :  { %v3156_v52 = vld [vmem:[#allocation2 + $0x260] sm:$0xf]  ;;  %v4280_v53 = vld [vmem:[#allocation2 + $0x26c] sm:$0xf0]  ;;  %v3029_v57 = vor.u32 %v4248_v51, %v3028_v49  ;;  %1726 = vmatpush.bf16.msra.mxu3 %v3301_v50 }
  0x27   :  { %v3284_v54 = vld [vmem:[#allocation2 + $0x360] sm:$0xf]  ;;  %v4312_v55 = vld [vmem:[#allocation2 + $0x36c] sm:$0xf0]  ;;  %v3157_v58 = vor.u32 %v4280_v53, %v3156_v52  ;;  %1685 = vmatpush.bf16.msra.mxu0 %v2901_v56 }
  0x28   :  { %v2884_v59 = vld [vmem:[#allocation2 + $0x40] sm:$0xf]  ;;  %v4212_v60 = vld [vmem:[#allocation2 + $0x4c] sm:$0xf0]  ;;  %v3285_v62 = vor.u32 %v4312_v55, %v3284_v54  ;;  %1699 = vmatpush.bf16.msra.mxu1 %v3029_v57  ;;  %v2828_v54 = vld [vmem:[%s4883_s0 + $0x8] sm:$0xf] }
  0x29   :  { %v3012_v61 = vld [vmem:[#allocation2 + $0x140] sm:$0xf]  ;;  %v4244_v63 = vld [vmem:[#allocation2 + $0x14c] sm:$0xf0]  ;;  %v2885_v4 = vor.u32 %v4212_v60, %v2884_v59  ;;  %1713 = vmatpush.bf16.msra.mxu2 %v3157_v58  ;;  %v4199_v59 = vld [vmem:[%s4883_s0 + $0x24] sm:$0xf0] }
  0x2a   :  { %v3140_v0 = vld [vmem:[#allocation2 + $0x240] sm:$0xf]  ;;  %v4276_v1 = vld [vmem:[#allocation2 + $0x24c] sm:$0xf0]  ;;  %v3013_v5 = vor.u32 %v4244_v63, %v3012_v61  ;;  %1727 = vmatpush.bf16.msra.mxu3 %v3285_v62 }
  0x2b   :  { %v3268_v2 = vld [vmem:[#allocation2 + $0x340] sm:$0xf]  ;;  %v4308_v3 = vld [vmem:[#allocation2 + $0x34c] sm:$0xf0]  ;;  %v3141_v6 = vor.u32 %v4276_v1, %v3140_v0  ;;  %1686 = vmatpush.bf16.msra.mxu0 %v2885_v4  ;;  %v4727_v1 = vor.u32 %v4199_v59, %v2828_v54 }
  0x2c   :  { %v2868_v7 = vld [vmem:[#allocation2 + $0x20] sm:$0xf]  ;;  %v4208_v8 = vld [vmem:[#allocation2 + $0x2c] sm:$0xf0]  ;;  %v3269_v10 = vor.u32 %v4308_v3, %v3268_v2  ;;  %1700 = vmatpush.bf16.msra.mxu1 %v3013_v5 }
  0x2d   :  { %v2996_v9 = vld [vmem:[#allocation2 + $0x120] sm:$0xf]  ;;  %v4240_v11 = vld [vmem:[#allocation2 + $0x12c] sm:$0xf0]  ;;  %v2869_v16 = vor.u32 %v4208_v8, %v2868_v7  ;;  %1714 = vmatpush.bf16.msra.mxu2 %v3141_v6  ;;  %v4194_v6 = vld [vmem:[%s4883_s0 + $0x4] sm:$0xf] }
  0x2e   :  { %v3124_v12 = vld [vmem:[#allocation2 + $0x220] sm:$0xf]  ;;  %v4272_v13 = vld [vmem:[#allocation2 + $0x22c] sm:$0xf0]  ;;  %v2997_v19 = vor.u32 %v4240_v11, %v2996_v9  ;;  %1728 = vmatpush.bf16.msra.mxu3 %v3269_v10  ;;  %v2822_v7 = vld [vmem:[%s4883_s0 + $0x20] sm:$0xf0] }
  0x2f   :  { %v3252_v14 = vld [vmem:[#allocation2 + $0x320] sm:$0xf]  ;;  %v4304_v15 = vld [vmem:[#allocation2 + $0x32c] sm:$0xf0]  ;;  %v3125_v20 = vor.u32 %v4272_v13, %v3124_v12  ;;  %1687 = vmatpush.bf16.msra.mxu0 %v2869_v16  ;;  %v4195_v8 = vld [vmem:[%s4883_s0 + $0xc] sm:$0xf]  ;;  %v4740_v10 = vor.u32 %v4194_v6, %v2822_v7 }
  0x30   :  { %v2852_v17 = vld [vmem:[#allocation2] sm:$0xf]  ;;  %v4204_v18 = vld [vmem:[#allocation2 + $0xc] sm:$0xf0]  ;;  %v3253_v24 = vor.u32 %v4304_v15, %v3252_v14  ;;  %1701 = vmatpush.bf16.msra.mxu1 %v2997_v19  ;;  %v2830_v11 = vld [vmem:[%s4883_s0 + $0x28] sm:$0xf0] }
  0x31   :  { %v2980_v21 = vld [vmem:[#allocation2 + $0x100] sm:$0xf]  ;;  %v4236_v22 = vld [vmem:[#allocation2 + $0x10c] sm:$0xf0]  ;;  %v2853_v31 = vor.u32 %v4204_v18, %v2852_v17  ;;  %1715 = vmatpush.bf16.msra.mxu2 %v3125_v20  ;;  %v4745_v17 = vor.u32 %v4195_v8, %v2830_v11 }
  0x32   :  { %v3108_v23 = vld [vmem:[#allocation2 + $0x200] sm:$0xf]  ;;  %v4268_v25 = vld [vmem:[#allocation2 + $0x20c] sm:$0xf0]  ;;  %v2981_v35 = vor.u32 %v4236_v22, %v2980_v21  ;;  %1729 = vmatpush.bf16.msra.mxu3 %v3253_v24 }
  0x33   :  { %v3236_v26 = vld [vmem:[#allocation2 + $0x300] sm:$0xf]  ;;  %v4300_v27 = vld [vmem:[#allocation2 + $0x30c] sm:$0xf0]  ;;  %v3109_v36 = vor.u32 %v4268_v25, %v3108_v23  ;;  %1688 = vmatpush.bf16.msra.mxu0 %v2853_v31 }
  0x34   :  { %v3476_v28 = vld [vmem:[#allocation2 + $0x4e0] sm:$0xf]  ;;  %v4360_v29 = vld [vmem:[#allocation2 + $0x4ec] sm:$0xf0]  ;;  %v3237_v39 = vor.u32 %v4300_v27, %v3236_v26  ;;  %1702 = vmatpush.bf16.msra.mxu1 %v2981_v35 }
  0x35   :  { %v3604_v30 = vld [vmem:[#allocation2 + $0x5e0] sm:$0xf]  ;;  %v4392_v32 = vld [vmem:[#allocation2 + $0x5ec] sm:$0xf0]  ;;  %v3477_v40 = vor.u32 %v4360_v29, %v3476_v28  ;;  %1716 = vmatpush.bf16.msra.mxu2 %v3109_v36 }
  0x36   :  { %v3732_v33 = vld [vmem:[#allocation2 + $0x6e0] sm:$0xf]  ;;  %v4424_v34 = vld [vmem:[#allocation2 + $0x6ec] sm:$0xf0]  ;;  %v3605_v43 = vor.u32 %v4392_v32, %v3604_v30  ;;  %1730 = vmatpush.bf16.msra.mxu3 %v3237_v39 }
  0x37   :  { %v3860_v37 = vld [vmem:[#allocation2 + $0x7e0] sm:$0xf]  ;;  %v4456_v38 = vld [vmem:[#allocation2 + $0x7ec] sm:$0xf0]  ;;  %v3733_v44 = vor.u32 %v4424_v34, %v3732_v33  ;;  %1737 = vmatpush.bf16.msrb.mxu0 %v3477_v40  ;;  %1703 = vmatmul.bf16.vlgmr.msra.gmra.mxu1 %v4740_v10 }
  0x38   :  { %v3460_v41 = vld [vmem:[#allocation2 + $0x4c0] sm:$0xf]  ;;  %v4356_v42 = vld [vmem:[#allocation2 + $0x4cc] sm:$0xf0]  ;;  %v3861_v48 = vor.u32 %v4456_v38, %v3860_v37  ;;  %1751 = vmatpush.bf16.msrb.mxu1 %v3605_v43  ;;  %1717 = vmatmul.bf16.vlgmr.msra.gmra.mxu2 %v4727_v1 }
  0x39   :  { %v3588_v45 = vld [vmem:[#allocation2 + $0x5c0] sm:$0xf]  ;;  %v4388_v46 = vld [vmem:[#allocation2 + $0x5cc] sm:$0xf0]  ;;  %v3461_v55 = vor.u32 %v4356_v42, %v3460_v41  ;;  %1765 = vmatpush.bf16.msrb.mxu2 %v3733_v44  ;;  %1731 = vmatmul.bf16.vlgmr.msra.gmra.mxu3 %v4745_v17 }
  0x3a   :  { %v3716_v47 = vld [vmem:[#allocation2 + $0x6c0] sm:$0xf]  ;;  %v4420_v49 = vld [vmem:[#allocation2 + $0x6cc] sm:$0xf0]  ;;  %v3589_v60 = vor.u32 %v4388_v46, %v3588_v45  ;;  %1779 = vmatpush.bf16.msrb.mxu3 %v3861_v48 }
  0x3b   :  { %v3844_v50 = vld [vmem:[#allocation2 + $0x7c0] sm:$0xf]  ;;  %v4452_v51 = vld [vmem:[#allocation2 + $0x7cc] sm:$0xf0]  ;;  %v3717_v61 = vor.u32 %v4420_v49, %v3716_v47  ;;  %1738 = vmatpush.bf16.msrb.mxu0 %v3461_v55 }
  0x3c   :  { %v2820_v52 = vld [vmem:[%s4883_s0] sm:$0xf]  ;;  %v4352_v57 = vld [vmem:[#allocation2 + $0x4ac] sm:$0xf0]  ;;  %v3845_v2 = vor.u32 %v4452_v51, %v3844_v50  ;;  %1752 = vmatpush.bf16.msrb.mxu1 %v3589_v60 }
  0x3d   :  { %v4198_v53 = vld [vmem:[%s4883_s0 + $0x1c] sm:$0xf0]  ;;  %v4384_v63 = vld [vmem:[#allocation2 + $0x5ac] sm:$0xf0]  ;;  %1766 = vmatpush.bf16.msrb.mxu2 %v3717_v61 }
  0x3e   :  { %v3444_v56 = vld [vmem:[#allocation2 + $0x4a0] sm:$0xf]  ;;  %v4722_v58 = vor.u32 %v4198_v53, %v2820_v52  ;;  %v4416_v3 = vld [vmem:[#allocation2 + $0x6ac] sm:$0xf0]  ;;  %1780 = vmatpush.bf16.msrb.mxu3 %v3845_v2 }
  0x3f   :  { %v3572_v62 = vld [vmem:[#allocation2 + $0x5a0] sm:$0xf]  ;;  %v4448_v5 = vld [vmem:[#allocation2 + $0x7ac] sm:$0xf0]  ;;  %v3445_v9 = vor.u32 %v4352_v57, %v3444_v56 }
  0x40   :  { %v3700_v0 = vld [vmem:[#allocation2 + $0x6a0] sm:$0xf]  ;;  %1689 = vmatmul.bf16.vlgmr.msra.gmra.mxu0 %v4722_v58  ;;  %v3573_v12 = vor.u32 %v4384_v63, %v3572_v62  ;;  %v4348_v15 = vld [vmem:[#allocation2 + $0x48c] sm:$0xf0] }
  0x41   :  { %v3828_v4 = vld [vmem:[#allocation2 + $0x7a0] sm:$0xf]  ;;  %v3701_v13 = vor.u32 %v4416_v3, %v3700_v0  ;;  %v4380_v19 = vld [vmem:[#allocation2 + $0x58c] sm:$0xf0]  ;;  %1739 = vmatpush.bf16.msrb.mxu0 %v3445_v9  ;;  %v4230_v9 = vld [vmem:[#allocation2 + $0xe4] sm:$0xf] }
  0x42   :  { %v3428_v14 = vld [vmem:[#allocation2 + $0x480] sm:$0xf]  ;;  %v3829_v18 = vor.u32 %v4448_v5, %v3828_v4  ;;  %v4412_v21 = vld [vmem:[#allocation2 + $0x68c] sm:$0xf0]  ;;  %1753 = vmatpush.bf16.msrb.mxu1 %v3573_v12  ;;  %v2966_v12 = vld [vmem:[#allocation2 + $0xf0] sm:$0xf0] }
  0x43   :  { %v3556_v16 = vld [vmem:[#allocation2 + $0x580] sm:$0xf]  ;;  %v4444_v23 = vld [vmem:[#allocation2 + $0x78c] sm:$0xf0]  ;;  %v3429_v24 = vor.u32 %v4348_v15, %v3428_v14  ;;  %1767 = vmatpush.bf16.msrb.mxu2 %v3701_v13  ;;  %v4262_v13 = vld [vmem:[#allocation2 + $0x1e4] sm:$0xf] }
  0x44   :  { %v3684_v20 = vld [vmem:[#allocation2 + $0x680] sm:$0xf]  ;;  %v3557_v25 = vor.u32 %v4380_v19, %v3556_v16  ;;  %v4344_v28 = vld [vmem:[#allocation2 + $0x46c] sm:$0xf0]  ;;  %1781 = vmatpush.bf16.msrb.mxu3 %v3829_v18  ;;  %v3094_v14 = vld [vmem:[#allocation2 + $0x1f0] sm:$0xf0] }
  0x45   :  { %v3812_v22 = vld [vmem:[#allocation2 + $0x780] sm:$0xf]  ;;  %v3685_v26 = vor.u32 %v4412_v21, %v3684_v20  ;;  %v4376_v31 = vld [vmem:[#allocation2 + $0x56c] sm:$0xf0]  ;;  %1740 = vmatpush.bf16.msrb.mxu0 %v3429_v24  ;;  %v4294_v15 = vld [vmem:[#allocation2 + $0x2e4] sm:$0xf] }
  0x46   :  { %v3412_v27 = vld [vmem:[#allocation2 + $0x460] sm:$0xf]  ;;  %v3813_v30 = vor.u32 %v4444_v23, %v3812_v22  ;;  %v4408_v33 = vld [vmem:[#allocation2 + $0x66c] sm:$0xf0]  ;;  %1754 = vmatpush.bf16.msrb.mxu1 %v3557_v25  ;;  %v3222_v16 = vld [vmem:[#allocation2 + $0x2f0] sm:$0xf0] }
  0x47   :  { %v3540_v29 = vld [vmem:[#allocation2 + $0x560] sm:$0xf]  ;;  %v4440_v35 = vld [vmem:[#allocation2 + $0x76c] sm:$0xf0]  ;;  %v3413_v36 = vor.u32 %v4344_v28, %v3412_v27  ;;  %1768 = vmatpush.bf16.msrb.mxu2 %v3685_v26  ;;  %v4326_v18 = vld [vmem:[#allocation2 + $0x3e4] sm:$0xf] }
  0x48   :  { %v3668_v32 = vld [vmem:[#allocation2 + $0x660] sm:$0xf]  ;;  %v3541_v37 = vor.u32 %v4376_v31, %v3540_v29  ;;  %v4340_v40 = vld [vmem:[#allocation2 + $0x44c] sm:$0xf0]  ;;  %1782 = vmatpush.bf16.msrb.mxu3 %v3813_v30  ;;  %v3350_v20 = vld [vmem:[#allocation2 + $0x3f0] sm:$0xf0]  ;;  %v2969_v29 = vor.u32 %v4230_v9, %v2966_v12 }
  0x49   :  { %v3796_v34 = vld [vmem:[#allocation2 + $0x760] sm:$0xf]  ;;  %v3669_v38 = vor.u32 %v4408_v33, %v3668_v32  ;;  %v4372_v43 = vld [vmem:[#allocation2 + $0x54c] sm:$0xf0]  ;;  %1741 = vmatpush.bf16.msrb.mxu0 %v3413_v36  ;;  %v2844_v25 = vld [vmem:[%s4883_s0 + $0x18] sm:$0xf]  ;;  %v3097_v33 = vor.u32 %v4262_v13, %v3094_v14 }
  0x4a   :  { %v3396_v39 = vld [vmem:[#allocation2 + $0x440] sm:$0xf]  ;;  %v3797_v42 = vor.u32 %v4440_v35, %v3796_v34  ;;  %v4404_v45 = vld [vmem:[#allocation2 + $0x64c] sm:$0xf0]  ;;  %1755 = vmatpush.bf16.msrb.mxu1 %v3541_v37  ;;  %v4201_v26 = vld [vmem:[%s4883_s0 + $0x34] sm:$0xf0]  ;;  %v3225_v34 = vor.u32 %v4294_v15, %v3222_v16 }
  0x4b   :  { %v3524_v41 = vld [vmem:[#allocation2 + $0x540] sm:$0xf]  ;;  %v4436_v47 = vld [vmem:[#allocation2 + $0x74c] sm:$0xf0]  ;;  %v3397_v48 = vor.u32 %v4340_v40, %v3396_v39  ;;  %1769 = vmatpush.bf16.msrb.mxu2 %v3669_v38  ;;  %v4196_v27 = vld [vmem:[%s4883_s0 + $0x14] sm:$0xf]  ;;  %v3353_v38 = vor.u32 %v4326_v18, %v3350_v20 }
  0x4c   :  { %v3652_v44 = vld [vmem:[#allocation2 + $0x640] sm:$0xf]  ;;  %v3525_v50 = vor.u32 %v4372_v43, %v3524_v41  ;;  %v4336_v52 = vld [vmem:[#allocation2 + $0x42c] sm:$0xf0]  ;;  %1783 = vmatpush.bf16.msrb.mxu3 %v3797_v42  ;;  %v2838_v30 = vld [vmem:[%s4883_s0 + $0x30] sm:$0xf0]  ;;  %v4775_v43 = vor.u32 %v4201_v26, %v2844_v25 }
  0x4d   :  { %v3780_v46 = vld [vmem:[#allocation2 + $0x740] sm:$0xf]  ;;  %v3653_v51 = vor.u32 %v4404_v45, %v3652_v44  ;;  %v4368_v54 = vld [vmem:[#allocation2 + $0x52c] sm:$0xf0]  ;;  %1742 = vmatpush.bf16.msrb.mxu0 %v3397_v48  ;;  %v4197_v31 = vld [vmem:[%s4883_s0 + $0x1c] sm:$0xf]  ;;  %v4777_v44 = vor.u32 %v4196_v27, %v2838_v30 }
  0x4e   :  { %v3380_v49 = vld [vmem:[#allocation2 + $0x420] sm:$0xf]  ;;  %v3781_v55 = vor.u32 %v4436_v47, %v3780_v46  ;;  %v4400_v57 = vld [vmem:[#allocation2 + $0x62c] sm:$0xf0]  ;;  %1756 = vmatpush.bf16.msrb.mxu1 %v3525_v50  ;;  %v2846_v32 = vld [vmem:[%s4883_s0 + $0x38] sm:$0xf0] }
  0x4f   :  { %v3508_v53 = vld [vmem:[#allocation2 + $0x520] sm:$0xf]  ;;  %v4432_v60 = vld [vmem:[#allocation2 + $0x72c] sm:$0xf0]  ;;  %v3381_v63 = vor.u32 %v4336_v52, %v3380_v49  ;;  %1770 = vmatpush.bf16.msrb.mxu2 %v3653_v51  ;;  %v4226_v35 = vld [vmem:[#allocation2 + $0xc4] sm:$0xf]  ;;  %v4779_v47 = vor.u32 %v4197_v31, %v2846_v32 }
  0x50   :  { %v3636_v56 = vld [vmem:[#allocation2 + $0x620] sm:$0xf]  ;;  %v4332_v62 = vld [vmem:[#allocation2 + $0x40c] sm:$0xf0]  ;;  %v3509_v5 = vor.u32 %v4368_v54, %v3508_v53  ;;  %1784 = vmatpush.bf16.msrb.mxu3 %v3781_v55  ;;  %v2950_v36 = vld [vmem:[#allocation2 + $0xd0] sm:$0xf0] }
  0x51   :  { %v3764_v59 = vld [vmem:[#allocation2 + $0x720] sm:$0xf]  ;;  %v4364_v2 = vld [vmem:[#allocation2 + $0x50c] sm:$0xf0]  ;;  %v3637_v6 = vor.u32 %v4400_v57, %v3636_v56  ;;  %1743 = vmatpush.bf16.msrb.mxu0 %v3381_v63  ;;  %v4258_v37 = vld [vmem:[#allocation2 + $0x1c4] sm:$0xf]  ;;  %v2953_v48 = vor.u32 %v4226_v35, %v2950_v36 }
  0x52   :  { %v3364_v61 = vld [vmem:[#allocation2 + $0x400] sm:$0xf]  ;;  %v4396_v4 = vld [vmem:[#allocation2 + $0x60c] sm:$0xf0]  ;;  %v3765_v11 = vor.u32 %v4432_v60, %v3764_v59  ;;  %1757 = vmatpush.bf16.msrb.mxu1 %v3509_v5  ;;  %v3078_v40 = vld [vmem:[#allocation2 + $0x1d0] sm:$0xf0] }
  0x53   :  { %v3492_v0 = vld [vmem:[#allocation2 + $0x500] sm:$0xf]  ;;  %v4428_v8 = vld [vmem:[#allocation2 + $0x70c] sm:$0xf0]  ;;  %v3365_v19 = vor.u32 %v4332_v62, %v3364_v61  ;;  %1771 = vmatpush.bf16.msrb.mxu2 %v3637_v6  ;;  %v4290_v41 = vld [vmem:[#allocation2 + $0x2c4] sm:$0xf]  ;;  %v3081_v49 = vor.u32 %v4258_v37, %v3078_v40 }
  0x54   :  { %v3620_v3 = vld [vmem:[#allocation2 + $0x600] sm:$0xf]  ;;  %v2836_v21 = vld [vmem:[%s4883_s0 + $0x10] sm:$0xf]  ;;  %v3493_v23 = vor.u32 %v4364_v2, %v3492_v0  ;;  %1785 = vmatpush.bf16.msrb.mxu3 %v3765_v11  ;;  %v3206_v42 = vld [vmem:[#allocation2 + $0x2d0] sm:$0xf0] }
  0x55   :  { %v3748_v7 = vld [vmem:[#allocation2 + $0x700] sm:$0xf]  ;;  %v4200_v22 = vld [vmem:[%s4883_s0 + $0x2c] sm:$0xf0]  ;;  %v3621_v24 = vor.u32 %v4396_v4, %v3620_v3  ;;  %1744 = vmatpush.bf16.msrb.mxu0 %v3365_v19  ;;  %v4322_v45 = vld [vmem:[#allocation2 + $0x3c4] sm:$0xf]  ;;  %v3209_v50 = vor.u32 %v4290_v41, %v3206_v42 }
  0x56   :  { %v3749_v28 = vor.u32 %v4428_v8, %v3748_v7  ;;  %v4773_v39 = vor.u32 %v4200_v22, %v2836_v21  ;;  %1758 = vmatpush.bf16.msrb.mxu1 %v3493_v23  ;;  %v3334_v46 = vld [vmem:[#allocation2 + $0x3d0] sm:$0xf0]  ;;  %v4222_v51 = vld [vmem:[#allocation2 + $0xa4] sm:$0xf] }
  0x57   :  { %1772 = vmatpush.bf16.msrb.mxu2 %v3621_v24  ;;  %v2934_v52 = vld [vmem:[#allocation2 + $0xb0] sm:$0xf0]  ;;  %v4254_v53 = vld [vmem:[#allocation2 + $0x1a4] sm:$0xf]  ;;  %v3337_v54 = vor.u32 %v4322_v45, %v3334_v46 }
  0x58   :  { %1786 = vmatpush.bf16.msrb.mxu3 %v3749_v28  ;;  %1745 = vmatmul.bf16.vlgmr.msrb.gmra.mxu0 %v4773_v39  ;;  %v3062_v55 = vld [vmem:[#allocation2 + $0x1b0] sm:$0xf0]  ;;  %v4286_v56 = vld [vmem:[#allocation2 + $0x2a4] sm:$0xf]  ;;  %v2937_v61 = vor.u32 %v4222_v51, %v2934_v52 }
  0x59   :  { %1793 = vmatpush.bf16.msra.mxu0 %v2969_v29  ;;  %v3190_v57 = vld [vmem:[#allocation2 + $0x2b0] sm:$0xf0]  ;;  %1759 = vmatmul.bf16.vlgmr.msrb.gmra.mxu1 %v4777_v44  ;;  %v4318_v59 = vld [vmem:[#allocation2 + $0x3a4] sm:$0xf]  ;;  %v3065_v62 = vor.u32 %v4254_v53, %v3062_v55 }
  0x5a   :  { %1807 = vmatpush.bf16.msra.mxu1 %v3097_v33  ;;  %1773 = vmatmul.bf16.vlgmr.msrb.gmra.mxu2 %v4775_v43  ;;  %v3318_v60 = vld [vmem:[#allocation2 + $0x3b0] sm:$0xf0]  ;;  %v3193_v63 = vor.u32 %v4286_v56, %v3190_v57  ;;  %v4218_v0 = vld [vmem:[#allocation2 + $0x84] sm:$0xf] }
  0x5b   :  { %1821 = vmatpush.bf16.msra.mxu2 %v3225_v34  ;;  %1787 = vmatmul.bf16.vlgmr.msrb.gmra.mxu3 %v4779_v47  ;;  %v2918_v2 = vld [vmem:[#allocation2 + $0x90] sm:$0xf0]  ;;  %v4250_v3 = vld [vmem:[#allocation2 + $0x184] sm:$0xf]  ;;  %v3321_v4 = vor.u32 %v4318_v59, %v3318_v60 }
  0x5c   :  { %1835 = vmatpush.bf16.msra.mxu3 %v3353_v38  ;;  %v3046_v5 = vld [vmem:[#allocation2 + $0x190] sm:$0xf0]  ;;  %v4282_v6 = vld [vmem:[#allocation2 + $0x284] sm:$0xf]  ;;  %v2921_v11 = vor.u32 %v4218_v0, %v2918_v2 }
  0x5d   :  { %1794 = vmatpush.bf16.msra.mxu0 %v2953_v48  ;;  %v3174_v7 = vld [vmem:[#allocation2 + $0x290] sm:$0xf0]  ;;  %v4314_v8 = vld [vmem:[#allocation2 + $0x384] sm:$0xf]  ;;  %v3049_v12 = vor.u32 %v4250_v3, %v3046_v5 }
  0x5e   :  { %1808 = vmatpush.bf16.msra.mxu1 %v3081_v49  ;;  %v3302_v9 = vld [vmem:[#allocation2 + $0x390] sm:$0xf0]  ;;  %v3177_v13 = vor.u32 %v4282_v6, %v3174_v7  ;;  %v4214_v14 = vld [vmem:[#allocation2 + $0x64] sm:$0xf] }
  0x5f   :  { %1822 = vmatpush.bf16.msra.mxu2 %v3209_v50  ;;  %v2902_v15 = vld [vmem:[#allocation2 + $0x70] sm:$0xf0]  ;;  %v4246_v16 = vld [vmem:[#allocation2 + $0x164] sm:$0xf]  ;;  %v3305_v18 = vor.u32 %v4314_v8, %v3302_v9 }
  0x60   :  { %1836 = vmatpush.bf16.msra.mxu3 %v3337_v54  ;;  %v3030_v19 = vld [vmem:[#allocation2 + $0x170] sm:$0xf0]  ;;  %v4278_v20 = vld [vmem:[#allocation2 + $0x264] sm:$0xf]  ;;  %v2905_v24 = vor.u32 %v4214_v14, %v2902_v15 }
  0x61   :  { %1795 = vmatpush.bf16.msra.mxu0 %v2937_v61  ;;  %v3158_v21 = vld [vmem:[#allocation2 + $0x270] sm:$0xf0]  ;;  %v4310_v22 = vld [vmem:[#allocation2 + $0x364] sm:$0xf]  ;;  %v3033_v25 = vor.u32 %v4246_v16, %v3030_v19 }
  0x62   :  { %1809 = vmatpush.bf16.msra.mxu1 %v3065_v62  ;;  %v3286_v23 = vld [vmem:[#allocation2 + $0x370] sm:$0xf0]  ;;  %v3161_v26 = vor.u32 %v4278_v20, %v3158_v21  ;;  %v4210_v27 = vld [vmem:[#allocation2 + $0x44] sm:$0xf] }
  0x63   :  { %1823 = vmatpush.bf16.msra.mxu2 %v3193_v63  ;;  %v2886_v28 = vld [vmem:[#allocation2 + $0x50] sm:$0xf0]  ;;  %v4242_v29 = vld [vmem:[#allocation2 + $0x144] sm:$0xf]  ;;  %v3289_v30 = vor.u32 %v4310_v22, %v3286_v23 }
  0x64   :  { %1837 = vmatpush.bf16.msra.mxu3 %v3321_v4  ;;  %v3014_v31 = vld [vmem:[#allocation2 + $0x150] sm:$0xf0]  ;;  %v4274_v32 = vld [vmem:[#allocation2 + $0x244] sm:$0xf]  ;;  %v2889_v36 = vor.u32 %v4210_v27, %v2886_v28 }
  0x65   :  { %1796 = vmatpush.bf16.msra.mxu0 %v2921_v11  ;;  %v3142_v33 = vld [vmem:[#allocation2 + $0x250] sm:$0xf0]  ;;  %v4306_v34 = vld [vmem:[#allocation2 + $0x344] sm:$0xf]  ;;  %v3017_v37 = vor.u32 %v4242_v29, %v3014_v31 }
  0x66   :  { %1810 = vmatpush.bf16.msra.mxu1 %v3049_v12  ;;  %v3270_v35 = vld [vmem:[#allocation2 + $0x350] sm:$0xf0]  ;;  %v3145_v38 = vor.u32 %v4274_v32, %v3142_v33  ;;  %v4206_v40 = vld [vmem:[#allocation2 + $0x24] sm:$0xf] }
  0x67   :  { %1824 = vmatpush.bf16.msra.mxu2 %v3177_v13  ;;  %v2870_v41 = vld [vmem:[#allocation2 + $0x30] sm:$0xf0]  ;;  %v4238_v42 = vld [vmem:[#allocation2 + $0x124] sm:$0xf]  ;;  %v3273_v45 = vor.u32 %v4306_v34, %v3270_v35 }
  0x68   :  { %1838 = vmatpush.bf16.msra.mxu3 %v3305_v18  ;;  %v2998_v46 = vld [vmem:[#allocation2 + $0x130] sm:$0xf0]  ;;  %v4270_v48 = vld [vmem:[#allocation2 + $0x224] sm:$0xf]  ;;  %v2873_v52 = vor.u32 %v4206_v40, %v2870_v41 }
  0x69   :  { %1797 = vmatpush.bf16.msra.mxu0 %v2905_v24  ;;  %v3126_v49 = vld [vmem:[#allocation2 + $0x230] sm:$0xf0]  ;;  %v4302_v50 = vld [vmem:[#allocation2 + $0x324] sm:$0xf]  ;;  %v3001_v55 = vor.u32 %v4238_v42, %v2998_v46 }
  0x6a   :  { %1811 = vmatpush.bf16.msra.mxu1 %v3033_v25  ;;  %v3254_v51 = vld [vmem:[#allocation2 + $0x330] sm:$0xf0]  ;;  %v4202_v53 = vld [vmem:[#allocation2 + $0x4] sm:$0xf]  ;;  %v3129_v56 = vor.u32 %v4270_v48, %v3126_v49 }
  0x6b   :  { %1825 = vmatpush.bf16.msra.mxu2 %v3161_v26  ;;  %v2854_v54 = vld [vmem:[#allocation2 + $0x10] sm:$0xf0]  ;;  %v4234_v57 = vld [vmem:[#allocation2 + $0x104] sm:$0xf]  ;;  %v3257_v61 = vor.u32 %v4302_v50, %v3254_v51 }
  0x6c   :  { %1839 = vmatpush.bf16.msra.mxu3 %v3289_v30  ;;  %v2982_v59 = vld [vmem:[#allocation2 + $0x110] sm:$0xf0]  ;;  %v4266_v60 = vld [vmem:[#allocation2 + $0x204] sm:$0xf]  ;;  %v2857_v5 = vor.u32 %v4202_v53, %v2854_v54 }
  0x6d   :  { %1798 = vmatpush.bf16.msra.mxu0 %v2889_v36  ;;  %v3110_v62 = vld [vmem:[#allocation2 + $0x210] sm:$0xf0]  ;;  %v4298_v63 = vld [vmem:[#allocation2 + $0x304] sm:$0xf]  ;;  %v2985_v9 = vor.u32 %v4234_v57, %v2982_v59 }
  0x6e   :  { %1812 = vmatpush.bf16.msra.mxu1 %v3017_v37  ;;  %v3238_v0 = vld [vmem:[#allocation2 + $0x310] sm:$0xf0]  ;;  %v4358_v2 = vld [vmem:[#allocation2 + $0x4e4] sm:$0xf]  ;;  %v3113_v11 = vor.u32 %v4266_v60, %v3110_v62 }
  0x6f   :  { %1826 = vmatpush.bf16.msra.mxu2 %v3145_v38  ;;  %v3478_v3 = vld [vmem:[#allocation2 + $0x4f0] sm:$0xf0]  ;;  %v4390_v4 = vld [vmem:[#allocation2 + $0x5e4] sm:$0xf]  ;;  %v3241_v14 = vor.u32 %v4298_v63, %v3238_v0 }
  0x70   :  { %1840 = vmatpush.bf16.msra.mxu3 %v3273_v45  ;;  %v3606_v6 = vld [vmem:[#allocation2 + $0x5f0] sm:$0xf0]  ;;  %v4422_v7 = vld [vmem:[#allocation2 + $0x6e4] sm:$0xf]  ;;  %v3481_v15 = vor.u32 %v4358_v2, %v3478_v3 }
  0x71   :  { %1799 = vmatpush.bf16.msra.mxu0 %v2873_v52  ;;  %v3734_v8 = vld [vmem:[#allocation2 + $0x6f0] sm:$0xf0]  ;;  %v4454_v12 = vld [vmem:[#allocation2 + $0x7e4] sm:$0xf]  ;;  %v3609_v16 = vor.u32 %v4390_v4, %v3606_v6 }
  0x72   :  { %1813 = vmatpush.bf16.msra.mxu1 %v3001_v55  ;;  %v3862_v13 = vld [vmem:[#allocation2 + $0x7f0] sm:$0xf0]  ;;  %v3737_v18 = vor.u32 %v4422_v7, %v3734_v8  ;;  %v4354_v19 = vld [vmem:[#allocation2 + $0x4c4] sm:$0xf] }
  0x73   :  { %1827 = vmatpush.bf16.msra.mxu2 %v3129_v56  ;;  %v3462_v20 = vld [vmem:[#allocation2 + $0x4d0] sm:$0xf0]  ;;  %v4386_v21 = vld [vmem:[#allocation2 + $0x5c4] sm:$0xf]  ;;  %v3865_v22 = vor.u32 %v4454_v12, %v3862_v13 }
  0x74   :  { %1841 = vmatpush.bf16.msra.mxu3 %v3257_v61  ;;  %v3590_v23 = vld [vmem:[#allocation2 + $0x5d0] sm:$0xf0]  ;;  %v4418_v24 = vld [vmem:[#allocation2 + $0x6c4] sm:$0xf]  ;;  %v3465_v28 = vor.u32 %v4354_v19, %v3462_v20 }
  0x75   :  { %1800 = vmatpush.bf16.msra.mxu0 %v2857_v5  ;;  %v3718_v25 = vld [vmem:[#allocation2 + $0x6d0] sm:$0xf0]  ;;  %v4450_v26 = vld [vmem:[#allocation2 + $0x7c4] sm:$0xf]  ;;  %v3593_v29 = vor.u32 %v4386_v21, %v3590_v23 }
  0x76   :  { %1814 = vmatpush.bf16.msra.mxu1 %v2985_v9  ;;  %v3846_v27 = vld [vmem:[#allocation2 + $0x7d0] sm:$0xf0]  ;;  %v3721_v30 = vor.u32 %v4418_v24, %v3718_v25  ;;  %v4350_v31 = vld [vmem:[#allocation2 + $0x4a4] sm:$0xf] }
  0x77   :  { %1828 = vmatpush.bf16.msra.mxu2 %v3113_v11  ;;  %v3446_v32 = vld [vmem:[#allocation2 + $0x4b0] sm:$0xf0]  ;;  %v4382_v33 = vld [vmem:[#allocation2 + $0x5a4] sm:$0xf]  ;;  %v3849_v34 = vor.u32 %v4450_v26, %v3846_v27 }
  0x78   :  { %1842 = vmatpush.bf16.msra.mxu3 %v3241_v14  ;;  %v3574_v35 = vld [vmem:[#allocation2 + $0x5b0] sm:$0xf0]  ;;  %v4414_v36 = vld [vmem:[#allocation2 + $0x6a4] sm:$0xf]  ;;  %1801 = vmatmul.bf16.vlgmr.msra.gmra.mxu0 %v4722_v58  ;;  %v3449_v41 = vor.u32 %v4350_v31, %v3446_v32 }
  0x79   :  { %1849 = vmatpush.bf16.msrb.mxu0 %v3481_v15  ;;  %v3702_v37 = vld [vmem:[#allocation2 + $0x6b0] sm:$0xf0]  ;;  %v4446_v38 = vld [vmem:[#allocation2 + $0x7a4] sm:$0xf]  ;;  %1815 = vmatmul.bf16.vlgmr.msra.gmra.mxu1 %v4740_v10  ;;  %v3577_v42 = vor.u32 %v4382_v33, %v3574_v35 }
  0x7a   :  { %1863 = vmatpush.bf16.msrb.mxu1 %v3609_v16  ;;  %v3830_v40 = vld [vmem:[#allocation2 + $0x7b0] sm:$0xf0]  ;;  %1829 = vmatmul.bf16.vlgmr.msra.gmra.mxu2 %v4727_v1  ;;  %v3705_v45 = vor.u32 %v4414_v36, %v3702_v37  ;;  %v4346_v46 = vld [vmem:[#allocation2 + $0x484] sm:$0xf] }
  0x7b   :  { %1877 = vmatpush.bf16.msrb.mxu2 %v3737_v18  ;;  %1843 = vmatmul.bf16.vlgmr.msra.gmra.mxu3 %v4745_v17  ;;  %v3430_v48 = vld [vmem:[#allocation2 + $0x490] sm:$0xf0]  ;;  %v4378_v49 = vld [vmem:[#allocation2 + $0x584] sm:$0xf]  ;;  %v3833_v50 = vor.u32 %v4446_v38, %v3830_v40 }
  0x7c   :  { %1891 = vmatpush.bf16.msrb.mxu3 %v3865_v22  ;;  %v3558_v51 = vld [vmem:[#allocation2 + $0x590] sm:$0xf0]  ;;  %v4410_v52 = vld [vmem:[#allocation2 + $0x684] sm:$0xf]  ;;  %v3433_v56 = vor.u32 %v4346_v46, %v3430_v48  ;;  %v2972_v48 = vld [vmem:[#allocation2 + $0xe8] sm:$0xf] }
  0x7d   :  { %1850 = vmatpush.bf16.msrb.mxu0 %v3465_v28  ;;  %v3686_v53 = vld [vmem:[#allocation2 + $0x690] sm:$0xf0]  ;;  %v4442_v54 = vld [vmem:[#allocation2 + $0x784] sm:$0xf]  ;;  %v3561_v57 = vor.u32 %v4378_v49, %v3558_v51  ;;  %v4233_v49 = vld [vmem:[#allocation2 + $0xf4] sm:$0xf0] }
  0x7e   :  { %1864 = vmatpush.bf16.msrb.mxu1 %v3593_v29  ;;  %v3814_v55 = vld [vmem:[#allocation2 + $0x790] sm:$0xf0]  ;;  %v3689_v59 = vor.u32 %v4410_v52, %v3686_v53  ;;  %v4342_v60 = vld [vmem:[#allocation2 + $0x464] sm:$0xf]  ;;  %v4265_v52 = vld [vmem:[#allocation2 + $0x1f4] sm:$0xf0] }
  0x7f   :  { %1878 = vmatpush.bf16.msrb.mxu2 %v3721_v30  ;;  %v3414_v61 = vld [vmem:[#allocation2 + $0x470] sm:$0xf0]  ;;  %v4374_v62 = vld [vmem:[#allocation2 + $0x564] sm:$0xf]  ;;  %v3817_v63 = vor.u32 %v4442_v54, %v3814_v55  ;;  %v3228_v53 = vld [vmem:[#allocation2 + $0x2e8] sm:$0xf] }
  0x80   :  { %1892 = vmatpush.bf16.msrb.mxu3 %v3849_v34  ;;  %v3542_v0 = vld [vmem:[#allocation2 + $0x570] sm:$0xf0]  ;;  %v4406_v2 = vld [vmem:[#allocation2 + $0x664] sm:$0xf]  ;;  %v3417_v6 = vor.u32 %v4342_v60, %v3414_v61  ;;  %v4297_v54 = vld [vmem:[#allocation2 + $0x2f4] sm:$0xf0]  ;;  %v2973_v61 = vor.u32 %v4233_v49, %v2972_v48 }
  0x81   :  { %1851 = vmatpush.bf16.msrb.mxu0 %v3449_v41  ;;  %v3670_v3 = vld [vmem:[#allocation2 + $0x670] sm:$0xf0]  ;;  %v4438_v4 = vld [vmem:[#allocation2 + $0x764] sm:$0xf]  ;;  %v3545_v7 = vor.u32 %v4374_v62, %v3542_v0  ;;  %v2956_v0 = vld [vmem:[#allocation2 + $0xc8] sm:$0xf] }
  0x82   :  { %1865 = vmatpush.bf16.msrb.mxu1 %v3577_v42  ;;  %v3798_v5 = vld [vmem:[#allocation2 + $0x770] sm:$0xf0]  ;;  %v3673_v8 = vor.u32 %v4406_v2, %v3670_v3  ;;  %v4338_v9 = vld [vmem:[#allocation2 + $0x444] sm:$0xf]  ;;  %v4229_v2 = vld [vmem:[#allocation2 + $0xd4] sm:$0xf0] }
  0x83   :  { %1879 = vmatpush.bf16.msrb.mxu2 %v3705_v45  ;;  %v3398_v11 = vld [vmem:[#allocation2 + $0x450] sm:$0xf0]  ;;  %v4370_v12 = vld [vmem:[#allocation2 + $0x544] sm:$0xf]  ;;  %v3801_v13 = vor.u32 %v4438_v4, %v3798_v5  ;;  %v3084_v3 = vld [vmem:[#allocation2 + $0x1c8] sm:$0xf] }
  0x84   :  { %1893 = vmatpush.bf16.msrb.mxu3 %v3833_v50  ;;  %v3526_v14 = vld [vmem:[#allocation2 + $0x550] sm:$0xf0]  ;;  %v4402_v15 = vld [vmem:[#allocation2 + $0x644] sm:$0xf]  ;;  %v3401_v20 = vor.u32 %v4338_v9, %v3398_v11  ;;  %v3100_v50 = vld [vmem:[#allocation2 + $0x1e8] sm:$0xf]  ;;  %v2957_v11 = vor.u32 %v4229_v2, %v2956_v0 }
  0x85   :  { %1852 = vmatpush.bf16.msrb.mxu0 %v3433_v56  ;;  %v3654_v16 = vld [vmem:[#allocation2 + $0x650] sm:$0xf0]  ;;  %v4434_v18 = vld [vmem:[#allocation2 + $0x744] sm:$0xf]  ;;  %v3529_v21 = vor.u32 %v4370_v12, %v3526_v14  ;;  %v3101_v62 = vor.u32 %v4265_v52, %v3100_v50  ;;  %v4261_v5 = vld [vmem:[#allocation2 + $0x1d4] sm:$0xf0] }
  0x86   :  { %1866 = vmatpush.bf16.msrb.mxu1 %v3561_v57  ;;  %v3782_v19 = vld [vmem:[#allocation2 + $0x750] sm:$0xf0]  ;;  %v3657_v22 = vor.u32 %v4402_v15, %v3654_v16  ;;  %v4334_v23 = vld [vmem:[#allocation2 + $0x424] sm:$0xf]  ;;  %v3356_v57 = vld [vmem:[#allocation2 + $0x3e8] sm:$0xf]  ;;  %v3085_v12 = vor.u32 %v4261_v5, %v3084_v3 }
  0x87   :  { %1880 = vmatpush.bf16.msrb.mxu2 %v3689_v59  ;;  %v3382_v24 = vld [vmem:[#allocation2 + $0x430] sm:$0xf0]  ;;  %v4366_v25 = vld [vmem:[#allocation2 + $0x524] sm:$0xf]  ;;  %v3785_v26 = vor.u32 %v4434_v18, %v3782_v19  ;;  %v4329_v59 = vld [vmem:[#allocation2 + $0x3f4] sm:$0xf0] }
  0x88   :  { %1894 = vmatpush.bf16.msrb.mxu3 %v3817_v63  ;;  %v3510_v27 = vld [vmem:[#allocation2 + $0x530] sm:$0xf0]  ;;  %v4398_v28 = vld [vmem:[#allocation2 + $0x624] sm:$0xf]  ;;  %v3385_v32 = vor.u32 %v4334_v23, %v3382_v24  ;;  %v3229_v63 = vor.u32 %v4297_v54, %v3228_v53  ;;  %v3357_v4 = vor.u32 %v4329_v59, %v3356_v57  ;;  %v4325_v9 = vld [vmem:[#allocation2 + $0x3d4] sm:$0xf0] }
  0x89   :  { %1853 = vmatpush.bf16.msrb.mxu0 %v3417_v6  ;;  %v3638_v29 = vld [vmem:[#allocation2 + $0x630] sm:$0xf0]  ;;  %v4430_v30 = vld [vmem:[#allocation2 + $0x724] sm:$0xf]  ;;  %v3513_v35 = vor.u32 %v4366_v25, %v3510_v27  ;;  %v3212_v6 = vld [vmem:[#allocation2 + $0x2c8] sm:$0xf] }
  0x8a   :  { %1867 = vmatpush.bf16.msrb.mxu1 %v3545_v7  ;;  %v3766_v31 = vld [vmem:[#allocation2 + $0x730] sm:$0xf0]  ;;  %v4330_v33 = vld [vmem:[#allocation2 + $0x404] sm:$0xf]  ;;  %v3641_v36 = vor.u32 %v4398_v28, %v3638_v29  ;;  %v4293_v7 = vld [vmem:[#allocation2 + $0x2d4] sm:$0xf0] }
  0x8b   :  { %1881 = vmatpush.bf16.msrb.mxu2 %v3673_v8  ;;  %v3366_v34 = vld [vmem:[#allocation2 + $0x410] sm:$0xf0]  ;;  %v4362_v37 = vld [vmem:[#allocation2 + $0x504] sm:$0xf]  ;;  %v3769_v41 = vor.u32 %v4430_v30, %v3766_v31  ;;  %v3340_v8 = vld [vmem:[#allocation2 + $0x3c8] sm:$0xf] }
  0x8c   :  { %1895 = vmatpush.bf16.msrb.mxu3 %v3801_v13  ;;  %v3494_v38 = vld [vmem:[#allocation2 + $0x510] sm:$0xf0]  ;;  %v4394_v40 = vld [vmem:[#allocation2 + $0x604] sm:$0xf]  ;;  %v3369_v51 = vor.u32 %v4330_v33, %v3366_v34  ;;  %v3213_v13 = vor.u32 %v4293_v7, %v3212_v6  ;;  %v2940_v14 = vld [vmem:[#allocation2 + $0xa8] sm:$0xf]  ;;  %v3341_v18 = vor.u32 %v4325_v9, %v3340_v8 }
  0x8d   :  { %1854 = vmatpush.bf16.msrb.mxu0 %v3401_v20  ;;  %v3622_v42 = vld [vmem:[#allocation2 + $0x610] sm:$0xf0]  ;;  %v4426_v45 = vld [vmem:[#allocation2 + $0x704] sm:$0xf]  ;;  %v3497_v55 = vor.u32 %v4362_v37, %v3494_v38  ;;  %v4225_v15 = vld [vmem:[#allocation2 + $0xb4] sm:$0xf0] }
  0x8e   :  { %1868 = vmatpush.bf16.msrb.mxu1 %v3529_v21  ;;  %v3750_v46 = vld [vmem:[#allocation2 + $0x710] sm:$0xf0]  ;;  %v3625_v56 = vor.u32 %v4394_v40, %v3622_v42  ;;  %v3068_v16 = vld [vmem:[#allocation2 + $0x1a8] sm:$0xf]  ;;  %v4257_v19 = vld [vmem:[#allocation2 + $0x1b4] sm:$0xf0]  ;;  %v2941_v24 = vor.u32 %v4225_v15, %v2940_v14 }
  0x8f   :  { %1882 = vmatpush.bf16.msrb.mxu2 %v3657_v22  ;;  %v3753_v60 = vor.u32 %v4426_v45, %v3750_v46  ;;  %v3196_v20 = vld [vmem:[#allocation2 + $0x2a8] sm:$0xf]  ;;  %v4289_v21 = vld [vmem:[#allocation2 + $0x2b4] sm:$0xf0]  ;;  %v3069_v25 = vor.u32 %v4257_v19, %v3068_v16 }
  0x90   :  { %1896 = vmatpush.bf16.msrb.mxu3 %v3785_v26  ;;  %v3324_v22 = vld [vmem:[#allocation2 + $0x3a8] sm:$0xf]  ;;  %v4321_v23 = vld [vmem:[#allocation2 + $0x3b4] sm:$0xf0]  ;;  %v3197_v26 = vor.u32 %v4289_v21, %v3196_v20 }
  0x91   :  { %1855 = vmatpush.bf16.msrb.mxu0 %v3385_v32  ;;  %v2924_v27 = vld [vmem:[#allocation2 + $0x88] sm:$0xf]  ;;  %v4221_v28 = vld [vmem:[#allocation2 + $0x94] sm:$0xf0]  ;;  %v3325_v30 = vor.u32 %v4321_v23, %v3324_v22 }
  0x92   :  { %1869 = vmatpush.bf16.msrb.mxu1 %v3513_v35  ;;  %v3052_v29 = vld [vmem:[#allocation2 + $0x188] sm:$0xf]  ;;  %v4253_v31 = vld [vmem:[#allocation2 + $0x194] sm:$0xf0] }
  0x93   :  { %1883 = vmatpush.bf16.msrb.mxu2 %v3641_v36  ;;  %v3180_v32 = vld [vmem:[#allocation2 + $0x288] sm:$0xf]  ;;  %v4285_v33 = vld [vmem:[#allocation2 + $0x294] sm:$0xf0]  ;;  %v2925_v36 = vor.u32 %v4221_v28, %v2924_v27  ;;  %v3053_v37 = vor.u32 %v4253_v31, %v3052_v29 }
  0x94   :  { %1897 = vmatpush.bf16.msrb.mxu3 %v3769_v41  ;;  %v3308_v34 = vld [vmem:[#allocation2 + $0x388] sm:$0xf]  ;;  %v4317_v35 = vld [vmem:[#allocation2 + $0x394] sm:$0xf0]  ;;  %v3181_v38 = vor.u32 %v4285_v33, %v3180_v32 }
  0x95   :  { %1856 = vmatpush.bf16.msrb.mxu0 %v3369_v51  ;;  %v2908_v40 = vld [vmem:[#allocation2 + $0x68] sm:$0xf]  ;;  %v4217_v41 = vld [vmem:[#allocation2 + $0x74] sm:$0xf0]  ;;  %v3309_v45 = vor.u32 %v4317_v35, %v3308_v34 }
  0x96   :  { %1870 = vmatpush.bf16.msrb.mxu1 %v3497_v55  ;;  %v3036_v42 = vld [vmem:[#allocation2 + $0x168] sm:$0xf]  ;;  %v4249_v46 = vld [vmem:[#allocation2 + $0x174] sm:$0xf0]  ;;  %v2909_v52 = vor.u32 %v4217_v41, %v2908_v40 }
  0x97   :  { %1884 = vmatpush.bf16.msrb.mxu2 %v3625_v56  ;;  %v3164_v48 = vld [vmem:[#allocation2 + $0x268] sm:$0xf]  ;;  %v4281_v49 = vld [vmem:[#allocation2 + $0x274] sm:$0xf0]  ;;  %v3037_v53 = vor.u32 %v4249_v46, %v3036_v42 }
  0x98   :  { %1898 = vmatpush.bf16.msrb.mxu3 %v3753_v60  ;;  %1857 = vmatmul.bf16.vlgmr.msrb.gmra.mxu0 %v4773_v39  ;;  %v3292_v50 = vld [vmem:[#allocation2 + $0x368] sm:$0xf]  ;;  %v4313_v51 = vld [vmem:[#allocation2 + $0x374] sm:$0xf0]  ;;  %v3165_v54 = vor.u32 %v4281_v49, %v3164_v48 }
  0x99   :  { %1905 = vmatpush.bf16.msra.mxu0 %v2973_v61  ;;  %1871 = vmatmul.bf16.vlgmr.msrb.gmra.mxu1 %v4777_v44  ;;  %v2892_v55 = vld [vmem:[#allocation2 + $0x48] sm:$0xf]  ;;  %v4213_v56 = vld [vmem:[#allocation2 + $0x54] sm:$0xf0]  ;;  %v3293_v59 = vor.u32 %v4313_v51, %v3292_v50 }
  0x9a   :  { %1919 = vmatpush.bf16.msra.mxu1 %v3101_v62  ;;  %1885 = vmatmul.bf16.vlgmr.msrb.gmra.mxu2 %v4775_v43  ;;  %v3020_v57 = vld [vmem:[#allocation2 + $0x148] sm:$0xf]  ;;  %v4245_v60 = vld [vmem:[#allocation2 + $0x154] sm:$0xf0]  ;;  %v2893_v2 = vor.u32 %v4213_v56, %v2892_v55 }
  0x9b   :  { %1933 = vmatpush.bf16.msra.mxu2 %v3229_v63  ;;  %1899 = vmatmul.bf16.vlgmr.msrb.gmra.mxu3 %v4779_v47  ;;  %v3148_v61 = vld [vmem:[#allocation2 + $0x248] sm:$0xf]  ;;  %v4277_v62 = vld [vmem:[#allocation2 + $0x254] sm:$0xf0]  ;;  %v3021_v3 = vor.u32 %v4245_v60, %v3020_v57 }
  0x9c   :  { %1947 = vmatpush.bf16.msra.mxu3 %v3357_v4  ;;  %v3276_v63 = vld [vmem:[#allocation2 + $0x348] sm:$0xf]  ;;  %v4309_v0 = vld [vmem:[#allocation2 + $0x354] sm:$0xf0]  ;;  %v3149_v4 = vor.u32 %v4277_v62, %v3148_v61 }
  0x9d   :  { %1906 = vmatpush.bf16.msra.mxu0 %v2957_v11  ;;  %v2876_v5 = vld [vmem:[#allocation2 + $0x28] sm:$0xf]  ;;  %v4209_v6 = vld [vmem:[#allocation2 + $0x34] sm:$0xf0]  ;;  %v3277_v8 = vor.u32 %v4309_v0, %v3276_v63 }
  0x9e   :  { %1920 = vmatpush.bf16.msra.mxu1 %v3085_v12  ;;  %v3004_v7 = vld [vmem:[#allocation2 + $0x128] sm:$0xf]  ;;  %v4241_v9 = vld [vmem:[#allocation2 + $0x134] sm:$0xf0]  ;;  %v2877_v15 = vor.u32 %v4209_v6, %v2876_v5 }
  0x9f   :  { %1934 = vmatpush.bf16.msra.mxu2 %v3213_v13  ;;  %v3132_v11 = vld [vmem:[#allocation2 + $0x228] sm:$0xf]  ;;  %v4273_v12 = vld [vmem:[#allocation2 + $0x234] sm:$0xf0]  ;;  %v3005_v19 = vor.u32 %v4241_v9, %v3004_v7 }
  0xa0   :  { %1948 = vmatpush.bf16.msra.mxu3 %v3341_v18  ;;  %v3260_v13 = vld [vmem:[#allocation2 + $0x328] sm:$0xf]  ;;  %v4305_v14 = vld [vmem:[#allocation2 + $0x334] sm:$0xf0]  ;;  %v3133_v20 = vor.u32 %v4273_v12, %v3132_v11 }
  0xa1   :  { %1907 = vmatpush.bf16.msra.mxu0 %v2941_v24  ;;  %v2860_v16 = vld [vmem:[#allocation2 + $0x8] sm:$0xf]  ;;  %v4205_v18 = vld [vmem:[#allocation2 + $0x14] sm:$0xf0]  ;;  %v3261_v24 = vor.u32 %v4305_v14, %v3260_v13 }
  0xa2   :  { %1921 = vmatpush.bf16.msra.mxu1 %v3069_v25  ;;  %v2988_v21 = vld [vmem:[#allocation2 + $0x108] sm:$0xf]  ;;  %v4237_v22 = vld [vmem:[#allocation2 + $0x114] sm:$0xf0]  ;;  %v2861_v31 = vor.u32 %v4205_v18, %v2860_v16 }
  0xa3   :  { %1935 = vmatpush.bf16.msra.mxu2 %v3197_v26  ;;  %v3116_v23 = vld [vmem:[#allocation2 + $0x208] sm:$0xf]  ;;  %v4269_v25 = vld [vmem:[#allocation2 + $0x214] sm:$0xf0]  ;;  %v2989_v35 = vor.u32 %v4237_v22, %v2988_v21 }
  0xa4   :  { %1949 = vmatpush.bf16.msra.mxu3 %v3325_v30  ;;  %v3244_v26 = vld [vmem:[#allocation2 + $0x308] sm:$0xf]  ;;  %v4301_v27 = vld [vmem:[#allocation2 + $0x314] sm:$0xf0] }
  0xa5   :  { %1908 = vmatpush.bf16.msra.mxu0 %v2925_v36  ;;  %v3484_v28 = vld [vmem:[#allocation2 + $0x4e8] sm:$0xf]  ;;  %v4361_v29 = vld [vmem:[#allocation2 + $0x4f4] sm:$0xf0]  ;;  %v3117_v36 = vor.u32 %v4269_v25, %v3116_v23  ;;  %v3245_v40 = vor.u32 %v4301_v27, %v3244_v26 }
  0xa6   :  { %1922 = vmatpush.bf16.msra.mxu1 %v3053_v37  ;;  %v3612_v30 = vld [vmem:[#allocation2 + $0x5e8] sm:$0xf]  ;;  %v4393_v32 = vld [vmem:[#allocation2 + $0x5f4] sm:$0xf0]  ;;  %v3485_v41 = vor.u32 %v4361_v29, %v3484_v28 }
  0xa7   :  { %1936 = vmatpush.bf16.msra.mxu2 %v3181_v38  ;;  %v3740_v33 = vld [vmem:[#allocation2 + $0x6e8] sm:$0xf]  ;;  %v4425_v34 = vld [vmem:[#allocation2 + $0x6f4] sm:$0xf0]  ;;  %v3613_v42 = vor.u32 %v4393_v32, %v3612_v30 }
  0xa8   :  { %1950 = vmatpush.bf16.msra.mxu3 %v3309_v45  ;;  %v3868_v37 = vld [vmem:[#allocation2 + $0x7e8] sm:$0xf]  ;;  %v4457_v38 = vld [vmem:[#allocation2 + $0x7f4] sm:$0xf0]  ;;  %v3741_v45 = vor.u32 %v4425_v34, %v3740_v33 }
  0xa9   :  { %1909 = vmatpush.bf16.msra.mxu0 %v2909_v52  ;;  %v3468_v46 = vld [vmem:[#allocation2 + $0x4c8] sm:$0xf]  ;;  %v4357_v48 = vld [vmem:[#allocation2 + $0x4d4] sm:$0xf0]  ;;  %v3869_v50 = vor.u32 %v4457_v38, %v3868_v37 }
  0xaa   :  { %1923 = vmatpush.bf16.msra.mxu1 %v3037_v53  ;;  %v3596_v49 = vld [vmem:[#allocation2 + $0x5c8] sm:$0xf]  ;;  %v4389_v51 = vld [vmem:[#allocation2 + $0x5d4] sm:$0xf0]  ;;  %v3469_v56 = vor.u32 %v4357_v48, %v3468_v46 }
  0xab   :  { %1937 = vmatpush.bf16.msra.mxu2 %v3165_v54  ;;  %v3724_v52 = vld [vmem:[#allocation2 + $0x6c8] sm:$0xf]  ;;  %v4421_v53 = vld [vmem:[#allocation2 + $0x6d4] sm:$0xf0]  ;;  %v3597_v57 = vor.u32 %v4389_v51, %v3596_v49 }
  0xac   :  { %1951 = vmatpush.bf16.msra.mxu3 %v3293_v59  ;;  %v3852_v54 = vld [vmem:[#allocation2 + $0x7c8] sm:$0xf]  ;;  %v4453_v55 = vld [vmem:[#allocation2 + $0x7d4] sm:$0xf0]  ;;  %v3725_v59 = vor.u32 %v4421_v53, %v3724_v52 }
  0xad   :  { %1910 = vmatpush.bf16.msra.mxu0 %v2893_v2  ;;  %v3452_v60 = vld [vmem:[#allocation2 + $0x4a8] sm:$0xf]  ;;  %v4353_v61 = vld [vmem:[#allocation2 + $0x4b4] sm:$0xf0]  ;;  %v3853_v63 = vor.u32 %v4453_v55, %v3852_v54 }
  0xae   :  { %1924 = vmatpush.bf16.msra.mxu1 %v3021_v3  ;;  %v3580_v62 = vld [vmem:[#allocation2 + $0x5a8] sm:$0xf]  ;;  %v4385_v0 = vld [vmem:[#allocation2 + $0x5b4] sm:$0xf0]  ;;  %v3453_v6 = vor.u32 %v4353_v61, %v3452_v60 }
  0xaf   :  { %1938 = vmatpush.bf16.msra.mxu2 %v3149_v4  ;;  %v3708_v2 = vld [vmem:[#allocation2 + $0x6a8] sm:$0xf]  ;;  %v4417_v3 = vld [vmem:[#allocation2 + $0x6b4] sm:$0xf0]  ;;  %v3581_v7 = vor.u32 %v4385_v0, %v3580_v62 }
  0xb0   :  { %1952 = vmatpush.bf16.msra.mxu3 %v3277_v8  ;;  %v3836_v4 = vld [vmem:[#allocation2 + $0x7a8] sm:$0xf]  ;;  %v4449_v5 = vld [vmem:[#allocation2 + $0x7b4] sm:$0xf0]  ;;  %v3709_v8 = vor.u32 %v4417_v3, %v3708_v2 }
  0xb1   :  { %1911 = vmatpush.bf16.msra.mxu0 %v2877_v15  ;;  %v3436_v9 = vld [vmem:[#allocation2 + $0x488] sm:$0xf]  ;;  %v4349_v11 = vld [vmem:[#allocation2 + $0x494] sm:$0xf0]  ;;  %v3837_v13 = vor.u32 %v4449_v5, %v3836_v4 }
  0xb2   :  { %1925 = vmatpush.bf16.msra.mxu1 %v3005_v19  ;;  %v3564_v12 = vld [vmem:[#allocation2 + $0x588] sm:$0xf]  ;;  %v4381_v14 = vld [vmem:[#allocation2 + $0x594] sm:$0xf0] }
  0xb3   :  { %1939 = vmatpush.bf16.msra.mxu2 %v3133_v20  ;;  %v3692_v15 = vld [vmem:[#allocation2 + $0x688] sm:$0xf]  ;;  %v4413_v16 = vld [vmem:[#allocation2 + $0x694] sm:$0xf0]  ;;  %v3437_v20 = vor.u32 %v4349_v11, %v3436_v9  ;;  %v3565_v21 = vor.u32 %v4381_v14, %v3564_v12  ;;  %v4231_v11 = vld [vmem:[#allocation2 + $0xec] sm:$0xf] }
  0xb4   :  { %1953 = vmatpush.bf16.msra.mxu3 %v3261_v24  ;;  %v3820_v18 = vld [vmem:[#allocation2 + $0x788] sm:$0xf]  ;;  %v4445_v19 = vld [vmem:[#allocation2 + $0x794] sm:$0xf0]  ;;  %v3693_v22 = vor.u32 %v4413_v16, %v3692_v15  ;;  %v2974_v12 = vld [vmem:[#allocation2 + $0xf8] sm:$0xf0] }
  0xb5   :  { %1912 = vmatpush.bf16.msra.mxu0 %v2861_v31  ;;  %v3420_v23 = vld [vmem:[#allocation2 + $0x468] sm:$0xf]  ;;  %v4345_v24 = vld [vmem:[#allocation2 + $0x474] sm:$0xf0]  ;;  %v3821_v26 = vor.u32 %v4445_v19, %v3820_v18  ;;  %v3102_v15 = vld [vmem:[#allocation2 + $0x1f8] sm:$0xf0] }
  0xb6   :  { %1926 = vmatpush.bf16.msra.mxu1 %v2989_v35  ;;  %v3548_v25 = vld [vmem:[#allocation2 + $0x568] sm:$0xf]  ;;  %v4377_v27 = vld [vmem:[#allocation2 + $0x574] sm:$0xf0]  ;;  %v3421_v32 = vor.u32 %v4345_v24, %v3420_v23  ;;  %v4295_v16 = vld [vmem:[#allocation2 + $0x2ec] sm:$0xf]  ;;  %v2977_v24 = vor.u32 %v4231_v11, %v2974_v12 }
  0xb7   :  { %1940 = vmatpush.bf16.msra.mxu2 %v3117_v36  ;;  %v3676_v28 = vld [vmem:[#allocation2 + $0x668] sm:$0xf]  ;;  %v4409_v29 = vld [vmem:[#allocation2 + $0x674] sm:$0xf0]  ;;  %v3549_v33 = vor.u32 %v4377_v27, %v3548_v25  ;;  %v3230_v18 = vld [vmem:[#allocation2 + $0x2f8] sm:$0xf0] }
  0xb8   :  { %1954 = vmatpush.bf16.msra.mxu3 %v3245_v40  ;;  %1913 = vmatmul.bf16.vlgmr.msra.gmra.mxu0 %v4722_v58  ;;  %v3804_v30 = vld [vmem:[#allocation2 + $0x768] sm:$0xf]  ;;  %v4441_v31 = vld [vmem:[#allocation2 + $0x774] sm:$0xf0]  ;;  %v3677_v34 = vor.u32 %v4409_v29, %v3676_v28  ;;  %v4227_v27 = vld [vmem:[#allocation2 + $0xcc] sm:$0xf] }
  0xb9   :  { %1961 = vmatpush.bf16.msrb.mxu0 %v3485_v41  ;;  %1927 = vmatmul.bf16.vlgmr.msra.gmra.mxu1 %v4740_v10  ;;  %v3404_v35 = vld [vmem:[#allocation2 + $0x448] sm:$0xf]  ;;  %v4341_v36 = vld [vmem:[#allocation2 + $0x454] sm:$0xf0]  ;;  %v3805_v38 = vor.u32 %v4441_v31, %v3804_v30  ;;  %v2958_v28 = vld [vmem:[#allocation2 + $0xd8] sm:$0xf0] }
  0xba   :  { %1975 = vmatpush.bf16.msrb.mxu1 %v3613_v42  ;;  %1941 = vmatmul.bf16.vlgmr.msra.gmra.mxu2 %v4727_v1  ;;  %v3532_v37 = vld [vmem:[#allocation2 + $0x548] sm:$0xf]  ;;  %v4373_v40 = vld [vmem:[#allocation2 + $0x554] sm:$0xf0]  ;;  %v3405_v48 = vor.u32 %v4341_v36, %v3404_v35  ;;  %v4259_v29 = vld [vmem:[#allocation2 + $0x1cc] sm:$0xf]  ;;  %v2961_v36 = vor.u32 %v4227_v27, %v2958_v28 }
  0xbb   :  { %1989 = vmatpush.bf16.msrb.mxu2 %v3741_v45  ;;  %1955 = vmatmul.bf16.vlgmr.msra.gmra.mxu3 %v4745_v17  ;;  %v3660_v41 = vld [vmem:[#allocation2 + $0x648] sm:$0xf]  ;;  %v4405_v42 = vld [vmem:[#allocation2 + $0x654] sm:$0xf0]  ;;  %v3533_v49 = vor.u32 %v4373_v40, %v3532_v37  ;;  %v3086_v31 = vld [vmem:[#allocation2 + $0x1d8] sm:$0xf0] }
  0xbc   :  { %2003 = vmatpush.bf16.msrb.mxu3 %v3869_v50  ;;  %v3788_v45 = vld [vmem:[#allocation2 + $0x748] sm:$0xf]  ;;  %v4437_v46 = vld [vmem:[#allocation2 + $0x754] sm:$0xf0]  ;;  %v3661_v50 = vor.u32 %v4405_v42, %v3660_v41  ;;  %v3342_v35 = vld [vmem:[#allocation2 + $0x3d8] sm:$0xf0]  ;;  %v3089_v37 = vor.u32 %v4259_v29, %v3086_v31 }
  0xbd   :  { %1962 = vmatpush.bf16.msrb.mxu0 %v3469_v56  ;;  %v3388_v51 = vld [vmem:[#allocation2 + $0x428] sm:$0xf]  ;;  %v4337_v52 = vld [vmem:[#allocation2 + $0x434] sm:$0xf0]  ;;  %v3789_v54 = vor.u32 %v4437_v46, %v3788_v45  ;;  %v4223_v40 = vld [vmem:[#allocation2 + $0xac] sm:$0xf] }
  0xbe   :  { %1976 = vmatpush.bf16.msrb.mxu1 %v3597_v57  ;;  %v3516_v53 = vld [vmem:[#allocation2 + $0x528] sm:$0xf]  ;;  %v4369_v55 = vld [vmem:[#allocation2 + $0x534] sm:$0xf0]  ;;  %v3389_v61 = vor.u32 %v4337_v52, %v3388_v51  ;;  %v2942_v41 = vld [vmem:[#allocation2 + $0xb8] sm:$0xf0] }
  0xbf   :  { %1990 = vmatpush.bf16.msrb.mxu2 %v3725_v59  ;;  %v3644_v56 = vld [vmem:[#allocation2 + $0x628] sm:$0xf]  ;;  %v4401_v57 = vld [vmem:[#allocation2 + $0x634] sm:$0xf0]  ;;  %v3517_v0 = vor.u32 %v4369_v55, %v3516_v53  ;;  %v4255_v42 = vld [vmem:[#allocation2 + $0x1ac] sm:$0xf]  ;;  %v2945_v52 = vor.u32 %v4223_v40, %v2942_v41 }
  0xc0   :  { %2004 = vmatpush.bf16.msrb.mxu3 %v3853_v63  ;;  %v3772_v59 = vld [vmem:[#allocation2 + $0x728] sm:$0xf]  ;;  %v4433_v60 = vld [vmem:[#allocation2 + $0x734] sm:$0xf0]  ;;  %v3645_v2 = vor.u32 %v4401_v57, %v3644_v56  ;;  %v3070_v46 = vld [vmem:[#allocation2 + $0x1b8] sm:$0xf0] }
  0xc1   :  { %1963 = vmatpush.bf16.msrb.mxu0 %v3453_v6  ;;  %v3372_v62 = vld [vmem:[#allocation2 + $0x408] sm:$0xf]  ;;  %v4333_v63 = vld [vmem:[#allocation2 + $0x414] sm:$0xf0]  ;;  %v3773_v6 = vor.u32 %v4433_v60, %v3772_v59  ;;  %v3326_v51 = vld [vmem:[#allocation2 + $0x3b8] sm:$0xf0]  ;;  %v3073_v53 = vor.u32 %v4255_v42, %v3070_v46 }
  0xc2   :  { %1977 = vmatpush.bf16.msrb.mxu1 %v3581_v7  ;;  %v3500_v3 = vld [vmem:[#allocation2 + $0x508] sm:$0xf]  ;;  %v4365_v4 = vld [vmem:[#allocation2 + $0x514] sm:$0xf0]  ;;  %v3373_v14 = vor.u32 %v4333_v63, %v3372_v62  ;;  %v4219_v55 = vld [vmem:[#allocation2 + $0x8c] sm:$0xf] }
  0xc3   :  { %1991 = vmatpush.bf16.msrb.mxu2 %v3709_v8  ;;  %v3628_v5 = vld [vmem:[#allocation2 + $0x608] sm:$0xf]  ;;  %v4397_v7 = vld [vmem:[#allocation2 + $0x614] sm:$0xf0]  ;;  %v3501_v19 = vor.u32 %v4365_v4, %v3500_v3  ;;  %v2926_v56 = vld [vmem:[#allocation2 + $0x98] sm:$0xf0]  ;;  %v4801_v3 = vpop.f32.mrf.mxu0 }
  0xc4   :  { %2005 = vmatpush.bf16.msrb.mxu3 %v3837_v13  ;;  %v3756_v8 = vld [vmem:[#allocation2 + $0x708] sm:$0xf]  ;;  %v4429_v9 = vld [vmem:[#allocation2 + $0x714] sm:$0xf0]  ;;  %v4263_v13 = vld [vmem:[#allocation2 + $0x1ec] sm:$0xf] }
  0xc5   :  { %1964 = vmatpush.bf16.msrb.mxu0 %v3437_v20  ;;  %v3629_v20 = vor.u32 %v4397_v7, %v3628_v5  ;;  %v3757_v23 = vor.u32 %v4429_v9, %v3756_v8  ;;  %v3105_v25 = vor.u32 %v4263_v13, %v3102_v15  ;;  %v4251_v57 = vld [vmem:[#allocation2 + $0x18c] sm:$0xf]  ;;  %v3054_v60 = vld [vmem:[#allocation2 + $0x198] sm:$0xf0]  ;;  %v4803_v9 = vpop.f32.mrf.mxu1 }
  0xc6   :  { %1978 = vmatpush.bf16.msrb.mxu1 %v3565_v21  ;;  %v4327_v21 = vld [vmem:[#allocation2 + $0x3ec] sm:$0xf]  ;;  %v3182_v62 = vld [vmem:[#allocation2 + $0x298] sm:$0xf0]  ;;  %v3057_v4 = vor.u32 %v4251_v57, %v3054_v60 }
  0xc7   :  { %1992 = vmatpush.bf16.msrb.mxu2 %v3693_v22  ;;  %v3358_v22 = vld [vmem:[#allocation2 + $0x3f8] sm:$0xf0]  ;;  %v4315_v63 = vld [vmem:[#allocation2 + $0x38c] sm:$0xf] }
  0xc8   :  { %2006 = vmatpush.bf16.msrb.mxu3 %v3821_v26  ;;  %v3233_v26 = vor.u32 %v4295_v16, %v3230_v18  ;;  %v3361_v30 = vor.u32 %v4327_v21, %v3358_v22  ;;  %v2910_v7 = vld [vmem:[#allocation2 + $0x78] sm:$0xf0]  ;;  %v4247_v8 = vld [vmem:[#allocation2 + $0x16c] sm:$0xf] }
  0xc9   :  { %1965 = vmatpush.bf16.msrb.mxu0 %v3421_v32  ;;  %v4291_v32 = vld [vmem:[#allocation2 + $0x2cc] sm:$0xf]  ;;  %v3038_v12 = vld [vmem:[#allocation2 + $0x178] sm:$0xf0] }
  0xca   :  { %1979 = vmatpush.bf16.msrb.mxu1 %v3549_v33  ;;  %v3214_v33 = vld [vmem:[#allocation2 + $0x2d8] sm:$0xf0]  ;;  %v4279_v13 = vld [vmem:[#allocation2 + $0x26c] sm:$0xf] }
  0xcb   :  { %1993 = vmatpush.bf16.msrb.mxu2 %v3677_v34  ;;  %v4323_v34 = vld [vmem:[#allocation2 + $0x3cc] sm:$0xf]  ;;  %v3294_v16 = vld [vmem:[#allocation2 + $0x378] sm:$0xf0] }
  0xcc   :  { %2007 = vmatpush.bf16.msrb.mxu3 %v3805_v38  ;;  %v3217_v38 = vor.u32 %v4291_v32, %v3214_v33  ;;  %v3345_v45 = vor.u32 %v4323_v34, %v3342_v35  ;;  %v4311_v15 = vld [vmem:[#allocation2 + $0x36c] sm:$0xf]  ;;  %v2894_v22 = vld [vmem:[#allocation2 + $0x58] sm:$0xf0]  ;;  %v4807_v32 = vpop.f32.mrf.mxu3 }
  0xcd   :  { %1966 = vmatpush.bf16.msrb.mxu0 %v3405_v48  ;;  %v4287_v48 = vld [vmem:[#allocation2 + $0x2ac] sm:$0xf]  ;;  %v3150_v27 = vld [vmem:[#allocation2 + $0x258] sm:$0xf0] }
  0xce   :  { %1980 = vmatpush.bf16.msrb.mxu1 %v3533_v49  ;;  %v3198_v49 = vld [vmem:[#allocation2 + $0x2b8] sm:$0xf0]  ;;  %v4211_v21 = vld [vmem:[#allocation2 + $0x4c] sm:$0xf] }
  0xcf   :  { %1994 = vmatpush.bf16.msrb.mxu2 %v3661_v50  ;;  %v4319_v50 = vld [vmem:[#allocation2 + $0x3ac] sm:$0xf]  ;;  %v3278_v29 = vld [vmem:[#allocation2 + $0x358] sm:$0xf0]  ;;  %v2897_v31 = vor.u32 %v4211_v21, %v2894_v22 }
  0xd0   :  { %2008 = vmatpush.bf16.msrb.mxu3 %v3789_v54  ;;  %v3201_v54 = vor.u32 %v4287_v48, %v3198_v49  ;;  %v3329_v59 = vor.u32 %v4319_v50, %v3326_v51  ;;  %v4307_v28 = vld [vmem:[#allocation2 + $0x34c] sm:$0xf]  ;;  %v3006_v40 = vld [vmem:[#allocation2 + $0x138] sm:$0xf0]  ;;  %v4811_v49 = vpop.f32.mrf.mxu1 }
  0xd1   :  { %1967 = vmatpush.bf16.msrb.mxu0 %v3389_v61  ;;  %v4283_v61 = vld [vmem:[#allocation2 + $0x28c] sm:$0xf]  ;;  %v3134_v42 = vld [vmem:[#allocation2 + $0x238] sm:$0xf0] }
  0xd2   :  { %1981 = vmatpush.bf16.msrb.mxu1 %v3517_v0  ;;  %v3310_v0 = vld [vmem:[#allocation2 + $0x398] sm:$0xf0]  ;;  %v3185_v5 = vor.u32 %v4283_v61, %v3182_v62  ;;  %v4207_v35 = vld [vmem:[#allocation2 + $0x2c] sm:$0xf] }
  0xd3   :  { %1995 = vmatpush.bf16.msrb.mxu2 %v3645_v2  ;;  %v2929_v2 = vor.u32 %v4219_v55, %v2926_v56  ;;  %v3313_v11 = vor.u32 %v4315_v63, %v3310_v0  ;;  %v4271_v41 = vld [vmem:[#allocation2 + $0x22c] sm:$0xf]  ;;  %v3262_v48 = vld [vmem:[#allocation2 + $0x338] sm:$0xf0] }
  0xd4   :  { %2009 = vmatpush.bf16.msrb.mxu3 %v3773_v6  ;;  %v4215_v6 = vld [vmem:[#allocation2 + $0x6c] sm:$0xf]  ;;  %v2990_v56 = vld [vmem:[#allocation2 + $0x118] sm:$0xf0] }
  0xd5   :  { %1968 = vmatpush.bf16.msrb.mxu0 %v3373_v14  ;;  %v3166_v14 = vld [vmem:[#allocation2 + $0x278] sm:$0xf0]  ;;  %v2913_v18 = vor.u32 %v4215_v6, %v2910_v7  ;;  %v4303_v46 = vld [vmem:[#allocation2 + $0x32c] sm:$0xf] }
  0xd6   :  { %1982 = vmatpush.bf16.msrb.mxu1 %v3501_v19  ;;  %v3041_v19 = vor.u32 %v4247_v8, %v3038_v12  ;;  %v4203_v51 = vld [vmem:[#allocation2 + $0xc] sm:$0xf]  ;;  %v3118_v60 = vld [vmem:[#allocation2 + $0x218] sm:$0xf0] }
  0xd7   :  { %1996 = vmatpush.bf16.msrb.mxu2 %v3629_v20  ;;  %v3169_v20 = vor.u32 %v4279_v13, %v3166_v14  ;;  %v4235_v55 = vld [vmem:[#allocation2 + $0x10c] sm:$0xf]  ;;  %v3246_v62 = vld [vmem:[#allocation2 + $0x318] sm:$0xf0] }
  0xd8   :  { %2010 = vmatpush.bf16.msrb.mxu3 %v3757_v23  ;;  %1969 = vmatmul.bf16.vlgmr.msrb.gmra.mxu0 %v4773_v39  ;;  %v4243_v23 = vld [vmem:[#allocation2 + $0x14c] sm:$0xf]  ;;  %v3486_v0 = vld [vmem:[#allocation2 + $0x4f8] sm:$0xf0]  ;;  %v2993_v8 = vor.u32 %v4235_v55, %v2990_v56 }
  0xd9   :  { %2017 = vmatpush.bf16.msra.mxu0 %v2977_v24  ;;  %1983 = vmatmul.bf16.vlgmr.msrb.gmra.mxu1 %v4777_v44  ;;  %v3297_v24 = vor.u32 %v4311_v15, %v3294_v16  ;;  %v4267_v57 = vld [vmem:[#allocation2 + $0x20c] sm:$0xf]  ;;  %v3742_v7 = vld [vmem:[#allocation2 + $0x6f8] sm:$0xf0] }
  0xda   :  { %2031 = vmatpush.bf16.msra.mxu1 %v3105_v25  ;;  %1997 = vmatmul.bf16.vlgmr.msrb.gmra.mxu2 %v4775_v43  ;;  %v3022_v25 = vld [vmem:[#allocation2 + $0x158] sm:$0xf0]  ;;  %v4299_v61 = vld [vmem:[#allocation2 + $0x30c] sm:$0xf] }
  0xdb   :  { %2045 = vmatpush.bf16.msra.mxu2 %v3233_v26  ;;  %2011 = vmatmul.bf16.vlgmr.msrb.gmra.mxu3 %v4779_v47  ;;  %v4275_v26 = vld [vmem:[#allocation2 + $0x24c] sm:$0xf]  ;;  %v3025_v33 = vor.u32 %v4243_v23, %v3022_v25  ;;  %v3870_v13 = vld [vmem:[#allocation2 + $0x7f8] sm:$0xf0]  ;;  %v3249_v15 = vor.u32 %v4299_v61, %v3246_v62 }
  0xdc   :  { %2059 = vmatpush.bf16.msra.mxu3 %v3361_v30  ;;  %v4805_v30 = vpop.f32.mrf.mxu2  ;;  %v3153_v34 = vor.u32 %v4275_v26, %v3150_v27  ;;  %v4359_v63 = vld [vmem:[#allocation2 + $0x4ec] sm:$0xf]  ;;  %v3470_v22 = vld [vmem:[#allocation2 + $0x4d8] sm:$0xf0] }
  0xdd   :  { %2018 = vmatpush.bf16.msra.mxu0 %v2961_v36  ;;  %v2878_v36 = vld [vmem:[#allocation2 + $0x38] sm:$0xf0]  ;;  %v4423_v6 = vld [vmem:[#allocation2 + $0x6ec] sm:$0xf]  ;;  %v3489_v16 = vor.u32 %v4359_v63, %v3486_v0 }
  0xde   :  { %2032 = vmatpush.bf16.msra.mxu1 %v3089_v37  ;;  %v4239_v37 = vld [vmem:[#allocation2 + $0x12c] sm:$0xf]  ;;  %v2881_v50 = vor.u32 %v4207_v35, %v2878_v36  ;;  %v3598_v25 = vld [vmem:[#allocation2 + $0x5d8] sm:$0xf0] }
  0xdf   :  { %2046 = vmatpush.bf16.msra.mxu2 %v3217_v38  ;;  %v3281_v38 = vor.u32 %v4307_v28, %v3278_v29  ;;  %v4455_v12 = vld [vmem:[#allocation2 + $0x7ec] sm:$0xf]  ;;  %v3726_v27 = vld [vmem:[#allocation2 + $0x6d8] sm:$0xf0] }
  0xe0   :  { %2060 = vmatpush.bf16.msra.mxu3 %v3345_v45  ;;  %v4809_v45 = vpop.f32.mrf.mxu0  ;;  %v4355_v21 = vld [vmem:[#allocation2 + $0x4cc] sm:$0xf]  ;;  %v3438_v56 = vld [vmem:[#allocation2 + $0x498] sm:$0xf0] }
  0xe1   :  { %2019 = vmatpush.bf16.msra.mxu0 %v2945_v52  ;;  %v2862_v52 = vld [vmem:[#allocation2 + $0x18] sm:$0xf0]  ;;  %v4387_v23 = vld [vmem:[#allocation2 + $0x5cc] sm:$0xf] }
  0xe2   :  { %2033 = vmatpush.bf16.msra.mxu1 %v3073_v53  ;;  %v3009_v53 = vor.u32 %v4239_v37, %v3006_v40  ;;  %v4419_v26 = vld [vmem:[#allocation2 + $0x6cc] sm:$0xf]  ;;  %v3601_v35 = vor.u32 %v4387_v23, %v3598_v25  ;;  %v3822_v63 = vld [vmem:[#allocation2 + $0x798] sm:$0xf0] }
  0xe3   :  { %2047 = vmatpush.bf16.msra.mxu2 %v3201_v54  ;;  %v3137_v54 = vor.u32 %v4271_v41, %v3134_v42  ;;  %v4451_v29 = vld [vmem:[#allocation2 + $0x7cc] sm:$0xf]  ;;  %v3729_v36 = vor.u32 %v4419_v26, %v3726_v27  ;;  %v3582_v42 = vld [vmem:[#allocation2 + $0x5b8] sm:$0xf0] }
  0xe4   :  { %2061 = vmatpush.bf16.msra.mxu3 %v3329_v59  ;;  %v3265_v59 = vor.u32 %v4303_v46, %v3262_v48  ;;  %v4813_v14 = vpop.f32.mrf.mxu2  ;;  %v4351_v37 = vld [vmem:[#allocation2 + $0x4ac] sm:$0xf]  ;;  %v3710_v48 = vld [vmem:[#allocation2 + $0x6b8] sm:$0xf0] }
  0xe5   :  { %2020 = vmatpush.bf16.msra.mxu0 %v2929_v2  ;;  %v4391_v2 = vld [vmem:[#allocation2 + $0x5ec] sm:$0xf]  ;;  %v3406_v25 = vld [vmem:[#allocation2 + $0x458] sm:$0xf0] }
  0xe6   :  { %2034 = vmatpush.bf16.msra.mxu1 %v3057_v4  ;;  %v2865_v4 = vor.u32 %v4203_v51, %v2862_v52  ;;  %v4383_v40 = vld [vmem:[#allocation2 + $0x5ac] sm:$0xf]  ;;  %v3838_v51 = vld [vmem:[#allocation2 + $0x7b8] sm:$0xf0] }
  0xe7   :  { %2048 = vmatpush.bf16.msra.mxu2 %v3185_v5  ;;  %v3614_v5 = vld [vmem:[#allocation2 + $0x5f8] sm:$0xf0]  ;;  %v4415_v46 = vld [vmem:[#allocation2 + $0x6ac] sm:$0xf] }
  0xe8   :  { %2062 = vmatpush.bf16.msra.mxu3 %v3313_v11  ;;  %v3121_v11 = vor.u32 %v4267_v57, %v3118_v60  ;;  %v4817_v28 = vpop.f32.mrf.mxu0  ;;  %v4347_v55 = vld [vmem:[#allocation2 + $0x48c] sm:$0xf]  ;;  %v3566_v60 = vld [vmem:[#allocation2 + $0x598] sm:$0xf0] }
  0xe9   :  { %2021 = vmatpush.bf16.msra.mxu0 %v2913_v18  ;;  %v4815_v18 = vpop.f32.mrf.mxu3  ;;  %v4411_v61 = vld [vmem:[#allocation2 + $0x68c] sm:$0xf] }
  0xea   :  { %2035 = vmatpush.bf16.msra.mxu1 %v3041_v19  ;;  %v3617_v19 = vor.u32 %v4391_v2, %v3614_v5  ;;  %v4343_v5 = vld [vmem:[#allocation2 + $0x46c] sm:$0xf] }
  0xeb   :  { %2049 = vmatpush.bf16.msra.mxu2 %v3169_v20  ;;  %v3745_v20 = vor.u32 %v4423_v6, %v3742_v7  ;;  %v3422_v6 = vld [vmem:[#allocation2 + $0x478] sm:$0xf0]  ;;  %v4375_v7 = vld [vmem:[#allocation2 + $0x56c] sm:$0xf] }
  0xec   :  { %2063 = vmatpush.bf16.msra.mxu3 %v3297_v24  ;;  %v3873_v24 = vor.u32 %v4455_v12, %v3870_v13  ;;  %v4825_v57 = vpop.f32.mrf.mxu2  ;;  %v3550_v12 = vld [vmem:[#allocation2 + $0x578] sm:$0xf0]  ;;  %v4407_v13 = vld [vmem:[#allocation2 + $0x66c] sm:$0xf] }
  0xed   :  { %2022 = vmatpush.bf16.msra.mxu0 %v2897_v31  ;;  %v3854_v31 = vld [vmem:[#allocation2 + $0x7d8] sm:$0xf0]  ;;  %v4371_v26 = vld [vmem:[#allocation2 + $0x54c] sm:$0xf] }
  0xee   :  { %2036 = vmatpush.bf16.msra.mxu1 %v3025_v33  ;;  %v4819_v33 = vpop.f32.mrf.mxu1  ;;  %v3857_v41 = vor.u32 %v4451_v29, %v3854_v31  ;;  %v3534_v29 = vld [vmem:[#allocation2 + $0x558] sm:$0xf0]  ;;  %v4403_v31 = vld [vmem:[#allocation2 + $0x64c] sm:$0xf] }
  0xef   :  { %2050 = vmatpush.bf16.msra.mxu2 %v3153_v34  ;;  %v3473_v34 = vor.u32 %v4355_v21, %v3470_v22  ;;  %v3425_v21 = vor.u32 %v4343_v5, %v3422_v6  ;;  %v3553_v22 = vor.u32 %v4375_v7, %v3550_v12  ;;  %v3502_v5 = vld [vmem:[#allocation2 + $0x518] sm:$0xf0] }
  0xf0   :  { %2064 = vmatpush.bf16.msra.mxu3 %v3281_v38  ;;  %v3454_v38 = vld [vmem:[#allocation2 + $0x4b8] sm:$0xf0]  ;;  %v4829_v0 = vpop.f32.mrf.mxu0 }
  0xf1   :  { %2023 = vmatpush.bf16.msra.mxu0 %v2881_v50  ;;  %v4447_v50 = vld [vmem:[#allocation2 + $0x7ac] sm:$0xf]  ;;  %v3457_v52 = vor.u32 %v4351_v37, %v3454_v38  ;;  %v4827_v62 = vpop.f32.mrf.mxu3  ;;  %v3630_v12 = vld [vmem:[#allocation2 + $0x618] sm:$0xf0] }
  0xf2   :  { %2037 = vmatpush.bf16.msra.mxu1 %v3009_v53  ;;  %v3585_v53 = vor.u32 %v4383_v40, %v3582_v42  ;;  %v3537_v42 = vor.u32 %v4371_v26, %v3534_v29 }
  0xf3   :  { %2051 = vmatpush.bf16.msra.mxu2 %v3137_v54  ;;  %v3713_v54 = vor.u32 %v4415_v46, %v3710_v48 }
  0xf4   :  { %2065 = vmatpush.bf16.msra.mxu3 %v3265_v59  ;;  %v3841_v59 = vor.u32 %v4447_v50, %v3838_v51  ;;  %v4839_v38 = vpop.f32.mrf.mxu2  ;;  %v4335_v50 = vld [vmem:[#allocation2 + $0x42c] sm:$0xf]  ;;  %v3390_v51 = vld [vmem:[#allocation2 + $0x438] sm:$0xf0] }
  0xf5   :  { %2024 = vmatpush.bf16.msra.mxu0 %v2865_v4 }
  0xf6   :  { %2038 = vmatpush.bf16.msra.mxu1 %v2993_v8  ;;  %v4831_v8 = vpop.f32.mrf.mxu1 }
  0xf7   :  { %2052 = vmatpush.bf16.msra.mxu2 %v3121_v11 }
  0xf8   :  { %2066 = vmatpush.bf16.msra.mxu3 %v3249_v15  ;;  %2025 = vmatmul.bf16.vlgmr.msra.gmra.mxu0 %v4722_v58  ;;  %v3694_v58 = vld [vmem:[#allocation2 + $0x698] sm:$0xf0]  ;;  %v1802_v48 = vpop.f32.mrf.mxu0 }
  0xf9   :  { %2073 = vmatpush.bf16.msrb.mxu0 %v3489_v16  ;;  %2039 = vmatmul.bf16.vlgmr.msra.gmra.mxu1 %v4740_v10  ;;  %v3441_v10 = vor.u32 %v4347_v55, %v3438_v56  ;;  %v3697_v4 = vor.u32 %v4411_v61, %v3694_v58  ;;  %v3678_v15 = vld [vmem:[#allocation2 + $0x678] sm:$0xf0]  ;;  %v4439_v16 = vld [vmem:[#allocation2 + $0x76c] sm:$0xf]  ;;  %v3393_v58 = vor.u32 %v4335_v50, %v3390_v51 }
  0xfa   :  { %2087 = vmatpush.bf16.msrb.mxu1 %v3617_v19  ;;  %2053 = vmatmul.bf16.vlgmr.msra.gmra.mxu2 %v4727_v1  ;;  %v4379_v1 = vld [vmem:[#allocation2 + $0x58c] sm:$0xf]  ;;  %v3806_v19 = vld [vmem:[#allocation2 + $0x778] sm:$0xf0]  ;;  %v3681_v23 = vor.u32 %v4407_v13, %v3678_v15 }
  0xfb   :  { %2101 = vmatpush.bf16.msrb.mxu2 %v3745_v20  ;;  %2067 = vmatmul.bf16.vlgmr.msra.gmra.mxu3 %v4745_v17  ;;  %v4443_v17 = vld [vmem:[#allocation2 + $0x78c] sm:$0xf]  ;;  %v3569_v2 = vor.u32 %v4379_v1, %v3566_v60  ;;  %v4836_v20 = vld [vmem:[%s4885_s2] sm:$0xf]  ;;  %v3809_v27 = vor.u32 %v4439_v16, %v3806_v19  ;;  %v3646_v56 = vld [vmem:[#allocation2 + $0x638] sm:$0xf0] }
  0xfc   :  { %2115 = vmatpush.bf16.msrb.mxu3 %v3873_v24  ;;  %v3825_v11 = vor.u32 %v4443_v17, %v3822_v63  ;;  %v4339_v24 = vld [vmem:[#allocation2 + $0x44c] sm:$0xf]  ;;  %v353_v37 = vperm.slane %v4836_v20, 0  ;;  %v3774_v60 = vld [vmem:[#allocation2 + $0x738] sm:$0xf0]  ;;  %v354_v61 = vperm.slane %v4836_v20, 1 }
  0xfd   :  { %2074 = vmatpush.bf16.msrb.mxu0 %v3473_v34  ;;  %v3662_v34 = vld [vmem:[#allocation2 + $0x658] sm:$0xf0]  ;;  %v3409_v40 = vor.u32 %v4339_v24, %v3406_v25  ;;  %v4399_v55 = vld [vmem:[#allocation2 + $0x62c] sm:$0xf]  ;;  %v3932_v16 = vld [vmem:[#allocation4 + $0x70] sm:$0xf]  ;;  %v1830_v25 = vpop.f32.mrf.mxu2 }
  0xfe   :  { %2088 = vmatpush.bf16.msrb.mxu1 %v3601_v35  ;;  %v4435_v35 = vld [vmem:[#allocation2 + $0x74c] sm:$0xf]  ;;  %v3665_v46 = vor.u32 %v4403_v31, %v3662_v34  ;;  %v1816_v1 = vpop.f32.mrf.mxu1  ;;  %v1691_v6 = vadd.f32 %v4801_v3, %v353_v37  ;;  %v3758_v15 = vld [vmem:[#allocation2 + $0x718] sm:$0xf0]  ;;  %v4473_v19 = vld [vmem:[#allocation4 + $0x74] sm:$0xf0]  ;;  %v1803_v26 = vadd.f32 %v1802_v48, %v354_v61 }
  0xff   :  { %2102 = vmatpush.bf16.msrb.mxu2 %v3729_v36  ;;  %v3790_v36 = vld [vmem:[#allocation2 + $0x758] sm:$0xf0]  ;;  %v4331_v17 = vld [vmem:[#allocation2 + $0x40c] sm:$0xf]  ;;  %v4489_v24 = vld [vmem:[#allocation4 + $0xf4] sm:$0xf0] }
 0x100   :  { %2116 = vmatpush.bf16.msrb.mxu3 %v3857_v41  ;;  %v4841_v41 = vpop.f32.mrf.mxu3  ;;  %v4427_v13 = vld [vmem:[#allocation2 + $0x70c] sm:$0xf]  ;;  %v1705_v31 = vadd.f32 %v4803_v9, %v1691_v6  ;;  %v1817_v51 = vadd.f32 %v1816_v1, %v1803_v26  ;;  %v4485_v1 = vld [vmem:[#allocation4 + $0xd4] sm:$0xf0]  ;;  %v3956_v26 = vld [vmem:[#allocation4 + $0xa0] sm:$0xf] }
 0x101   :  { %2075 = vmatpush.bf16.msrb.mxu0 %v3457_v52  ;;  %v4367_v52 = vld [vmem:[#allocation2 + $0x52c] sm:$0xf]  ;;  %v3761_v34 = vor.u32 %v4427_v13, %v3758_v15  ;;  %v4465_v13 = vld [vmem:[#allocation4 + $0x34] sm:$0xf0]  ;;  %v3964_v15 = vld [vmem:[#allocation4 + $0xb0] sm:$0xf] }
 0x102   :  { %2089 = vmatpush.bf16.msrb.mxu1 %v3585_v53  ;;  %v3793_v53 = vor.u32 %v4435_v35, %v3790_v36  ;;  %v3933_v35 = vor.u32 %v4473_v19, %v3932_v16  ;;  %v4481_v16 = vld [vmem:[#allocation4 + $0xb4] sm:$0xf0] }
 0x103   :  { %2103 = vmatpush.bf16.msrb.mxu2 %v3713_v54  ;;  %v3518_v54 = vld [vmem:[#allocation2 + $0x538] sm:$0xf0] }
 0x104   :  { %2117 = vmatpush.bf16.msrb.mxu3 %v3841_v59  ;;  %v4431_v59 = vld [vmem:[#allocation2 + $0x72c] sm:$0xf]  ;;  %v3521_v63 = vor.u32 %v4367_v52, %v3518_v54  ;;  %v1719_v52 = vadd.f32 %v4805_v30, %v1705_v31  ;;  %v4505_v31 = vld [vmem:[#allocation4 + $0x174] sm:$0xf0] }
 0x105   :  { %2076 = vmatpush.bf16.msrb.mxu0 %v3441_v10  ;;  %v3649_v10 = vor.u32 %v4399_v55, %v3646_v56  ;;  %v3777_v7 = vor.u32 %v4431_v59, %v3774_v60  ;;  %v3916_v55 = vld [vmem:[#allocation4 + $0x50] sm:$0xf]  ;;  %v4469_v56 = vld [vmem:[#allocation4 + $0x54] sm:$0xf0]  ;;  %v1831_v60 = vadd.f32 %v1830_v25, %v1817_v51  ;;  %v4463_v25 = vld [vmem:[#allocation4 + $0x24] sm:$0xf0] }
 0x106   :  { %2090 = vmatpush.bf16.msrb.mxu1 %v3569_v2  ;;  %v3374_v2 = vld [vmem:[#allocation2 + $0x418] sm:$0xf0]  ;;  %v1818_v50 = vpop.f32.mrf.mxu1  ;;  %v1733_v30 = vadd.f32 %v4807_v32, %v1719_v52  ;;  %v3948_v51 = vld [vmem:[#allocation4 + $0x90] sm:$0xf] }
 0x107   :  { %2104 = vmatpush.bf16.msrb.mxu2 %v3697_v4  ;;  %v4363_v4 = vld [vmem:[#allocation2 + $0x50c] sm:$0xf] }
 0x108   :  { %2118 = vmatpush.bf16.msrb.mxu3 %v3825_v11  ;;  %v4395_v11 = vld [vmem:[#allocation2 + $0x60c] sm:$0xf]  ;;  %v1844_v29 = vpop.f32.mrf.mxu3  ;;  %v1747_v6 = vadd.f32 %v4817_v28, %v1733_v30  ;;  %v3965_v28 = vor.u32 %v4481_v16, %v3964_v15  ;;  %v3940_v30 = vld [vmem:[#allocation4 + $0x80] sm:$0xf]  ;;  %v4499_v16 = vld [vmem:[#allocation4 + $0x144] sm:$0xf0] }
 0x109   :  { %2077 = vmatpush.bf16.msrb.mxu0 %v3425_v21  ;;  %v1693_v21 = vadd.f32 %v4809_v45, %v353_v37  ;;  %v3633_v3 = vor.u32 %v4395_v11, %v3630_v12  ;;  %v4471_v45 = vld [vmem:[#allocation4 + $0x64] sm:$0xf0]  ;;  %v3988_v37 = vld [vmem:[#allocation4 + $0xe0] sm:$0xf]  ;;  %v3900_v12 = vld [vmem:[#allocation4 + $0x30] sm:$0xf] }
 0x10a   :  { %2091 = vmatpush.bf16.msrb.mxu1 %v3553_v22  ;;  %v3377_v22 = vor.u32 %v4331_v17, %v3374_v2  ;;  %v3972_v2 = vld [vmem:[#allocation4 + $0xc0] sm:$0xf] }
 0x10b   :  { %2105 = vmatpush.bf16.msrb.mxu2 %v3681_v23  ;;  %v3996_v23 = vld [vmem:[#allocation4 + $0xf0] sm:$0xf]  ;;  %v1707_v48 = vadd.f32 %v4811_v49, %v1693_v21  ;;  %v4036_v15 = vld [vmem:[#allocation4 + $0x140] sm:$0xf] }
 0x10c   :  { %2119 = vmatpush.bf16.msrb.mxu3 %v3809_v27  ;;  %v3505_v27 = vor.u32 %v4363_v4, %v3502_v5  ;;  %v3997_v36 = vor.u32 %v4489_v24, %v3996_v23  ;;  %v3980_v49 = vld [vmem:[#allocation4 + $0xd0] sm:$0xf]  ;;  %v1845_v5 = vadd.f32 %v1844_v29, %v1831_v60  ;;  %v3892_v24 = vld [vmem:[#allocation4 + $0x20] sm:$0xf] }
 0x10d   :  { %2078 = vmatpush.bf16.msrb.mxu0 %v3409_v40  ;;  %v1804_v40 = vpop.f32.mrf.mxu0  ;;  %v1721_v59 = vadd.f32 %v4813_v14, %v1707_v48  ;;  %v3981_v17 = vor.u32 %v4485_v1, %v3980_v49  ;;  %v4060_v29 = vld [vmem:[#allocation4 + $0x170] sm:$0xf]  ;;  %v4461_v48 = vld [vmem:[#allocation4 + $0x14] sm:$0xf0]  ;;  %v3876_v49 = vld [vmem:[#allocation4] sm:$0xf] }
 0x10e   :  { %2092 = vmatpush.bf16.msrb.mxu1 %v3537_v42  ;;  %v3924_v42 = vld [vmem:[#allocation4 + $0x60] sm:$0xf]  ;;  %v4459_v1 = vld [vmem:[#allocation4 + $0x4] sm:$0xf0] }
 0x10f   :  { %2106 = vmatpush.bf16.msrb.mxu2 %v3665_v46  ;;  %v4487_v46 = vld [vmem:[#allocation4 + $0xe4] sm:$0xf0]  ;;  %v3925_v9 = vor.u32 %v4471_v45, %v3924_v42  ;;  %v1735_v4 = vadd.f32 %v4815_v18, %v1721_v59  ;;  %v3901_v18 = vor.u32 %v4465_v13, %v3900_v12  ;;  %v3893_v42 = vor.u32 %v4463_v25, %v3892_v24  ;;  %v3926_v13 = vld [vmem:[#allocation4 + $0x68] sm:$0xf0] }
 0x110   :  { %2120 = vmatpush.bf16.msrb.mxu3 %v3793_v53  ;;  %v1805_v53 = vadd.f32 %v1804_v40, %v354_v61  ;;  %v3989_v54 = vor.u32 %v4487_v46, %v3988_v37  ;;  %v4061_v40 = vor.u32 %v4505_v31, %v4060_v29  ;;  %v4468_v29 = vld [vmem:[#allocation4 + $0x54] sm:$0xf]  ;;  %v3918_v31 = vld [vmem:[#allocation4 + $0x58] sm:$0xf0] }
 0x111   :  { %2079 = vmatpush.bf16.msrb.mxu0 %v3393_v58  ;;  %v3917_v58 = vor.u32 %v4469_v56, %v3916_v55  ;;  %v1749_v19 = vadd.f32 %v4829_v0, %v1735_v4  ;;  %v3998_v4 = vld [vmem:[#allocation4 + $0xf8] sm:$0xf0] }
 0x112   :  { %2093 = vmatpush.bf16.msrb.mxu1 %v3521_v63  ;;  %v1819_v61 = vadd.f32 %v1818_v50, %v1805_v53  ;;  %v1846_v63 = vpop.f32.mrf.mxu3  ;;  %v3884_v50 = vld [vmem:[#allocation4 + $0x10] sm:$0xf]  ;;  %v4503_v53 = vld [vmem:[#allocation4 + $0x164] sm:$0xf0] }
 0x113   :  { %2107 = vmatpush.bf16.msrb.mxu2 %v3649_v10  ;;  %v3908_v10 = vld [vmem:[#allocation4 + $0x40] sm:$0xf] }
 0x114   :  { %2121 = vmatpush.bf16.msrb.mxu3 %v3777_v7 }
 0x115   :  { %2080 = vmatpush.bf16.msrb.mxu0 %v3377_v22  ;;  %v1858_v14 = vpop.f32.mrf.mxu0  ;;  %v1761_v22 = vadd.f32 %v4819_v33, %v1747_v6 }
 0x116   :  { %2094 = vmatpush.bf16.msrb.mxu1 %v3505_v27  ;;  %v1872_v32 = vpop.f32.mrf.mxu1  ;;  %v1859_v21 = vadd.f32 %v1858_v14, %v1845_v5 }
 0x117   :  { %2108 = vmatpush.bf16.msrb.mxu2 %v3633_v3  ;;  %v4479_v3 = vld [vmem:[#allocation4 + $0xa4] sm:$0xf0]  ;;  %v1775_v33 = vadd.f32 %v4825_v57, %v1761_v22  ;;  %v3885_v57 = vor.u32 %v4461_v48, %v3884_v50  ;;  %v4486_v22 = vld [vmem:[#allocation4 + $0xe4] sm:$0xf]  ;;  %v3974_v48 = vld [vmem:[#allocation4 + $0xc8] sm:$0xf0] }
 0x118   :  { %2122 = vmatpush.bf16.msrb.mxu3 %v3761_v34  ;;  %2081 = vmatmul.bf16.vlgmr.msrb.gmra.mxu0 %v4773_v39  ;;  %v1832_v39 = vpop.f32.mrf.mxu2  ;;  %v1763_v34 = vadd.f32 %v4831_v8, %v1749_v19  ;;  %v3957_v46 = vor.u32 %v4479_v3, %v3956_v26  ;;  %v4052_v8 = vld [vmem:[#allocation4 + $0x160] sm:$0xf]  ;;  %v4028_v26 = vld [vmem:[#allocation4 + $0x130] sm:$0xf]  ;;  %v4482_v50 = vld [vmem:[#allocation4 + $0xc4] sm:$0xf] }
 0x119   :  { %2531 = vmatpush.bf16.msra.mxu0 %v3933_v35  ;;  %2095 = vmatmul.bf16.vlgmr.msrb.gmra.mxu1 %v4777_v44  ;;  %v4467_v44 = vld [vmem:[#allocation4 + $0x44] sm:$0xf0]  ;;  %v1833_v7 = vadd.f32 %v1832_v39, %v1819_v61  ;;  %v1873_v35 = vadd.f32 %v1872_v32, %v1859_v21  ;;  %v4053_v55 = vor.u32 %v4503_v53, %v4052_v8  ;;  %v4472_v39 = vld [vmem:[#allocation4 + $0x74] sm:$0xf]  ;;  %v3902_v8 = vld [vmem:[#allocation4 + $0x38] sm:$0xf0] }
 0x11a   :  { %2545 = vmatpush.bf16.msra.mxu1 %v3997_v36  ;;  %2109 = vmatmul.bf16.vlgmr.msrb.gmra.mxu2 %v4775_v43  ;;  %v4483_v43 = vld [vmem:[#allocation4 + $0xc4] sm:$0xf0]  ;;  %v1777_v45 = vadd.f32 %v4839_v38, %v1763_v34  ;;  %v1789_v56 = vadd.f32 %v4827_v62, %v1775_v33  ;;  %v4484_v34 = vld [vmem:[#allocation4 + $0xd4] sm:$0xf]  ;;  %v3921_v33 = vor.u32 %v4468_v29, %v3918_v31  ;;  %v4012_v53 = vld [vmem:[#allocation4 + $0x110] sm:$0xf] }
 0x11b   :  { %2123 = vmatmul.bf16.vlgmr.msrb.gmra.mxu3 %v4779_v47  ;;  %v3909_v47 = vor.u32 %v4467_v44, %v3908_v10  ;;  %v3973_v11 = vor.u32 %v4483_v43, %v3972_v2  ;;  %v1847_v23 = vadd.f32 %v1846_v63, %v1833_v7  ;;  %2559 = vmatpush.bf16.msra.mxu2 %v4061_v40  ;;  %v4044_v63 = vld [vmem:[#allocation4 + $0x150] sm:$0xf]  ;;  %v4501_v10 = vld [vmem:[#allocation4 + $0x154] sm:$0xf0]  ;;  %v4488_v43 = vld [vmem:[#allocation4 + $0xf4] sm:$0xf] }
 0x11c   :  { %v1791_v38 = vadd.f32 %v4841_v41, %v1777_v45  ;;  %v4045_v5 = vor.u32 %v4501_v10, %v4044_v63  ;;  %v2129_v14 = vmax.f32 %v1789_v56, 0.0  ;;  %v3877_v41 = vor.u32 %v4459_v1, %v3876_v49  ;;  %v4495_v40 = vld [vmem:[#allocation4 + $0x124] sm:$0xf0]  ;;  %v4466_v45 = vld [vmem:[#allocation4 + $0x44] sm:$0xf] }
 0x11d   :  { %2532 = vmatpush.bf16.msra.mxu0 %v3925_v9  ;;  %v1860_v36 = vpop.f32.mrf.mxu0  ;;  %v4477_v9 = vld [vmem:[#allocation4 + $0x94] sm:$0xf0]  ;;  %v4001_v12 = vor.u32 %v4488_v43, %v3998_v4  ;;  %v3966_v56 = vld [vmem:[#allocation4 + $0xb8] sm:$0xf0]  ;;  %v4462_v1 = vld [vmem:[#allocation4 + $0x24] sm:$0xf] }
 0x11e   :  { %2546 = vmatpush.bf16.msra.mxu1 %v3989_v54  ;;  %v1900_v0 = vpop.f32.mrf.mxu3  ;;  %v1861_v37 = vadd.f32 %v1860_v36, %v1847_v23  ;;  %v1874_v52 = vpop.f32.mrf.mxu1  ;;  %v3949_v60 = vor.u32 %v4477_v9, %v3948_v51  ;;  %v2133_v6 = vmax.f32 %v1791_v38, 0.0  ;;  %v4037_v23 = vor.u32 %v4499_v16, %v4036_v15  ;;  %v3982_v36 = vld [vmem:[#allocation4 + $0xd8] sm:$0xf0]  ;;  %v3894_v38 = vld [vmem:[#allocation4 + $0x28] sm:$0xf0] }
 0x11f   :  { %2560 = vmatpush.bf16.msra.mxu2 %v4053_v55  ;;  %v3977_v9 = vor.u32 %v4482_v50, %v3974_v48  ;;  %v4480_v55 = vld [vmem:[#allocation4 + $0xb4] sm:$0xf]  ;;  %v4062_v63 = vld [vmem:[#allocation4 + $0x178] sm:$0xf0]  ;;  %v3878_v15 = vld [vmem:[#allocation4 + $0x8] sm:$0xf0] }
 0x120   :  { %v1886_v27 = vpop.f32.mrf.mxu2  ;;  %v1875_v59 = vadd.f32 %v1874_v52, %v1861_v37  ;;  %v3910_v37 = vld [vmem:[#allocation4 + $0x48] sm:$0xf0]  ;;  %v4464_v52 = vld [vmem:[#allocation4 + $0x34] sm:$0xf]  ;;  %v3886_v43 = vld [vmem:[#allocation4 + $0x18] sm:$0xf0] }
 0x121   :  { %2533 = vmatpush.bf16.msra.mxu0 %v3917_v58  ;;  %v1887_v54 = vadd.f32 %v1886_v27, %v1873_v35  ;;  %v4475_v58 = vld [vmem:[#allocation4 + $0x84] sm:$0xf0]  ;;  %v4497_v27 = vld [vmem:[#allocation4 + $0x134] sm:$0xf0]  ;;  %v3913_v51 = vor.u32 %v4466_v45, %v3910_v37  ;;  %v3905_v49 = vor.u32 %v4464_v52, %v3902_v8  ;;  %v4476_v4 = vld [vmem:[#allocation4 + $0x94] sm:$0xf] }
 0x122   :  { %2547 = vmatpush.bf16.msra.mxu1 %v3981_v17  ;;  %v3934_v17 = vld [vmem:[#allocation4 + $0x78] sm:$0xf0]  ;;  %v3941_v32 = vor.u32 %v4475_v58, %v3940_v30  ;;  %v4029_v35 = vor.u32 %v4497_v27, %v4028_v26  ;;  %v4004_v30 = vld [vmem:[#allocation4 + $0x100] sm:$0xf]  ;;  %v4491_v58 = vld [vmem:[#allocation4 + $0x104] sm:$0xf0] }
 0x123   :  { %v1901_v44 = vadd.f32 %v1900_v0, %v1887_v54  ;;  %v3937_v7 = vor.u32 %v4472_v39, %v3934_v17  ;;  %2561 = vmatpush.bf16.msra.mxu2 %v4045_v5  ;;  %v4020_v0 = vld [vmem:[#allocation4 + $0x120] sm:$0xf]  ;;  %v4493_v54 = vld [vmem:[#allocation4 + $0x114] sm:$0xf0]  ;;  %v3958_v39 = vld [vmem:[#allocation4 + $0xa8] sm:$0xf0] }
 0x124   :  { %v4504_v17 = vld [vmem:[#allocation4 + $0x174] sm:$0xf]  ;;  %v4474_v16 = vld [vmem:[#allocation4 + $0x84] sm:$0xf]  ;;  %v4038_v31 = vld [vmem:[#allocation4 + $0x148] sm:$0xf0] }
 0x125   :  { %2534 = vmatpush.bf16.msra.mxu0 %v3909_v47  ;;  %v2130_v19 = vmax.f32 %v1901_v44, 0.0  ;;  %v4065_v10 = vor.u32 %v4504_v17, %v4062_v63  ;;  %v3897_v44 = vor.u32 %v4462_v1, %v3894_v38  ;;  %v4498_v29 = vld [vmem:[#allocation4 + $0x144] sm:$0xf]  ;;  %v4022_v37 = vld [vmem:[#allocation4 + $0x128] sm:$0xf0] }
 0x126   :  { %2548 = vmatpush.bf16.msra.mxu1 %v3973_v11  ;;  %v1902_v62 = vpop.f32.mrf.mxu3  ;;  %v4470_v11 = vld [vmem:[#allocation4 + $0x64] sm:$0xf]  ;;  %v4492_v52 = vld [vmem:[#allocation4 + $0x114] sm:$0xf]  ;;  %v4006_v1 = vld [vmem:[#allocation4 + $0x108] sm:$0xf0] }
 0x127   :  { %v3929_v25 = vor.u32 %v4470_v11, %v3926_v13  ;;  %2562 = vmatpush.bf16.msra.mxu2 %v4037_v23  ;;  %v4458_v13 = vld [vmem:[#allocation4 + $0x4] sm:$0xf]  ;;  %v4521_v38 = vld [vmem:[#allocation4 + $0x1f4] sm:$0xf0] }
 0x128   :  { %v1888_v61 = vpop.f32.mrf.mxu2  ;;  %v3881_v23 = vor.u32 %v4458_v13, %v3878_v15  ;;  %v4494_v45 = vld [vmem:[#allocation4 + $0x124] sm:$0xf] }
 0x129   :  { %2535 = vmatpush.bf16.msra.mxu0 %v3901_v18  ;;  %v1889_v2 = vadd.f32 %v1888_v61, %v1875_v59  ;;  %v3990_v18 = vld [vmem:[#allocation4 + $0xe8] sm:$0xf0]  ;;  %v3969_v59 = vor.u32 %v4480_v55, %v3966_v56  ;;  %v4005_v61 = vor.u32 %v4491_v58, %v4004_v30  ;;  %v4025_v48 = vor.u32 %v4494_v45, %v4022_v37  ;;  %v4518_v45 = vld [vmem:[#allocation4 + $0x1e4] sm:$0xf] }
 0x12a   :  { %2549 = vmatpush.bf16.msra.mxu1 %v3965_v28  ;;  %v4864_v28 = vpack.c.bf16 %v2133_v6, %v2129_v14  ;;  %v3993_v3 = vor.u32 %v4486_v22, %v3990_v18  ;;  %v3950_v14 = vld [vmem:[#allocation4 + $0x98] sm:$0xf0]  ;;  %v4054_v6 = vld [vmem:[#allocation4 + $0x168] sm:$0xf0] }
 0x12b   :  { %v1903_v47 = vadd.f32 %v1902_v62, %v1889_v2  ;;  %2563 = vmatpush.bf16.msra.mxu2 %v4029_v35  ;;  %v4460_v62 = vld [vmem:[#allocation4 + $0x14] sm:$0xf]  ;;  %v4046_v22 = vld [vmem:[#allocation4 + $0x158] sm:$0xf0]  ;;  %v4118_v37 = vld [vmem:[#allocation4 + $0x1e8] sm:$0xf0] }
 0x12c   :  { %v3889_v11 = vor.u32 %v4460_v62, %v3886_v43  ;;  %v4517_v43 = vld [vmem:[#allocation4 + $0x1d4] sm:$0xf0] }
 0x12d   :  { %2536 = vmatpush.bf16.msra.mxu0 %v3893_v42  ;;  %v2134_v21 = vmax.f32 %v1903_v47, 0.0  ;;  %v3985_v42 = vor.u32 %v4484_v34, %v3982_v36  ;;  %v4041_v34 = vor.u32 %v4498_v29, %v4038_v31  ;;  %v4076_v29 = vld [vmem:[#allocation4 + $0x190] sm:$0xf]  ;;  %v4509_v31 = vld [vmem:[#allocation4 + $0x194] sm:$0xf0] }
 0x12e   :  { %2550 = vmatpush.bf16.msra.mxu1 %v3957_v46  ;;  %v4021_v46 = vor.u32 %v4495_v40, %v4020_v0  ;;  %v4496_v40 = vld [vmem:[#allocation4 + $0x134] sm:$0xf] }
 0x12f   :  { %v4866_v24 = vpack.c.bf16 %v2134_v21, %v2130_v19  ;;  %v3942_v19 = vld [vmem:[#allocation4 + $0x88] sm:$0xf0]  ;;  %v4500_v21 = vld [vmem:[#allocation4 + $0x154] sm:$0xf] }
 0x130   :  { %2564 = vmatpush.bf16.msra.mxu2 %v4021_v46  ;;  %v4049_v18 = vor.u32 %v4500_v21, %v4046_v22 }
 0x131   :  { %2537 = vmatpush.bf16.msra.mxu0 %v3885_v57  ;;  %v4013_v57 = vor.u32 %v4493_v54, %v4012_v53 }
 0x132   :  { %2551 = vmatpush.bf16.msra.mxu1 %v3949_v60  ;;  %v4478_v60 = vld [vmem:[#allocation4 + $0xa4] sm:$0xf] }
 0x133   :  { %v3961_v2 = vor.u32 %v4478_v60, %v3958_v39 }
 0x134   :  { %2565 = vmatpush.bf16.msra.mxu2 %v4013_v57  ;;  %v4124_v57 = vld [vmem:[#allocation4 + $0x1f0] sm:$0xf] }
 0x135   :  { %2538 = vmatpush.bf16.msra.mxu0 %v3877_v41  ;;  %v1914_v5 = vpop.f32.mrf.mxu0  ;;  %v4502_v41 = vld [vmem:[#allocation4 + $0x164] sm:$0xf] }
 0x136   :  { %2552 = vmatpush.bf16.msra.mxu1 %v3941_v32  ;;  %v1928_v47 = vpop.f32.mrf.mxu1  ;;  %v4057_v32 = vor.u32 %v4502_v41, %v4054_v6  ;;  %v4100_v6 = vld [vmem:[#allocation4 + $0x1c0] sm:$0xf] }
 0x138   :  { %2539 = vmatmul.bf16.vlgmr.msra.gmra.mxu0 %v4864_v28  ;;  %2566 = vmatpush.bf16.msra.mxu2 %v4005_v61 }
 0x139   :  { %2587 = vmatpush.bf16.msrb.mxu0 %v3937_v7  ;;  %2553 = vmatmul.bf16.vlgmr.msra.gmra.mxu1 %v4866_v24  ;;  %v355_v7 = vperm.slane %v4836_v20, 2 }
 0x13a   :  { %2601 = vmatpush.bf16.msrb.mxu1 %v4001_v12  ;;  %v3953_v12 = vor.u32 %v4476_v4, %v3950_v14 }
 0x13b   :  { %v1915_v27 = vadd.f32 %v1914_v5, %v355_v7 }
 0x13c   :  { %2615 = vmatpush.bf16.msrb.mxu2 %v4065_v10  ;;  %v4116_v10 = vld [vmem:[#allocation4 + $0x1e0] sm:$0xf] }
 0x13d   :  { %2588 = vmatpush.bf16.msrb.mxu0 %v3929_v25  ;;  %v3945_v25 = vor.u32 %v4474_v16, %v3942_v19  ;;  %v1942_v26 = vpop.f32.mrf.mxu2  ;;  %v1916_v35 = vpop.f32.mrf.mxu0  ;;  %v1929_v0 = vadd.f32 %v1928_v47, %v1915_v27  ;;  %v4515_v47 = vld [vmem:[#allocation4 + $0x1c4] sm:$0xf0]  ;;  %v4092_v16 = vld [vmem:[#allocation4 + $0x1b0] sm:$0xf]  ;;  %v4513_v19 = vld [vmem:[#allocation4 + $0x1b4] sm:$0xf0] }
 0x13e   :  { %2602 = vmatpush.bf16.msrb.mxu1 %v3993_v3  ;;  %v1956_v3 = vpop.f32.mrf.mxu3  ;;  %v1930_v36 = vpop.f32.mrf.mxu1  ;;  %v1917_v46 = vadd.f32 %v1916_v35, %v355_v7  ;;  %v4093_v22 = vor.u32 %v4513_v19, %v4092_v16  ;;  %v4068_v35 = vld [vmem:[#allocation4 + $0x180] sm:$0xf] }
 0x13f   :  { %v1943_v50 = vadd.f32 %v1942_v26, %v1929_v0  ;;  %v4511_v26 = vld [vmem:[#allocation4 + $0x1a4] sm:$0xf0] }
 0x140   :  { %2616 = vmatpush.bf16.msrb.mxu2 %v4057_v32  ;;  %v1931_v8 = vadd.f32 %v1930_v36, %v1917_v46  ;;  %v4507_v36 = vld [vmem:[#allocation4 + $0x184] sm:$0xf0]  ;;  %v4121_v46 = vor.u32 %v4518_v45, %v4118_v37  ;;  %v4536_v45 = vld [vmem:[#allocation6 + $0x70] sm:$0xff] }
 0x141   :  { %2589 = vmatpush.bf16.msrb.mxu0 %v3921_v33  ;;  %v4030_v33 = vld [vmem:[#allocation4 + $0x138] sm:$0xf0]  ;;  %v1957_v54 = vadd.f32 %v1956_v3, %v1943_v50  ;;  %v4069_v0 = vor.u32 %v4507_v36, %v4068_v35  ;;  %v4528_v35 = vld [vmem:[#allocation6 + $0x30] sm:$0xff]  ;;  %v4527_v36 = vld [vmem:[#allocation6 + $0x28] sm:$0xff] }
 0x142   :  { %2603 = vmatpush.bf16.msrb.mxu1 %v3985_v42  ;;  %v4033_v42 = vor.u32 %v4496_v40, %v4030_v33  ;;  %v4520_v40 = vld [vmem:[#allocation4 + $0x1f4] sm:$0xf]  ;;  %v4126_v33 = vld [vmem:[#allocation4 + $0x1f8] sm:$0xf0]  ;;  %v4523_v37 = vld [vmem:[#allocation6 + $0x8] sm:$0xff] }
 0x144   :  { %2617 = vmatpush.bf16.msrb.mxu2 %v4049_v18 }
 0x145   :  { %2590 = vmatpush.bf16.msrb.mxu0 %v3913_v51  ;;  %v1944_v51 = vpop.f32.mrf.mxu2 }
 0x146   :  { %2604 = vmatpush.bf16.msrb.mxu1 %v3977_v9  ;;  %v4014_v9 = vld [vmem:[#allocation4 + $0x118] sm:$0xf0]  ;;  %v1958_v53 = vpop.f32.mrf.mxu3 }
 0x147   :  { %v4017_v56 = vor.u32 %v4492_v52, %v4014_v9 }
 0x148   :  { %2618 = vmatpush.bf16.msrb.mxu2 %v4041_v34  ;;  %v4077_v34 = vor.u32 %v4509_v31, %v4076_v29 }
 0x149   :  { %2591 = vmatpush.bf16.msrb.mxu0 %v3905_v49  ;;  %v4490_v49 = vld [vmem:[#allocation4 + $0x104] sm:$0xf] }
 0x14a   :  { %2605 = vmatpush.bf16.msrb.mxu1 %v3969_v59  ;;  %v1945_v59 = vadd.f32 %v1944_v51, %v1931_v8  ;;  %v4009_v30 = vor.u32 %v4490_v49, %v4006_v1  ;;  %v4110_v51 = vld [vmem:[#allocation4 + $0x1d8] sm:$0xf0]  ;;  %v4514_v8 = vld [vmem:[#allocation4 + $0x1c4] sm:$0xf] }
 0x14b   :  { %v4094_v49 = vld [vmem:[#allocation4 + $0x1b8] sm:$0xf0] }
 0x14c   :  { %2619 = vmatpush.bf16.msrb.mxu2 %v4033_v42  ;;  %v1959_v58 = vadd.f32 %v1958_v53, %v1945_v59  ;;  %v4129_v42 = vor.u32 %v4520_v40, %v4126_v33  ;;  %v4102_v53 = vld [vmem:[#allocation4 + $0x1c8] sm:$0xf0]  ;;  %v4525_v40 = vld [vmem:[#allocation6 + $0x18] sm:$0xff] }
 0x14d   :  { %2592 = vmatpush.bf16.msrb.mxu0 %v3897_v44  ;;  %v4519_v44 = vld [vmem:[#allocation4 + $0x1e4] sm:$0xf0]  ;;  %v4537_v33 = vld [vmem:[#allocation6 + $0x78] sm:$0xff] }
 0x14e   :  { %2606 = vmatpush.bf16.msrb.mxu1 %v3961_v2  ;;  %v4108_v2 = vld [vmem:[#allocation4 + $0x1d0] sm:$0xf]  ;;  %v4117_v62 = vor.u32 %v4519_v44, %v4116_v10 }
 0x14f   :  { %v4109_v14 = vor.u32 %v4517_v43, %v4108_v2 }
 0x150   :  { %2620 = vmatpush.bf16.msrb.mxu2 %v4025_v48  ;;  %v4516_v48 = vld [vmem:[#allocation4 + $0x1d4] sm:$0xf] }
 0x151   :  { %2593 = vmatpush.bf16.msrb.mxu0 %v3889_v11  ;;  %v4101_v11 = vor.u32 %v4515_v47, %v4100_v6  ;;  %v4113_v52 = vor.u32 %v4516_v48, %v4110_v51  ;;  %v4534_v48 = vld [vmem:[#allocation6 + $0x60] sm:$0xff]  ;;  %v4533_v51 = vld [vmem:[#allocation6 + $0x58] sm:$0xff] }
 0x152   :  { %2607 = vmatpush.bf16.msrb.mxu1 %v3953_v12 }
 0x154   :  { %2621 = vmatpush.bf16.msrb.mxu2 %v4017_v56 }
 0x155   :  { %2594 = vmatpush.bf16.msrb.mxu0 %v3881_v23  ;;  %v1970_v55 = vpop.f32.mrf.mxu0 }
 0x156   :  { %2608 = vmatpush.bf16.msrb.mxu1 %v3945_v25  ;;  %v1971_v60 = vadd.f32 %v1970_v55, %v1957_v54  ;;  %v4084_v25 = vld [vmem:[#allocation4 + $0x1a0] sm:$0xf]  ;;  %v356_v54 = vperm.slane %v4836_v20, 3  ;;  %v4105_v55 = vor.u32 %v4514_v8, %v4102_v53  ;;  %v4078_v20 = vld [vmem:[#allocation4 + $0x198] sm:$0xf0]  ;;  %v4531_v53 = vld [vmem:[#allocation6 + $0x48] sm:$0xff] }
 0x157   :  { %v4085_v3 = vor.u32 %v4511_v26, %v4084_v25 }
 0x158   :  { %2595 = vmatmul.bf16.vlgmr.msrb.gmra.mxu0 %v4864_v28  ;;  %v1984_v28 = vpop.f32.mrf.mxu1  ;;  %2622 = vmatpush.bf16.msrb.mxu2 %v4009_v30 }
 0x159   :  { %2609 = vmatmul.bf16.vlgmr.msrb.gmra.mxu1 %v4866_v24  ;;  %v4125_v24 = vor.u32 %v4521_v38, %v4124_v57  ;;  %v1985_v61 = vadd.f32 %v1984_v28, %v1971_v60  ;;  %v4512_v28 = vld [vmem:[#allocation4 + $0x1b4] sm:$0xf]  ;;  %v4086_v60 = vld [vmem:[#allocation4 + $0x1a8] sm:$0xf0] }
 0x15a   :  { %v4097_v59 = vor.u32 %v4512_v28, %v4094_v49  ;;  %2795 = vmatpush.bf16.msra.mxu1 %v4537_v33 }
 0x15b   :  { %2573 = vmatpush.bf16.msra.mxu3 %v4125_v24  ;;  %v4510_v24 = vld [vmem:[#allocation4 + $0x1a4] sm:$0xf] }
 0x15c   :  { %v4089_v30 = vor.u32 %v4510_v24, %v4086_v60 }
 0x15d   :  { %v1998_v39 = vpop.f32.mrf.mxu2  ;;  %v1972_v17 = vpop.f32.mrf.mxu0 }
 0x15e   :  { %v2012_v63 = vpop.f32.mrf.mxu3  ;;  %v1973_v4 = vadd.f32 %v1972_v17, %v1959_v58  ;;  %v1999_v41 = vadd.f32 %v1998_v39, %v1985_v61  ;;  %2796 = vmatpush.bf16.msra.mxu1 %v4536_v45 }
 0x15f   :  { %2574 = vmatpush.bf16.msra.mxu3 %v4117_v62 }
 0x160   :  { %v1986_v5 = vpop.f32.mrf.mxu1  ;;  %v2013_v12 = vadd.f32 %v2012_v63, %v1999_v41  ;;  %v4508_v63 = vld [vmem:[#allocation4 + $0x194] sm:$0xf] }
 0x161   :  { %v1987_v32 = vadd.f32 %v1986_v5, %v1973_v4  ;;  %v4081_v43 = vor.u32 %v4508_v63, %v4078_v20  ;;  %v4506_v4 = vld [vmem:[#allocation4 + $0x184] sm:$0xf]  ;;  %v4070_v5 = vld [vmem:[#allocation4 + $0x188] sm:$0xf0] }
 0x162   :  { %v2131_v18 = vmax.f32 %v2013_v12, 0.0 }
 0x163   :  { %2575 = vmatpush.bf16.msra.mxu3 %v4109_v14  ;;  %v4073_v14 = vor.u32 %v4506_v4, %v4070_v5 }
 0x165   :  { %v2000_v7 = vpop.f32.mrf.mxu2 }
 0x166   :  { %v2001_v13 = vadd.f32 %v2000_v7, %v1987_v32  ;;  %v2014_v15 = vpop.f32.mrf.mxu3 }
 0x167   :  { %2576 = vmatpush.bf16.msra.mxu3 %v4101_v11 }
 0x168   :  { %v2015_v21 = vadd.f32 %v2014_v15, %v2001_v13 }
 0x16a   :  { %v2135_v23 = vmax.f32 %v2015_v21, 0.0 }
 0x16b   :  { %2577 = vmatpush.bf16.msra.mxu3 %v4093_v22 }
 0x16c   :  { %v2139_v27 = vpack.c.bf16 %v2135_v23, %v2131_v18 }
 0x16e   :  { %2567 = vmatmul.bf16.vlgmr.msra.gmra.mxu2 %v2139_v27 }
 0x16f   :  { %2578 = vmatpush.bf16.msra.mxu3 %v4085_v3 }
 0x173   :  { %2579 = vmatpush.bf16.msra.mxu3 %v4077_v34  ;;  %v4529_v34 = vld [vmem:[#allocation6 + $0x38] sm:$0xff] }
 0x174   :  { %2781 = vmatpush.bf16.msra.mxu0 %v4529_v34 }
 0x175   :  { %v2026_v50 = vpop.f32.mrf.mxu0 }
 0x176   :  { %v2040_v9 = vpop.f32.mrf.mxu1  ;;  %v2027_v1 = vadd.f32 %v2026_v50, %v356_v54  ;;  %v4522_v50 = vld [vmem:[#allocation6] sm:$0xff] }
 0x177   :  { %2580 = vmatpush.bf16.msra.mxu3 %v4069_v0  ;;  %v4526_v0 = vld [vmem:[#allocation6 + $0x20] sm:$0xff] }
 0x178   :  { %v2041_v39 = vadd.f32 %v2040_v9, %v2027_v1  ;;  %2782 = vmatpush.bf16.msra.mxu0 %v4528_v35  ;;  %v4532_v9 = vld [vmem:[#allocation6 + $0x50] sm:$0xff] }
 0x17b   :  { %2629 = vmatpush.bf16.msrb.mxu3 %v4129_v42  ;;  %v4524_v42 = vld [vmem:[#allocation6 + $0x10] sm:$0xff] }
 0x17c   :  { %2783 = vmatpush.bf16.msra.mxu0 %v4527_v36 }
 0x17d   :  { %v2054_v56 = vpop.f32.mrf.mxu2  ;;  %v2028_v38 = vpop.f32.mrf.mxu0 }
 0x17e   :  { %2623 = vmatmul.bf16.vlgmr.msrb.gmra.mxu2 %v2139_v27  ;;  %v2068_v57 = vpop.f32.mrf.mxu3  ;;  %v2042_v58 = vpop.f32.mrf.mxu1  ;;  %v2029_v61 = vadd.f32 %v2028_v38, %v356_v54  ;;  %v2055_v10 = vadd.f32 %v2054_v56, %v2041_v39  ;;  %v2205_v54 = vld [vmem:[%s4887_s4] sm:$0x3] }
 0x17f   :  { %2630 = vmatpush.bf16.msrb.mxu3 %v4121_v46  ;;  %v4535_v46 = vld [vmem:[#allocation6 + $0x68] sm:$0xff]  ;;  %v2207_v56 = vperm.slane %v2205_v54, 0 }
 0x180   :  { %v2043_v44 = vadd.f32 %v2042_v58, %v2029_v61  ;;  %v2069_v6 = vadd.f32 %v2068_v57, %v2055_v10  ;;  %2784 = vmatpush.bf16.msra.mxu0 %v4526_v0  ;;  %2797 = vmatpush.bf16.msra.mxu1 %v4535_v46  ;;  %v4530_v57 = vld [vmem:[#allocation6 + $0x40] sm:$0xff] }
 0x183   :  { %2631 = vmatpush.bf16.msrb.mxu3 %v4113_v52 }
 0x184   :  { %2785 = vmatpush.bf16.msra.mxu0 %v4525_v40  ;;  %2798 = vmatpush.bf16.msra.mxu1 %v4534_v48 }
 0x185   :  { %v2056_v17 = vpop.f32.mrf.mxu2 }
 0x186   :  { %v2070_v2 = vpop.f32.mrf.mxu3  ;;  %v2057_v47 = vadd.f32 %v2056_v17, %v2043_v44 }
 0x187   :  { %2632 = vmatpush.bf16.msrb.mxu3 %v4105_v55 }
 0x188   :  { %v2071_v11 = vadd.f32 %v2070_v2, %v2057_v47  ;;  %2786 = vmatpush.bf16.msra.mxu0 %v4524_v42  ;;  %2799 = vmatpush.bf16.msra.mxu1 %v4533_v51  ;;  %v2208_v2 = vperm.slane %v2205_v54, 1 }
 0x18b   :  { %2633 = vmatpush.bf16.msrb.mxu3 %v4097_v59 }
 0x18c   :  { %2787 = vmatpush.bf16.msra.mxu0 %v4523_v37  ;;  %2800 = vmatpush.bf16.msra.mxu1 %v4532_v9 }
 0x18f   :  { %2634 = vmatpush.bf16.msrb.mxu3 %v4089_v30 }
 0x190   :  { %2788 = vmatpush.bf16.msra.mxu0 %v4522_v50  ;;  %2801 = vmatpush.bf16.msra.mxu1 %v4531_v53 }
 0x193   :  { %2635 = vmatpush.bf16.msrb.mxu3 %v4081_v43 }
 0x194   :  { %2802 = vmatpush.bf16.msra.mxu1 %v4530_v57 }
 0x195   :  { %v2082_v62 = vpop.f32.mrf.mxu0 }
 0x196   :  { %v2096_v41 = vpop.f32.mrf.mxu1  ;;  %v2083_v32 = vadd.f32 %v2082_v62, %v2069_v6 }
 0x197   :  { %2636 = vmatpush.bf16.msrb.mxu3 %v4073_v14 }
 0x198   :  { %v2097_v15 = vadd.f32 %v2096_v41, %v2083_v32 }
 0x19d   :  { %v2110_v7 = vpop.f32.mrf.mxu2  ;;  %v2084_v13 = vpop.f32.mrf.mxu0 }
 0x19e   :  { %v2124_v12 = vpop.f32.mrf.mxu3  ;;  %v2085_v16 = vadd.f32 %v2084_v13, %v2071_v11  ;;  %v2111_v19 = vadd.f32 %v2110_v7, %v2097_v15  ;;  %v2098_v21 = vpop.f32.mrf.mxu1 }
 0x1a0   :  { %v2099_v22 = vadd.f32 %v2098_v21, %v2085_v16  ;;  %v2125_v23 = vadd.f32 %v2124_v12, %v2111_v19 }
 0x1a2   :  { %v2132_v3 = vmax.f32 %v2125_v23, 0.0 }
 0x1a5   :  { %v2112_v18 = vpop.f32.mrf.mxu2 }
 0x1a6   :  { %v2113_v25 = vadd.f32 %v2112_v18, %v2099_v22  ;;  %v2126_v26 = vpop.f32.mrf.mxu3 }
 0x1a8   :  { %v2127_v27 = vadd.f32 %v2126_v26, %v2113_v25  ;;  %v4548_v25 = vld [vmem:[#allocation7] ss:$0 sm:$0xff] }
 0x1aa   :  { %v2136_v29 = vmax.f32 %v2127_v27, 0.0 }
 0x1ac   :  { %v2140_v31 = vpack.c.bf16 %v2136_v29, %v2132_v3 }
 0x1ae   :  { %2581 = vmatmul.bf16.vlgmr.msra.gmra.mxu3 %v2140_v31 }
 0x1b5   :  { %v2540_v52 = vpop.f32.mrf.mxu0 }
 0x1b6   :  { %v2554_v55 = vpop.f32.mrf.mxu1  ;;  %v2541_v49 = vadd.f32 %v2540_v52, %v2207_v56 }
 0x1b8   :  { %v2555_v60 = vadd.f32 %v2554_v55, %v2541_v49 }
 0x1bd   :  { %v2542_v28 = vpop.f32.mrf.mxu0 }
 0x1be   :  { %2637 = vmatmul.bf16.vlgmr.msrb.gmra.mxu3 %v2140_v31  ;;  %v2543_v59 = vadd.f32 %v2542_v28, %v2207_v56  ;;  %v2556_v24 = vpop.f32.mrf.mxu1 }
 0x1c0   :  { %v2557_v58 = vadd.f32 %v2556_v24, %v2543_v59 }
 0x1d5   :  { %v2596_v30 = vpop.f32.mrf.mxu0 }
 0x1d6   :  { %v2610_v10 = vpop.f32.mrf.mxu1  ;;  %v2597_v14 = vadd.f32 %v2596_v30, %v2208_v2 }
 0x1d8   :  { %v2611_v47 = vadd.f32 %v2610_v10, %v2597_v14 }
 0x1dd   :  { %v2598_v5 = vpop.f32.mrf.mxu0 }
 0x1de   :  { %v2599_v6 = vadd.f32 %v2598_v5, %v2208_v2  ;;  %v2612_v32 = vpop.f32.mrf.mxu1 }
 0x1e0   :  { %v2613_v11 = vadd.f32 %v2612_v32, %v2599_v6 }
 0x1f1   :  { %v2568_v8 = vpop.f32.mrf.mxu2 }
 0x1f2   :  { %v2569_v39 = vadd.f32 %v2568_v8, %v2555_v60 }
 0x1f9   :  { %v2570_v1 = vpop.f32.mrf.mxu2 }
 0x1fa   :  { %v2571_v61 = vadd.f32 %v2570_v1, %v2557_v58 }
 0x201   :  { %v2624_v44 = vpop.f32.mrf.mxu2 }
 0x202   :  { %v2625_v12 = vadd.f32 %v2624_v44, %v2611_v47 }
 0x209   :  { %v2626_v7 = vpop.f32.mrf.mxu2 }
 0x20a   :  { %v2627_v13 = vadd.f32 %v2626_v7, %v2613_v11 }
 0x231   :  { %v2582_v38 = vpop.f32.mrf.mxu3 }
 0x232   :  { %v2583_v17 = vadd.f32 %v2582_v38, %v2569_v39 }
 0x234   :  { %v2643_v62 = vmax.f32 %v2583_v17, 0.0 }
 0x239   :  { %v2584_v63 = vpop.f32.mrf.mxu3 }
 0x23a   :  { %v2585_v20 = vadd.f32 %v2584_v63, %v2571_v61 }
 0x23c   :  { %v2645_v43 = vmax.f32 %v2585_v20, 0.0 }
 0x23e   :  { %v2647_v4 = vpack.c.bf16 %v2645_v43, %v2643_v62 }
 0x240   :  { %2789 = vmatmul.bf16.vlgmr.msra.gmra.mxu0 %v2647_v4 }
 0x241   :  { %v2638_v41 = vpop.f32.mrf.mxu3 }
 0x242   :  { %v2639_v15 = vadd.f32 %v2638_v41, %v2625_v12 }
 0x244   :  { %v2644_v21 = vmax.f32 %v2639_v15, 0.0 }
 0x249   :  { %v2640_v16 = vpop.f32.mrf.mxu3 }
 0x24a   :  { %v2641_v19 = vadd.f32 %v2640_v16, %v2627_v13 }
 0x24c   :  { %v2646_v22 = vmax.f32 %v2641_v19, 0.0 }
 0x24e   :  { %v2648_v18 = vpack.c.bf16 %v2646_v22, %v2644_v21 }
 0x250   :  { %2803 = vmatmul.bf16.vlgmr.msra.gmra.mxu1 %v2648_v18 }
 0x2bd   :  { %v2790_v23 = vpop.f32.mrf.mxu0 }
 0x2be   :  { %v2791_v26 = vadd.f32 %v4548_v25, %v2790_v23 }
 0x2c5   :  { %v2792_v29 = vpop.f32.mrf.mxu0 }
 0x2c6   :  { %v2793_v31 = vadd.f32 %v4548_v25, %v2792_v29 }
 0x2cd   :  { %v2804_v27 = vpop.f32.mrf.mxu1 }
 0x2ce   :  { %v2805_v3 = vadd.f32 %v2804_v27, %v2791_v26 }
 0x2d0   :  { %2809 = vst [vmem:[%s4890_s7] sm:$0xff] %v2805_v3 }
 0x2d5   :  { %v2806_v34 = vpop.f32.mrf.mxu1 }
 0x2d6   :  { %v2807_v35 = vadd.f32 %v2806_v34, %v2793_v31 }
 0x2d8   :  { %2810 = vst [vmem:[%s4890_s7 + $0x8] sm:$0xff] %v2807_v35 }
 0x2d9   :  { %2815 = vsyncpa [#allocation3], 1 }
 0x2da   :  { %2816 = vsyncpa [#allocation5], 1 }
 0x2db   :  { %2817 = vsyncpa [#allocation8], 1 }

</bundles_post_ra>
